<compile_context>
chip_gen: v6e
topology: v6e:2x2x1
jax: 0.10.0
libtpu: 0.0.40
codegen_flags: <defaults>
</compile_context>

<pallas_src>
import functools

import numpy as np
import jax
import jax.numpy as jnp
from jax.experimental import pallas as pl
from jax.experimental.pallas import tpu as pltpu

EPS = 1e-5
CMAX = 8            # channel sublanes carried through the conv stack (max Cout)
FC_HIDDEN = 512     # 500 padded to 512 -> clean 128-lane MXU tiles
FC_OUT = 128        # 5 padded to 128  -> lane-dense final store (slice to 5)
FC_TK_MAX = 4096    # FC1 K-tile (v5e/v6e can go 8192+ w/ vmem_limit; keep
                    # <=8192 on v7x's 64 MiB VMEM)


def _round_up(v, m):
    return ((v + m - 1) // m) * m


def _fc_k_tiling(k_fc):
    tk = FC_TK_MAX if k_fc >= FC_TK_MAX else _round_up(k_fc, 128)
    return tk, _round_up(k_fc, tk)


# =============================================================================
# Kernel 1: fused conv1 -> conv2 -> conv3 (ReflectionPad + Conv3x3 + ReLU + BN)
# =============================================================================
def _make_conv_kernel(n, h, w, P):
    hp, wp = h + 2, w + 2
    cnt = float(n * h * w)                    # BN count (interior lanes only)
    offs = [(dy - 1) * wp + (dx - 1) for dy in range(3) for dx in range(3)]

    def kernel(x_ref, m_ref, w1_ref, p1_ref, w2_ref, p2_ref, w3_ref, p3_ref,
               o_ref, slab_ref):
        m_int = m_ref[0:1, :]     # interior lanes (BN statistics mask)
        m_nlr = m_ref[1:2, :]     # not a left/right padding column
        m_lft = m_ref[2:3, :]
        m_rgt = m_ref[3:4, :]
        m_ntb = m_ref[4:5, :]     # not a top/bottom padding row
        m_top = m_ref[5:6, :]
        m_bot = m_ref[6:7, :]

        def shift(z, off):
            # out[:, p] = z[:, p + off]  (lane rotation, XLU slot, no stores).
            return pltpu.roll(z, (-off) % P, axis=1)

        def reflect_ring(z):
            # ReflectionPad2d(1): rewrite the 1-wide padding ring from interior
            # values (columns first, then rows, so the corners resolve right).
            # Pure register ops + rolls: zero scratch round-trips.
            z = z * m_nlr + shift(z, 2) * m_lft + shift(z, -2) * m_rgt
            z = z * m_ntb + shift(z, 2 * wp) * m_top + shift(z, -2 * wp) * m_bot
            return z

        def conv_relu_bn(z, w_ref, p_ref):
            z = reflect_ring(z)
            # Build the 9-tap im2col slab (72, P) via lane rolls, then contract
            # all taps and channels in ONE (8, 72) @ (72, P) MXU dot.
            for t, off in enumerate(offs):
                slab_ref[pl.ds(t * CMAX, CMAX), :] = (
                    z if off == 0 else shift(z, off))
            acc = jnp.dot(w_ref[...], slab_ref[...],
                          preferred_element_type=jnp.float32)
            acc = jnp.maximum(acc + p_ref[:, 0:1], 0.0)        # bias + ReLU
            # Per-branch BatchNorm (training semantics, biased variance) with
            # one-pass statistics over interior lanes only.
            am = acc * m_int
            mean = jnp.sum(am, axis=1, keepdims=True) / cnt
            ex2 = jnp.sum(am * acc, axis=1, keepdims=True) / cnt
            var = jnp.maximum(ex2 - mean * mean, 0.0)
            return ((acc - mean) * jax.lax.rsqrt(var + EPS) * p_ref[:, 1:2]
                    + p_ref[:, 2:3])

        z = conv_relu_bn(x_ref[...], w1_ref, p1_ref)  # ring fix == input pad
        z = conv_relu_bn(z, w2_ref, p2_ref)
        z = conv_relu_bn(z, w3_ref, p3_ref)
        o_ref[...] = z     # lane-dense store; ring/pad lanes hit zero FC1 rows

    return kernel


def conv_stack(conv_params, masks, xg, n, h, w, P):
    kernel = _make_conv_kernel(n, h, w, P)
    (w1, p1), (w2, p2), (w3, p3) = conv_params

    def wspec():
        return pl.BlockSpec((CMAX, 9 * CMAX), lambda b: (0, 0))

    def pspec():
        return pl.BlockSpec((CMAX, CMAX), lambda b: (0, 0))

    return pl.pallas_call(
        kernel,
        out_shape=jax.ShapeDtypeStruct((2, CMAX, P), jnp.float32),
        grid=(2,),                               # one step per siamese branch
        in_specs=[
            pl.BlockSpec((None, CMAX, P), lambda b: (b, 0, 0)),
            pl.BlockSpec((CMAX, P), lambda b: (0, 0)),
            wspec(), pspec(), wspec(), pspec(), wspec(), pspec(),
        ],
        out_specs=pl.BlockSpec((None, CMAX, P), lambda b: (b, 0, 0)),
        scratch_shapes=[pltpu.VMEM((9 * CMAX, P), jnp.float32)],
        compiler_params=pltpu.CompilerParams(dimension_semantics=("parallel",)),
    )(xg, masks, w1, p1, w2, p2, w3, p3)


# =============================================================================
# Kernel 2: fused MLP head, FC1 K-tiled with a VMEM f32 accumulator.
# =============================================================================
def _mlp_kernel(x_ref, w1_ref, b1_ref, w2_ref, b2_ref, w3_ref, b3_ref,
                o_ref, acc_ref):
    k = pl.program_id(0)

    @pl.when(k == 0)
    def _():
        acc_ref[...] = jnp.zeros_like(acc_ref)

    # x is already bf16 (pre-cast host-side): no per-step cast, half the DMA.
    acc_ref[...] += jnp.dot(x_ref[...], w1_ref[...],
                            preferred_element_type=jnp.float32)

    @pl.when(k == pl.num_programs(0) - 1)
    def _():
        h1 = jnp.maximum(acc_ref[...] + b1_ref[...], 0.0)
        h2 = jnp.dot(h1.astype(jnp.bfloat16), w2_ref[...],
                     preferred_element_type=jnp.float32)
        h2 = jnp.maximum(h2 + b2_ref[...], 0.0)
        out = jnp.dot(h2.astype(jnp.bfloat16), w3_ref[...],
                      preferred_element_type=jnp.float32)
        o_ref[...] = out + b3_ref[...]


def mlp_head(x_fc, fc, tk):
    w1e, b1p, w2p, b2p, w3p, b3p = fc
    m_pad, k_pad = x_fc.shape
    grid_k = k_pad // tk
    flops = 2 * m_pad * (k_pad * FC_HIDDEN + FC_HIDDEN * FC_HIDDEN
                         + FC_HIDDEN * FC_OUT)
    byts = int(x_fc.size * 2 + w1e.size * 2 + w2p.size * 2 + w3p.size * 2
               + (b1p.size + b2p.size + b3p.size) * 4 + m_pad * FC_OUT * 4)
    return pl.pallas_call(
        _mlp_kernel,
        out_shape=jax.ShapeDtypeStruct((m_pad, FC_OUT), jnp.float32),
        grid=(grid_k,),                               # K (reduction) axis last
        in_specs=[
            pl.BlockSpec((m_pad, tk), lambda k: (0, k)),
            pl.BlockSpec((tk, FC_HIDDEN), lambda k: (k, 0)),
            pl.BlockSpec((1, FC_HIDDEN), lambda k: (0, 0)),
            pl.BlockSpec((FC_HIDDEN, FC_HIDDEN), lambda k: (0, 0)),
            pl.BlockSpec((1, FC_HIDDEN), lambda k: (0, 0)),
            pl.BlockSpec((FC_HIDDEN, FC_OUT), lambda k: (0, 0)),
            pl.BlockSpec((1, FC_OUT), lambda k: (0, 0)),
        ],
        out_specs=pl.BlockSpec((m_pad, FC_OUT), lambda k: (0, 0)),
        scratch_shapes=[pltpu.VMEM((m_pad, FC_HIDDEN), jnp.float32)],
        compiler_params=pltpu.CompilerParams(dimension_semantics=("arbitrary",)),
        cost_estimate=pl.CostEstimate(flops=int(flops), transcendentals=0,
                                      bytes_accessed=byts),
    )(x_fc, w1e, b1p, w2p, b2p, w3p, b3p)


# =============================================================================
# Host-side one-time parameter repacking and masks.
# =============================================================================
def _pack_conv(wt, b, gamma, beta):
    cout, cin = wt.shape[0], wt.shape[1]
    # (cout, cin, 3, 3) -> (cout, tap, cin); column index = tap*8 + cin matches
    # the in-kernel im2col slab's sublane order.
    w9 = jnp.transpose(wt, (0, 2, 3, 1)).reshape(cout, 9, cin)
    wpk = jnp.zeros((CMAX, 9, CMAX), jnp.float32).at[:cout, :, :cin].set(w9)
    par = jnp.zeros((CMAX, CMAX), jnp.float32)
    par = par.at[:cout, 0].set(b).at[:cout, 1].set(gamma).at[:cout, 2].set(beta)
    return wpk.reshape(CMAX, 9 * CMAX), par


def prepare_params(raw, h, w):
    """Repack conv weights into (8, 72) tap-major matrices matching the im2col
    slab; permute/zero-pad FC1 rows to the conv kernel's per-image
    (c, y_pad, x_pad) flatten order; pad FC dims 500->512 / 5->128; bf16 FC
    weights (f32 accumulation)."""
    hp, wp = h + 2, w + 2
    conv = tuple(_pack_conv(*raw[name]) for name in ("conv1", "conv2", "conv3"))

    w1, b1, w2, b2, w3, b3 = raw["fc"]
    n_hidden = w1.shape[1]                        # 500
    k_fc = CMAX * hp * wp
    _, k_pad = _fc_k_tiling(k_fc)
    # PyTorch flattens (c, y, x); the conv kernel emits (c, y_pad, x_pad) per
    # image -> pad W1's spatial dims with zero rows for the padding ring.
    w1r = w1.reshape(CMAX, h, w, n_hidden)
    w1r = jnp.pad(w1r, ((0, 0), (1, 1), (1, 1), (0, 0)))
    w1e = jnp.pad(w1r.reshape(k_fc, n_hidden),
                  ((0, k_pad - k_fc), (0, FC_HIDDEN - n_hidden)))
    fc = (
        w1e.astype(jnp.bfloat16),
        jnp.pad(b1, (0, FC_HIDDEN - n_hidden)).reshape(1, FC_HIDDEN),
        jnp.pad(w2, ((0, FC_HIDDEN - w2.shape[0]),
                     (0, FC_HIDDEN - w2.shape[1]))).astype(jnp.bfloat16),
        jnp.pad(b2, (0, FC_HIDDEN - b2.shape[0])).reshape(1, FC_HIDDEN),
        jnp.pad(w3, ((0, FC_HIDDEN - w3.shape[0]),
                     (0, FC_OUT - w3.shape[1]))).astype(jnp.bfloat16),
        jnp.pad(b3, (0, FC_OUT - b3.shape[0])).reshape(1, FC_OUT),
    )
    return {"conv": conv, "fc": fc}


def build_masks(n, h, w):
    hp, wp = h + 2, w + 2
    R = n * hp * wp
    P = _round_up(R, 128)
    y = np.tile(np.repeat(np.arange(hp), wp), n)
    x = np.tile(np.arange(wp), n * hp)
    m_int = ((y >= 1) & (y <= h) & (x >= 1) & (x <= w)).astype(np.float32)
    m_lft = (x == 0).astype(np.float32)
    m_rgt = (x == wp - 1).astype(np.float32)
    m_top = (y == 0).astype(np.float32)
    m_bot = (y == hp - 1).astype(np.float32)
    rows = np.stack([m_int, 1.0 - m_lft - m_rgt, m_lft, m_rgt,
                     1.0 - m_top - m_bot, m_top, m_bot,
                     np.zeros_like(m_int)], axis=0)            # (8, R)
    return jnp.asarray(np.pad(rows, ((0, 0), (0, P - R))), jnp.float32)


# =============================================================================
# SiameseNetwork forward (both branches in one pass; BN stats stay per-branch).
# =============================================================================
def siamese_forward(params, masks, input1, input2, *, n, h, w):
    hp, wp = h + 2, w + 2
    R = n * hp * wp
    P = _round_up(R, 128)

    def to_grid(x):   # (N,1,H,W) -> (8, P): channels on sublanes, space on lanes
        x = x.astype(jnp.float32).reshape(n, h, w)
        x = jnp.pad(x, ((0, 0), (1, 1), (1, 1)))   # ring reflect-fixed in-kernel
        return jnp.pad(x.reshape(1, R), ((0, CMAX - 1), (0, P - R)))

    xg = jnp.stack([to_grid(input1), to_grid(input2)], axis=0)      # (2, 8, P)
    conv_out = conv_stack(params["conv"], masks, xg, n, h, w, P)    # (2, 8, P)

    # Re-layout to per-image FC rows in the (c, y_pad, x_pad) order that W1's
    # rows were permuted to host-side; pre-cast to bf16 (halves activation DMA).
    k_fc = CMAX * hp * wp
    tk, k_pad = _fc_k_tiling(k_fc)
    m_pad = _round_up(2 * n, 8)
    x_fc = conv_out[:, :, :R].reshape(2, CMAX, n, hp * wp)
    x_fc = jnp.transpose(x_fc, (0, 2, 1, 3)).reshape(2 * n, k_fc)
    x_fc = jnp.pad(x_fc, ((0, m_pad - 2 * n), (0, k_pad - k_fc)))
    out = mlp_head(x_fc.astype(jnp.bfloat16), params["fc"], tk)[:2 * n, :5]
    return out[:n], out[n:]


# =============================================================================
# Deterministic synthetic parameters (PyTorch layout) and driver.
# =============================================================================
def init_params(key, h, w):
    ks = jax.random.split(key, 9)

    def conv_block(kw, kb, cin, cout):
        wt = jax.random.normal(kw, (cout, cin, 3, 3), jnp.float32) * 0.1   # OIHW
        b = jax.random.normal(kb, (cout,), jnp.float32) * 0.1
        return (wt, b, jnp.ones((cout,), jnp.float32),
                jnp.zeros((cout,), jnp.float32))

    fc_in = 8 * h * w
    return {
        "conv1": conv_block(ks[0], ks[1], 1, 4),
        "conv2": conv_block(ks[2], ks[3], 4, 8),
        "conv3": conv_block(ks[4], ks[5], 8, 8),
        "fc": (
            jax.random.normal(ks[6], (fc_in, 500), jnp.float32) * 0.02,
            jnp.zeros((500,), jnp.float32),
            jax.random.normal(ks[7], (500, 500), jnp.float32) * 0.02,
            jnp.zeros((500,), jnp.float32),
            jax.random.normal(ks[8], (500, 5), jnp.float32) * 0.02,
            jnp.zeros((5,), jnp.float32),
        ),
    }


if __name__ == "__main__":
    key = jax.random.PRNGKey(0)
    kp, k1, k2 = jax.random.split(key, 3)

    H = W = 16        # scaled-down spatial (original module assumes 100x100)
    N = 2
    raw = init_params(kp, H, W)
    params = prepare_params(raw, H, W)
    masks = build_masks(N, H, W)

    input1 = jax.random.normal(k1, (N, 1, H, W), jnp.float32)
    input2 = jax.random.normal(k2, (N, 1, H, W), jnp.float32)

    fwd = jax.jit(functools.partial(siamese_forward, params, masks,
                                    n=N, h=H, w=W))
    out1, out2 = fwd(input1, input2)
    jax.block_until_ready((out1, out2))

    assert out1.shape == (N, 5) and out2.shape == (N, 5)
    assert bool(jnp.all(jnp.isfinite(out1))) and bool(jnp.all(jnp.isfinite(out2)))
    print("KERNEL_OK")
</pallas_src>

<mosaic_0001>
module attributes {stable_mosaic.version = 11 : i64} {
  func.func @kernel(%arg0: i32, %arg1: memref<1x8x768xf32, #tpu.memory_space<vmem>>, %arg2: memref<8x768xf32, #tpu.memory_space<vmem>>, %arg3: memref<8x72xf32, #tpu.memory_space<vmem>>, %arg4: memref<8x8xf32, #tpu.memory_space<vmem>>, %arg5: memref<8x72xf32, #tpu.memory_space<vmem>>, %arg6: memref<8x8xf32, #tpu.memory_space<vmem>>, %arg7: memref<8x72xf32, #tpu.memory_space<vmem>>, %arg8: memref<8x8xf32, #tpu.memory_space<vmem>>, %arg9: memref<1x8x768xf32, #tpu.memory_space<vmem>>, %arg10: memref<72x768xf32, #tpu.memory_space<vmem>>) attributes {dimension_semantics = [#tpu.dimension_semantics<parallel>], iteration_bounds = array<i64: 2>, scalar_prefetch = 0 : i64, scratch_operands = 1 : i64, tpu.core_type = #tpu.core_type<tc>, window_params = [{transform_indices = @transform_0, window_bounds = array<i64: 1, 8, 768>}, {pipeline_mode = #tpu.pipeline_mode<synchronous>, transform_indices = @transform_1, window_bounds = array<i64: 8, 768>}, {pipeline_mode = #tpu.pipeline_mode<synchronous>, transform_indices = @transform_2, window_bounds = array<i64: 8, 72>}, {pipeline_mode = #tpu.pipeline_mode<synchronous>, transform_indices = @transform_3, window_bounds = array<i64: 8, 8>}, {pipeline_mode = #tpu.pipeline_mode<synchronous>, transform_indices = @transform_4, window_bounds = array<i64: 8, 72>}, {pipeline_mode = #tpu.pipeline_mode<synchronous>, transform_indices = @transform_5, window_bounds = array<i64: 8, 8>}, {pipeline_mode = #tpu.pipeline_mode<synchronous>, transform_indices = @transform_6, window_bounds = array<i64: 8, 72>}, {pipeline_mode = #tpu.pipeline_mode<synchronous>, transform_indices = @transform_7, window_bounds = array<i64: 8, 8>}, {transform_indices = @transform_8, window_bounds = array<i64: 1, 8, 768>}]} {
    %c0 = arith.constant 0 : index
    %c0_0 = arith.constant 0 : index
    %0 = vector.load %arg2[%c0, %c0_0] : memref<8x768xf32, #tpu.memory_space<vmem>>, vector<1x768xf32>
    %c1 = arith.constant 1 : index
    %c0_1 = arith.constant 0 : index
    %1 = vector.load %arg2[%c1, %c0_1] : memref<8x768xf32, #tpu.memory_space<vmem>>, vector<1x768xf32>
    %c2 = arith.constant 2 : index
    %c0_2 = arith.constant 0 : index
    %2 = vector.load %arg2[%c2, %c0_2] : memref<8x768xf32, #tpu.memory_space<vmem>>, vector<1x768xf32>
    %c3 = arith.constant 3 : index
    %c0_3 = arith.constant 0 : index
    %3 = vector.load %arg2[%c3, %c0_3] : memref<8x768xf32, #tpu.memory_space<vmem>>, vector<1x768xf32>
    %c4 = arith.constant 4 : index
    %c0_4 = arith.constant 0 : index
    %4 = vector.load %arg2[%c4, %c0_4] : memref<8x768xf32, #tpu.memory_space<vmem>>, vector<1x768xf32>
    %c5 = arith.constant 5 : index
    %c0_5 = arith.constant 0 : index
    %5 = vector.load %arg2[%c5, %c0_5] : memref<8x768xf32, #tpu.memory_space<vmem>>, vector<1x768xf32>
    %c6 = arith.constant 6 : index
    %c0_6 = arith.constant 0 : index
    %6 = vector.load %arg2[%c6, %c0_6] : memref<8x768xf32, #tpu.memory_space<vmem>>, vector<1x768xf32>
    %c0_7 = arith.constant 0 : index
    %c0_8 = arith.constant 0 : index
    %c0_9 = arith.constant 0 : index
    %7 = vector.load %arg1[%c0_7, %c0_8, %c0_9] : memref<1x8x768xf32, #tpu.memory_space<vmem>>, vector<1x8x768xf32>
    %8 = vector.shape_cast %7 : vector<1x8x768xf32> to vector<8x768xf32>
    %9 = vector.broadcast %1 : vector<1x768xf32> to vector<8x768xf32>
    %10 = arith.mulf %8, %9 : vector<8x768xf32>
    %c766_i32 = arith.constant 766 : i32
    %11 = tpu.dynamic_rotate %8 by %c766_i32 dim 1 : vector<8x768xf32>, i32 -> vector<8x768xf32>
    %12 = vector.broadcast %2 : vector<1x768xf32> to vector<8x768xf32>
    %13 = arith.mulf %11, %12 : vector<8x768xf32>
    %14 = arith.addf %10, %13 : vector<8x768xf32>
    %c2_i32 = arith.constant 2 : i32
    %15 = tpu.dynamic_rotate %8 by %c2_i32 dim 1 : vector<8x768xf32>, i32 -> vector<8x768xf32>
    %16 = vector.broadcast %3 : vector<1x768xf32> to vector<8x768xf32>
    %17 = arith.mulf %15, %16 : vector<8x768xf32>
    %18 = arith.addf %14, %17 : vector<8x768xf32>
    %19 = vector.broadcast %4 : vector<1x768xf32> to vector<8x768xf32>
    %20 = arith.mulf %18, %19 : vector<8x768xf32>
    %c732_i32 = arith.constant 732 : i32
    %21 = tpu.dynamic_rotate %18 by %c732_i32 dim 1 : vector<8x768xf32>, i32 -> vector<8x768xf32>
    %22 = vector.broadcast %5 : vector<1x768xf32> to vector<8x768xf32>
    %23 = arith.mulf %21, %22 : vector<8x768xf32>
    %24 = arith.addf %20, %23 : vector<8x768xf32>
    %c36_i32 = arith.constant 36 : i32
    %25 = tpu.dynamic_rotate %18 by %c36_i32 dim 1 : vector<8x768xf32>, i32 -> vector<8x768xf32>
    %26 = vector.broadcast %6 : vector<1x768xf32> to vector<8x768xf32>
    %27 = arith.mulf %25, %26 : vector<8x768xf32>
    %28 = arith.addf %24, %27 : vector<8x768xf32>
    %c19_i32 = arith.constant 19 : i32
    %29 = tpu.dynamic_rotate %28 by %c19_i32 dim 1 : vector<8x768xf32>, i32 -> vector<8x768xf32>
    %c0_10 = arith.constant 0 : index
    %c0_11 = arith.constant 0 : index
    %30 = vector.load %arg10[%c0_10, %c0_11] : memref<72x768xf32, #tpu.memory_space<vmem>>, vector<8x768xf32>
    tpu.vector_store %arg10[%c0_10, %c0_11], %29 {strides = array<i32>} : memref<72x768xf32, #tpu.memory_space<vmem>>, vector<8x768xf32>,
    %c18_i32 = arith.constant 18 : i32
    %31 = tpu.dynamic_rotate %28 by %c18_i32 dim 1 : vector<8x768xf32>, i32 -> vector<8x768xf32>
    %c8 = arith.constant 8 : index
    %c0_12 = arith.constant 0 : index
    %32 = vector.load %arg10[%c8, %c0_12] : memref<72x768xf32, #tpu.memory_space<vmem>>, vector<8x768xf32>
    tpu.vector_store %arg10[%c8, %c0_12], %31 {strides = array<i32>} : memref<72x768xf32, #tpu.memory_space<vmem>>, vector<8x768xf32>,
    %c17_i32 = arith.constant 17 : i32
    %33 = tpu.dynamic_rotate %28 by %c17_i32 dim 1 : vector<8x768xf32>, i32 -> vector<8x768xf32>
    %c16 = arith.constant 16 : index
    %c0_13 = arith.constant 0 : index
    %34 = vector.load %arg10[%c16, %c0_13] : memref<72x768xf32, #tpu.memory_space<vmem>>, vector<8x768xf32>
    tpu.vector_store %arg10[%c16, %c0_13], %33 {strides = array<i32>} : memref<72x768xf32, #tpu.memory_space<vmem>>, vector<8x768xf32>,
    %c1_i32 = arith.constant 1 : i32
    %35 = tpu.dynamic_rotate %28 by %c1_i32 dim 1 : vector<8x768xf32>, i32 -> vector<8x768xf32>
    %c24 = arith.constant 24 : index
    %c0_14 = arith.constant 0 : index
    %36 = vector.load %arg10[%c24, %c0_14] : memref<72x768xf32, #tpu.memory_space<vmem>>, vector<8x768xf32>
    tpu.vector_store %arg10[%c24, %c0_14], %35 {strides = array<i32>} : memref<72x768xf32, #tpu.memory_space<vmem>>, vector<8x768xf32>,
    %c32 = arith.constant 32 : index
    %c0_15 = arith.constant 0 : index
    %37 = vector.load %arg10[%c32, %c0_15] : memref<72x768xf32, #tpu.memory_space<vmem>>, vector<8x768xf32>
    tpu.vector_store %arg10[%c32, %c0_15], %28 {strides = array<i32>} : memref<72x768xf32, #tpu.memory_space<vmem>>, vector<8x768xf32>,
    %c767_i32 = arith.constant 767 : i32
    %38 = tpu.dynamic_rotate %28 by %c767_i32 dim 1 : vector<8x768xf32>, i32 -> vector<8x768xf32>
    %c40 = arith.constant 40 : index
    %c0_16 = arith.constant 0 : index
    %39 = vector.load %arg10[%c40, %c0_16] : memref<72x768xf32, #tpu.memory_space<vmem>>, vector<8x768xf32>
    tpu.vector_store %arg10[%c40, %c0_16], %38 {strides = array<i32>} : memref<72x768xf32, #tpu.memory_space<vmem>>, vector<8x768xf32>,
    %c751_i32 = arith.constant 751 : i32
    %40 = tpu.dynamic_rotate %28 by %c751_i32 dim 1 : vector<8x768xf32>, i32 -> vector<8x768xf32>
    %c48 = arith.constant 48 : index
    %c0_17 = arith.constant 0 : index
    %41 = vector.load %arg10[%c48, %c0_17] : memref<72x768xf32, #tpu.memory_space<vmem>>, vector<8x768xf32>
    tpu.vector_store %arg10[%c48, %c0_17], %40 {strides = array<i32>} : memref<72x768xf32, #tpu.memory_space<vmem>>, vector<8x768xf32>,
    %c750_i32 = arith.constant 750 : i32
    %42 = tpu.dynamic_rotate %28 by %c750_i32 dim 1 : vector<8x768xf32>, i32 -> vector<8x768xf32>
    %c56 = arith.constant 56 : index
    %c0_18 = arith.constant 0 : index
    %43 = vector.load %arg10[%c56, %c0_18] : memref<72x768xf32, #tpu.memory_space<vmem>>, vector<8x768xf32>
    tpu.vector_store %arg10[%c56, %c0_18], %42 {strides = array<i32>} : memref<72x768xf32, #tpu.memory_space<vmem>>, vector<8x768xf32>,
    %c749_i32 = arith.constant 749 : i32
    %44 = tpu.dynamic_rotate %28 by %c749_i32 dim 1 : vector<8x768xf32>, i32 -> vector<8x768xf32>
    %c64 = arith.constant 64 : index
    %c0_19 = arith.constant 0 : index
    %45 = vector.load %arg10[%c64, %c0_19] : memref<72x768xf32, #tpu.memory_space<vmem>>, vector<8x768xf32>
    tpu.vector_store %arg10[%c64, %c0_19], %44 {strides = array<i32>} : memref<72x768xf32, #tpu.memory_space<vmem>>, vector<8x768xf32>,
    %c0_20 = arith.constant 0 : index
    %c0_21 = arith.constant 0 : index
    %46 = vector.load %arg3[%c0_20, %c0_21] : memref<8x72xf32, #tpu.memory_space<vmem>>, vector<8x72xf32>
    %c0_22 = arith.constant 0 : index
    %c0_23 = arith.constant 0 : index
    %47 = vector.load %arg10[%c0_22, %c0_23] : memref<72x768xf32, #tpu.memory_space<vmem>>, vector<72x768xf32>
    %cst = arith.constant dense<0.000000e+00> : vector<8x768xf32>
    %48 = tpu.matmul %46, %47, %cst {dimension_numbers = #tpu.dot_dimension_numbers<[1], [0], [0], [1], [0, 0, 1, 1], [], []>} : vector<8x72xf32>, vector<72x768xf32>, vector<8x768xf32> -> vector<8x768xf32>
    %c0_24 = arith.constant 0 : index
    %c0_25 = arith.constant 0 : index
    %49 = vector.load %arg4[%c0_24, %c0_25] : memref<8x8xf32, #tpu.memory_space<vmem>>, vector<8x1xf32>
    %50 = vector.broadcast %49 : vector<8x1xf32> to vector<8x768xf32>
    %51 = arith.addf %48, %50 : vector<8x768xf32>
    %cst_26 = arith.constant 0.000000e+00 : f32
    %52 = vector.broadcast %cst_26 : f32 to vector<8x768xf32>
    %53 = arith.maximumf %51, %52 : vector<8x768xf32>
    %54 = vector.broadcast %0 : vector<1x768xf32> to vector<8x768xf32>
    %55 = arith.mulf %53, %54 : vector<8x768xf32>
    %cst_27 = arith.constant dense<0.000000e+00> : vector<8xf32>
    %56 = vector.multi_reduction <add>, %55, %cst_27 [1] : vector<8x768xf32> to vector<8xf32>
    %57 = vector.shape_cast %56 : vector<8xf32> to vector<8x1xf32>
    %cst_28 = arith.constant 5.120000e+02 : f32
    %58 = vector.broadcast %cst_28 : f32 to vector<8x1xf32>
    %59 = arith.divf %57, %58 : vector<8x1xf32>
    %60 = arith.mulf %55, %53 : vector<8x768xf32>
    %cst_29 = arith.constant dense<0.000000e+00> : vector<8xf32>
    %61 = vector.multi_reduction <add>, %60, %cst_29 [1] : vector<8x768xf32> to vector<8xf32>
    %62 = vector.shape_cast %61 : vector<8xf32> to vector<8x1xf32>
    %cst_30 = arith.constant 5.120000e+02 : f32
    %63 = vector.broadcast %cst_30 : f32 to vector<8x1xf32>
    %64 = arith.divf %62, %63 : vector<8x1xf32>
    %65 = arith.mulf %59, %59 : vector<8x1xf32>
    %66 = arith.subf %64, %65 : vector<8x1xf32>
    %cst_31 = arith.constant 0.000000e+00 : f32
    %67 = vector.broadcast %cst_31 : f32 to vector<8x1xf32>
    %68 = arith.maximumf %66, %67 : vector<8x1xf32>
    %69 = vector.broadcast %59 : vector<8x1xf32> to vector<8x768xf32>
    %70 = arith.subf %53, %69 : vector<8x768xf32>
    %cst_32 = arith.constant 9.99999974E-6 : f32
    %71 = vector.broadcast %cst_32 : f32 to vector<8x1xf32>
    %72 = arith.addf %68, %71 : vector<8x1xf32>
    %73 = math.rsqrt %72 : vector<8x1xf32>
    %74 = vector.broadcast %73 : vector<8x1xf32> to vector<8x768xf32>
    %75 = arith.mulf %70, %74 : vector<8x768xf32>
    %c0_33 = arith.constant 0 : index
    %c1_34 = arith.constant 1 : index
    %76 = vector.load %arg4[%c0_33, %c1_34] : memref<8x8xf32, #tpu.memory_space<vmem>>, vector<8x1xf32>
    %77 = vector.broadcast %76 : vector<8x1xf32> to vector<8x768xf32>
    %78 = arith.mulf %75, %77 : vector<8x768xf32>
    %c0_35 = arith.constant 0 : index
    %c2_36 = arith.constant 2 : index
    %79 = vector.load %arg4[%c0_35, %c2_36] : memref<8x8xf32, #tpu.memory_space<vmem>>, vector<8x1xf32>
    %80 = vector.broadcast %79 : vector<8x1xf32> to vector<8x768xf32>
    %81 = arith.addf %78, %80 : vector<8x768xf32>
    %82 = vector.broadcast %1 : vector<1x768xf32> to vector<8x768xf32>
    %83 = arith.mulf %81, %82 : vector<8x768xf32>
    %c766_i32_37 = arith.constant 766 : i32
    %84 = tpu.dynamic_rotate %81 by %c766_i32_37 dim 1 : vector<8x768xf32>, i32 -> vector<8x768xf32>
    %85 = vector.broadcast %2 : vector<1x768xf32> to vector<8x768xf32>
    %86 = arith.mulf %84, %85 : vector<8x768xf32>
    %87 = arith.addf %83, %86 : vector<8x768xf32>
    %c2_i32_38 = arith.constant 2 : i32
    %88 = tpu.dynamic_rotate %81 by %c2_i32_38 dim 1 : vector<8x768xf32>, i32 -> vector<8x768xf32>
    %89 = vector.broadcast %3 : vector<1x768xf32> to vector<8x768xf32>
    %90 = arith.mulf %88, %89 : vector<8x768xf32>
    %91 = arith.addf %87, %90 : vector<8x768xf32>
    %92 = vector.broadcast %4 : vector<1x768xf32> to vector<8x768xf32>
    %93 = arith.mulf %91, %92 : vector<8x768xf32>
    %c732_i32_39 = arith.constant 732 : i32
    %94 = tpu.dynamic_rotate %91 by %c732_i32_39 dim 1 : vector<8x768xf32>, i32 -> vector<8x768xf32>
    %95 = vector.broadcast %5 : vector<1x768xf32> to vector<8x768xf32>
    %96 = arith.mulf %94, %95 : vector<8x768xf32>
    %97 = arith.addf %93, %96 : vector<8x768xf32>
    %c36_i32_40 = arith.constant 36 : i32
    %98 = tpu.dynamic_rotate %91 by %c36_i32_40 dim 1 : vector<8x768xf32>, i32 -> vector<8x768xf32>
    %99 = vector.broadcast %6 : vector<1x768xf32> to vector<8x768xf32>
    %100 = arith.mulf %98, %99 : vector<8x768xf32>
    %101 = arith.addf %97, %100 : vector<8x768xf32>
    %c19_i32_41 = arith.constant 19 : i32
    %102 = tpu.dynamic_rotate %101 by %c19_i32_41 dim 1 : vector<8x768xf32>, i32 -> vector<8x768xf32>
    %c0_42 = arith.constant 0 : index
    %c0_43 = arith.constant 0 : index
    %103 = vector.load %arg10[%c0_42, %c0_43] : memref<72x768xf32, #tpu.memory_space<vmem>>, vector<8x768xf32>
    tpu.vector_store %arg10[%c0_42, %c0_43], %102 {strides = array<i32>} : memref<72x768xf32, #tpu.memory_space<vmem>>, vector<8x768xf32>,
    %c18_i32_44 = arith.constant 18 : i32
    %104 = tpu.dynamic_rotate %101 by %c18_i32_44 dim 1 : vector<8x768xf32>, i32 -> vector<8x768xf32>
    %c8_45 = arith.constant 8 : index
    %c0_46 = arith.constant 0 : index
    %105 = vector.load %arg10[%c8_45, %c0_46] : memref<72x768xf32, #tpu.memory_space<vmem>>, vector<8x768xf32>
    tpu.vector_store %arg10[%c8_45, %c0_46], %104 {strides = array<i32>} : memref<72x768xf32, #tpu.memory_space<vmem>>, vector<8x768xf32>,
    %c17_i32_47 = arith.constant 17 : i32
    %106 = tpu.dynamic_rotate %101 by %c17_i32_47 dim 1 : vector<8x768xf32>, i32 -> vector<8x768xf32>
    %c16_48 = arith.constant 16 : index
    %c0_49 = arith.constant 0 : index
    %107 = vector.load %arg10[%c16_48, %c0_49] : memref<72x768xf32, #tpu.memory_space<vmem>>, vector<8x768xf32>
    tpu.vector_store %arg10[%c16_48, %c0_49], %106 {strides = array<i32>} : memref<72x768xf32, #tpu.memory_space<vmem>>, vector<8x768xf32>,
    %c1_i32_50 = arith.constant 1 : i32
    %108 = tpu.dynamic_rotate %101 by %c1_i32_50 dim 1 : vector<8x768xf32>, i32 -> vector<8x768xf32>
    %c24_51 = arith.constant 24 : index
    %c0_52 = arith.constant 0 : index
    %109 = vector.load %arg10[%c24_51, %c0_52] : memref<72x768xf32, #tpu.memory_space<vmem>>, vector<8x768xf32>
    tpu.vector_store %arg10[%c24_51, %c0_52], %108 {strides = array<i32>} : memref<72x768xf32, #tpu.memory_space<vmem>>, vector<8x768xf32>,
    %c32_53 = arith.constant 32 : index
    %c0_54 = arith.constant 0 : index
    %110 = vector.load %arg10[%c32_53, %c0_54] : memref<72x768xf32, #tpu.memory_space<vmem>>, vector<8x768xf32>
    tpu.vector_store %arg10[%c32_53, %c0_54], %101 {strides = array<i32>} : memref<72x768xf32, #tpu.memory_space<vmem>>, vector<8x768xf32>,
    %c767_i32_55 = arith.constant 767 : i32
    %111 = tpu.dynamic_rotate %101 by %c767_i32_55 dim 1 : vector<8x768xf32>, i32 -> vector<8x768xf32>
    %c40_56 = arith.constant 40 : index
    %c0_57 = arith.constant 0 : index
    %112 = vector.load %arg10[%c40_56, %c0_57] : memref<72x768xf32, #tpu.memory_space<vmem>>, vector<8x768xf32>
    tpu.vector_store %arg10[%c40_56, %c0_57], %111 {strides = array<i32>} : memref<72x768xf32, #tpu.memory_space<vmem>>, vector<8x768xf32>,
    %c751_i32_58 = arith.constant 751 : i32
    %113 = tpu.dynamic_rotate %101 by %c751_i32_58 dim 1 : vector<8x768xf32>, i32 -> vector<8x768xf32>
    %c48_59 = arith.constant 48 : index
    %c0_60 = arith.constant 0 : index
    %114 = vector.load %arg10[%c48_59, %c0_60] : memref<72x768xf32, #tpu.memory_space<vmem>>, vector<8x768xf32>
    tpu.vector_store %arg10[%c48_59, %c0_60], %113 {strides = array<i32>} : memref<72x768xf32, #tpu.memory_space<vmem>>, vector<8x768xf32>,
    %c750_i32_61 = arith.constant 750 : i32
    %115 = tpu.dynamic_rotate %101 by %c750_i32_61 dim 1 : vector<8x768xf32>, i32 -> vector<8x768xf32>
    %c56_62 = arith.constant 56 : index
    %c0_63 = arith.constant 0 : index
    %116 = vector.load %arg10[%c56_62, %c0_63] : memref<72x768xf32, #tpu.memory_space<vmem>>, vector<8x768xf32>
    tpu.vector_store %arg10[%c56_62, %c0_63], %115 {strides = array<i32>} : memref<72x768xf32, #tpu.memory_space<vmem>>, vector<8x768xf32>,
    %c749_i32_64 = arith.constant 749 : i32
    %117 = tpu.dynamic_rotate %101 by %c749_i32_64 dim 1 : vector<8x768xf32>, i32 -> vector<8x768xf32>
    %c64_65 = arith.constant 64 : index
    %c0_66 = arith.constant 0 : index
    %118 = vector.load %arg10[%c64_65, %c0_66] : memref<72x768xf32, #tpu.memory_space<vmem>>, vector<8x768xf32>
    tpu.vector_store %arg10[%c64_65, %c0_66], %117 {strides = array<i32>} : memref<72x768xf32, #tpu.memory_space<vmem>>, vector<8x768xf32>,
    %c0_67 = arith.constant 0 : index
    %c0_68 = arith.constant 0 : index
    %119 = vector.load %arg5[%c0_67, %c0_68] : memref<8x72xf32, #tpu.memory_space<vmem>>, vector<8x72xf32>
    %c0_69 = arith.constant 0 : index
    %c0_70 = arith.constant 0 : index
    %120 = vector.load %arg10[%c0_69, %c0_70] : memref<72x768xf32, #tpu.memory_space<vmem>>, vector<72x768xf32>
    %cst_71 = arith.constant dense<0.000000e+00> : vector<8x768xf32>
    %121 = tpu.matmul %119, %120, %cst_71 {dimension_numbers = #tpu.dot_dimension_numbers<[1], [0], [0], [1], [0, 0, 1, 1], [], []>} : vector<8x72xf32>, vector<72x768xf32>, vector<8x768xf32> -> vector<8x768xf32>
    %c0_72 = arith.constant 0 : index
    %c0_73 = arith.constant 0 : index
    %122 = vector.load %arg6[%c0_72, %c0_73] : memref<8x8xf32, #tpu.memory_space<vmem>>, vector<8x1xf32>
    %123 = vector.broadcast %122 : vector<8x1xf32> to vector<8x768xf32>
    %124 = arith.addf %121, %123 : vector<8x768xf32>
    %cst_74 = arith.constant 0.000000e+00 : f32
    %125 = vector.broadcast %cst_74 : f32 to vector<8x768xf32>
    %126 = arith.maximumf %124, %125 : vector<8x768xf32>
    %127 = vector.broadcast %0 : vector<1x768xf32> to vector<8x768xf32>
    %128 = arith.mulf %126, %127 : vector<8x768xf32>
    %cst_75 = arith.constant dense<0.000000e+00> : vector<8xf32>
    %129 = vector.multi_reduction <add>, %128, %cst_75 [1] : vector<8x768xf32> to vector<8xf32>
    %130 = vector.shape_cast %129 : vector<8xf32> to vector<8x1xf32>
    %cst_76 = arith.constant 5.120000e+02 : f32
    %131 = vector.broadcast %cst_76 : f32 to vector<8x1xf32>
    %132 = arith.divf %130, %131 : vector<8x1xf32>
    %133 = arith.mulf %128, %126 : vector<8x768xf32>
    %cst_77 = arith.constant dense<0.000000e+00> : vector<8xf32>
    %134 = vector.multi_reduction <add>, %133, %cst_77 [1] : vector<8x768xf32> to vector<8xf32>
    %135 = vector.shape_cast %134 : vector<8xf32> to vector<8x1xf32>
    %cst_78 = arith.constant 5.120000e+02 : f32
    %136 = vector.broadcast %cst_78 : f32 to vector<8x1xf32>
    %137 = arith.divf %135, %136 : vector<8x1xf32>
    %138 = arith.mulf %132, %132 : vector<8x1xf32>
    %139 = arith.subf %137, %138 : vector<8x1xf32>
    %cst_79 = arith.constant 0.000000e+00 : f32
    %140 = vector.broadcast %cst_79 : f32 to vector<8x1xf32>
    %141 = arith.maximumf %139, %140 : vector<8x1xf32>
    %142 = vector.broadcast %132 : vector<8x1xf32> to vector<8x768xf32>
    %143 = arith.subf %126, %142 : vector<8x768xf32>
    %cst_80 = arith.constant 9.99999974E-6 : f32
    %144 = vector.broadcast %cst_80 : f32 to vector<8x1xf32>
    %145 = arith.addf %141, %144 : vector<8x1xf32>
    %146 = math.rsqrt %145 : vector<8x1xf32>
    %147 = vector.broadcast %146 : vector<8x1xf32> to vector<8x768xf32>
    %148 = arith.mulf %143, %147 : vector<8x768xf32>
    %c0_81 = arith.constant 0 : index
    %c1_82 = arith.constant 1 : index
    %149 = vector.load %arg6[%c0_81, %c1_82] : memref<8x8xf32, #tpu.memory_space<vmem>>, vector<8x1xf32>
    %150 = vector.broadcast %149 : vector<8x1xf32> to vector<8x768xf32>
    %151 = arith.mulf %148, %150 : vector<8x768xf32>
    %c0_83 = arith.constant 0 : index
    %c2_84 = arith.constant 2 : index
    %152 = vector.load %arg6[%c0_83, %c2_84] : memref<8x8xf32, #tpu.memory_space<vmem>>, vector<8x1xf32>
    %153 = vector.broadcast %152 : vector<8x1xf32> to vector<8x768xf32>
    %154 = arith.addf %151, %153 : vector<8x768xf32>
    %155 = vector.broadcast %1 : vector<1x768xf32> to vector<8x768xf32>
    %156 = arith.mulf %154, %155 : vector<8x768xf32>
    %c766_i32_85 = arith.constant 766 : i32
    %157 = tpu.dynamic_rotate %154 by %c766_i32_85 dim 1 : vector<8x768xf32>, i32 -> vector<8x768xf32>
    %158 = vector.broadcast %2 : vector<1x768xf32> to vector<8x768xf32>
    %159 = arith.mulf %157, %158 : vector<8x768xf32>
    %160 = arith.addf %156, %159 : vector<8x768xf32>
    %c2_i32_86 = arith.constant 2 : i32
    %161 = tpu.dynamic_rotate %154 by %c2_i32_86 dim 1 : vector<8x768xf32>, i32 -> vector<8x768xf32>
    %162 = vector.broadcast %3 : vector<1x768xf32> to vector<8x768xf32>
    %163 = arith.mulf %161, %162 : vector<8x768xf32>
    %164 = arith.addf %160, %163 : vector<8x768xf32>
    %165 = vector.broadcast %4 : vector<1x768xf32> to vector<8x768xf32>
    %166 = arith.mulf %164, %165 : vector<8x768xf32>
    %c732_i32_87 = arith.constant 732 : i32
    %167 = tpu.dynamic_rotate %164 by %c732_i32_87 dim 1 : vector<8x768xf32>, i32 -> vector<8x768xf32>
    %168 = vector.broadcast %5 : vector<1x768xf32> to vector<8x768xf32>
    %169 = arith.mulf %167, %168 : vector<8x768xf32>
    %170 = arith.addf %166, %169 : vector<8x768xf32>
    %c36_i32_88 = arith.constant 36 : i32
    %171 = tpu.dynamic_rotate %164 by %c36_i32_88 dim 1 : vector<8x768xf32>, i32 -> vector<8x768xf32>
    %172 = vector.broadcast %6 : vector<1x768xf32> to vector<8x768xf32>
    %173 = arith.mulf %171, %172 : vector<8x768xf32>
    %174 = arith.addf %170, %173 : vector<8x768xf32>
    %c19_i32_89 = arith.constant 19 : i32
    %175 = tpu.dynamic_rotate %174 by %c19_i32_89 dim 1 : vector<8x768xf32>, i32 -> vector<8x768xf32>
    %c0_90 = arith.constant 0 : index
    %c0_91 = arith.constant 0 : index
    %176 = vector.load %arg10[%c0_90, %c0_91] : memref<72x768xf32, #tpu.memory_space<vmem>>, vector<8x768xf32>
    tpu.vector_store %arg10[%c0_90, %c0_91], %175 {strides = array<i32>} : memref<72x768xf32, #tpu.memory_space<vmem>>, vector<8x768xf32>,
    %c18_i32_92 = arith.constant 18 : i32
    %177 = tpu.dynamic_rotate %174 by %c18_i32_92 dim 1 : vector<8x768xf32>, i32 -> vector<8x768xf32>
    %c8_93 = arith.constant 8 : index
    %c0_94 = arith.constant 0 : index
    %178 = vector.load %arg10[%c8_93, %c0_94] : memref<72x768xf32, #tpu.memory_space<vmem>>, vector<8x768xf32>
    tpu.vector_store %arg10[%c8_93, %c0_94], %177 {strides = array<i32>} : memref<72x768xf32, #tpu.memory_space<vmem>>, vector<8x768xf32>,
    %c17_i32_95 = arith.constant 17 : i32
    %179 = tpu.dynamic_rotate %174 by %c17_i32_95 dim 1 : vector<8x768xf32>, i32 -> vector<8x768xf32>
    %c16_96 = arith.constant 16 : index
    %c0_97 = arith.constant 0 : index
    %180 = vector.load %arg10[%c16_96, %c0_97] : memref<72x768xf32, #tpu.memory_space<vmem>>, vector<8x768xf32>
    tpu.vector_store %arg10[%c16_96, %c0_97], %179 {strides = array<i32>} : memref<72x768xf32, #tpu.memory_space<vmem>>, vector<8x768xf32>,
    %c1_i32_98 = arith.constant 1 : i32
    %181 = tpu.dynamic_rotate %174 by %c1_i32_98 dim 1 : vector<8x768xf32>, i32 -> vector<8x768xf32>
    %c24_99 = arith.constant 24 : index
    %c0_100 = arith.constant 0 : index
    %182 = vector.load %arg10[%c24_99, %c0_100] : memref<72x768xf32, #tpu.memory_space<vmem>>, vector<8x768xf32>
    tpu.vector_store %arg10[%c24_99, %c0_100], %181 {strides = array<i32>} : memref<72x768xf32, #tpu.memory_space<vmem>>, vector<8x768xf32>,
    %c32_101 = arith.constant 32 : index
    %c0_102 = arith.constant 0 : index
    %183 = vector.load %arg10[%c32_101, %c0_102] : memref<72x768xf32, #tpu.memory_space<vmem>>, vector<8x768xf32>
    tpu.vector_store %arg10[%c32_101, %c0_102], %174 {strides = array<i32>} : memref<72x768xf32, #tpu.memory_space<vmem>>, vector<8x768xf32>,
    %c767_i32_103 = arith.constant 767 : i32
    %184 = tpu.dynamic_rotate %174 by %c767_i32_103 dim 1 : vector<8x768xf32>, i32 -> vector<8x768xf32>
    %c40_104 = arith.constant 40 : index
    %c0_105 = arith.constant 0 : index
    %185 = vector.load %arg10[%c40_104, %c0_105] : memref<72x768xf32, #tpu.memory_space<vmem>>, vector<8x768xf32>
    tpu.vector_store %arg10[%c40_104, %c0_105], %184 {strides = array<i32>} : memref<72x768xf32, #tpu.memory_space<vmem>>, vector<8x768xf32>,
    %c751_i32_106 = arith.constant 751 : i32
    %186 = tpu.dynamic_rotate %174 by %c751_i32_106 dim 1 : vector<8x768xf32>, i32 -> vector<8x768xf32>
    %c48_107 = arith.constant 48 : index
    %c0_108 = arith.constant 0 : index
    %187 = vector.load %arg10[%c48_107, %c0_108] : memref<72x768xf32, #tpu.memory_space<vmem>>, vector<8x768xf32>
    tpu.vector_store %arg10[%c48_107, %c0_108], %186 {strides = array<i32>} : memref<72x768xf32, #tpu.memory_space<vmem>>, vector<8x768xf32>,
    %c750_i32_109 = arith.constant 750 : i32
    %188 = tpu.dynamic_rotate %174 by %c750_i32_109 dim 1 : vector<8x768xf32>, i32 -> vector<8x768xf32>
    %c56_110 = arith.constant 56 : index
    %c0_111 = arith.constant 0 : index
    %189 = vector.load %arg10[%c56_110, %c0_111] : memref<72x768xf32, #tpu.memory_space<vmem>>, vector<8x768xf32>
    tpu.vector_store %arg10[%c56_110, %c0_111], %188 {strides = array<i32>} : memref<72x768xf32, #tpu.memory_space<vmem>>, vector<8x768xf32>,
    %c749_i32_112 = arith.constant 749 : i32
    %190 = tpu.dynamic_rotate %174 by %c749_i32_112 dim 1 : vector<8x768xf32>, i32 -> vector<8x768xf32>
    %c64_113 = arith.constant 64 : index
    %c0_114 = arith.constant 0 : index
    %191 = vector.load %arg10[%c64_113, %c0_114] : memref<72x768xf32, #tpu.memory_space<vmem>>, vector<8x768xf32>
    tpu.vector_store %arg10[%c64_113, %c0_114], %190 {strides = array<i32>} : memref<72x768xf32, #tpu.memory_space<vmem>>, vector<8x768xf32>,
    %c0_115 = arith.constant 0 : index
    %c0_116 = arith.constant 0 : index
    %192 = vector.load %arg7[%c0_115, %c0_116] : memref<8x72xf32, #tpu.memory_space<vmem>>, vector<8x72xf32>
    %c0_117 = arith.constant 0 : index
    %c0_118 = arith.constant 0 : index
    %193 = vector.load %arg10[%c0_117, %c0_118] : memref<72x768xf32, #tpu.memory_space<vmem>>, vector<72x768xf32>
    %cst_119 = arith.constant dense<0.000000e+00> : vector<8x768xf32>
    %194 = tpu.matmul %192, %193, %cst_119 {dimension_numbers = #tpu.dot_dimension_numbers<[1], [0], [0], [1], [0, 0, 1, 1], [], []>} : vector<8x72xf32>, vector<72x768xf32>, vector<8x768xf32> -> vector<8x768xf32>
    %c0_120 = arith.constant 0 : index
    %c0_121 = arith.constant 0 : index
    %195 = vector.load %arg8[%c0_120, %c0_121] : memref<8x8xf32, #tpu.memory_space<vmem>>, vector<8x1xf32>
    %196 = vector.broadcast %195 : vector<8x1xf32> to vector<8x768xf32>
    %197 = arith.addf %194, %196 : vector<8x768xf32>
    %cst_122 = arith.constant 0.000000e+00 : f32
    %198 = vector.broadcast %cst_122 : f32 to vector<8x768xf32>
    %199 = arith.maximumf %197, %198 : vector<8x768xf32>
    %200 = vector.broadcast %0 : vector<1x768xf32> to vector<8x768xf32>
    %201 = arith.mulf %199, %200 : vector<8x768xf32>
    %cst_123 = arith.constant dense<0.000000e+00> : vector<8xf32>
    %202 = vector.multi_reduction <add>, %201, %cst_123 [1] : vector<8x768xf32> to vector<8xf32>
    %203 = vector.shape_cast %202 : vector<8xf32> to vector<8x1xf32>
    %cst_124 = arith.constant 5.120000e+02 : f32
    %204 = vector.broadcast %cst_124 : f32 to vector<8x1xf32>
    %205 = arith.divf %203, %204 : vector<8x1xf32>
    %206 = arith.mulf %201, %199 : vector<8x768xf32>
    %cst_125 = arith.constant dense<0.000000e+00> : vector<8xf32>
    %207 = vector.multi_reduction <add>, %206, %cst_125 [1] : vector<8x768xf32> to vector<8xf32>
    %208 = vector.shape_cast %207 : vector<8xf32> to vector<8x1xf32>
    %cst_126 = arith.constant 5.120000e+02 : f32
    %209 = vector.broadcast %cst_126 : f32 to vector<8x1xf32>
    %210 = arith.divf %208, %209 : vector<8x1xf32>
    %211 = arith.mulf %205, %205 : vector<8x1xf32>
    %212 = arith.subf %210, %211 : vector<8x1xf32>
    %cst_127 = arith.constant 0.000000e+00 : f32
    %213 = vector.broadcast %cst_127 : f32 to vector<8x1xf32>
    %214 = arith.maximumf %212, %213 : vector<8x1xf32>
    %215 = vector.broadcast %205 : vector<8x1xf32> to vector<8x768xf32>
    %216 = arith.subf %199, %215 : vector<8x768xf32>
    %cst_128 = arith.constant 9.99999974E-6 : f32
    %217 = vector.broadcast %cst_128 : f32 to vector<8x1xf32>
    %218 = arith.addf %214, %217 : vector<8x1xf32>
    %219 = math.rsqrt %218 : vector<8x1xf32>
    %220 = vector.broadcast %219 : vector<8x1xf32> to vector<8x768xf32>
    %221 = arith.mulf %216, %220 : vector<8x768xf32>
    %c0_129 = arith.constant 0 : index
    %c1_130 = arith.constant 1 : index
    %222 = vector.load %arg8[%c0_129, %c1_130] : memref<8x8xf32, #tpu.memory_space<vmem>>, vector<8x1xf32>
    %223 = vector.broadcast %222 : vector<8x1xf32> to vector<8x768xf32>
    %224 = arith.mulf %221, %223 : vector<8x768xf32>
    %c0_131 = arith.constant 0 : index
    %c2_132 = arith.constant 2 : index
    %225 = vector.load %arg8[%c0_131, %c2_132] : memref<8x8xf32, #tpu.memory_space<vmem>>, vector<8x1xf32>
    %226 = vector.broadcast %225 : vector<8x1xf32> to vector<8x768xf32>
    %227 = arith.addf %224, %226 : vector<8x768xf32>
    %c0_133 = arith.constant 0 : index
    %c0_134 = arith.constant 0 : index
    %c0_135 = arith.constant 0 : index
    %228 = vector.load %arg9[%c0_133, %c0_134, %c0_135] : memref<1x8x768xf32, #tpu.memory_space<vmem>>, vector<1x8x768xf32>
    %229 = vector.shape_cast %228 : vector<1x8x768xf32> to vector<8x768xf32>
    %230 = vector.shape_cast %227 : vector<8x768xf32> to vector<1x8x768xf32>
    tpu.vector_store %arg9[%c0_133, %c0_134, %c0_135], %230 {strides = array<i32>} : memref<1x8x768xf32, #tpu.memory_space<vmem>>, vector<1x8x768xf32>,
    return
  }
  func.func @transform_0(%arg0: i32) -> (i32, i32, i32) {
    %c0_i32 = arith.constant 0 : i32
    %c0_i32_0 = arith.constant 0 : i32
    %c0_i32_1 = arith.constant 0 : i32
    return %arg0, %c0_i32, %c0_i32_0 : i32, i32, i32
  }
  func.func @transform_1(%arg0: i32) -> (i32, i32) {
    %c0_i32 = arith.constant 0 : i32
    %c0_i32_0 = arith.constant 0 : i32
    %c0_i32_1 = arith.constant 0 : i32
    return %c0_i32, %c0_i32_0 : i32, i32
  }
  func.func @transform_2(%arg0: i32) -> (i32, i32) {
    %c0_i32 = arith.constant 0 : i32
    %c0_i32_0 = arith.constant 0 : i32
    %c0_i32_1 = arith.constant 0 : i32
    return %c0_i32, %c0_i32_0 : i32, i32
  }
  func.func @transform_3(%arg0: i32) -> (i32, i32) {
    %c0_i32 = arith.constant 0 : i32
    %c0_i32_0 = arith.constant 0 : i32
    %c0_i32_1 = arith.constant 0 : i32
    return %c0_i32, %c0_i32_0 : i32, i32
  }
  func.func @transform_4(%arg0: i32) -> (i32, i32) {
    %c0_i32 = arith.constant 0 : i32
    %c0_i32_0 = arith.constant 0 : i32
    %c0_i32_1 = arith.constant 0 : i32
    return %c0_i32, %c0_i32_0 : i32, i32
  }
  func.func @transform_5(%arg0: i32) -> (i32, i32) {
    %c0_i32 = arith.constant 0 : i32
    %c0_i32_0 = arith.constant 0 : i32
    %c0_i32_1 = arith.constant 0 : i32
    return %c0_i32, %c0_i32_0 : i32, i32
  }
  func.func @transform_6(%arg0: i32) -> (i32, i32) {
    %c0_i32 = arith.constant 0 : i32
    %c0_i32_0 = arith.constant 0 : i32
    %c0_i32_1 = arith.constant 0 : i32
    return %c0_i32, %c0_i32_0 : i32, i32
  }
  func.func @transform_7(%arg0: i32) -> (i32, i32) {
    %c0_i32 = arith.constant 0 : i32
    %c0_i32_0 = arith.constant 0 : i32
    %c0_i32_1 = arith.constant 0 : i32
    return %c0_i32, %c0_i32_0 : i32, i32
  }
  func.func @transform_8(%arg0: i32) -> (i32, i32, i32) {
    %c0_i32 = arith.constant 0 : i32
    %c0_i32_0 = arith.constant 0 : i32
    %c0_i32_1 = arith.constant 0 : i32
    return %arg0, %c0_i32, %c0_i32_0 : i32, i32, i32
  }
}

module attributes {stable_mosaic.version = 11 : i64} {
  func.func @_mlp_kernel(%arg0: i32, %arg1: memref<8x2688xbf16, #tpu.memory_space<vmem>>, %arg2: memref<2688x512xbf16, #tpu.memory_space<vmem>>, %arg3: memref<1x512xf32, #tpu.memory_space<vmem>>, %arg4: memref<512x512xbf16, #tpu.memory_space<vmem>>, %arg5: memref<1x512xf32, #tpu.memory_space<vmem>>, %arg6: memref<512x128xbf16, #tpu.memory_space<vmem>>, %arg7: memref<1x128xf32, #tpu.memory_space<vmem>>, %arg8: memref<8x128xf32, #tpu.memory_space<vmem>>, %arg9: memref<8x512xf32, #tpu.memory_space<vmem>>) attributes {dimension_semantics = [#tpu.dimension_semantics<arbitrary>], iteration_bounds = array<i64: 1>, scalar_prefetch = 0 : i64, scratch_operands = 1 : i64, tpu.core_type = #tpu.core_type<tc>, window_params = [{transform_indices = @transform_0, window_bounds = array<i64: 8, 2688>}, {transform_indices = @transform_1, window_bounds = array<i64: 2688, 512>}, {pipeline_mode = #tpu.pipeline_mode<synchronous>, transform_indices = @transform_2, window_bounds = array<i64: 1, 512>}, {pipeline_mode = #tpu.pipeline_mode<synchronous>, transform_indices = @transform_3, window_bounds = array<i64: 512, 512>}, {pipeline_mode = #tpu.pipeline_mode<synchronous>, transform_indices = @transform_4, window_bounds = array<i64: 1, 512>}, {pipeline_mode = #tpu.pipeline_mode<synchronous>, transform_indices = @transform_5, window_bounds = array<i64: 512, 128>}, {pipeline_mode = #tpu.pipeline_mode<synchronous>, transform_indices = @transform_6, window_bounds = array<i64: 1, 128>}, {pipeline_mode = #tpu.pipeline_mode<synchronous>, transform_indices = @transform_7, window_bounds = array<i64: 8, 128>}]} {
    %c0_i32 = arith.constant 0 : i32
    %0 = arith.cmpi eq, %arg0, %c0_i32 : i32
    %1 = arith.extui %0 : i1 to i32
    %c0_i32_0 = arith.constant 0 : i32
    %2 = arith.cmpi ne, %1, %c0_i32_0 : i32
    scf.if %2 {
      %cst_10 = arith.constant 0.000000e+00 : f32
      %12 = vector.broadcast %cst_10 : f32 to vector<8x512xf32>
      %c0_11 = arith.constant 0 : index
      %c0_12 = arith.constant 0 : index
      %13 = vector.load %arg9[%c0_11, %c0_12] : memref<8x512xf32, #tpu.memory_space<vmem>>, vector<8x512xf32>
      tpu.vector_store %arg9[%c0_11, %c0_12], %12 {strides = array<i32>} : memref<8x512xf32, #tpu.memory_space<vmem>>, vector<8x512xf32>,
    } else {
    }
    %c0 = arith.constant 0 : index
    %c0_1 = arith.constant 0 : index
    %3 = vector.load %arg9[%c0, %c0_1] : memref<8x512xf32, #tpu.memory_space<vmem>>, vector<8x512xf32>
    %c0_2 = arith.constant 0 : index
    %c0_3 = arith.constant 0 : index
    %4 = vector.load %arg1[%c0_2, %c0_3] : memref<8x2688xbf16, #tpu.memory_space<vmem>>, vector<8x2688xbf16>
    %c0_4 = arith.constant 0 : index
    %c0_5 = arith.constant 0 : index
    %5 = vector.load %arg2[%c0_4, %c0_5] : memref<2688x512xbf16, #tpu.memory_space<vmem>>, vector<2688x512xbf16>
    %cst = arith.constant dense<0.000000e+00> : vector<8x512xf32>
    %6 = tpu.matmul %4, %5, %cst {dimension_numbers = #tpu.dot_dimension_numbers<[1], [0], [0], [1], [0, 0, 1, 1], [], []>} : vector<8x2688xbf16>, vector<2688x512xbf16>, vector<8x512xf32> -> vector<8x512xf32>
    %7 = arith.addf %3, %6 : vector<8x512xf32>
    %c0_6 = arith.constant 0 : index
    %c0_7 = arith.constant 0 : index
    %8 = vector.load %arg9[%c0_6, %c0_7] : memref<8x512xf32, #tpu.memory_space<vmem>>, vector<8x512xf32>
    tpu.vector_store %arg9[%c0_6, %c0_7], %7 {strides = array<i32>} : memref<8x512xf32, #tpu.memory_space<vmem>>, vector<8x512xf32>,
    %c0_i32_8 = arith.constant 0 : i32
    %9 = arith.cmpi eq, %arg0, %c0_i32_8 : i32
    %10 = arith.extui %9 : i1 to i32
    %c0_i32_9 = arith.constant 0 : i32
    %11 = arith.cmpi ne, %10, %c0_i32_9 : i32
    scf.if %11 {
      %c0_10 = arith.constant 0 : index
      %c0_11 = arith.constant 0 : index
      %12 = vector.load %arg9[%c0_10, %c0_11] : memref<8x512xf32, #tpu.memory_space<vmem>>, vector<8x512xf32>
      %c0_12 = arith.constant 0 : index
      %c0_13 = arith.constant 0 : index
      %13 = vector.load %arg3[%c0_12, %c0_13] : memref<1x512xf32, #tpu.memory_space<vmem>>, vector<1x512xf32>
      %14 = vector.broadcast %13 : vector<1x512xf32> to vector<8x512xf32>
      %15 = arith.addf %12, %14 : vector<8x512xf32>
      %cst_14 = arith.constant 0.000000e+00 : f32
      %16 = vector.broadcast %cst_14 : f32 to vector<8x512xf32>
      %17 = arith.maximumf %15, %16 : vector<8x512xf32>
      %18 = arith.truncf %17 : vector<8x512xf32> to vector<8x512xbf16>
      %c0_15 = arith.constant 0 : index
      %c0_16 = arith.constant 0 : index
      %19 = vector.load %arg4[%c0_15, %c0_16] : memref<512x512xbf16, #tpu.memory_space<vmem>>, vector<512x512xbf16>
      %cst_17 = arith.constant dense<0.000000e+00> : vector<8x512xf32>
      %20 = tpu.matmul %18, %19, %cst_17 {dimension_numbers = #tpu.dot_dimension_numbers<[1], [0], [0], [1], [0, 0, 1, 1], [], []>} : vector<8x512xbf16>, vector<512x512xbf16>, vector<8x512xf32> -> vector<8x512xf32>
      %c0_18 = arith.constant 0 : index
      %c0_19 = arith.constant 0 : index
      %21 = vector.load %arg5[%c0_18, %c0_19] : memref<1x512xf32, #tpu.memory_space<vmem>>, vector<1x512xf32>
      %22 = vector.broadcast %21 : vector<1x512xf32> to vector<8x512xf32>
      %23 = arith.addf %20, %22 : vector<8x512xf32>
      %cst_20 = arith.constant 0.000000e+00 : f32
      %24 = vector.broadcast %cst_20 : f32 to vector<8x512xf32>
      %25 = arith.maximumf %23, %24 : vector<8x512xf32>
      %26 = arith.truncf %25 : vector<8x512xf32> to vector<8x512xbf16>
      %c0_21 = arith.constant 0 : index
      %c0_22 = arith.constant 0 : index
      %27 = vector.load %arg6[%c0_21, %c0_22] : memref<512x128xbf16, #tpu.memory_space<vmem>>, vector<512x128xbf16>
      %cst_23 = arith.constant dense<0.000000e+00> : vector<8x128xf32>
      %28 = tpu.matmul %26, %27, %cst_23 {dimension_numbers = #tpu.dot_dimension_numbers<[1], [0], [0], [1], [0, 0, 1, 1], [], []>} : vector<8x512xbf16>, vector<512x128xbf16>, vector<8x128xf32> -> vector<8x128xf32>
      %c0_24 = arith.constant 0 : index
      %c0_25 = arith.constant 0 : index
      %29 = vector.load %arg7[%c0_24, %c0_25] : memref<1x128xf32, #tpu.memory_space<vmem>>, vector<1x128xf32>
      %30 = vector.broadcast %29 : vector<1x128xf32> to vector<8x128xf32>
      %31 = arith.addf %28, %30 : vector<8x128xf32>
      %c0_26 = arith.constant 0 : index
      %c0_27 = arith.constant 0 : index
      %32 = vector.load %arg8[%c0_26, %c0_27] : memref<8x128xf32, #tpu.memory_space<vmem>>, vector<8x128xf32>
      tpu.vector_store %arg8[%c0_26, %c0_27], %31 {strides = array<i32>} : memref<8x128xf32, #tpu.memory_space<vmem>>, vector<8x128xf32>,
    } else {
    }
    return
  }
  func.func @transform_0(%arg0: i32) -> (i32, i32) {
    %c0_i32 = arith.constant 0 : i32
    %c0_i32_0 = arith.constant 0 : i32
    return %c0_i32, %arg0 : i32, i32
  }
  func.func @transform_1(%arg0: i32) -> (i32, i32) {
    %c0_i32 = arith.constant 0 : i32
    %c0_i32_0 = arith.constant 0 : i32
    return %arg0, %c0_i32 : i32, i32
  }
  func.func @transform_2(%arg0: i32) -> (i32, i32) {
    %c0_i32 = arith.constant 0 : i32
    %c0_i32_0 = arith.constant 0 : i32
    %c0_i32_1 = arith.constant 0 : i32
    return %c0_i32, %c0_i32_0 : i32, i32
  }
  func.func @transform_3(%arg0: i32) -> (i32, i32) {
    %c0_i32 = arith.constant 0 : i32
    %c0_i32_0 = arith.constant 0 : i32
    %c0_i32_1 = arith.constant 0 : i32
    return %c0_i32, %c0_i32_0 : i32, i32
  }
  func.func @transform_4(%arg0: i32) -> (i32, i32) {
    %c0_i32 = arith.constant 0 : i32
    %c0_i32_0 = arith.constant 0 : i32
    %c0_i32_1 = arith.constant 0 : i32
    return %c0_i32, %c0_i32_0 : i32, i32
  }
  func.func @transform_5(%arg0: i32) -> (i32, i32) {
    %c0_i32 = arith.constant 0 : i32
    %c0_i32_0 = arith.constant 0 : i32
    %c0_i32_1 = arith.constant 0 : i32
    return %c0_i32, %c0_i32_0 : i32, i32
  }
  func.func @transform_6(%arg0: i32) -> (i32, i32) {
    %c0_i32 = arith.constant 0 : i32
    %c0_i32_0 = arith.constant 0 : i32
    %c0_i32_1 = arith.constant 0 : i32
    return %c0_i32, %c0_i32_0 : i32, i32
  }
  func.func @transform_7(%arg0: i32) -> (i32, i32) {
    %c0_i32 = arith.constant 0 : i32
    %c0_i32_0 = arith.constant 0 : i32
    %c0_i32_1 = arith.constant 0 : i32
    return %c0_i32, %c0_i32_0 : i32, i32
  }
}

</mosaic_0001>

<bundles_post_ra>
// kernel: siamese_forward.2
= control target key start
LH: loop header
LB: loop body
LE: loop exit
PB: predicated region body
PF: predicated region fallthrough
CT: control target
= control target key end

     0   :  { %13 = vsyncpa [#allocation4], 0  ;;  %s4882_s0 = inlined_call_operand.vmem [shape: f32[2,8,768], index: 0, kind: input, shape index: {}]   ;;  %s4883_s1 = inlined_call_operand.hbm [shape: f32[8,768], index: 1, kind: input, shape index: {}]   ;;  %s4884_s2 = inlined_call_operand.hbm [shape: f32[8,72], index: 2, kind: input, shape index: {}]   ;;  %s4885_s3 = inlined_call_operand.hbm [shape: f32[8,8], index: 3, kind: input, shape index: {}]   ;;  %s4886_s4 = inlined_call_operand.hbm [shape: f32[8,72], index: 4, kind: input, shape index: {}]   ;;  %s4887_s5 = inlined_call_operand.hbm [shape: f32[8,8], index: 5, kind: input, shape index: {}]   ;;  %s4888_s6 = inlined_call_operand.hbm [shape: f32[8,72], index: 6, kind: input, shape index: {}]   ;;  %s4889_s7 = inlined_call_operand.hbm [shape: f32[8,8], index: 7, kind: input, shape index: {}]   ;;  %s4890_s8 = inlined_call_operand.vmem [shape: f32[2,8,768], index: 8, kind: output, shape index: {}]  }
   0x1   :  { %14 = vsyncpa [#allocation6], 0 }
   0x2   :  { %15 = vsyncpa [#allocation9], 0 }
   0x3   :  { %16 = vsyncpa [#allocation12], 0  ;;  %s3241_s27 = smov 0  }
   0x4 LB: > { %s3173_s28 = smov [#allocation5]   ;;  %s3247_s30 = sadd.s32 4294967295, %s3171_s27   ;;  %s3171_s27 = sphi %s3241_s27, %s22_s27  }
   0x5   : > { %s250_s29 = sshll.u32 %s3173_s28, 4  ;;  %p2826_p0 = scmp.ge.s32.totalorder %s3171_s27, 1  ;;  %s251_s29 = int_to_ptr.vmem [resolvable:$true] %s250_s29 }
   0x6   : > { %p226_p1 = scmp.lt.s32.totalorder %s3171_s27, 3  ;;  %p4891_p2 = scmp.eq.s32.totalorder %s3247_s30, 0 }
   0x7   : > { %s3174_s10 = smov [#allocation8]   ;;  %s3175_s12 = smov [#allocation11]  }
   0x8   : > { %p3252_p3 = pnand %p2826_p0, %p226_p1  ;;  %s272_s11 = sshll.u32 %s3174_s10, 4  ;;  %s273_s11 = int_to_ptr.vmem [resolvable:$true] %s272_s11 }
   0x9   : > { %s294_s13 = sshll.u32 %s3175_s12, 4  ;;  %s3176_s15 = smov [#allocation3]   ;;  %s3264_s13 = int_to_ptr.vmem [resolvable:$true] %s294_s13 }
   0xa   : > { %s4926_s9 = scalar_select %p3252_p3, 1, 0 }
   0xb   : > { %p2885_p4 = pneg %p3252_p3  ;;  %s239_s16 = sshll.u32 %s3176_s15, 4  ;;  %s3266_s16 = int_to_ptr.vmem [resolvable:$true] %s239_s16 }
   0xc   : > { %s2978_s18 = scalar_lea.vmem %s251_s29, 128  ;;  %p2986_p10 = scmp.lt.s32.totalorder %s251_s29, %s251_s29 }
   0xd   : > { %p3260_p5 = pnand %p4891_p2, %p2885_p4  ;;  %p2979_p7 = scmp.ne.s32.totalorder %s251_s29, %s2978_s18 }
   0xe   : > { %p2987_p11 = scmp.lt.s32.totalorder %s2978_s18, %s2978_s18 }
   0xf   : > { %p3270_p6 = pneg %p3260_p5 }
  0x10   : > { %p2988_p12 = por %p2987_p11, %p2986_p10 }
  0x11   : > { %p2981_p8 = pnand %p2979_p7, %p3270_p6 }
  0x13   : > { %p2982_p9 = pneg %p2981_p8 }
  0x15   : > { %p2989_p13 = pnand %p2988_p12, %p2982_p9 }
  0x17   : > { %2992 = shalt.err (!%p2989_p13)
}
  0x18   : > { %2891 = dma.hbm_to_vmem [thread:$0]  (!%p3260_p5), %s4884_s2, 128, %s251_s29, [#allocation6]  }
  0x19   : > { %s3004_s21 = scalar_lea.vmem %s273_s11, 128  ;;  %p3012_p2 = scmp.lt.s32.totalorder %s273_s11, %s273_s11 }
  0x1a   : > { %p3005_p0 = scmp.ne.s32.totalorder %s273_s11, %s3004_s21  ;;  %p3013_p7 = scmp.lt.s32.totalorder %s3004_s21, %s3004_s21 }
  0x1c   : > { %p3007_p1 = pnand %p3005_p0, %p3270_p6  ;;  %p3014_p8 = por %p3013_p7, %p3012_p2 }
  0x1e   : > { %p3008_p4 = pneg %p3007_p1 }
  0x20   : > { %p3015_p3 = pnand %p3014_p8, %p3008_p4 }
  0x22   : > { %3018 = shalt.err (!%p3015_p3)
}
  0x23   : > { %2897 = dma.hbm_to_vmem [thread:$0]  (!%p3260_p5), %s4886_s4, 128, %s273_s11, [#allocation9]  }
  0x24   : > { %s3030_s24 = scalar_lea.vmem %s3264_s13, 128  ;;  %p3038_p12 = scmp.lt.s32.totalorder %s3264_s13, %s3264_s13 }
  0x25   : > { %p3031_p9 = scmp.ne.s32.totalorder %s3264_s13, %s3030_s24  ;;  %p3039_p2 = scmp.lt.s32.totalorder %s3030_s24, %s3030_s24 }
  0x27   : > { %p3033_p10 = pnand %p3031_p9, %p3270_p6  ;;  %p3040_p13 = por %p3039_p2, %p3038_p12 }
  0x29   : > { %p3034_p11 = pneg %p3033_p10 }
  0x2b   : > { %p3041_p3 = pnand %p3040_p13, %p3034_p11 }
  0x2d   : > { %3044 = shalt.err (!%p3041_p3)
}
  0x2e   : > { %2903 = dma.hbm_to_vmem [thread:$0]  (!%p3260_p5), %s4888_s6, 128, %s3264_s13, [#allocation12]  }
  0x2f   : > { %s3056_s28 = scalar_lea.vmem %s3266_s16, 768  ;;  %p3064_p7 = scmp.lt.s32.totalorder %s3266_s16, %s3266_s16 }
  0x30   : > { %p3057_p0 = scmp.ne.s32.totalorder %s3266_s16, %s3056_s28  ;;  %p3065_p8 = scmp.lt.s32.totalorder %s3056_s28, %s3056_s28 }
  0x32   : > { %p3059_p1 = pnand %p3057_p0, %p3270_p6  ;;  %p3066_p9 = por %p3065_p8, %p3064_p7 }
  0x34   : > { %p3060_p4 = pneg %p3059_p1 }
  0x36   : > { %p3067_p10 = pnand %p3066_p9, %p3060_p4 }
  0x38   : > { %3070 = shalt.err (!%p3067_p10)
}
  0x39   : > { %2888 = dma.hbm_to_vmem [thread:$0]  (!%p3260_p5), %s4883_s1, 768, %s3266_s16, [#allocation4]  }
  0x3a   : > { %s3177_s11 = smov [#allocation7]   ;;  %s3178_s13 = smov [#allocation10]  }
  0x3b   : > { %s261_s12 = sshll.u32 %s3177_s11, 4  ;;  %s283_s15 = sshll.u32 %s3178_s13, 4  ;;  %s262_s12 = int_to_ptr.vmem [resolvable:$true] %s261_s12  ;;  %s284_s15 = int_to_ptr.vmem [resolvable:$true] %s283_s15 }
  0x3c   : > { %s3082_s18 = scalar_lea.vmem %s262_s12, 128  ;;  %p3090_p13 = scmp.lt.s32.totalorder %s262_s12, %s262_s12 }
  0x3d   : > { %p3083_p11 = scmp.ne.s32.totalorder %s262_s12, %s3082_s18  ;;  %p3091_p3 = scmp.lt.s32.totalorder %s3082_s18, %s3082_s18 }
  0x3f   : > { %p3085_p12 = pnand %p3083_p11, %p3270_p6  ;;  %p3092_p0 = por %p3091_p3, %p3090_p13 }
  0x41   : > { %p3086_p2 = pneg %p3085_p12 }
  0x43   : > { %p3093_p1 = pnand %p3092_p0, %p3086_p2 }
  0x45   : > { %3096 = shalt.err (!%p3093_p1)
}
  0x46   : > { %2894 = dma.hbm_to_vmem [thread:$0]  (!%p3260_p5), %s4885_s3, 128, %s262_s12, [#allocation6]  }
  0x47   : > { %s3108_s16 = scalar_lea.vmem %s284_s15, 128  ;;  %p3116_p9 = scmp.lt.s32.totalorder %s284_s15, %s284_s15 }
  0x48   : > { %p3109_p4 = scmp.ne.s32.totalorder %s284_s15, %s3108_s16  ;;  %p3117_p10 = scmp.lt.s32.totalorder %s3108_s16, %s3108_s16 }
  0x4a   : > { %p3111_p7 = pnand %p3109_p4, %p3270_p6  ;;  %p3118_p11 = por %p3117_p10, %p3116_p9 }
  0x4c   : > { %p3112_p8 = pneg %p3111_p7 }
  0x4e   : > { %p3119_p12 = pnand %p3118_p11, %p3112_p8 }
  0x50   : > { %3122 = shalt.err (!%p3119_p12)
}
  0x51   : > { %2900 = dma.hbm_to_vmem [thread:$0]  (!%p3260_p5), %s4887_s5, 128, %s284_s15, [#allocation9]  }
  0x52   : > { %s3179_s23 = smov [#allocation13]  }
  0x53   : > { %s305_s24 = sshll.u32 %s3179_s23, 4  ;;  %s306_s24 = int_to_ptr.vmem [resolvable:$true] %s305_s24 }
  0x54   : > { %s3134_s25 = scalar_lea.vmem %s306_s24, 128  ;;  %p3142_p0 = scmp.lt.s32.totalorder %s306_s24, %s306_s24 }
  0x55   : > { %p3135_p2 = scmp.ne.s32.totalorder %s306_s24, %s3134_s25  ;;  %p3143_p1 = scmp.lt.s32.totalorder %s3134_s25, %s3134_s25 }
  0x57   : > { %p3137_p13 = pnand %p3135_p2, %p3270_p6  ;;  %p3144_p4 = por %p3143_p1, %p3142_p0 }
  0x59   : > { %p3138_p3 = pneg %p3137_p13 }
  0x5b   : > { %p3145_p7 = pnand %p3144_p4, %p3138_p3 }
  0x5d   : > { %3148 = shalt.err (!%p3145_p7)
}
  0x5e   : > { %2906 = dma.hbm_to_vmem [thread:$0]  (!%p3260_p5), %s4889_s7, 128, %s306_s24, [#allocation12]  }
  0x5f   : > { %p4929_p8 = scmp.ne.s32.totalorder %s4926_s9, 0 }
  0x61   : > { %326 = sbr.rel (%p4929_p8) target bundleno = 2690 (0xa82), region = 52 }
  0x66   : > { %p4930_p9 = scmp.eq.s32.totalorder %s3247_s30, 0 }
  0x68   : > { %3154 = dma.done.wait (%p4930_p9), [#allocation4], 768   ;;  %p4931_p6 = pmov %p4930_p9 }
  0x6a   : > { %3156 = vsyncadd (%p4931_p6), [#allocation4], 4294966528  ;;  %p4932_p10 = pmov %p4931_p6 }
  0x6b   : > { %p4933_p11 = pmov %p4931_p6 }
  0x6c   : > { %3158 = dma.done.wait (%p4932_p10), [#allocation6], 256  }
  0x6d   : > { %3160 = vsyncadd (%p4933_p11), [#allocation6], 4294967040  ;;  %p4934_p12 = pmov %p4931_p6 }
  0x6e   : > { %p4935_p5 = pmov %p4931_p6 }
  0x6f   : > { %3162 = dma.done.wait (%p4934_p12), [#allocation9], 256  }
  0x70   : > { %3164 = vsyncadd (%p4935_p5), [#allocation9], 4294967040  ;;  %p4936_p2 = pmov %p4935_p5 }
  0x72   : > { %3166 = dma.done.wait (%p4936_p2), [#allocation12], 256   ;;  %p4937_p13 = pmov %p4936_p2 }
  0x73   : > { %p384_p3 = scmp.lt.s32.totalorder %s3247_s30, 1  ;;  %s3180_s10 = smov 126   ;;  %v428_v6 = vlaneseq  ;;  %v398_v8 = vld [vmem:[#allocation3 + $0x1] ss:$8 sm:$0xf]  ;;  %vm1018_vm12 = vcmask 588800  }
  0x74   : > { %3168 = vsyncadd (%p4937_p13), [#allocation12], 4294967040  ;;  %s3181_s11 = smov 2   ;;  %v399_v9 = vld [vmem:[#allocation3 + $0x1] ss:$8 sm:$0x30] }
  0x75   : > { %s4982_s30 = smov (!%p384_p3, %s3247_s30), 1  ;;  %v3385_v7 = vshrl.u32 %v428_v6, 7  ;;  %v402_v10 = vld [vmem:[#allocation3 + $0x2] ss:$8 sm:$0xf]  ;;  %v3387_v12 = vand.u32 127, %v428_v6  ;;  %v3389_v15 = vor.u32 %v399_v9, %v398_v8 }
  0x76   : > { %s2856_s9 = smul.u32 48, %s4982_s30  ;;  %v403_v11 = vld [vmem:[#allocation3 + $0x2] ss:$8 sm:$0x30]  ;;  %s3182_s12 = smov 92  }
  0x77   : > { %v3392_v16 = vsub.s32 1, %v3385_v7  ;;  %v3395_v17 = vsub.s32 2, %v3385_v7  ;;  %v3397_v18 = vor.u32 %v403_v11, %v402_v10  ;;  %v406_v19 = vld [vmem:[#allocation3 + $0x3] ss:$8 sm:$0xf]  ;;  %v3400_v21 = vsub.s32 3, %v3385_v7 }
  0x78   : > { %s388_s29 = scalar_lea.vmem %s4882_s0, %s2856_s9  ;;  %v407_v20 = vld [vmem:[#allocation3 + $0x3] ss:$8 sm:$0x30]  ;;  %vm478_vm0 = vcmp.lt.s32.totalorder %v3387_v12, 126  ;;  %v3432_v32 = vsub.s32 0, %v3385_v7  ;;  %vm540_vm1 = vcmp.lt.s32.totalorder %v3387_v12, 2  ;;  %s393_s26 = scalar_lea.vmem %s4890_s8, %s2856_s9 }
  0x79   : > { %v424_v0 = vld [vmem:[%s388_s29 + $0x18] sm:$0xff]  ;;  %v422_v1 = vld [vmem:[%s388_s29 + $0x8] sm:$0xff]  ;;  %v3363_v2 = vld [vmem:[%s388_s29 + $0x20] sm:$0xff]  ;;  %v3407_v24 = vrot.slane %v3389_v15, %v3392_v16  ;;  %v3411_v25 = vrot.slane %v3389_v15, %v3395_v17  ;;  %v3413_v26 = vor.u32 %v407_v20, %v406_v19  ;;  %v3417_v27 = vrot.slane %v3397_v18, %v3392_v16  ;;  %s3183_s13 = smov 36   ;;  %s3184_s15 = smov 109  }
  0x7a   : > { %470 = vrot.lane.b32.xlu1 %v424_v0, %s3180_s10  ;;  %466 = vrot.lane.b32.xlu0 %v422_v1, %s3180_s10  ;;  %v423_v3 = vld [vmem:[%s388_s29 + $0x10] sm:$0xff]  ;;  %v3368_v4 = vld [vmem:[%s388_s29] sm:$0xff]  ;;  %v3421_v28 = vrot.slane %v3397_v18, %v3395_v17  ;;  %v3429_v31 = vrot.slane %v3389_v15, %v3400_v21  ;;  %v3439_v37 = vrot.slane %v3397_v18, %v3400_v21  ;;  %v3500_v9 = vsub.s32 4, %v3385_v7  ;;  %s3185_s18 = smov 110   ;;  %s3186_s19 = smov 111  }
  0x7b   : > { %v3376_v5 = vld [vmem:[%s388_s29 + $0x28] sm:$0xff]  ;;  %v459_v35 = vmul.f32 %v3407_v24, %v422_v1  ;;  %v460_v36 = vmul.f32 %v3411_v25, %v423_v3  ;;  %v3443_v38 = vrot.slane %v3413_v26, %v3392_v16  ;;  %v3452_v42 = vrot.slane %v3413_v26, %v3395_v17  ;;  %s3187_s20 = smov 127   ;;  %s3188_s16 = smov 1  }
  0x7c   : > { %v461_v43 = vmul.f32 %v3429_v31, %v424_v0  ;;  %v3457_v44 = vrot.slane %v3389_v15, %v3432_v32  ;;  %v3461_v45 = vrot.slane %v3397_v18, %v3432_v32  ;;  %v3470_v51 = vrot.slane %v3413_v26, %v3400_v21  ;;  %s3189_s21 = smov 17   ;;  %s3190_s22 = smov 18  }
  0x7d   : > { %v3486_v63 = vrot.slane %v3413_v26, %v3432_v32  ;;  %vm639_vm2 = vcmp.lt.s32.totalorder %v3387_v12, 92  ;;  %vm701_vm3 = vcmp.lt.s32.totalorder %v3387_v12, 36  ;;  %s3191_s23 = smov 19   ;;  %vm944_vm4 = vcmp.lt.s32.totalorder %v3387_v12, 109 }
  0x7e   : > { %472 = vrot.lane.b32.xlu1 %v3363_v2, %s3180_s10  ;;  %468 = vrot.lane.b32.xlu0 %v423_v3, %s3180_s10  ;;  %v458_v61 = vmul.f32 %v3457_v44, %v3368_v4  ;;  %vm919_vm5 = vcmp.lt.s32.totalorder %v3387_v12, 110  ;;  %vm894_vm6 = vcmp.lt.s32.totalorder %v3387_v12, 111  ;;  %vm869_vm7 = vcmp.lt.s32.totalorder %v3387_v12, 127 }
  0x7f   : > { %vm838_vm8 = vcmp.lt.s32.totalorder %v3387_v12, 1  ;;  %vm813_vm9 = vcmp.lt.s32.totalorder %v3387_v12, 17  ;;  %vm788_vm10 = vcmp.lt.s32.totalorder %v3387_v12, 18  ;;  %vm763_vm11 = vcmp.lt.s32.totalorder %v3387_v12, 19 }
  0x82   : > { %528 = vrot.lane.b32.xlu1 %v3368_v4, %s3181_s11  ;;  %464 = vrot.lane.b32.xlu0 %v3368_v4, %s3180_s10 }
  0x86   : > { %532 = vrot.lane.b32.xlu1 %v423_v3, %s3181_s11  ;;  %530 = vrot.lane.b32.xlu0 %v422_v1, %s3181_s11 }
  0x8a   : > { %474 = vrot.lane.b32.xlu1 %v3376_v5, %s3180_s10  ;;  %534 = vrot.lane.b32.xlu0 %v424_v0, %s3181_s11  ;;  %v3489_v0 = vsub.s32 5, %v3385_v7 }
  0x8c   : > { %v3506_v11 = vrot.slane %v3389_v15, %v3489_v0 }
  0x8e   : > { %536 = vrot.lane.b32.xlu1 %v3363_v2, %s3181_s11  ;;  %538 = vrot.lane.b32.xlu0 %v3376_v5, %s3181_s11 }
  0xec   : > { %v471_v13 = vpop.permute.xlu1 %470  ;;  %v467_v14 = vpop.permute.xlu0 %466 }
  0xf0   : > { %v3403_v22 = vpop.permute.xlu1 %472  ;;  %v469_v23 = vpop.permute.xlu0 %468 }
  0xf1   : > { %v481_v29 = vsel %vm478_vm0, %v469_v23, %v471_v13  ;;  %v482_v30 = vsel %vm478_vm0, %v467_v14, %v469_v23  ;;  %v480_v39 = vsel %vm478_vm0, %v471_v13, %v3403_v22  ;;  %v3510_v13 = vrot.slane %v3397_v18, %v3489_v0 }
  0xf2   : > { %v517_v40 = vmul.f32 %v3417_v27, %v482_v30  ;;  %v518_v41 = vmul.f32 %v3421_v28, %v481_v29  ;;  %v519_v48 = vmul.f32 %v3439_v37, %v480_v39  ;;  %v3519_v23 = vrot.slane %v3413_v26, %v3489_v0 }
  0xf3   : > { %v3525_v30 = vrot.slane %v3389_v15, %v3500_v9 }
  0xf4   : > { %v529_v33 = vpop.permute.xlu1 %528  ;;  %v465_v34 = vpop.permute.xlu0 %464  ;;  %v524_v54 = vadd.f32 %v518_v41, %v460_v36  ;;  %v523_v55 = vadd.f32 %v517_v40, %v459_v35  ;;  %v525_v4 = vadd.f32 %v519_v48, %v461_v43  ;;  %v463_v35 = vmul.f32 %v3506_v11, %v3376_v5  ;;  %v415_v48 = vld [vmem:[#allocation3 + $0x5] ss:$8 sm:$0x30] }
  0xf5   : > { %v483_v56 = vsel %vm478_vm0, %v465_v34, %v467_v14  ;;  %v3533_v36 = vrot.slane %v3397_v18, %v3500_v9  ;;  %v3545_v5 = vrot.slane %v3413_v26, %v3500_v9  ;;  %v462_v40 = vmul.f32 %v3525_v30, %v3363_v2 }
  0xf6   : > { %v516_v1 = vmul.f32 %v3461_v45, %v483_v56  ;;  %v418_v56 = vld [vmem:[#allocation3 + $0x6] ss:$8 sm:$0xf] }
  0xf8   : > { %v533_v46 = vpop.permute.xlu1 %532  ;;  %v531_v47 = vpop.permute.xlu0 %530  ;;  %v522_v20 = vadd.f32 %v516_v1, %v458_v61 }
  0xf9   : > { %v544_v49 = vsel %vm540_vm1, %v531_v47, %v533_v46  ;;  %v545_v50 = vsel %vm540_vm1, %v529_v33, %v531_v47  ;;  %v414_v47 = vld [vmem:[#allocation3 + $0x5] ss:$8 sm:$0xf] }
  0xfa   : > { %v579_v52 = vmul.f32 %v3443_v38, %v545_v50  ;;  %v580_v53 = vmul.f32 %v3452_v42, %v544_v49  ;;  %v410_v49 = vld [vmem:[#allocation3 + $0x4] ss:$8 sm:$0xf] }
  0xfb   : > { %v411_v50 = vld [vmem:[#allocation3 + $0x4] ss:$8 sm:$0x30] }
  0xfc   : > { %v475_v57 = vpop.permute.xlu1 %474  ;;  %v535_v58 = vpop.permute.xlu0 %534  ;;  %v3476_v59 = vadd.f32 %v580_v53, %v524_v54  ;;  %v3478_v60 = vadd.f32 %v579_v52, %v523_v55  ;;  %v3572_v53 = vor.u32 %v415_v48, %v414_v47  ;;  %v3575_v55 = vor.u32 %v411_v50, %v410_v49 }
  0xfd   : > { %v543_v62 = vsel %vm540_vm1, %v533_v46, %v535_v58  ;;  %v484_v7 = vsel %vm478_vm0, %v475_v57, %v465_v34  ;;  %v479_v15 = vsel %vm478_vm0, %v3403_v22, %v475_v57  ;;  %v419_v57 = vld [vmem:[#allocation3 + $0x6] ss:$8 sm:$0x30] }
  0xfe   : > { %v581_v3 = vmul.f32 %v3470_v51, %v543_v62  ;;  %631 = vrot.lane.b32.xlu1 %v3476_v59, %s3182_s12  ;;  %629 = vrot.lane.b32.xlu0 %v3478_v60, %s3182_s12  ;;  %v521_v34 = vmul.f32 %v3510_v13, %v484_v7  ;;  %v520_v41 = vmul.f32 %v3533_v36, %v479_v15 }
  0xff   : > { %v3581_v61 = vrot.slane %v3572_v53, %v3392_v16  ;;  %v3587_v1 = vrot.slane %v3572_v53, %v3395_v17  ;;  %v3605_v7 = vrot.slane %v3572_v53, %v3432_v32 }
 0x100   : > { %v539_v6 = vpop.permute.xlu0 %538  ;;  %v3497_v8 = vadd.f32 %v581_v3, %v525_v4  ;;  %v537_v14 = vpop.permute.xlu1 %536  ;;  %v527_v22 = vadd.f32 %v521_v34, %v463_v35  ;;  %v526_v2 = vadd.f32 %v520_v41, %v462_v40  ;;  %v3589_v3 = vor.u32 %v419_v57, %v418_v56 }
 0x101   : > { %v546_v10 = vsel %vm540_vm1, %v539_v6, %v529_v33  ;;  %v541_v33 = vsel %vm540_vm1, %v537_v14, %v539_v6  ;;  %v542_v39 = vsel %vm540_vm1, %v535_v58, %v537_v14  ;;  %v3593_v4 = vrot.slane %v3575_v55, %v3392_v16 }
 0x102   : > { %v578_v19 = vmul.f32 %v3486_v63, %v546_v10  ;;  %633 = vrot.lane.b32.xlu0 %v3497_v8, %s3182_s12  ;;  %v583_v18 = vmul.f32 %v3519_v23, %v541_v33  ;;  %v582_v26 = vmul.f32 %v3545_v5, %v542_v39  ;;  %v3600_v10 = vrot.slane %v3575_v55, %v3395_v17 }
 0x103   : > { %v3611_v35 = vrot.slane %v3589_v3, %v3392_v16  ;;  %v3615_v34 = vrot.slane %v3589_v3, %v3395_v17  ;;  %v622_v15 = vmul.f32 %v3593_v4, %v3478_v60  ;;  %v3625_v40 = vrot.slane %v3575_v55, %v3432_v32 }
 0x104   : > { %v3521_v29 = vadd.f32 %v578_v19, %v522_v20  ;;  %v3558_v43 = vadd.f32 %v583_v18, %v527_v22  ;;  %v3564_v46 = vadd.f32 %v582_v26, %v526_v2  ;;  %v623_v39 = vmul.f32 %v3600_v10, %v3476_v59 }
 0x105   : > { %4938 = vst [vmem:[#allocation18_spill] sm:$0xff] %v3611_v35  ;;  %4939 = vst [vmem:[#allocation19_spill] sm:$0xff] %v3615_v34  ;;  %v3636_v47 = vrot.slane %v3589_v3, %v3432_v32 }
 0x106   : > { %689 = vrot.lane.b32.xlu0 %v3521_v29, %s3183_s13  ;;  %627 = vrot.lane.b32.xlu1 %v3521_v29, %s3182_s12  ;;  %4940 = vst [vmem:[#allocation20_spill] sm:$0xff] %v3625_v40 }
 0x107   : > { %4941 = vst [vmem:[#allocation21_spill] sm:$0xff] %v3636_v47 }
 0x10a   : > { %693 = vrot.lane.b32.xlu0 %v3476_v59, %s3183_s13  ;;  %691 = vrot.lane.b32.xlu1 %v3478_v60, %s3183_s13 }
 0x10e   : > { %637 = vrot.lane.b32.xlu0 %v3558_v43, %s3182_s12  ;;  %699 = vrot.lane.b32.xlu1 %v3558_v43, %s3183_s13 }
 0x112   : > { %635 = vrot.lane.b32.xlu0 %v3564_v46, %s3182_s12  ;;  %697 = vrot.lane.b32.xlu1 %v3564_v46, %s3183_s13 }
 0x116   : > { %695 = vrot.lane.b32.xlu1 %v3497_v8, %s3183_s13 }
 0x170   : > { %v630_v52 = vpop.permute.xlu0 %629  ;;  %v632_v54 = vpop.permute.xlu1 %631 }
 0x171   : > { %v643_v62 = vsel %vm639_vm2, %v630_v52, %v632_v54 }
 0x172   : > { %v678_v20 = vmul.f32 %v3581_v61, %v643_v62 }
 0x174   : > { %v3577_v58 = vpop.permute.xlu0 %633  ;;  %v684_v26 = vadd.f32 %v678_v20, %v622_v15 }
 0x175   : > { %v642_v6 = vsel %vm639_vm2, %v632_v54, %v3577_v58 }
 0x176   : > { %v679_v33 = vmul.f32 %v3587_v1, %v642_v6 }
 0x178   : > { %v690_v14 = vpop.permute.xlu0 %689  ;;  %v628_v19 = vpop.permute.xlu1 %627  ;;  %v685_v59 = vadd.f32 %v679_v33, %v623_v39  ;;  %v3680_v39 = vrot.slane %v3575_v55, %v3489_v0 }
 0x179   : > { %v644_v18 = vsel %vm639_vm2, %v628_v19, %v630_v52  ;;  %v621_v52 = vmul.f32 %v3625_v40, %v3521_v29 }
 0x17a   : > { %v677_v48 = vmul.f32 %v3605_v7, %v644_v18  ;;  %4943 = vst [vmem:[#allocation23_spill] sm:$0xff] %v3680_v39 }
 0x17c   : > { %v3627_v41 = vpop.permute.xlu0 %693  ;;  %v692_v22 = vpop.permute.xlu1 %691  ;;  %v683_v6 = vadd.f32 %v677_v48, %v621_v52 }
 0x17d   : > { %v705_v2 = vsel %vm701_vm3, %v692_v22, %v3627_v41  ;;  %v706_v60 = vsel %vm701_vm3, %v690_v14, %v692_v22  ;;  %v3684_v22 = vrot.slane %v3589_v3, %v3489_v0 }
 0x17e   : > { %v740_v49 = vmul.f32 %v3611_v35, %v706_v60  ;;  %v741_v50 = vmul.f32 %v3615_v34, %v705_v2 }
 0x17f   : > { %4944 = vst [vmem:[#allocation24_spill] sm:$0xff] %v3684_v22 }
 0x180   : > { %v3643_v54 = vadd.f32 %v740_v49, %v684_v26  ;;  %v3645_v56 = vadd.f32 %v741_v50, %v685_v59  ;;  %v700_v57 = vpop.permute.xlu1 %699  ;;  %v638_v29 = vpop.permute.xlu0 %637  ;;  %v3704_v50 = vrot.slane %v3572_v53, %v3400_v21 }
 0x181   : > { %v707_v62 = vsel %vm701_vm3, %v700_v57, %v690_v14  ;;  %v3670_v14 = vrot.slane %v3572_v53, %v3489_v0  ;;  %v645_v18 = vsel %vm639_vm2, %v638_v29, %v628_v19  ;;  %v626_v19 = vmul.f32 %v3680_v39, %v3558_v43 }
 0x182   : > { %v739_v20 = vmul.f32 %v3636_v47, %v707_v62  ;;  %934 = vrot.lane.b32.xlu0 %v3643_v54, %s3184_s15  ;;  %936 = vrot.lane.b32.xlu1 %v3645_v56, %s3184_s15  ;;  %4945 = vst [vmem:[#allocation25_spill] sm:$0xff] %v3704_v50  ;;  %v3708_v43 = vrot.slane %v3572_v53, %v3500_v9  ;;  %v4951_v47 = vmov 0.0  }
 0x183   : > { %4942 = vst [vmem:[#allocation22_spill] sm:$0xff] %v3670_v14  ;;  %v682_v2 = vmul.f32 %v3670_v14, %v645_v18  ;;  %v3725_v53 = vrot.slane %v3575_v55, %v3500_v9  ;;  %v3733_v18 = vrot.slane %v3589_v3, %v3500_v9 }
 0x184   : > { %v3654_v33 = vadd.f32 %v739_v20, %v683_v6  ;;  %v698_v15 = vpop.permute.xlu1 %697  ;;  %v636_v48 = vpop.permute.xlu0 %635  ;;  %4946 = vst [vmem:[#allocation26_spill] sm:$0xff] %v3708_v43  ;;  %v3721_v6 = vrot.slane %v3575_v55, %v3400_v21  ;;  %v3729_v20 = vrot.slane %v3589_v3, %v3400_v21 }
 0x185   : > { %v702_v26 = vsel %vm701_vm3, %v698_v15, %v700_v57  ;;  %v688_v59 = vadd.f32 %v682_v2, %v626_v19  ;;  %v640_v57 = vsel %vm639_vm2, %v636_v48, %v638_v29  ;;  %v641_v62 = vsel %vm639_vm2, %v3577_v58, %v636_v48  ;;  %4948 = vst [vmem:[#allocation28_spill] sm:$0xff] %v3725_v53 }
 0x186   : > { %909 = vrot.lane.b32.xlu1 %v3643_v54, %s3185_s18  ;;  %932 = vrot.lane.b32.xlu0 %v3654_v33, %s3184_s15  ;;  %v744_v60 = vmul.f32 %v3684_v22, %v702_v26  ;;  %4947 = vst [vmem:[#allocation27_spill] sm:$0xff] %v3721_v6  ;;  %4949 = vst [vmem:[#allocation29_spill] sm:$0xff] %v3729_v20  ;;  %v680_v26 = vmul.f32 %v3704_v50, %v641_v62 }
 0x187   : > { %4950 = vst [vmem:[#allocation30_spill] sm:$0xff] %v3733_v18  ;;  %v681_v55 = vmul.f32 %v3708_v43, %v640_v57  ;;  %v624_v3 = vmul.f32 %v3721_v6, %v3497_v8  ;;  %v4895_v8 = vmov 0.0  }
 0x188   : > { %v3700_v49 = vadd.f32 %v744_v60, %v688_v59  ;;  %v696_v52 = vpop.permute.xlu1 %695  ;;  %1086 = vmatprep.mubr.f32.mxu0 %v4895_v8  ;;  %1157 = vmatprep.mubr.f32.mxu1 %v4895_v8 }
 0x189   : > { %v703_v29 = vsel %vm701_vm3, %v696_v52, %v698_v15  ;;  %v704_v58 = vsel %vm701_vm3, %v3627_v41, %v696_v52  ;;  %v625_v15 = vmul.f32 %v3725_v53, %v3564_v46  ;;  %v686_v19 = vadd.f32 %v680_v26, %v624_v3  ;;  %v3819_v52 = vld [vmem:[#allocation7] sm:$0xff] }
 0x18a   : > { %907 = vrot.lane.b32.xlu1 %v3654_v33, %s3185_s18  ;;  %911 = vrot.lane.b32.xlu0 %v3645_v56, %s3185_s18  ;;  %v742_v2 = vmul.f32 %v3729_v20, %v704_v58  ;;  %v743_v41 = vmul.f32 %v3733_v18, %v703_v29  ;;  %v4893_v46 = vmov 0  }
 0x18b   : > { %v687_v60 = vadd.f32 %v681_v55, %v625_v15  ;;  %2952 = vset.pattern.permute.xlu0 %v4893_v46 }
 0x18c   : > { %v3756_v59 = vadd.f32 %v742_v2, %v686_v19 }
 0x18d   : > { %v3758_v48 = vadd.f32 %v743_v41, %v687_v60 }
 0x18e   : > { %886 = vrot.lane.b32.xlu1 %v3645_v56, %s3186_s19  ;;  %884 = vrot.lane.b32.xlu0 %v3643_v54, %s3186_s19 }
 0x192   : > { %859 = vrot.lane.b32.xlu1 %v3643_v54, %s3187_s20  ;;  %882 = vrot.lane.b32.xlu0 %v3654_v33, %s3186_s19 }
 0x196   : > { %857 = vrot.lane.b32.xlu1 %v3654_v33, %s3187_s20  ;;  %861 = vrot.lane.b32.xlu0 %v3645_v56, %s3187_s20 }
 0x19a   : > { %828 = vrot.lane.b32.xlu1 %v3643_v54, %s3188_s16  ;;  %826 = vrot.lane.b32.xlu0 %v3654_v33, %s3188_s16 }
 0x19e   : > { %801 = vrot.lane.b32.xlu1 %v3654_v33, %s3189_s21  ;;  %836 = vrot.lane.b32.xlu0 %v3700_v49, %s3188_s16 }
 0x1a2   : > { %811 = vrot.lane.b32.xlu1 %v3700_v49, %s3189_s21  ;;  %803 = vrot.lane.b32.xlu0 %v3643_v54, %s3189_s21 }
 0x1a6   : > { %778 = vrot.lane.b32.xlu1 %v3643_v54, %s3190_s22  ;;  %776 = vrot.lane.b32.xlu0 %v3654_v33, %s3190_s22 }
 0x1aa   : > { %940 = vrot.lane.b32.xlu1 %v3758_v48, %s3184_s15  ;;  %938 = vrot.lane.b32.xlu0 %v3756_v59, %s3184_s15 }
 0x1ae   : > { %751 = vrot.lane.b32.xlu1 %v3654_v33, %s3191_s23  ;;  %786 = vrot.lane.b32.xlu0 %v3700_v49, %s3190_s22 }
 0x1b2   : > { %913 = vrot.lane.b32.xlu1 %v3756_v59, %s3185_s18  ;;  %753 = vrot.lane.b32.xlu0 %v3643_v54, %s3191_s23 }
 0x1b6   : > { %761 = vrot.lane.b32.xlu1 %v3700_v49, %s3191_s23  ;;  %915 = vrot.lane.b32.xlu0 %v3758_v48, %s3185_s18 }
 0x1ba   : > { %890 = vrot.lane.b32.xlu1 %v3758_v48, %s3186_s19  ;;  %888 = vrot.lane.b32.xlu0 %v3756_v59, %s3186_s19 }
 0x1be   : > { %863 = vrot.lane.b32.xlu1 %v3756_v59, %s3187_s20  ;;  %942 = vrot.lane.b32.xlu0 %v3700_v49, %s3184_s15 }
 0x1c2   : > { %917 = vrot.lane.b32.xlu1 %v3700_v49, %s3185_s18  ;;  %865 = vrot.lane.b32.xlu0 %v3758_v48, %s3187_s20 }
 0x1c6   : > { %830 = vrot.lane.b32.xlu1 %v3645_v56, %s3188_s16  ;;  %892 = vrot.lane.b32.xlu0 %v3700_v49, %s3186_s19 }
 0x1ca   : > { %867 = vrot.lane.b32.xlu1 %v3700_v49, %s3187_s20  ;;  %832 = vrot.lane.b32.xlu0 %v3756_v59, %s3188_s16 }
 0x1ce   : > { %807 = vrot.lane.b32.xlu1 %v3756_v59, %s3189_s21  ;;  %805 = vrot.lane.b32.xlu0 %v3645_v56, %s3189_s21 }
 0x1d2   : > { %782 = vrot.lane.b32.xlu1 %v3756_v59, %s3190_s22  ;;  %780 = vrot.lane.b32.xlu0 %v3645_v56, %s3190_s22 }
 0x1d6   : > { %755 = vrot.lane.b32.xlu1 %v3645_v56, %s3191_s23  ;;  %834 = vrot.lane.b32.xlu0 %v3758_v48, %s3188_s16 }
 0x1da   : > { %809 = vrot.lane.b32.xlu1 %v3758_v48, %s3189_s21  ;;  %757 = vrot.lane.b32.xlu0 %v3756_v59, %s3191_s23 }
 0x1de   : > { %759 = vrot.lane.b32.xlu1 %v3758_v48, %s3191_s23  ;;  %784 = vrot.lane.b32.xlu0 %v3758_v48, %s3190_s22 }
 0x1e2   : > { %1015 = vperm.xlu0 %2952, %v3819_v52  }
 0x1f4   : > { %v935_v57 = vpop.permute.xlu0 %934  ;;  %v937_v62 = vpop.permute.xlu1 %936 }
 0x1f5   : > { %v948_v29 = vsel %vm944_vm4, %v935_v57, %v937_v62 }
 0x1f6   : > { %1036 = vmatprep.subr.mxu0 %v948_v29 }
 0x1f8   : > { %v910_v58 = vpop.permute.xlu1 %909  ;;  %v3825_v26 = vpop.permute.xlu0 %932 }
 0x1f9   : > { %v949_v55 = vsel %vm944_vm4, %v3825_v26, %v935_v57 }
 0x1fa   : > { %1037 = vmatpush1.msra.mxu0 %v949_v55 }
 0x1fc   : > { %v3831_v3 = vpop.permute.xlu1 %907  ;;  %v3833_v15 = vpop.permute.xlu0 %911 }
 0x1fd   : > { %v923_v2 = vsel %vm919_vm5, %v910_v58, %v3833_v15  ;;  %v924_v41 = vsel %vm919_vm5, %v3831_v3, %v910_v58 }
 0x1fe   : > { %1038 = vmatprep.subr.mxu0 %v923_v2 }
 0x1ff   : > { %1039 = vmatpush1.msra.mxu0 %v924_v41 }
 0x200   : > { %v3842_v19 = vpop.permute.xlu1 %886  ;;  %v885_v60 = vpop.permute.xlu0 %884 }
 0x201   : > { %v898_v57 = vsel %vm894_vm6, %v885_v60, %v3842_v19 }
 0x202   : > { %1040 = vmatprep.subr.mxu0 %v898_v57 }
 0x204   : > { %v860_v29 = vpop.permute.xlu1 %859  ;;  %v3847_v55 = vpop.permute.xlu0 %882 }
 0x205   : > { %v899_v46 = vsel %vm894_vm6, %v3847_v55, %v885_v60 }
 0x206   : > { %1041 = vmatpush1.msra.mxu0 %v899_v46 }
 0x208   : > { %v3853_v58 = vpop.permute.xlu1 %857  ;;  %v3855_v2 = vpop.permute.xlu0 %861 }
 0x209   : > { %v873_v41 = vsel %vm869_vm7, %v860_v29, %v3855_v2  ;;  %v874_v57 = vsel %vm869_vm7, %v3853_v58, %v860_v29 }
 0x20a   : > { %1042 = vmatprep.subr.mxu0 %v873_v41 }
 0x20b   : > { %1043 = vmatpush1.msra.mxu0 %v874_v57 }
 0x20c   : > { %v3864_v60 = vpop.permute.xlu1 %828  ;;  %1044 = vmatprep.subr.mxu0 %v3643_v54  ;;  %v827_v46 = vpop.permute.xlu0 %826 }
 0x20d   : > { %1045 = vmatpush1.msra.mxu0 %v3654_v33  ;;  %v843_v8 = vsel %vm838_vm8, %v827_v46, %v3864_v60 }
 0x20e   : > { %1046 = vmatprep.subr.mxu0 %v843_v8 }
 0x210   : > { %v802_v18 = vpop.permute.xlu1 %801  ;;  %v3871_v20 = vpop.permute.xlu0 %836 }
 0x211   : > { %v844_v29 = vsel %vm838_vm8, %v3871_v20, %v827_v46 }
 0x212   : > { %1047 = vmatpush1.msra.mxu0 %v844_v29 }
 0x214   : > { %v3877_v41 = vpop.permute.xlu1 %811  ;;  %v3879_v54 = vpop.permute.xlu0 %803 }
 0x215   : > { %v818_v33 = vsel %vm813_vm9, %v802_v18, %v3879_v54  ;;  %v819_v8 = vsel %vm813_vm9, %v3877_v41, %v802_v18 }
 0x216   : > { %1048 = vmatprep.subr.mxu0 %v818_v33 }
 0x217   : > { %1049 = vmatpush1.msra.mxu0 %v819_v8 }
 0x218   : > { %v3888_v57 = vpop.permute.xlu1 %778  ;;  %v777_v46 = vpop.permute.xlu0 %776 }
 0x219   : > { %v793_v29 = vsel %vm788_vm10, %v777_v46, %v3888_v57 }
 0x21a   : > { %1050 = vmatprep.subr.mxu0 %v793_v29 }
 0x21c   : > { %v941_v53 = vpop.permute.xlu1 %940  ;;  %v939_v6 = vpop.permute.xlu0 %938 }
 0x21d   : > { %v946_v43 = vsel %vm944_vm4, %v939_v6, %v941_v53  ;;  %v947_v18 = vsel %vm944_vm4, %v937_v62, %v939_v6  ;;  %v3910_v62 = vld [vmem:[#allocation5] sm:$0xff] }
 0x21e   : > { %1107 = vmatprep.subr.mxu1 %v946_v43 }
 0x21f   : > { %1108 = vmatpush1.msra.mxu1 %v947_v18 }
 0x220   : > { %v752_v33 = vpop.permute.xlu1 %751  ;;  %v3897_v8 = vpop.permute.xlu0 %786 }
 0x221   : > { %v794_v50 = vsel %vm788_vm10, %v3897_v8, %v777_v46 }
 0x222   : > { %1051 = vmatpush1.msra.mxu0 %v794_v50 }
 0x224   : > { %v914_v29 = vpop.permute.xlu1 %913  ;;  %v3903_v22 = vpop.permute.xlu0 %753 }
 0x225   : > { %v768_v39 = vsel %vm763_vm11, %v752_v33, %v3903_v22  ;;  %v922_v18 = vsel %vm919_vm5, %v3833_v15, %v914_v29 }
 0x226   : > { %1052 = vmatprep.subr.mxu0 %v768_v39 }
 0x228   : > { %v3908_v43 = vpop.permute.xlu1 %761  ;;  %v916_v6 = vpop.permute.xlu0 %915 }
 0x229   : > { %v769_v50 = vsel %vm763_vm11, %v3908_v43, %v752_v33  ;;  %v921_v46 = vsel %vm919_vm5, %v914_v29, %v916_v6 }
 0x22a   : > { %1053 = vmatpush1.msra.mxu0 %v769_v50  ;;  %1109 = vmatprep.subr.mxu1 %v921_v46 }
 0x22b   : > { %1110 = vmatpush1.msra.mxu1 %v922_v18  ;;  %2845 = vmatmul.mubr.msk.f32.vlgmr.msra.gmra.mxu0 %vm1018_vm12, %v3910_v62 }
 0x22c   : > { %v891_v39 = vpop.permute.xlu1 %890  ;;  %v889_v14 = vpop.permute.xlu0 %888  ;;  %1228 = vmatprep.mubr.f32.mxu0 %v4951_v47 }
 0x22d   : > { %v896_v33 = vsel %vm894_vm6, %v889_v14, %v891_v39  ;;  %v897_v50 = vsel %vm894_vm6, %v3842_v19, %v889_v14 }
 0x22e   : > { %1111 = vmatprep.subr.mxu1 %v896_v33 }
 0x22f   : > { %1112 = vmatpush1.msra.mxu1 %v897_v50 }
 0x230   : > { %v864_v46 = vpop.permute.xlu1 %863  ;;  %v943_v40 = vpop.permute.xlu0 %942 }
 0x231   : > { %v950_v15 = vsel %vm944_vm4, %v943_v40, %v3825_v26  ;;  %v945_v29 = vsel %vm944_vm4, %v941_v53, %v943_v40  ;;  %v872_v40 = vsel %vm869_vm7, %v3855_v2, %v864_v46 }
 0x232   : > { %1178 = vmatprep.subr.mxu0 %v950_v15 }
 0x233   : > { %1179 = vmatpush1.msra.mxu0 %v945_v29 }
 0x234   : > { %v918_v18 = vpop.permute.xlu1 %917  ;;  %v866_v34 = vpop.permute.xlu0 %865 }
 0x235   : > { %v871_v35 = vsel %vm869_vm7, %v864_v46, %v866_v34  ;;  %v925_v14 = vsel %vm919_vm5, %v918_v18, %v3831_v3  ;;  %v920_v19 = vsel %vm919_vm5, %v916_v6, %v918_v18 }
 0x236   : > { %1113 = vmatprep.subr.mxu1 %v871_v35  ;;  %1180 = vmatprep.subr.mxu0 %v925_v14 }
 0x237   : > { %1114 = vmatpush1.msra.mxu1 %v872_v40  ;;  %1181 = vmatpush1.msra.mxu0 %v920_v19 }
 0x238   : > { %v831_v53 = vpop.permute.xlu1 %830  ;;  %1115 = vmatprep.subr.mxu1 %v3756_v59  ;;  %v893_v26 = vpop.permute.xlu0 %892 }
 0x239   : > { %1116 = vmatpush1.msra.mxu1 %v3645_v56  ;;  %v900_v3 = vsel %vm894_vm6, %v893_v26, %v3847_v55  ;;  %v895_v35 = vsel %vm894_vm6, %v891_v39, %v893_v26  ;;  %v842_v55 = vsel %vm838_vm8, %v3864_v60, %v831_v53 }
 0x23a   : > { %1182 = vmatprep.subr.mxu0 %v900_v3 }
 0x23b   : > { %1183 = vmatpush1.msra.mxu0 %v895_v35 }
 0x23c   : > { %v868_v6 = vpop.permute.xlu1 %867  ;;  %v833_v33 = vpop.permute.xlu0 %832 }
 0x23d   : > { %v841_v2 = vsel %vm838_vm8, %v831_v53, %v833_v33  ;;  %v875_v59 = vsel %vm869_vm7, %v868_v6, %v3853_v58  ;;  %v870_v56 = vsel %vm869_vm7, %v866_v34, %v868_v6 }
 0x23e   : > { %1117 = vmatprep.subr.mxu1 %v841_v2  ;;  %1184 = vmatprep.subr.mxu0 %v875_v59 }
 0x23f   : > { %1118 = vmatpush1.msra.mxu1 %v842_v55  ;;  %1185 = vmatpush1.msra.mxu0 %v870_v56  ;;  %v395_v55 = vld [vmem:[#allocation3] ss:$8 sm:$0x30] }
 0x240   : > { %v808_v39 = vpop.permute.xlu1 %807  ;;  %1186 = vmatprep.subr.mxu0 %v3700_v49  ;;  %v806_v50 = vpop.permute.xlu0 %805 }
 0x241   : > { %1187 = vmatpush1.msra.mxu0 %v3758_v48  ;;  %v816_v58 = vsel %vm813_vm9, %v806_v50, %v808_v39  ;;  %v817_v34 = vsel %vm813_vm9, %v3879_v54, %v806_v50 }
 0x242   : > { %1119 = vmatprep.subr.mxu1 %v816_v58 }
 0x243   : > { %1120 = vmatpush1.msra.mxu1 %v817_v34 }
 0x244   : > { %v783_v46 = vpop.permute.xlu1 %782  ;;  %v781_v15 = vpop.permute.xlu0 %780 }
 0x245   : > { %v791_v60 = vsel %vm788_vm10, %v781_v15, %v783_v46  ;;  %v792_v49 = vsel %vm788_vm10, %v3888_v57, %v781_v15 }
 0x246   : > { %1121 = vmatprep.subr.mxu1 %v791_v60 }
 0x247   : > { %1122 = vmatpush1.msra.mxu1 %v792_v49 }
 0x248   : > { %v756_v48 = vpop.permute.xlu1 %755  ;;  %v835_v29 = vpop.permute.xlu0 %834 }
 0x249   : > { %v839_v18 = vsel %vm838_vm8, %v835_v29, %v3871_v20  ;;  %v840_v54 = vsel %vm838_vm8, %v833_v33, %v835_v29  ;;  %v767_v20 = vsel %vm763_vm11, %v3903_v22, %v756_v48  ;;  %v4924_v33 = vmov 2  }
 0x24a   : > { %1188 = vmatprep.subr.mxu0 %v839_v18  ;;  %2954 = vset.pattern.permute.xlu0 %v4924_v33 }
 0x24b   : > { %1189 = vmatpush1.msra.mxu0 %v840_v54 }
 0x24c   : > { %v810_v14 = vpop.permute.xlu1 %809  ;;  %v758_v19 = vpop.permute.xlu0 %757 }
 0x24d   : > { %v766_v40 = vsel %vm763_vm11, %v756_v48, %v758_v19  ;;  %v814_v57 = vsel %vm813_vm9, %v810_v14, %v3877_v41  ;;  %v815_v53 = vsel %vm813_vm9, %v808_v39, %v810_v14 }
 0x24e   : > { %1123 = vmatprep.subr.mxu1 %v766_v40  ;;  %1190 = vmatprep.subr.mxu0 %v814_v57 }
 0x24f   : > { %1124 = vmatpush1.msra.mxu1 %v767_v20  ;;  %1191 = vmatpush1.msra.mxu0 %v815_v53 }
 0x250   : > { %v760_v26 = vpop.permute.xlu1 %759  ;;  %2846 = vmatmul.mubr.msk.f32.vlgmr.msra.gmra.mxu1 %vm1018_vm12, %v3910_v62  ;;  %v785_v3 = vpop.permute.xlu0 %784 }
 0x251   : > { %v789_v41 = vsel %vm788_vm10, %v785_v3, %v3897_v8  ;;  %v790_v35 = vsel %vm788_vm10, %v783_v46, %v785_v3  ;;  %1796 = vmatprep.mubr.f32.mxu1 %v4951_v47  ;;  %v764_v22 = vsel %vm763_vm11, %v760_v26, %v3908_v43  ;;  %v765_v6 = vsel %vm763_vm11, %v758_v19, %v760_v26  ;;  %v394_v43 = vld [vmem:[#allocation3] ss:$8 sm:$0xf] }
 0x252   : > { %1192 = vmatprep.subr.mxu0 %v789_v41  ;;  %v4923_v8 = vmov 1   ;;  %v396_v58 = vor.u32 %v395_v55, %v394_v43 }
 0x253   : > { %1193 = vmatpush1.msra.mxu0 %v790_v35  ;;  %2953 = vset.pattern.permute.xlu1 %v4923_v8 }
 0x254   : > { %1194 = vmatprep.subr.mxu0 %v764_v22  ;;  %v4013_v15 = vrot.slane %v396_v58, %v3392_v16  ;;  %v4020_v18 = vrot.slane %v396_v58, %v3395_v17  ;;  %v4029_v3 = vrot.slane %v396_v58, %v3500_v9  ;;  %v4033_v55 = vrot.slane %v396_v58, %v3489_v0 }
 0x255   : > { %1195 = vmatpush1.msra.mxu0 %v765_v6  ;;  %v4952_v0 = vmov 0  }
 0x256   : > { %2847 = vmatmul.mubr.msk.f32.vlgmr.msra.gmra.mxu0 %vm1018_vm12, %v3910_v62  ;;  %v4010_v62 = vrot.slane %v396_v58, %v3432_v32  ;;  %v4023_v32 = vrot.slane %v396_v58, %v3400_v21 }
 0x257   : > { %1867 = vmatprep.mubr.f32.mxu0 %v4951_v47 }
 0x25d   : > { %v1016_v56 = vpop.permute.xlu0 %1015 }
 0x2eb   : > { %v1088_v2 = vpop.f32.mrf.mxu0 }
 0x2ec   : > { %v1089_v39 = vadd.f32 %v1088_v2, %v1016_v56 }
 0x2ed   : > { %v1090_v59 = vpop.f32.mrf.mxu0 }
 0x2ee   : > { %v1091_v50 = vadd.f32 %v1090_v59, %v1016_v56  ;;  %v4005_v34 = vmax.f32 %v1089_v39, 0.0 }
 0x2f0   : > { %v4007_v46 = vmax.f32 %v1091_v50, 0.0  ;;  %v1272_v49 = vmul.f32 %v4010_v62, %v4005_v34 }
 0x2f2   : > { %v1273_v48 = vmul.f32 %v4013_v15, %v4007_v46  ;;  %v1287_v16 = vmul.f32 %v1272_v49, %v4005_v34 }
 0x2f4   : > { %v1288_v40 = vmul.f32 %v1273_v48, %v4007_v46  ;;  %v1278_v20 = vadd.f32 %v1273_v48, %v1272_v49 }
 0x2f6   : > { %v1293_v21 = vadd.f32 %v1288_v40, %v1287_v16 }
 0x310   : > { %v1159_v60 = vpop.f32.mrf.mxu1 }
 0x311   : > { %v1160_v29 = vadd.f32 %v1159_v60, %v1016_v56 }
 0x312   : > { %v1161_v54 = vpop.f32.mrf.mxu1 }
 0x313   : > { %v1237_v14 = vmax.f32 %v1160_v29, 0.0  ;;  %v1162_v19 = vadd.f32 %v1161_v54, %v1016_v56 }
 0x315   : > { %v1274_v57 = vmul.f32 %v4020_v18, %v1237_v14  ;;  %v1238_v53 = vmax.f32 %v1162_v19, 0.0 }
 0x316   : > { %v1230_v26 = vpop.f32.mrf.mxu0 }
 0x317   : > { %v1289_v17 = vmul.f32 %v1274_v57, %v1237_v14  ;;  %v1275_v41 = vmul.f32 %v4023_v32, %v1238_v53  ;;  %v1231_v35 = vadd.f32 %v1230_v26, %v1016_v56  ;;  %v1279_v22 = vadd.f32 %v1278_v20, %v1274_v57 }
 0x318   : > { %v1232_v6 = vpop.f32.mrf.mxu0 }
 0x319   : > { %v1290_v2 = vmul.f32 %v1275_v41, %v1238_v53  ;;  %v1239_v59 = vmax.f32 %v1231_v35, 0.0  ;;  %v1233_v43 = vadd.f32 %v1232_v6, %v1016_v56  ;;  %v1294_v39 = vadd.f32 %v1293_v21, %v1289_v17 }
 0x31a   : > { %v1280_v49 = vadd.f32 %v1279_v22, %v1275_v41 }
 0x31b   : > { %v1240_v50 = vmax.f32 %v1233_v43, 0.0  ;;  %v1276_v60 = vmul.f32 %v4029_v3, %v1239_v59  ;;  %v1295_v54 = vadd.f32 %v1294_v39, %v1290_v2 }
 0x31d   : > { %v1277_v9 = vmul.f32 %v4033_v55, %v1240_v50  ;;  %v1281_v48 = vadd.f32 %v1280_v49, %v1276_v60  ;;  %v1291_v29 = vmul.f32 %v1276_v60, %v1239_v59 }
 0x31f   : > { %v1282_v19 = vadd.f32 %v1281_v48, %v1277_v9  ;;  %v1292_v57 = vmul.f32 %v1277_v9, %v1240_v50  ;;  %v1296_v20 = vadd.f32 %v1295_v54, %v1291_v29 }
 0x321   : > { %1283 = vadd.xlane.f32.xlu1 %v1282_v19  ;;  %v1297_v16 = vadd.f32 %v1296_v20, %v1292_v57 }
 0x323   : > { %1298 = vadd.xlane.f32.xlu0 %v1297_v16 }
 0x332   : > { %1319 = vperm.xlu1 %2953, %v3819_v52  }
 0x339   : > { %1329 = vperm.xlu0 %2954, %v3819_v52  }
 0x33d   : > { %2955 = vset.pattern.permute.xlu0 %v4952_v0 }
 0x3aa   : > { %v1284_v56 = vpop.xlane.xlu1 %1283 }
 0x3ab   : > { %v1286_v58 = vmul.f32 0.001953125, %v1284_v56 }
 0x3ac   : > { %v1299_v40 = vpop.xlane.xlu0 %1298 }
 0x3ad   : > { %v1300_v26 = vmul.f32 0.001953125, %v1299_v40  ;;  %v1301_v17 = vmul.f32 %v1286_v58, %v1286_v58  ;;  %v1307_v6 = vsub.f32 %v1238_v53, %v1286_v58  ;;  %v1305_v21 = vsub.f32 %v4007_v46, %v1286_v58 }
 0x3ae   : > { %v1309_v2 = vsub.f32 %v1240_v50, %v1286_v58  ;;  %v1306_v43 = vsub.f32 %v1237_v14, %v1286_v58  ;;  %v1320_v60 = vpop.permute.xlu1 %1319  ;;  %v1308_v46 = vsub.f32 %v1239_v59, %v1286_v58  ;;  %v1304_v40 = vsub.f32 %v4005_v34, %v1286_v58 }
 0x3af   : > { %v1302_v41 = vsub.f32 %v1300_v26, %v1301_v17 }
 0x3b1   : > { %v1303_v35 = vmax.f32 %v1302_v41, 0.0 }
 0x3b3   : > { %v1310_v22 = vadd.f32 1e-05, %v1303_v35 }
 0x3b4   : > { %v1330_v29 = vpop.permute.xlu0 %1329 }
 0x3b5   : > { %2961 = vrsqrt.f32 %v1310_v22 }
 0x3c2   : > { %v2962_v39 = vpop.eup %2961 }
 0x3c3   : > { %v1315_v49 = vmul.f32 %v2962_v39, %v1307_v6  ;;  %v1313_v52 = vmul.f32 %v2962_v39, %v1305_v21  ;;  %v1317_v9 = vmul.f32 %v2962_v39, %v1309_v2  ;;  %v1314_v48 = vmul.f32 %v2962_v39, %v1306_v43 }
 0x3c4   : > { %v1316_v50 = vmul.f32 %v2962_v39, %v1308_v46  ;;  %v1312_v17 = vmul.f32 %v2962_v39, %v1304_v40 }
 0x3c5   : > { %v1325_v54 = vmul.f32 %v1320_v60, %v1315_v49  ;;  %v1323_v19 = vmul.f32 %v1320_v60, %v1313_v52  ;;  %v1327_v16 = vmul.f32 %v1320_v60, %v1317_v9  ;;  %v1324_v56 = vmul.f32 %v1320_v60, %v1314_v48 }
 0x3c6   : > { %v1326_v26 = vmul.f32 %v1320_v60, %v1316_v50  ;;  %v1322_v35 = vmul.f32 %v1320_v60, %v1312_v17 }
 0x3c7   : > { %v1335_v57 = vadd.f32 %v1330_v29, %v1325_v54  ;;  %v1333_v20 = vadd.f32 %v1330_v29, %v1323_v19  ;;  %v4043_v53 = vadd.f32 %v1330_v29, %v1327_v16  ;;  %v1334_v14 = vadd.f32 %v1330_v29, %v1324_v56 }
 0x3c8   : > { %v4050_v41 = vadd.f32 %v1330_v29, %v1326_v26  ;;  %v1332_v59 = vadd.f32 %v1330_v29, %v1322_v35 }
 0x3c9   : > { %1380 = vrot.lane.b32.xlu0 %v1335_v57, %s3181_s11  ;;  %1346 = vrot.lane.b32.xlu1 %v1333_v20, %s3180_s10  ;;  %v1339_v48 = vmul.f32 %v1333_v20, %v3407_v24  ;;  %v1340_v50 = vmul.f32 %v1334_v14, %v3411_v25 }
 0x3cd   : > { %1384 = vrot.lane.b32.xlu0 %v4043_v53, %s3181_s11  ;;  %1348 = vrot.lane.b32.xlu1 %v1334_v14, %s3180_s10 }
 0x3d1   : > { %1350 = vrot.lane.b32.xlu1 %v1335_v57, %s3180_s10 }
 0x3d5   : > { %1352 = vrot.lane.b32.xlu1 %v4050_v41, %s3180_s10 }
 0x3d9   : > { %1344 = vrot.lane.b32.xlu1 %v1332_v59, %s3180_s10 }
 0x3dd   : > { %1374 = vrot.lane.b32.xlu1 %v1332_v59, %s3181_s11 }
 0x3e1   : > { %1376 = vrot.lane.b32.xlu1 %v1333_v20, %s3181_s11  ;;  %v1341_v20 = vmul.f32 %v1335_v57, %v3429_v31 }
 0x3e5   : > { %1378 = vrot.lane.b32.xlu1 %v1334_v14, %s3181_s11 }
 0x3e9   : > { %1354 = vrot.lane.b32.xlu1 %v4043_v53, %s3180_s10 }
 0x3ed   : > { %1382 = vrot.lane.b32.xlu1 %v4050_v41, %s3181_s11 }
 0x43b   : > { %v1347_v34 = vpop.permute.xlu1 %1346  ;;  %v1381_v39 = vpop.permute.xlu0 %1380 }
 0x43f   : > { %v1349_v58 = vpop.permute.xlu1 %1348  ;;  %v1385_v40 = vpop.permute.xlu0 %1384 }
 0x440   : > { %v1359_v2 = vsel %vm478_vm0, %v1347_v34, %v1349_v58 }
 0x441   : > { %v1363_v60 = vmul.f32 %v1359_v2, %v3417_v27 }
 0x443   : > { %v1351_v22 = vpop.permute.xlu1 %1350  ;;  %v1369_v56 = vadd.f32 %v1363_v60, %v1339_v48 }
 0x444   : > { %v1358_v49 = vsel %vm478_vm0, %v1349_v58, %v1351_v22 }
 0x445   : > { %v1364_v29 = vmul.f32 %v1358_v49, %v3421_v28 }
 0x447   : > { %v1353_v6 = vpop.permute.xlu1 %1352  ;;  %v1370_v2 = vadd.f32 %v1364_v29, %v1340_v50 }
 0x448   : > { %v1357_v52 = vsel %vm478_vm0, %v1351_v22, %v1353_v6 }
 0x449   : > { %v1365_v19 = vmul.f32 %v1357_v52, %v3439_v37 }
 0x44b   : > { %v1345_v21 = vpop.permute.xlu1 %1344  ;;  %v1371_v49 = vadd.f32 %v1365_v19, %v1341_v20 }
 0x44c   : > { %v1360_v46 = vsel %vm478_vm0, %v1345_v21, %v1347_v34 }
 0x44d   : > { %v1362_v60 = vmul.f32 %v1360_v46, %v3461_v45 }
 0x44f   : > { %v1375_v43 = vpop.permute.xlu1 %1374 }
 0x450   : > { %v1391_v35 = vsel %vm540_vm1, %v1385_v40, %v1375_v43 }
 0x451   : > { %v1392_v57 = vmul.f32 %v1391_v35, %v3486_v63 }
 0x453   : > { %v1377_v9 = vpop.permute.xlu1 %1376 }
 0x454   : > { %v1390_v54 = vsel %vm540_vm1, %v1375_v43, %v1377_v9 }
 0x455   : > { %v1393_v16 = vmul.f32 %v1390_v54, %v3443_v38  ;;  %v1338_v54 = vmul.f32 %v1332_v59, %v3457_v44 }
 0x457   : > { %v1379_v26 = vpop.permute.xlu1 %1378  ;;  %v1399_v17 = vadd.f32 %v1393_v16, %v1369_v56 }
 0x458   : > { %v1388_v58 = vsel %vm540_vm1, %v1379_v26, %v1381_v39  ;;  %v1389_v22 = vsel %vm540_vm1, %v1377_v9, %v1379_v26  ;;  %v1368_v9 = vadd.f32 %v1362_v60, %v1338_v54  ;;  %v1343_v26 = vmul.f32 %v4043_v53, %v3506_v11 }
 0x459   : > { %v1394_v34 = vmul.f32 %v1389_v22, %v3452_v42  ;;  %v1395_v14 = vmul.f32 %v1388_v58, %v3470_v51  ;;  %1412 = vrot.lane.b32.xlu0 %v1399_v17, %s3182_s12  ;;  %v1405_v54 = vmul.f32 %v1399_v17, %v3593_v4 }
 0x45a   : > { %v1398_v56 = vadd.f32 %v1392_v57, %v1368_v9 }
 0x45b   : > { %v1355_v52 = vpop.permute.xlu1 %1354  ;;  %v1400_v43 = vadd.f32 %v1394_v34, %v1370_v2  ;;  %v4090_v48 = vadd.f32 %v1395_v14, %v1371_v49 }
 0x45c   : > { %v1361_v29 = vsel %vm478_vm0, %v1355_v52, %v1345_v21  ;;  %v1356_v59 = vsel %vm478_vm0, %v1353_v6, %v1355_v52  ;;  %v1342_v6 = vmul.f32 %v4050_v41, %v3525_v30 }
 0x45d   : > { %1414 = vrot.lane.b32.xlu1 %v1400_v43, %s3182_s12  ;;  %1416 = vrot.lane.b32.xlu0 %v4090_v48, %s3182_s12  ;;  %v1367_v46 = vmul.f32 %v1361_v29, %v3510_v13  ;;  %v1366_v20 = vmul.f32 %v1356_v59, %v3533_v36  ;;  %v1406_v29 = vmul.f32 %v1400_v43, %v3600_v10 }
 0x45f   : > { %v1383_v16 = vpop.permute.xlu1 %1382  ;;  %v1372_v53 = vadd.f32 %v1366_v20, %v1342_v6  ;;  %v4953_v20 = vld [vmem:[#allocation18_spill] sm:$0xff]  ;;  %v4955_v6 = vld [vmem:[#allocation20_spill] sm:$0xff] }
 0x460   : > { %v1386_v19 = vsel %vm540_vm1, %v1383_v16, %v1385_v40  ;;  %v1387_v21 = vsel %vm540_vm1, %v1381_v39, %v1383_v16  ;;  %v1373_v40 = vadd.f32 %v1367_v46, %v1343_v26 }
 0x461   : > { %1440 = vrot.lane.b32.xlu0 %v1398_v56, %s3183_s13  ;;  %1410 = vrot.lane.b32.xlu1 %v1398_v56, %s3182_s12  ;;  %v1397_v50 = vmul.f32 %v1386_v19, %v3519_v23  ;;  %v1396_v35 = vmul.f32 %v1387_v21, %v3545_v5 }
 0x463   : > { %v1403_v58 = vadd.f32 %v1397_v50, %v1373_v40  ;;  %v4118_v22 = vadd.f32 %v1396_v35, %v1372_v53  ;;  %v1404_v53 = vmul.f32 %v1398_v56, %v4955_v6 }
 0x465   : > { %1444 = vrot.lane.b32.xlu0 %v1400_v43, %s3183_s13  ;;  %1442 = vrot.lane.b32.xlu1 %v1399_v17, %s3183_s13  ;;  %v4954_v17 = vld [vmem:[#allocation19_spill] sm:$0xff] }
 0x469   : > { %1420 = vrot.lane.b32.xlu0 %v1403_v58, %s3182_s12  ;;  %1450 = vrot.lane.b32.xlu1 %v1403_v58, %s3183_s13 }
 0x46d   : > { %1418 = vrot.lane.b32.xlu0 %v4118_v22, %s3182_s12  ;;  %1448 = vrot.lane.b32.xlu1 %v4118_v22, %s3183_s13 }
 0x471   : > { %1446 = vrot.lane.b32.xlu1 %v4090_v48, %s3183_s13 }
 0x4cb   : > { %v1413_v39 = vpop.permute.xlu0 %1412 }
 0x4cf   : > { %v1417_v2 = vpop.permute.xlu0 %1416  ;;  %v1415_v60 = vpop.permute.xlu1 %1414 }
 0x4d0   : > { %v1425_v41 = vsel %vm639_vm2, %v1413_v39, %v1415_v60  ;;  %v1424_v34 = vsel %vm639_vm2, %v1415_v60, %v1417_v2 }
 0x4d1   : > { %v1429_v57 = vmul.f32 %v1425_v41, %v3581_v61  ;;  %v1430_v52 = vmul.f32 %v1424_v34, %v3587_v1 }
 0x4d3   : > { %v1441_v14 = vpop.permute.xlu0 %1440  ;;  %v1411_v49 = vpop.permute.xlu1 %1410  ;;  %v1435_v46 = vadd.f32 %v1429_v57, %v1405_v54  ;;  %v1436_v26 = vadd.f32 %v1430_v52, %v1406_v29  ;;  %v4956_v57 = vld [vmem:[#allocation21_spill] sm:$0xff] }
 0x4d4   : > { %v1426_v9 = vsel %vm639_vm2, %v1411_v49, %v1413_v39 }
 0x4d5   : > { %v1428_v21 = vmul.f32 %v1426_v9, %v3605_v7 }
 0x4d7   : > { %v1445_v16 = vpop.permute.xlu0 %1444  ;;  %v1443_v19 = vpop.permute.xlu1 %1442  ;;  %v1434_v34 = vadd.f32 %v1428_v21, %v1404_v53 }
 0x4d8   : > { %v1455_v59 = vsel %vm701_vm3, %v1443_v19, %v1445_v16  ;;  %v1456_v50 = vsel %vm701_vm3, %v1441_v14, %v1443_v19  ;;  %v4957_v19 = vld [vmem:[#allocation22_spill] sm:$0xff] }
 0x4d9   : > { %v1459_v40 = vmul.f32 %v1456_v50, %v4953_v20  ;;  %v1460_v35 = vmul.f32 %v1455_v59, %v4954_v17  ;;  %v4958_v59 = vld [vmem:[#allocation23_spill] sm:$0xff] }
 0x4da   : > { %v1409_v50 = vmul.f32 %v1403_v58, %v4958_v59 }
 0x4db   : > { %v4144_v39 = vadd.f32 %v1459_v40, %v1435_v46  ;;  %v4146_v43 = vadd.f32 %v1460_v35, %v1436_v26  ;;  %v1451_v60 = vpop.permute.xlu1 %1450  ;;  %v1421_v56 = vpop.permute.xlu0 %1420  ;;  %v4959_v26 = vld [vmem:[#allocation24_spill] sm:$0xff] }
 0x4dc   : > { %v1457_v41 = vsel %vm701_vm3, %v1451_v60, %v1441_v14  ;;  %v1427_v9 = vsel %vm639_vm2, %v1421_v56, %v1411_v49 }
 0x4dd   : > { %v1458_v54 = vmul.f32 %v1457_v41, %v4956_v57  ;;  %1646 = vrot.lane.b32.xlu0 %v4144_v39, %s3184_s15  ;;  %1648 = vrot.lane.b32.xlu1 %v4146_v43, %s3184_s15  ;;  %v1433_v46 = vmul.f32 %v1427_v9, %v4957_v19 }
 0x4df   : > { %v4155_v52 = vadd.f32 %v1458_v54, %v1434_v34  ;;  %v1449_v14 = vpop.permute.xlu1 %1448  ;;  %v1439_v40 = vadd.f32 %v1433_v46, %v1409_v50  ;;  %v1419_v49 = vpop.permute.xlu0 %1418  ;;  %v4960_v54 = vld [vmem:[#allocation25_spill] sm:$0xff] }
 0x4e0   : > { %v1452_v29 = vsel %vm701_vm3, %v1449_v14, %v1451_v60  ;;  %v1422_v58 = vsel %vm639_vm2, %v1419_v49, %v1421_v56  ;;  %v1423_v60 = vsel %vm639_vm2, %v1417_v2, %v1419_v49  ;;  %v4962_v56 = vld [vmem:[#allocation27_spill] sm:$0xff]  ;;  %v4963_v2 = vld [vmem:[#allocation28_spill] sm:$0xff]  ;;  %v4965_v49 = vld [vmem:[#allocation30_spill] sm:$0xff] }
 0x4e1   : > { %1622 = vrot.lane.b32.xlu1 %v4144_v39, %s3185_s18  ;;  %1644 = vrot.lane.b32.xlu0 %v4155_v52, %s3184_s15  ;;  %v1463_v21 = vmul.f32 %v1452_v29, %v4959_v26  ;;  %v1431_v9 = vmul.f32 %v1423_v60, %v4960_v54  ;;  %v4961_v29 = vld [vmem:[#allocation26_spill] sm:$0xff]  ;;  %v1407_v50 = vmul.f32 %v4090_v48, %v4962_v56  ;;  %v4278_v48 = vld [vmem:[#allocation10] sm:$0xff] }
 0x4e2   : > { %v1432_v46 = vmul.f32 %v1422_v58, %v4961_v29 }
 0x4e3   : > { %v4188_v35 = vadd.f32 %v1463_v21, %v1439_v40  ;;  %v1447_v53 = vpop.permute.xlu1 %1446  ;;  %v1408_v21 = vmul.f32 %v4118_v22, %v4963_v2 }
 0x4e4   : > { %v1453_v41 = vsel %vm701_vm3, %v1447_v53, %v1449_v14  ;;  %v1454_v34 = vsel %vm701_vm3, %v1445_v16, %v1447_v53  ;;  %v4964_v14 = vld [vmem:[#allocation29_spill] sm:$0xff]  ;;  %v1437_v53 = vadd.f32 %v1431_v9, %v1407_v50 }
 0x4e5   : > { %1620 = vrot.lane.b32.xlu1 %v4155_v52, %s3185_s18  ;;  %1624 = vrot.lane.b32.xlu0 %v4146_v43, %s3185_s18  ;;  %v1461_v40 = vmul.f32 %v1454_v34, %v4964_v14  ;;  %v1462_v16 = vmul.f32 %v1453_v41, %v4965_v49  ;;  %v1438_v60 = vadd.f32 %v1432_v46, %v1408_v21 }
 0x4e7   : > { %v4218_v58 = vadd.f32 %v1461_v40, %v1437_v53  ;;  %v4220_v8 = vadd.f32 %v1462_v16, %v1438_v60 }
 0x4e9   : > { %1600 = vrot.lane.b32.xlu1 %v4146_v43, %s3186_s19  ;;  %1598 = vrot.lane.b32.xlu0 %v4144_v39, %s3186_s19 }
 0x4ed   : > { %1574 = vrot.lane.b32.xlu1 %v4144_v39, %s3187_s20  ;;  %1596 = vrot.lane.b32.xlu0 %v4155_v52, %s3186_s19 }
 0x4f1   : > { %1572 = vrot.lane.b32.xlu1 %v4155_v52, %s3187_s20  ;;  %1576 = vrot.lane.b32.xlu0 %v4146_v43, %s3187_s20 }
 0x4f5   : > { %1544 = vrot.lane.b32.xlu1 %v4144_v39, %s3188_s16  ;;  %1542 = vrot.lane.b32.xlu0 %v4155_v52, %s3188_s16 }
 0x4f9   : > { %1518 = vrot.lane.b32.xlu1 %v4155_v52, %s3189_s21  ;;  %1552 = vrot.lane.b32.xlu0 %v4188_v35, %s3188_s16 }
 0x4fd   : > { %1528 = vrot.lane.b32.xlu1 %v4188_v35, %s3189_s21  ;;  %1520 = vrot.lane.b32.xlu0 %v4144_v39, %s3189_s21 }
 0x501   : > { %1496 = vrot.lane.b32.xlu1 %v4144_v39, %s3190_s22  ;;  %1494 = vrot.lane.b32.xlu0 %v4155_v52, %s3190_s22 }
 0x505   : > { %1652 = vrot.lane.b32.xlu1 %v4220_v8, %s3184_s15  ;;  %1650 = vrot.lane.b32.xlu0 %v4218_v58, %s3184_s15 }
 0x509   : > { %1470 = vrot.lane.b32.xlu1 %v4155_v52, %s3191_s23  ;;  %1504 = vrot.lane.b32.xlu0 %v4188_v35, %s3190_s22 }
 0x50d   : > { %1626 = vrot.lane.b32.xlu1 %v4218_v58, %s3185_s18  ;;  %1472 = vrot.lane.b32.xlu0 %v4144_v39, %s3191_s23 }
 0x511   : > { %1480 = vrot.lane.b32.xlu1 %v4188_v35, %s3191_s23  ;;  %1628 = vrot.lane.b32.xlu0 %v4220_v8, %s3185_s18 }
 0x515   : > { %1604 = vrot.lane.b32.xlu1 %v4220_v8, %s3186_s19  ;;  %1602 = vrot.lane.b32.xlu0 %v4218_v58, %s3186_s19 }
 0x519   : > { %1578 = vrot.lane.b32.xlu1 %v4218_v58, %s3187_s20  ;;  %1654 = vrot.lane.b32.xlu0 %v4188_v35, %s3184_s15 }
 0x51d   : > { %1630 = vrot.lane.b32.xlu1 %v4188_v35, %s3185_s18  ;;  %1580 = vrot.lane.b32.xlu0 %v4220_v8, %s3187_s20 }
 0x521   : > { %1546 = vrot.lane.b32.xlu1 %v4146_v43, %s3188_s16  ;;  %1606 = vrot.lane.b32.xlu0 %v4188_v35, %s3186_s19 }
 0x525   : > { %1582 = vrot.lane.b32.xlu1 %v4188_v35, %s3187_s20  ;;  %1548 = vrot.lane.b32.xlu0 %v4218_v58, %s3188_s16 }
 0x529   : > { %1524 = vrot.lane.b32.xlu1 %v4218_v58, %s3189_s21  ;;  %1522 = vrot.lane.b32.xlu0 %v4146_v43, %s3189_s21 }
 0x52d   : > { %1500 = vrot.lane.b32.xlu1 %v4218_v58, %s3190_s22  ;;  %1498 = vrot.lane.b32.xlu0 %v4146_v43, %s3190_s22 }
 0x531   : > { %1474 = vrot.lane.b32.xlu1 %v4146_v43, %s3191_s23  ;;  %1550 = vrot.lane.b32.xlu0 %v4220_v8, %s3188_s16 }
 0x535   : > { %1526 = vrot.lane.b32.xlu1 %v4220_v8, %s3189_s21  ;;  %1476 = vrot.lane.b32.xlu0 %v4218_v58, %s3191_s23 }
 0x539   : > { %1478 = vrot.lane.b32.xlu1 %v4220_v8, %s3191_s23  ;;  %1502 = vrot.lane.b32.xlu0 %v4220_v8, %s3190_s22 }
 0x53d   : > { %1726 = vperm.xlu0 %2955, %v4278_v48  }
 0x541   : > { %2956 = vset.pattern.permute.xlu0 %v4924_v33 }
 0x54f   : > { %v1647_v22 = vpop.permute.xlu0 %1646  ;;  %v1649_v41 = vpop.permute.xlu1 %1648 }
 0x550   : > { %v1659_v34 = vsel %vm944_vm4, %v1647_v22, %v1649_v41 }
 0x551   : > { %1746 = vmatprep.subr.mxu1 %v1659_v34 }
 0x553   : > { %v1623_v9 = vpop.permute.xlu1 %1622  ;;  %v4284_v46 = vpop.permute.xlu0 %1644 }
 0x554   : > { %v1660_v50 = vsel %vm944_vm4, %v4284_v46, %v1647_v22 }
 0x555   : > { %1747 = vmatpush1.msra.mxu1 %v1660_v50 }
 0x557   : > { %v4289_v21 = vpop.permute.xlu1 %1620  ;;  %v1625_v40 = vpop.permute.xlu0 %1624 }
 0x558   : > { %v1635_v16 = vsel %vm919_vm5, %v1623_v9, %v1625_v40  ;;  %v1636_v53 = vsel %vm919_vm5, %v4289_v21, %v1623_v9 }
 0x559   : > { %1748 = vmatprep.subr.mxu1 %v1635_v16 }
 0x55a   : > { %1749 = vmatpush1.msra.mxu1 %v1636_v53 }
 0x55b   : > { %v1601_v60 = vpop.permute.xlu1 %1600  ;;  %v1599_v34 = vpop.permute.xlu0 %1598 }
 0x55c   : > { %v1611_v33 = vsel %vm894_vm6, %v1599_v34, %v1601_v60 }
 0x55d   : > { %1750 = vmatprep.subr.mxu1 %v1611_v33 }
 0x55f   : > { %v1575_v22 = vpop.permute.xlu1 %1574  ;;  %v4298_v50 = vpop.permute.xlu0 %1596 }
 0x560   : > { %v1612_v49 = vsel %vm894_vm6, %v4298_v50, %v1599_v34 }
 0x561   : > { %1751 = vmatpush1.msra.mxu1 %v1612_v49 }
 0x563   : > { %v4303_v14 = vpop.permute.xlu1 %1572  ;;  %v4305_v2 = vpop.permute.xlu0 %1576 }
 0x564   : > { %v1587_v9 = vsel %vm869_vm7, %v1575_v22, %v4305_v2  ;;  %v1588_v33 = vsel %vm869_vm7, %v4303_v14, %v1575_v22 }
 0x565   : > { %1752 = vmatprep.subr.mxu1 %v1587_v9 }
 0x566   : > { %1753 = vmatpush1.msra.mxu1 %v1588_v33 }
 0x567   : > { %v4313_v16 = vpop.permute.xlu1 %1544  ;;  %1754 = vmatprep.subr.mxu1 %v4144_v39  ;;  %v1543_v53 = vpop.permute.xlu0 %1542 }
 0x568   : > { %1755 = vmatpush1.msra.mxu1 %v4155_v52  ;;  %v1558_v49 = vsel %vm838_vm8, %v1543_v53, %v4313_v16 }
 0x569   : > { %1756 = vmatprep.subr.mxu1 %v1558_v49 }
 0x56b   : > { %v1519_v34 = vpop.permute.xlu1 %1518  ;;  %v4320_v56 = vpop.permute.xlu0 %1552 }
 0x56c   : > { %v1559_v22 = vsel %vm838_vm8, %v4320_v56, %v1543_v53 }
 0x56d   : > { %1757 = vmatpush1.msra.mxu1 %v1559_v22 }
 0x56f   : > { %v4325_v9 = vpop.permute.xlu1 %1528  ;;  %v4327_v33 = vpop.permute.xlu0 %1520 }
 0x570   : > { %v1534_v39 = vsel %vm813_vm9, %v1519_v34, %v4327_v33  ;;  %v1535_v52 = vsel %vm813_vm9, %v4325_v9, %v1519_v34 }
 0x571   : > { %1758 = vmatprep.subr.mxu1 %v1534_v39 }
 0x572   : > { %1759 = vmatpush1.msra.mxu1 %v1535_v52 }
 0x573   : > { %v4335_v49 = vpop.permute.xlu1 %1496  ;;  %v1495_v29 = vpop.permute.xlu0 %1494 }
 0x574   : > { %v1510_v53 = vsel %vm788_vm10, %v1495_v29, %v4335_v49 }
 0x575   : > { %1760 = vmatprep.subr.mxu1 %v1510_v53 }
 0x577   : > { %v1653_v22 = vpop.permute.xlu1 %1652  ;;  %v1651_v54 = vpop.permute.xlu0 %1650 }
 0x578   : > { %v1657_v26 = vsel %vm944_vm4, %v1651_v54, %v1653_v22  ;;  %v1658_v59 = vsel %vm944_vm4, %v1649_v41, %v1651_v54 }
 0x579   : > { %1817 = vmatprep.subr.mxu0 %v1657_v26 }
 0x57a   : > { %1818 = vmatpush1.msra.mxu0 %v1658_v59  ;;  %v4356_v59 = vld [vmem:[#allocation8] sm:$0xff] }
 0x57b   : > { %v1471_v34 = vpop.permute.xlu1 %1470  ;;  %v4344_v39 = vpop.permute.xlu0 %1504 }
 0x57c   : > { %v1511_v52 = vsel %vm788_vm10, %v4344_v39, %v1495_v29 }
 0x57d   : > { %1761 = vmatpush1.msra.mxu1 %v1511_v52 }
 0x57f   : > { %v1627_v19 = vpop.permute.xlu1 %1626  ;;  %v4349_v53 = vpop.permute.xlu0 %1472 }
 0x580   : > { %v1486_v57 = vsel %vm763_vm11, %v1471_v34, %v4349_v53  ;;  %v1634_v41 = vsel %vm919_vm5, %v1625_v40, %v1627_v19 }
 0x581   : > { %1762 = vmatprep.subr.mxu1 %v1486_v57 }
 0x583   : > { %v4354_v6 = vpop.permute.xlu1 %1480  ;;  %v1629_v26 = vpop.permute.xlu0 %1628 }
 0x584   : > { %v1487_v54 = vsel %vm763_vm11, %v4354_v6, %v1471_v34  ;;  %v1633_v29 = vsel %vm919_vm5, %v1627_v19, %v1629_v26 }
 0x585   : > { %1763 = vmatpush1.msra.mxu1 %v1487_v54  ;;  %1819 = vmatprep.subr.mxu0 %v1633_v29 }
 0x586   : > { %1820 = vmatpush1.msra.mxu0 %v1634_v41  ;;  %2848 = vmatmul.mubr.msk.f32.vlgmr.msra.gmra.mxu1 %vm1018_vm12, %v4356_v59 }
 0x587   : > { %v1605_v57 = vpop.permute.xlu1 %1604  ;;  %v1603_v52 = vpop.permute.xlu0 %1602  ;;  %1938 = vmatprep.mubr.f32.mxu1 %v4951_v47 }
 0x588   : > { %v1610_v17 = vsel %vm894_vm6, %v1601_v60, %v1603_v52  ;;  %v1609_v34 = vsel %vm894_vm6, %v1603_v52, %v1605_v57 }
 0x589   : > { %1821 = vmatprep.subr.mxu0 %v1609_v34 }
 0x58a   : > { %1822 = vmatpush1.msra.mxu0 %v1610_v17 }
 0x58b   : > { %v1579_v54 = vpop.permute.xlu1 %1578  ;;  %v1655_v29 = vpop.permute.xlu0 %1654 }
 0x58c   : > { %v1656_v19 = vsel %vm944_vm4, %v1653_v22, %v1655_v29  ;;  %v1661_v40 = vsel %vm944_vm4, %v1655_v29, %v4284_v46  ;;  %v1586_v46 = vsel %vm869_vm7, %v4305_v2, %v1579_v54 }
 0x58d   : > { %1888 = vmatprep.subr.mxu1 %v1661_v40 }
 0x58e   : > { %1889 = vmatpush1.msra.mxu1 %v1656_v19 }
 0x58f   : > { %v1631_v41 = vpop.permute.xlu1 %1630  ;;  %v1581_v20 = vpop.permute.xlu0 %1580 }
 0x590   : > { %v1585_v60 = vsel %vm869_vm7, %v1579_v54, %v1581_v20  ;;  %v1637_v17 = vsel %vm919_vm5, %v1631_v41, %v4289_v21  ;;  %v1632_v52 = vsel %vm919_vm5, %v1629_v26, %v1631_v41 }
 0x591   : > { %1823 = vmatprep.subr.mxu0 %v1585_v60  ;;  %1890 = vmatprep.subr.mxu1 %v1637_v17 }
 0x592   : > { %1824 = vmatpush1.msra.mxu0 %v1586_v46  ;;  %1891 = vmatpush1.msra.mxu1 %v1632_v52 }
 0x593   : > { %v1547_v22 = vpop.permute.xlu1 %1546  ;;  %1825 = vmatprep.subr.mxu0 %v4218_v58  ;;  %v1607_v34 = vpop.permute.xlu0 %1606 }
 0x594   : > { %v1608_v29 = vsel %vm894_vm6, %v1605_v57, %v1607_v34  ;;  %1826 = vmatpush1.msra.mxu0 %v4146_v43  ;;  %v1613_v21 = vsel %vm894_vm6, %v1607_v34, %v4298_v50  ;;  %v1557_v43 = vsel %vm838_vm8, %v4313_v16, %v1547_v22 }
 0x595   : > { %1892 = vmatprep.subr.mxu1 %v1613_v21 }
 0x596   : > { %1893 = vmatpush1.msra.mxu1 %v1608_v29 }
 0x597   : > { %v1583_v26 = vpop.permute.xlu1 %1582  ;;  %v1549_v19 = vpop.permute.xlu0 %1548 }
 0x598   : > { %v1556_v2 = vsel %vm838_vm8, %v1547_v22, %v1549_v19  ;;  %v1589_v58 = vsel %vm869_vm7, %v1583_v26, %v4303_v14  ;;  %v1584_v57 = vsel %vm869_vm7, %v1581_v20, %v1583_v26 }
 0x599   : > { %1827 = vmatprep.subr.mxu0 %v1556_v2  ;;  %1894 = vmatprep.subr.mxu1 %v1589_v58 }
 0x59a   : > { %1828 = vmatpush1.msra.mxu0 %v1557_v43  ;;  %1895 = vmatpush1.msra.mxu1 %v1584_v57 }
 0x59b   : > { %v1525_v50 = vpop.permute.xlu1 %1524  ;;  %1896 = vmatprep.subr.mxu1 %v4188_v35  ;;  %v1523_v54 = vpop.permute.xlu0 %1522 }
 0x59c   : > { %v1533_v40 = vsel %vm813_vm9, %v4327_v33, %v1523_v54  ;;  %1897 = vmatpush1.msra.mxu1 %v4220_v8  ;;  %v1532_v20 = vsel %vm813_vm9, %v1523_v54, %v1525_v50 }
 0x59d   : > { %1829 = vmatprep.subr.mxu0 %v1532_v20 }
 0x59e   : > { %1830 = vmatpush1.msra.mxu0 %v1533_v40 }
 0x59f   : > { %v1501_v14 = vpop.permute.xlu1 %1500  ;;  %v1499_v41 = vpop.permute.xlu0 %1498 }
 0x5a0   : > { %v1509_v16 = vsel %vm788_vm10, %v4335_v49, %v1499_v41  ;;  %v1508_v35 = vsel %vm788_vm10, %v1499_v41, %v1501_v14 }
 0x5a1   : > { %1831 = vmatprep.subr.mxu0 %v1508_v35 }
 0x5a2   : > { %1832 = vmatpush1.msra.mxu0 %v1509_v16 }
 0x5a3   : > { %v1475_v60 = vpop.permute.xlu1 %1474  ;;  %v1551_v33 = vpop.permute.xlu0 %1550 }
 0x5a4   : > { %v1555_v8 = vsel %vm838_vm8, %v1549_v19, %v1551_v33  ;;  %v1554_v17 = vsel %vm838_vm8, %v1551_v33, %v4320_v56  ;;  %v1485_v29 = vsel %vm763_vm11, %v4349_v53, %v1475_v60 }
 0x5a5   : > { %1898 = vmatprep.subr.mxu1 %v1554_v17 }
 0x5a6   : > { %1899 = vmatpush1.msra.mxu1 %v1555_v8 }
 0x5a7   : > { %v1527_v52 = vpop.permute.xlu1 %1526  ;;  %v1477_v46 = vpop.permute.xlu0 %1476 }
 0x5a8   : > { %v1531_v49 = vsel %vm813_vm9, %v1525_v50, %v1527_v52  ;;  %v1484_v22 = vsel %vm763_vm11, %v1475_v60, %v1477_v46  ;;  %v1530_v34 = vsel %vm813_vm9, %v1527_v52, %v4325_v9 }
 0x5a9   : > { %1833 = vmatprep.subr.mxu0 %v1484_v22  ;;  %1900 = vmatprep.subr.mxu1 %v1530_v34 }
 0x5aa   : > { %1834 = vmatpush1.msra.mxu0 %v1485_v29  ;;  %1901 = vmatpush1.msra.mxu1 %v1531_v49 }
 0x5ab   : > { %v1479_v56 = vpop.permute.xlu1 %1478  ;;  %2849 = vmatmul.mubr.msk.f32.vlgmr.msra.gmra.mxu0 %vm1018_vm12, %v4356_v59  ;;  %v1503_v21 = vpop.permute.xlu0 %1502 }
 0x5ac   : > { %v1507_v26 = vsel %vm788_vm10, %v1501_v14, %v1503_v21  ;;  %v1506_v9 = vsel %vm788_vm10, %v1503_v21, %v4344_v39  ;;  %2474 = vmatprep.mubr.f32.mxu0 %v4951_v47  ;;  %v1482_v53 = vsel %vm763_vm11, %v1479_v56, %v4354_v6  ;;  %v1483_v19 = vsel %vm763_vm11, %v1477_v46, %v1479_v56 }
 0x5ad   : > { %1902 = vmatprep.subr.mxu1 %v1506_v9 }
 0x5ae   : > { %1903 = vmatpush1.msra.mxu1 %v1507_v26 }
 0x5af   : > { %1904 = vmatprep.subr.mxu1 %v1482_v53 }
 0x5b0   : > { %1905 = vmatpush1.msra.mxu1 %v1483_v19 }
 0x5b1   : > { %2850 = vmatmul.mubr.msk.f32.vlgmr.msra.gmra.mxu1 %vm1018_vm12, %v4356_v59 }
 0x5b2   : > { %2545 = vmatprep.mubr.f32.mxu1 %v4951_v47 }
 0x5b8   : > { %v1727_v58 = vpop.permute.xlu0 %1726 }
 0x646   : > { %v1798_v2 = vpop.f32.mrf.mxu1 }
 0x647   : > { %v1799_v57 = vadd.f32 %v1798_v2, %v1727_v58 }
 0x648   : > { %v1800_v39 = vpop.f32.mrf.mxu1 }
 0x649   : > { %v1801_v43 = vadd.f32 %v1800_v39, %v1727_v58  ;;  %v4447_v50 = vmax.f32 %v1799_v57, 0.0 }
 0x64b   : > { %v1946_v54 = vmax.f32 %v1801_v43, 0.0  ;;  %v1951_v6 = vmul.f32 %v4447_v50, %v4010_v62 }
 0x64d   : > { %v1952_v40 = vmul.f32 %v1946_v54, %v4013_v15  ;;  %v1965_v41 = vmul.f32 %v1951_v6, %v4447_v50 }
 0x64f   : > { %v1966_v59 = vmul.f32 %v1952_v40, %v1946_v54  ;;  %v1957_v8 = vadd.f32 %v1952_v40, %v1951_v6 }
 0x651   : > { %v1971_v52 = vadd.f32 %v1966_v59, %v1965_v41 }
 0x66b   : > { %v1869_v20 = vpop.f32.mrf.mxu0 }
 0x66c   : > { %v1870_v14 = vadd.f32 %v1869_v20, %v1727_v58 }
 0x66d   : > { %v1871_v16 = vpop.f32.mrf.mxu0 }
 0x66e   : > { %v1947_v35 = vmax.f32 %v1870_v14, 0.0  ;;  %v1872_v60 = vadd.f32 %v1871_v16, %v1727_v58 }
 0x670   : > { %v1953_v33 = vmul.f32 %v1947_v35, %v4020_v18  ;;  %v1948_v17 = vmax.f32 %v1872_v60, 0.0 }
 0x671   : > { %v1940_v46 = vpop.f32.mrf.mxu1 }
 0x672   : > { %v1958_v49 = vadd.f32 %v1957_v8, %v1953_v33  ;;  %v1967_v22 = vmul.f32 %v1953_v33, %v1947_v35  ;;  %v1954_v34 = vmul.f32 %v1948_v17, %v4023_v32  ;;  %v1941_v29 = vadd.f32 %v1940_v46, %v1727_v58 }
 0x673   : > { %v1942_v56 = vpop.f32.mrf.mxu1 }
 0x674   : > { %v1972_v21 = vadd.f32 %v1971_v52, %v1967_v22  ;;  %v1968_v26 = vmul.f32 %v1954_v34, %v1948_v17  ;;  %v1949_v9 = vmax.f32 %v1941_v29, 0.0  ;;  %v1943_v53 = vadd.f32 %v1942_v56, %v1727_v58 }
 0x675   : > { %v1959_v19 = vadd.f32 %v1958_v49, %v1954_v34  ;;  %v4966_v58 = vmov 1  }
 0x676   : > { %v1955_v2 = vmul.f32 %v1949_v9, %v4029_v3  ;;  %v1950_v39 = vmax.f32 %v1943_v53, 0.0  ;;  %v1973_v57 = vadd.f32 %v1972_v21, %v1968_v26 }
 0x678   : > { %v1969_v43 = vmul.f32 %v1955_v2, %v1949_v9  ;;  %v1960_v6 = vadd.f32 %v1959_v19, %v1955_v2  ;;  %v1956_v40 = vmul.f32 %v1950_v39, %v4033_v55 }
 0x67a   : > { %v1974_v20 = vadd.f32 %v1973_v57, %v1969_v43  ;;  %v1970_v14 = vmul.f32 %v1956_v40, %v1950_v39  ;;  %v1961_v41 = vadd.f32 %v1960_v6, %v1956_v40 }
 0x67c   : > { %1962 = vadd.xlane.f32.xlu1 %v1961_v41  ;;  %v1975_v59 = vadd.f32 %v1974_v20, %v1970_v14 }
 0x67e   : > { %1976 = vadd.xlane.f32.xlu0 %v1975_v59 }
 0x68d   : > { %1997 = vperm.xlu1 %2953, %v4278_v48  }
 0x691   : > { %2957 = vset.pattern.permute.xlu1 %v4952_v0 }
 0x694   : > { %2007 = vperm.xlu0 %2956, %v4278_v48  }
 0x698   : > { %2958 = vset.pattern.permute.xlu0 %v4966_v58 }
 0x705   : > { %v1963_v16 = vpop.xlane.xlu1 %1962 }
 0x706   : > { %v1964_v60 = vmul.f32 0.001953125, %v1963_v16 }
 0x707   : > { %v1977_v33 = vpop.xlane.xlu0 %1976 }
 0x708   : > { %v1978_v8 = vmul.f32 0.001953125, %v1977_v33  ;;  %v1979_v52 = vmul.f32 %v1964_v60, %v1964_v60  ;;  %v1984_v34 = vsub.f32 %v1947_v35, %v1964_v60  ;;  %v1983_v29 = vsub.f32 %v1946_v54, %v1964_v60 }
 0x709   : > { %v1987_v56 = vsub.f32 %v1950_v39, %v1964_v60  ;;  %v1998_v19 = vpop.permute.xlu1 %1997  ;;  %v1986_v2 = vsub.f32 %v1949_v9, %v1964_v60  ;;  %v1985_v6 = vsub.f32 %v1948_v17, %v1964_v60  ;;  %v1982_v17 = vsub.f32 %v4447_v50, %v1964_v60 }
 0x70a   : > { %v1980_v46 = vsub.f32 %v1978_v8, %v1979_v52 }
 0x70c   : > { %v1981_v49 = vmax.f32 %v1980_v46, 0.0 }
 0x70e   : > { %v1988_v22 = vadd.f32 1e-05, %v1981_v49 }
 0x70f   : > { %v2008_v48 = vpop.permute.xlu0 %2007 }
 0x710   : > { %2963 = vrsqrt.f32 %v1988_v22 }
 0x71d   : > { %v2964_v21 = vpop.eup %2963 }
 0x71e   : > { %v1992_v26 = vmul.f32 %v2964_v21, %v1984_v34  ;;  %v1991_v53 = vmul.f32 %v2964_v21, %v1983_v29  ;;  %v1995_v0 = vmul.f32 %v2964_v21, %v1987_v56  ;;  %v1994_v40 = vmul.f32 %v2964_v21, %v1986_v2 }
 0x71f   : > { %v1993_v59 = vmul.f32 %v2964_v21, %v1985_v6  ;;  %v1990_v16 = vmul.f32 %v2964_v21, %v1982_v17 }
 0x720   : > { %v2002_v57 = vmul.f32 %v1998_v19, %v1992_v26  ;;  %v2001_v43 = vmul.f32 %v1998_v19, %v1991_v53  ;;  %v2005_v41 = vmul.f32 %v1998_v19, %v1995_v0  ;;  %v2004_v35 = vmul.f32 %v1998_v19, %v1994_v40 }
 0x721   : > { %v2003_v39 = vmul.f32 %v1998_v19, %v1993_v59  ;;  %v2000_v33 = vmul.f32 %v1998_v19, %v1990_v16 }
 0x722   : > { %v2012_v20 = vadd.f32 %v2008_v48, %v2002_v57  ;;  %v2011_v14 = vadd.f32 %v2008_v48, %v2001_v43  ;;  %v4463_v54 = vadd.f32 %v2008_v48, %v2005_v41  ;;  %v4469_v9 = vadd.f32 %v2008_v48, %v2004_v35 }
 0x723   : > { %v2013_v58 = vadd.f32 %v2008_v48, %v2003_v39  ;;  %v2010_v8 = vadd.f32 %v2008_v48, %v2000_v33 }
 0x724   : > { %2056 = vrot.lane.b32.xlu0 %v2012_v20, %s3181_s11  ;;  %2024 = vrot.lane.b32.xlu1 %v2011_v14, %s3180_s10  ;;  %v2017_v26 = vmul.f32 %v2011_v14, %v3407_v24  ;;  %v2018_v19 = vmul.f32 %v2012_v20, %v3411_v25 }
 0x725   : > { %v2019_v25 = vmul.f32 %v2013_v58, %v3429_v31 }
 0x728   : > { %2032 = vrot.lane.b32.xlu0 %v4463_v54, %s3180_s10  ;;  %2026 = vrot.lane.b32.xlu1 %v2012_v20, %s3180_s10 }
 0x72c   : > { %2060 = vrot.lane.b32.xlu0 %v4469_v9, %s3181_s11  ;;  %2028 = vrot.lane.b32.xlu1 %v2013_v58, %s3180_s10 }
 0x730   : > { %2030 = vrot.lane.b32.xlu1 %v4469_v9, %s3180_s10 }
 0x734   : > { %2022 = vrot.lane.b32.xlu1 %v2010_v8, %s3180_s10 }
 0x738   : > { %2052 = vrot.lane.b32.xlu1 %v2010_v8, %s3181_s11 }
 0x73c   : > { %2054 = vrot.lane.b32.xlu1 %v2011_v14, %s3181_s11 }
 0x740   : > { %2058 = vrot.lane.b32.xlu1 %v2013_v58, %s3181_s11 }
 0x744   : > { %2062 = vrot.lane.b32.xlu1 %v4463_v54, %s3181_s11 }
 0x796   : > { %v2025_v50 = vpop.permute.xlu1 %2024  ;;  %v2057_v0 = vpop.permute.xlu0 %2056 }
 0x79a   : > { %v2027_v60 = vpop.permute.xlu1 %2026  ;;  %v2033_v35 = vpop.permute.xlu0 %2032 }
 0x79b   : > { %v2037_v22 = vsel %vm478_vm0, %v2025_v50, %v2027_v60 }
 0x79c   : > { %v2041_v56 = vmul.f32 %v2037_v22, %v3417_v27 }
 0x79e   : > { %v2029_v52 = vpop.permute.xlu1 %2028  ;;  %v2047_v2 = vadd.f32 %v2041_v56, %v2017_v26 }
 0x79f   : > { %v2036_v34 = vsel %vm478_vm0, %v2027_v60, %v2029_v52  ;;  %v2021_v60 = vmul.f32 %v4463_v54, %v3506_v11 }
 0x7a0   : > { %v2042_v21 = vmul.f32 %v2036_v34, %v3421_v28 }
 0x7a2   : > { %v2031_v46 = vpop.permute.xlu1 %2030  ;;  %v2048_v6 = vadd.f32 %v2042_v21, %v2018_v19 }
 0x7a3   : > { %v2035_v53 = vsel %vm478_vm0, %v2029_v52, %v2031_v46 }
 0x7a4   : > { %v2043_v27 = vmul.f32 %v2035_v53, %v3439_v37 }
 0x7a6   : > { %v2023_v49 = vpop.permute.xlu1 %2022  ;;  %v2049_v39 = vadd.f32 %v2043_v27, %v2019_v25  ;;  %v4969_v25 = vld [vmem:[#allocation20_spill] sm:$0xff] }
 0x7a7   : > { %v2038_v40 = vsel %vm478_vm0, %v2023_v49, %v2025_v50 }
 0x7a8   : > { %v2040_v17 = vmul.f32 %v2038_v40, %v3461_v45  ;;  %v2039_v45 = vsel %vm478_vm0, %v2033_v35, %v2023_v49 }
 0x7aa   : > { %v2053_v29 = vpop.permute.xlu1 %2052 }
 0x7ae   : > { %v2055_v48 = vpop.permute.xlu1 %2054 }
 0x7af   : > { %v2067_v57 = vsel %vm540_vm1, %v2055_v48, %v2057_v0  ;;  %v2068_v43 = vsel %vm540_vm1, %v2053_v29, %v2055_v48 }
 0x7b0   : > { %v2071_v28 = vmul.f32 %v2068_v43, %v3443_v38  ;;  %v2072_v24 = vmul.f32 %v2067_v57, %v3452_v42  ;;  %v2016_v38 = vmul.f32 %v2010_v8, %v3457_v44  ;;  %v2045_v8 = vmul.f32 %v2039_v45, %v3510_v13  ;;  %v4972_v45 = vld [vmem:[#allocation23_spill] sm:$0xff] }
 0x7b1   : > { %v2020_v13 = vmul.f32 %v4469_v9, %v3525_v30 }
 0x7b2   : > { %v2077_v20 = vadd.f32 %v2071_v28, %v2047_v2  ;;  %v2078_v14 = vadd.f32 %v2072_v24, %v2048_v6  ;;  %v2059_v41 = vpop.permute.xlu1 %2058  ;;  %v2046_v16 = vadd.f32 %v2040_v17, %v2016_v38  ;;  %v2051_v34 = vadd.f32 %v2045_v8, %v2021_v60 }
 0x7b3   : > { %v2066_v59 = vsel %vm540_vm1, %v2057_v0, %v2059_v41 }
 0x7b4   : > { %v2073_v37 = vmul.f32 %v2066_v59, %v3470_v51  ;;  %2090 = vrot.lane.b32.xlu1 %v2077_v20, %s3182_s12  ;;  %2092 = vrot.lane.b32.xlu0 %v2078_v14, %s3182_s12  ;;  %v2061_v51 = vpop.permute.xlu0 %2060  ;;  %v2083_v0 = vmul.f32 %v2077_v20, %v3593_v4  ;;  %v2084_v48 = vmul.f32 %v2078_v14, %v3600_v10  ;;  %v4968_v4 = vld [vmem:[#allocation19_spill] sm:$0xff] }
 0x7b5   : > { %v2065_v49 = vsel %vm540_vm1, %v2059_v41, %v2061_v51 }
 0x7b6   : > { %v4509_v42 = vadd.f32 %v2073_v37, %v2049_v39  ;;  %v2063_v31 = vpop.permute.xlu1 %2062  ;;  %v4970_v39 = vld [vmem:[#allocation21_spill] sm:$0xff] }
 0x7b7   : > { %v2069_v58 = vsel %vm540_vm1, %v2063_v31, %v2053_v29  ;;  %v2064_v44 = vsel %vm540_vm1, %v2061_v51, %v2063_v31 }
 0x7b8   : > { %v2070_v33 = vmul.f32 %v2069_v58, %v3486_v63  ;;  %2094 = vrot.lane.b32.xlu1 %v4509_v42, %s3182_s12  ;;  %v2034_v63 = vsel %vm478_vm0, %v2031_v46, %v2033_v35  ;;  %v2075_v52 = vmul.f32 %v2064_v44, %v3519_v23  ;;  %v2074_v46 = vmul.f32 %v2065_v49, %v3545_v5 }
 0x7b9   : > { %v2044_v22 = vmul.f32 %v2034_v63, %v3533_v36 }
 0x7ba   : > { %v2076_v50 = vadd.f32 %v2070_v33, %v2046_v16  ;;  %v2081_v29 = vadd.f32 %v2075_v52, %v2051_v34  ;;  %v4971_v16 = vld [vmem:[#allocation22_spill] sm:$0xff] }
 0x7bb   : > { %v2050_v56 = vadd.f32 %v2044_v22, %v2020_v13 }
 0x7bc   : > { %2118 = vrot.lane.b32.xlu1 %v2076_v50, %s3183_s13  ;;  %2088 = vrot.lane.b32.xlu0 %v2076_v50, %s3182_s12  ;;  %v2087_v51 = vmul.f32 %v2081_v29, %v4972_v45 }
 0x7bd   : > { %v4538_v11 = vadd.f32 %v2074_v46, %v2050_v56  ;;  %v4974_v46 = vld [vmem:[#allocation25_spill] sm:$0xff]  ;;  %v4975_v56 = vld [vmem:[#allocation26_spill] sm:$0xff] }
 0x7c0   : > { %2122 = vrot.lane.b32.xlu1 %v2078_v14, %s3183_s13  ;;  %2120 = vrot.lane.b32.xlu0 %v2077_v20, %s3183_s13  ;;  %v2082_v20 = vmul.f32 %v2076_v50, %v4969_v25  ;;  %v4973_v50 = vld [vmem:[#allocation24_spill] sm:$0xff] }
 0x7c4   : > { %2098 = vrot.lane.b32.xlu1 %v2081_v29, %s3182_s12  ;;  %2128 = vrot.lane.b32.xlu0 %v2081_v29, %s3183_s13 }
 0x7c8   : > { %2096 = vrot.lane.b32.xlu1 %v4538_v11, %s3182_s12  ;;  %2126 = vrot.lane.b32.xlu0 %v4538_v11, %s3183_s13 }
 0x7cc   : > { %2124 = vrot.lane.b32.xlu0 %v4509_v42, %s3183_s13 }
 0x826   : > { %v2091_v23 = vpop.permute.xlu1 %2090  ;;  %v2093_v30 = vpop.permute.xlu0 %2092 }
 0x827   : > { %v2103_v5 = vsel %vm639_vm2, %v2091_v23, %v2093_v30 }
 0x828   : > { %v2107_v26 = vmul.f32 %v2103_v5, %v3581_v61 }
 0x82a   : > { %v2095_v36 = vpop.permute.xlu1 %2094  ;;  %v2113_v43 = vadd.f32 %v2107_v26, %v2083_v0  ;;  %v4979_v26 = vld [vmem:[#allocation30_spill] sm:$0xff] }
 0x82b   : > { %v2102_v54 = vsel %vm639_vm2, %v2093_v30, %v2095_v36  ;;  %v4976_v30 = vld [vmem:[#allocation27_spill] sm:$0xff] }
 0x82c   : > { %v2108_v53 = vmul.f32 %v2102_v54, %v3587_v1  ;;  %v4967_v1 = vld [vmem:[#allocation18_spill] sm:$0xff]  ;;  %v2085_v5 = vmul.f32 %v4509_v42, %v4976_v30  ;;  %v4698_v42 = vld [vmem:[#allocation13] sm:$0xff] }
 0x82e   : > { %v2119_v9 = vpop.permute.xlu1 %2118  ;;  %v2089_v21 = vpop.permute.xlu0 %2088  ;;  %v2114_v28 = vadd.f32 %v2108_v53, %v2084_v48 }
 0x82f   : > { %v2104_v19 = vsel %vm639_vm2, %v2089_v21, %v2091_v23 }
 0x830   : > { %v2106_v61 = vmul.f32 %v2104_v19, %v3605_v7 }
 0x832   : > { %v2123_v2 = vpop.permute.xlu1 %2122  ;;  %v2121_v57 = vpop.permute.xlu0 %2120  ;;  %v2112_v35 = vadd.f32 %v2106_v61, %v2082_v20 }
 0x833   : > { %v2133_v6 = vsel %vm701_vm3, %v2121_v57, %v2123_v2  ;;  %v2134_v27 = vsel %vm701_vm3, %v2119_v9, %v2121_v57 }
 0x834   : > { %v2137_v24 = vmul.f32 %v2134_v27, %v4967_v1  ;;  %v2138_v40 = vmul.f32 %v2133_v6, %v4968_v4 }
 0x836   : > { %v4564_v41 = vadd.f32 %v2137_v24, %v2113_v43  ;;  %v4566_v10 = vadd.f32 %v2138_v40, %v2114_v28  ;;  %v2129_v14 = vpop.permute.xlu0 %2128  ;;  %v2099_v37 = vpop.permute.xlu1 %2098 }
 0x837   : > { %v2135_v59 = vsel %vm701_vm3, %v2129_v14, %v2119_v9  ;;  %v2105_v31 = vsel %vm639_vm2, %v2099_v37, %v2089_v21  ;;  %v4978_v9 = vld [vmem:[#allocation29_spill] sm:$0xff] }
 0x838   : > { %v2136_v17 = vmul.f32 %v2135_v59, %v4970_v39  ;;  %2324 = vrot.lane.b32.xlu1 %v4564_v41, %s3184_s15  ;;  %2326 = vrot.lane.b32.xlu0 %v4566_v10, %s3184_s15  ;;  %v2111_v33 = vmul.f32 %v2105_v31, %v4971_v16 }
 0x83a   : > { %v4575_v7 = vadd.f32 %v2136_v17, %v2112_v35  ;;  %v2127_v38 = vpop.permute.xlu0 %2126  ;;  %v2117_v8 = vadd.f32 %v2111_v33, %v2087_v51  ;;  %v2097_v63 = vpop.permute.xlu1 %2096 }
 0x83b   : > { %v2130_v58 = vsel %vm701_vm3, %v2127_v38, %v2129_v14  ;;  %v2100_v49 = vsel %vm639_vm2, %v2097_v63, %v2099_v37  ;;  %v2101_v22 = vsel %vm639_vm2, %v2095_v36, %v2097_v63  ;;  %v4977_v36 = vld [vmem:[#allocation28_spill] sm:$0xff] }
 0x83c   : > { %2300 = vrot.lane.b32.xlu0 %v4564_v41, %s3185_s18  ;;  %2322 = vrot.lane.b32.xlu1 %v4575_v7, %s3184_s15  ;;  %v2141_v44 = vmul.f32 %v2130_v58, %v4973_v50  ;;  %v2109_v29 = vmul.f32 %v2101_v22, %v4974_v46  ;;  %v2110_v23 = vmul.f32 %v2100_v49, %v4975_v56 }
 0x83d   : > { %v2086_v54 = vmul.f32 %v4538_v11, %v4977_v36  ;;  %v4980_v11 = vmov 2  }
 0x83e   : > { %v4608_v60 = vadd.f32 %v2141_v44, %v2117_v8  ;;  %v2125_v52 = vpop.permute.xlu0 %2124  ;;  %v2115_v0 = vadd.f32 %v2109_v29, %v2085_v5 }
 0x83f   : > { %v2131_v34 = vsel %vm701_vm3, %v2125_v52, %v2127_v38  ;;  %v2132_v13 = vsel %vm701_vm3, %v2123_v2, %v2125_v52  ;;  %v2116_v19 = vadd.f32 %v2110_v23, %v2086_v54 }
 0x840   : > { %2298 = vrot.lane.b32.xlu0 %v4575_v7, %s3185_s18  ;;  %2302 = vrot.lane.b32.xlu1 %v4566_v10, %s3185_s18  ;;  %v2139_v21 = vmul.f32 %v2132_v13, %v4978_v9  ;;  %v2140_v53 = vmul.f32 %v2131_v34, %v4979_v26 }
 0x842   : > { %v4638_v48 = vadd.f32 %v2139_v21, %v2115_v0  ;;  %v4640_v2 = vadd.f32 %v2140_v53, %v2116_v19  ;;  %v4776_v21 = vld [vmem:[#allocation11] sm:$0xff] }
 0x844   : > { %2278 = vrot.lane.b32.xlu0 %v4566_v10, %s3186_s19  ;;  %2276 = vrot.lane.b32.xlu1 %v4564_v41, %s3186_s19 }
 0x848   : > { %2252 = vrot.lane.b32.xlu0 %v4564_v41, %s3187_s20  ;;  %2274 = vrot.lane.b32.xlu1 %v4575_v7, %s3186_s19 }
 0x84c   : > { %2250 = vrot.lane.b32.xlu0 %v4575_v7, %s3187_s20  ;;  %2254 = vrot.lane.b32.xlu1 %v4566_v10, %s3187_s20 }
 0x850   : > { %2222 = vrot.lane.b32.xlu0 %v4564_v41, %s3188_s16  ;;  %2220 = vrot.lane.b32.xlu1 %v4575_v7, %s3188_s16 }
 0x854   : > { %2196 = vrot.lane.b32.xlu0 %v4575_v7, %s3189_s21  ;;  %2230 = vrot.lane.b32.xlu1 %v4608_v60, %s3188_s16 }
 0x858   : > { %2206 = vrot.lane.b32.xlu0 %v4608_v60, %s3189_s21  ;;  %2198 = vrot.lane.b32.xlu1 %v4564_v41, %s3189_s21 }
 0x85c   : > { %2174 = vrot.lane.b32.xlu0 %v4564_v41, %s3190_s22  ;;  %2172 = vrot.lane.b32.xlu1 %v4575_v7, %s3190_s22 }
 0x860   : > { %2330 = vrot.lane.b32.xlu0 %v4640_v2, %s3184_s15  ;;  %2328 = vrot.lane.b32.xlu1 %v4638_v48, %s3184_s15 }
 0x864   : > { %2148 = vrot.lane.b32.xlu0 %v4575_v7, %s3191_s23  ;;  %2182 = vrot.lane.b32.xlu1 %v4608_v60, %s3190_s22 }
 0x868   : > { %2304 = vrot.lane.b32.xlu0 %v4638_v48, %s3185_s18  ;;  %2150 = vrot.lane.b32.xlu1 %v4564_v41, %s3191_s23 }
 0x86c   : > { %2158 = vrot.lane.b32.xlu0 %v4608_v60, %s3191_s23  ;;  %2306 = vrot.lane.b32.xlu1 %v4640_v2, %s3185_s18 }
 0x870   : > { %2282 = vrot.lane.b32.xlu0 %v4640_v2, %s3186_s19  ;;  %2280 = vrot.lane.b32.xlu1 %v4638_v48, %s3186_s19 }
 0x874   : > { %2256 = vrot.lane.b32.xlu0 %v4638_v48, %s3187_s20  ;;  %2332 = vrot.lane.b32.xlu1 %v4608_v60, %s3184_s15 }
 0x878   : > { %2308 = vrot.lane.b32.xlu0 %v4608_v60, %s3185_s18  ;;  %2258 = vrot.lane.b32.xlu1 %v4640_v2, %s3187_s20 }
 0x87c   : > { %2224 = vrot.lane.b32.xlu0 %v4566_v10, %s3188_s16  ;;  %2284 = vrot.lane.b32.xlu1 %v4608_v60, %s3186_s19 }
 0x880   : > { %2260 = vrot.lane.b32.xlu0 %v4608_v60, %s3187_s20  ;;  %2226 = vrot.lane.b32.xlu1 %v4638_v48, %s3188_s16 }
 0x884   : > { %2202 = vrot.lane.b32.xlu0 %v4638_v48, %s3189_s21  ;;  %2200 = vrot.lane.b32.xlu1 %v4566_v10, %s3189_s21 }
 0x888   : > { %2178 = vrot.lane.b32.xlu0 %v4638_v48, %s3190_s22  ;;  %2176 = vrot.lane.b32.xlu1 %v4566_v10, %s3190_s22 }
 0x88c   : > { %2152 = vrot.lane.b32.xlu0 %v4566_v10, %s3191_s23  ;;  %2228 = vrot.lane.b32.xlu1 %v4640_v2, %s3188_s16 }
 0x890   : > { %2204 = vrot.lane.b32.xlu0 %v4640_v2, %s3189_s21  ;;  %2154 = vrot.lane.b32.xlu1 %v4638_v48, %s3191_s23 }
 0x894   : > { %2156 = vrot.lane.b32.xlu0 %v4640_v2, %s3191_s23  ;;  %2180 = vrot.lane.b32.xlu1 %v4640_v2, %s3190_s22 }
 0x898   : > { %2404 = vperm.xlu1 %2957, %v4698_v42  }
 0x89c   : > { %2959 = vset.pattern.permute.xlu1 %v4980_v11 }
 0x8aa   : > { %v2325_v57 = vpop.permute.xlu1 %2324  ;;  %v2327_v43 = vpop.permute.xlu0 %2326 }
 0x8ab   : > { %v2337_v6 = vsel %vm944_vm4, %v2325_v57, %v2327_v43 }
 0x8ac   : > { %2424 = vmatprep.subr.mxu0 %v2337_v6 }
 0x8ae   : > { %v2301_v27 = vpop.permute.xlu0 %2300  ;;  %v4704_v28 = vpop.permute.xlu1 %2322 }
 0x8af   : > { %v2338_v61 = vsel %vm944_vm4, %v4704_v28, %v2325_v57 }
 0x8b0   : > { %2425 = vmatpush1.msra.mxu0 %v2338_v61 }
 0x8b2   : > { %v4709_v1 = vpop.permute.xlu0 %2298  ;;  %v2303_v24 = vpop.permute.xlu1 %2302 }
 0x8b3   : > { %v2314_v4 = vsel %vm919_vm5, %v4709_v1, %v2301_v27  ;;  %v2313_v40 = vsel %vm919_vm5, %v2301_v27, %v2303_v24 }
 0x8b4   : > { %2426 = vmatprep.subr.mxu0 %v2313_v40 }
 0x8b5   : > { %2427 = vmatpush1.msra.mxu0 %v2314_v4 }
 0x8b6   : > { %v2279_v25 = vpop.permute.xlu0 %2278  ;;  %v2277_v20 = vpop.permute.xlu1 %2276 }
 0x8b7   : > { %v2289_v14 = vsel %vm894_vm6, %v2277_v20, %v2279_v25 }
 0x8b8   : > { %2428 = vmatprep.subr.mxu0 %v2289_v14 }
 0x8ba   : > { %v2253_v59 = vpop.permute.xlu0 %2252  ;;  %v4718_v35 = vpop.permute.xlu1 %2274 }
 0x8bb   : > { %v2290_v39 = vsel %vm894_vm6, %v4718_v35, %v2277_v20 }
 0x8bc   : > { %2429 = vmatpush1.msra.mxu0 %v2290_v39 }
 0x8be   : > { %v4723_v17 = vpop.permute.xlu0 %2250  ;;  %v4725_v37 = vpop.permute.xlu1 %2254 }
 0x8bf   : > { %v2266_v38 = vsel %vm869_vm7, %v4723_v17, %v2253_v59  ;;  %v2265_v31 = vsel %vm869_vm7, %v2253_v59, %v4725_v37 }
 0x8c0   : > { %2430 = vmatprep.subr.mxu0 %v2265_v31 }
 0x8c1   : > { %2431 = vmatpush1.msra.mxu0 %v2266_v38 }
 0x8c2   : > { %v4733_v58 = vpop.permute.xlu0 %2222  ;;  %2432 = vmatprep.subr.mxu0 %v4564_v41  ;;  %v2221_v16 = vpop.permute.xlu1 %2220 }
 0x8c3   : > { %2433 = vmatpush1.msra.mxu0 %v4575_v7  ;;  %v2236_v33 = vsel %vm838_vm8, %v2221_v16, %v4733_v58 }
 0x8c4   : > { %2434 = vmatprep.subr.mxu0 %v2236_v33 }
 0x8c6   : > { %v2197_v45 = vpop.permute.xlu0 %2196  ;;  %v4740_v51 = vpop.permute.xlu1 %2230 }
 0x8c7   : > { %v2237_v50 = vsel %vm838_vm8, %v4740_v51, %v2221_v16 }
 0x8c8   : > { %2435 = vmatpush1.msra.mxu0 %v2237_v50 }
 0x8ca   : > { %v4745_v44 = vpop.permute.xlu0 %2206  ;;  %v4747_v8 = vpop.permute.xlu1 %2198 }
 0x8cb   : > { %v2213_v41 = vsel %vm813_vm9, %v4745_v44, %v2197_v45  ;;  %v2212_v7 = vsel %vm813_vm9, %v2197_v45, %v4747_v8 }
 0x8cc   : > { %2436 = vmatprep.subr.mxu0 %v2212_v7 }
 0x8cd   : > { %2437 = vmatpush1.msra.mxu0 %v2213_v41 }
 0x8ce   : > { %v4755_v63 = vpop.permute.xlu0 %2174  ;;  %v2173_v52 = vpop.permute.xlu1 %2172 }
 0x8cf   : > { %v2188_v49 = vsel %vm788_vm10, %v2173_v52, %v4755_v63 }
 0x8d0   : > { %2438 = vmatprep.subr.mxu0 %v2188_v49 }
 0x8d2   : > { %v2331_v22 = vpop.permute.xlu0 %2330  ;;  %v2329_v34 = vpop.permute.xlu1 %2328 }
 0x8d3   : > { %v2336_v13 = vsel %vm944_vm4, %v2327_v43, %v2329_v34  ;;  %v2335_v46 = vsel %vm944_vm4, %v2329_v34, %v2331_v22 }
 0x8d4   : > { %2495 = vmatprep.subr.mxu1 %v2335_v46 }
 0x8d5   : > { %2496 = vmatpush1.msra.mxu1 %v2336_v13 }
 0x8d6   : > { %v2149_v29 = vpop.permute.xlu0 %2148  ;;  %v4764_v56 = vpop.permute.xlu1 %2182 }
 0x8d7   : > { %v2189_v23 = vsel %vm788_vm10, %v4764_v56, %v2173_v52 }
 0x8d8   : > { %2439 = vmatpush1.msra.mxu0 %v2189_v23 }
 0x8da   : > { %v2305_v30 = vpop.permute.xlu0 %2304  ;;  %v4769_v5 = vpop.permute.xlu1 %2150 }
 0x8db   : > { %v2164_v36 = vsel %vm763_vm11, %v2149_v29, %v4769_v5  ;;  %v2312_v0 = vsel %vm919_vm5, %v2303_v24, %v2305_v30 }
 0x8dc   : > { %2440 = vmatprep.subr.mxu0 %v2164_v36 }
 0x8de   : > { %v4774_v54 = vpop.permute.xlu0 %2158  ;;  %v2307_v9 = vpop.permute.xlu1 %2306 }
 0x8df   : > { %v2165_v26 = vsel %vm763_vm11, %v4774_v54, %v2149_v29  ;;  %v2311_v53 = vsel %vm919_vm5, %v2305_v30, %v2307_v9 }
 0x8e0   : > { %2441 = vmatpush1.msra.mxu0 %v2165_v26  ;;  %2497 = vmatprep.subr.mxu1 %v2311_v53 }
 0x8e1   : > { %2498 = vmatpush1.msra.mxu1 %v2312_v0  ;;  %2851 = vmatmul.mubr.msk.f32.vlgmr.msra.gmra.mxu0 %vm1018_vm12, %v4776_v21 }
 0x8e2   : > { %v2283_v19 = vpop.permute.xlu0 %2282  ;;  %v2281_v57 = vpop.permute.xlu1 %2280  ;;  %2616 = vmatprep.mubr.f32.mxu0 %v4951_v47 }
 0x8e3   : > { %v2288_v43 = vsel %vm894_vm6, %v2279_v25, %v2281_v57  ;;  %v2287_v6 = vsel %vm894_vm6, %v2281_v57, %v2283_v19 }
 0x8e4   : > { %2499 = vmatprep.subr.mxu1 %v2287_v6 }
 0x8e5   : > { %2500 = vmatpush1.msra.mxu1 %v2288_v43 }
 0x8e6   : > { %v2257_v27 = vpop.permute.xlu0 %2256  ;;  %v2333_v61 = vpop.permute.xlu1 %2332 }
 0x8e7   : > { %v2334_v24 = vsel %vm944_vm4, %v2331_v22, %v2333_v61  ;;  %v2339_v4 = vsel %vm944_vm4, %v2333_v61, %v4704_v28  ;;  %v2264_v59 = vsel %vm869_vm7, %v4725_v37, %v2257_v27 }
 0x8e8   : > { %2566 = vmatprep.subr.mxu0 %v2339_v4 }
 0x8e9   : > { %2567 = vmatpush1.msra.mxu0 %v2334_v24 }
 0x8ea   : > { %v2309_v47 = vpop.permute.xlu0 %2308  ;;  %v2259_v40 = vpop.permute.xlu1 %2258 }
 0x8eb   : > { %v2310_v25 = vsel %vm919_vm5, %v2307_v9, %v2309_v47  ;;  %v2263_v20 = vsel %vm869_vm7, %v2257_v27, %v2259_v40  ;;  %v2315_v14 = vsel %vm919_vm5, %v2309_v47, %v4709_v1 }
 0x8ec   : > { %2501 = vmatprep.subr.mxu1 %v2263_v20  ;;  %2568 = vmatprep.subr.mxu0 %v2315_v14 }
 0x8ed   : > { %2502 = vmatpush1.msra.mxu1 %v2264_v59  ;;  %2569 = vmatpush1.msra.mxu0 %v2310_v25 }
 0x8ee   : > { %v2225_v28 = vpop.permute.xlu0 %2224  ;;  %2503 = vmatprep.subr.mxu1 %v4638_v48  ;;  %v2285_v39 = vpop.permute.xlu1 %2284 }
 0x8ef   : > { %v2286_v38 = vsel %vm894_vm6, %v2283_v19, %v2285_v39  ;;  %2504 = vmatpush1.msra.mxu1 %v4566_v10  ;;  %v2291_v1 = vsel %vm894_vm6, %v2285_v39, %v4718_v35  ;;  %v2235_v10 = vsel %vm838_vm8, %v4733_v58, %v2225_v28 }
 0x8f0   : > { %2570 = vmatprep.subr.mxu0 %v2291_v1 }
 0x8f1   : > { %2571 = vmatpush1.msra.mxu0 %v2286_v38 }
 0x8f2   : > { %v2261_v37 = vpop.permute.xlu0 %2260  ;;  %v2227_v31 = vpop.permute.xlu1 %2226 }
 0x8f3   : > { %v2262_v16 = vsel %vm869_vm7, %v2259_v40, %v2261_v37  ;;  %v2234_v48 = vsel %vm838_vm8, %v2225_v28, %v2227_v31  ;;  %v2267_v33 = vsel %vm869_vm7, %v2261_v37, %v4723_v17 }
 0x8f4   : > { %2505 = vmatprep.subr.mxu1 %v2234_v48  ;;  %2572 = vmatprep.subr.mxu0 %v2267_v33 }
 0x8f5   : > { %2506 = vmatpush1.msra.mxu1 %v2235_v10  ;;  %2573 = vmatpush1.msra.mxu0 %v2262_v16 }
 0x8f6   : > { %v2203_v35 = vpop.permute.xlu0 %2202  ;;  %2574 = vmatprep.subr.mxu0 %v4608_v60  ;;  %v2201_v45 = vpop.permute.xlu1 %2200 }
 0x8f7   : > { %v2211_v50 = vsel %vm813_vm9, %v4747_v8, %v2201_v45  ;;  %2575 = vmatpush1.msra.mxu0 %v4640_v2  ;;  %v2210_v17 = vsel %vm813_vm9, %v2201_v45, %v2203_v35 }
 0x8f8   : > { %2507 = vmatprep.subr.mxu1 %v2210_v17 }
 0x8f9   : > { %2508 = vmatpush1.msra.mxu1 %v2211_v50 }
 0x8fa   : > { %v2179_v58 = vpop.permute.xlu0 %2178  ;;  %v2177_v41 = vpop.permute.xlu1 %2176 }
 0x8fb   : > { %v2187_v7 = vsel %vm788_vm10, %v4755_v63, %v2177_v41  ;;  %v2186_v60 = vsel %vm788_vm10, %v2177_v41, %v2179_v58 }
 0x8fc   : > { %2509 = vmatprep.subr.mxu1 %v2186_v60 }
 0x8fd   : > { %2510 = vmatpush1.msra.mxu1 %v2187_v7 }
 0x8fe   : > { %v2153_v52 = vpop.permute.xlu0 %2152  ;;  %v2229_v8 = vpop.permute.xlu1 %2228 }
 0x8ff   : > { %v2233_v2 = vsel %vm838_vm8, %v2227_v31, %v2229_v8  ;;  %v2232_v49 = vsel %vm838_vm8, %v2229_v8, %v4740_v51  ;;  %v2163_v29 = vsel %vm763_vm11, %v4769_v5, %v2153_v52 }
 0x900   : > { %2576 = vmatprep.subr.mxu0 %v2232_v49 }
 0x901   : > { %2577 = vmatpush1.msra.mxu0 %v2233_v2 }
 0x902   : > { %v2205_v22 = vpop.permute.xlu0 %2204  ;;  %v2155_v34 = vpop.permute.xlu1 %2154 }
 0x903   : > { %v2209_v63 = vsel %vm813_vm9, %v2203_v35, %v2205_v22  ;;  %v2162_v13 = vsel %vm763_vm11, %v2153_v52, %v2155_v34  ;;  %v2208_v46 = vsel %vm813_vm9, %v2205_v22, %v4745_v44 }
 0x904   : > { %2511 = vmatprep.subr.mxu1 %v2162_v13  ;;  %2578 = vmatprep.subr.mxu0 %v2208_v46 }
 0x905   : > { %2512 = vmatpush1.msra.mxu1 %v2163_v29  ;;  %2579 = vmatpush1.msra.mxu0 %v2209_v63 }
 0x906   : > { %v2157_v51 = vpop.permute.xlu0 %2156  ;;  %2852 = vmatmul.mubr.msk.f32.vlgmr.msra.gmra.mxu1 %vm1018_vm12, %v4776_v21  ;;  %v2181_v23 = vpop.permute.xlu1 %2180 }
 0x907   : > { %v2185_v30 = vsel %vm788_vm10, %v2179_v58, %v2181_v23  ;;  %v2184_v44 = vsel %vm788_vm10, %v2181_v23, %v4764_v56  ;;  %v2160_v5 = vsel %vm763_vm11, %v2157_v51, %v4774_v54  ;;  %v2161_v36 = vsel %vm763_vm11, %v2155_v34, %v2157_v51 }
 0x908   : > { %2580 = vmatprep.subr.mxu0 %v2184_v44 }
 0x909   : > { %2581 = vmatpush1.msra.mxu0 %v2185_v30 }
 0x90a   : > { %2582 = vmatprep.subr.mxu0 %v2160_v5 }
 0x90b   : > { %2583 = vmatpush1.msra.mxu0 %v2161_v36 }
 0x90c   : > { %2853 = vmatmul.mubr.msk.f32.vlgmr.msra.gmra.mxu0 %vm1018_vm12, %v4776_v21 }
 0x913   : > { %v2405_v53 = vpop.permute.xlu1 %2404 }
 0x9a1   : > { %v2476_v9 = vpop.f32.mrf.mxu0 }
 0x9a2   : > { %v2477_v0 = vadd.f32 %v2476_v9, %v2405_v53 }
 0x9a3   : > { %v2478_v26 = vpop.f32.mrf.mxu0 }
 0x9a4   : > { %v2479_v19 = vadd.f32 %v2478_v26, %v2405_v53  ;;  %v2623_v56 = vmax.f32 %v2477_v0, 0.0 }
 0x9a6   : > { %v2624_v57 = vmax.f32 %v2479_v19, 0.0  ;;  %v2629_v43 = vmul.f32 %v2623_v56, %v4010_v62 }
 0x9a8   : > { %v2630_v6 = vmul.f32 %v2624_v57, %v4013_v15  ;;  %v2643_v12 = vmul.f32 %v2629_v43, %v2623_v56 }
 0x9aa   : > { %v2644_v61 = vmul.f32 %v2630_v6, %v2624_v57  ;;  %v2635_v40 = vadd.f32 %v2630_v6, %v2629_v43 }
 0x9ac   : > { %v2649_v20 = vadd.f32 %v2644_v61, %v2643_v12 }
 0x9c6   : > { %v2547_v54 = vpop.f32.mrf.mxu1 }
 0x9c7   : > { %v2548_v27 = vadd.f32 %v2547_v54, %v2405_v53 }
 0x9c8   : > { %v2549_v24 = vpop.f32.mrf.mxu1 }
 0x9c9   : > { %v2625_v4 = vmax.f32 %v2548_v27, 0.0  ;;  %v2550_v47 = vadd.f32 %v2549_v24, %v2405_v53 }
 0x9cb   : > { %v2631_v21 = vmul.f32 %v2625_v4, %v4020_v18  ;;  %v2626_v25 = vmax.f32 %v2550_v47, 0.0 }
 0x9cc   : > { %v2618_v14 = vpop.f32.mrf.mxu0 }
 0x9cd   : > { %v2636_v59 = vadd.f32 %v2635_v40, %v2631_v21  ;;  %v2645_v28 = vmul.f32 %v2631_v21, %v2625_v4  ;;  %v2632_v39 = vmul.f32 %v2626_v25, %v4023_v32  ;;  %v2619_v62 = vadd.f32 %v2618_v14, %v2405_v53 }
 0x9ce   : > { %v2620_v38 = vpop.f32.mrf.mxu0 }
 0x9cf   : > { %v2650_v15 = vadd.f32 %v2649_v20, %v2645_v28  ;;  %v2646_v1 = vmul.f32 %v2632_v39, %v2626_v25  ;;  %v2627_v37 = vmax.f32 %v2619_v62, 0.0  ;;  %v2621_v31 = vadd.f32 %v2620_v38, %v2405_v53 }
 0x9d0   : > { %v2637_v16 = vadd.f32 %v2636_v59, %v2632_v39 }
 0x9d1   : > { %v2633_v48 = vmul.f32 %v2627_v37, %v4029_v3  ;;  %v2628_v33 = vmax.f32 %v2621_v31, 0.0  ;;  %v2651_v10 = vadd.f32 %v2650_v15, %v2646_v1 }
 0x9d3   : > { %v2647_v18 = vmul.f32 %v2633_v48, %v2627_v37  ;;  %v2638_v35 = vadd.f32 %v2637_v16, %v2633_v48  ;;  %v2634_v45 = vmul.f32 %v2628_v33, %v4033_v55 }
 0x9d5   : > { %v2652_v50 = vadd.f32 %v2651_v10, %v2647_v18  ;;  %v2648_v17 = vmul.f32 %v2634_v45, %v2628_v33  ;;  %v2639_v58 = vadd.f32 %v2638_v35, %v2634_v45 }
 0x9d7   : > { %2640 = vadd.xlane.f32.xlu0 %v2639_v58  ;;  %v2653_v32 = vadd.f32 %v2652_v50, %v2648_v17 }
 0x9d9   : > { %2654 = vadd.xlane.f32.xlu1 %v2653_v32 }
 0x9ea   : > { %2685 = vperm.xlu1 %2959, %v4698_v42  }
 0x9ed   : > { %2675 = vperm.xlu0 %2958, %v4698_v42  }
 0x9f1   : > { %2960 = vset.pattern.permute.xlu0 %v4980_v11 }
 0xa60   : > { %v2641_v41 = vpop.xlane.xlu0 %2640 }
 0xa61   : > { %v2642_v3 = vmul.f32 0.001953125, %v2641_v41 }
 0xa62   : > { %v2655_v7 = vpop.xlane.xlu1 %2654 }
 0xa63   : > { %v2656_v60 = vmul.f32 0.001953125, %v2655_v7  ;;  %v2657_v52 = vmul.f32 %v2642_v3, %v2642_v3  ;;  %v2660_v49 = vsub.f32 %v2623_v56, %v2642_v3  ;;  %v2661_v22 = vsub.f32 %v2624_v57, %v2642_v3 }
 0xa64   : > { %v2662_v34 = vsub.f32 %v2625_v4, %v2642_v3  ;;  %v2663_v63 = vsub.f32 %v2626_v25, %v2642_v3  ;;  %v2664_v46 = vsub.f32 %v2627_v37, %v2642_v3  ;;  %v2665_v29 = vsub.f32 %v2628_v33, %v2642_v3 }
 0xa65   : > { %v2658_v8 = vsub.f32 %v2656_v60, %v2657_v52 }
 0xa66   : > { %v2686_v36 = vpop.permute.xlu1 %2685 }
 0xa67   : > { %v2659_v2 = vmax.f32 %v2658_v8, 0.0 }
 0xa68   : > { %v2676_v42 = vpop.permute.xlu0 %2675 }
 0xa69   : > { %v2666_v55 = vadd.f32 1e-05, %v2659_v2 }
 0xa6b   : > { %2965 = vrsqrt.f32 %v2666_v55 }
 0xa78   : > { %v2966_v13 = vpop.eup %2965 }
 0xa79   : > { %v2668_v51 = vmul.f32 %v2966_v13, %v2660_v49  ;;  %v2669_v11 = vmul.f32 %v2966_v13, %v2661_v22  ;;  %v2670_v23 = vmul.f32 %v2966_v13, %v2662_v34  ;;  %v2671_v30 = vmul.f32 %v2966_v13, %v2663_v63 }
 0xa7a   : > { %v2672_v44 = vmul.f32 %v2966_v13, %v2664_v46  ;;  %v2673_v5 = vmul.f32 %v2966_v13, %v2665_v29 }
 0xa7b   : > { %v2678_v9 = vmul.f32 %v2676_v42, %v2668_v51  ;;  %v2679_v26 = vmul.f32 %v2676_v42, %v2669_v11  ;;  %v2680_v53 = vmul.f32 %v2676_v42, %v2670_v23  ;;  %v2681_v0 = vmul.f32 %v2676_v42, %v2671_v30 }
 0xa7c   : > { %v2682_v19 = vmul.f32 %v2676_v42, %v2672_v44  ;;  %v2683_v56 = vmul.f32 %v2676_v42, %v2673_v5 }
 0xa7d   : > { %v2688_v57 = vadd.f32 %v2686_v36, %v2678_v9  ;;  %v2689_v43 = vadd.f32 %v2686_v36, %v2679_v26  ;;  %v2690_v6 = vadd.f32 %v2686_v36, %v2680_v53  ;;  %v2691_v54 = vadd.f32 %v2686_v36, %v2681_v0 }
 0xa7e   : > { %v2692_v27 = vadd.f32 %v2686_v36, %v2682_v19  ;;  %v2693_v12 = vadd.f32 %v2686_v36, %v2683_v56 }
 0xa7f   : > { %2694 = vst [vmem:[%s393_s26] sm:$0xff] %v2688_v57  ;;  %2695 = vst [vmem:[%s393_s26 + $0x8] sm:$0xff] %v2689_v43 }
 0xa80   : > { %2696 = vst [vmem:[%s393_s26 + $0x10] sm:$0xff] %v2690_v6  ;;  %2697 = vst [vmem:[%s393_s26 + $0x18] sm:$0xff] %v2691_v54 }
 0xa81   : > { %2698 = vst [vmem:[%s393_s26 + $0x20] sm:$0xff] %v2692_v27  ;;  %2699 = vst [vmem:[%s393_s26 + $0x28] sm:$0xff] %v2693_v12 }
 0xa82 PF: > { %s22_s27 = sadd.s32 1, %s3171_s27  }
 0xa83   : > { %p19_p0 = scmp.ge.s32.totalorder %s22_s27, 4  }
 0xa85   :  { %21 = sbr.rel (!%p19_p0) target bundleno = 4 (0x4), region = 117 }
 0xa8a   :  { %2721 = vsyncpa [#allocation4], 1 }
 0xa8b   :  { %2723 = vsyncpa [#allocation4 + $0x1], 1 }
 0xa8c   :  { %2724 = vsyncpa [#allocation6], 1 }
 0xa8d   :  { %2725 = vsyncpa [#allocation9], 1 }
 0xa8e   :  { %2726 = vsyncpa [#allocation12], 1 }

// kernel: siamese_forward.3
= control target key start
LH: loop header
LB: loop body
LE: loop exit
PB: predicated region body
PF: predicated region fallthrough
CT: control target
= control target key end

     0   :  { %12 = vsyncpa [#allocation4], 0  ;;  %s9019_s0 = inlined_call_operand.vmem [shape: bf16[8,2688], index: 0, kind: input, shape index: {}]   ;;  %s9020_s1 = inlined_call_operand.hbm [shape: bf16[2688,512], index: 1, kind: input, shape index: {}]   ;;  %s9021_s2 = inlined_call_operand.vmem [shape: f32[1,512], index: 2, kind: input, shape index: {}, may-alias: {2,4}]   ;;  %s9022_s3 = inlined_call_operand.hbm [shape: bf16[512,512], index: 3, kind: input, shape index: {}]   ;;  %s9023_s4 = inlined_call_operand.vmem [shape: f32[1,512], index: 4, kind: input, shape index: {}, may-alias: {2,4}]   ;;  %s9024_s5 = inlined_call_operand.hbm [shape: bf16[512,128], index: 5, kind: input, shape index: {}]   ;;  %s9025_s6 = inlined_call_operand.vmem [shape: f32[1,128], index: 6, kind: input, shape index: {}]   ;;  %s9026_s7 = inlined_call_operand.vmem [shape: f32[8,128], index: 7, kind: output, shape index: {}]  }
   0x1   :  { %13 = vsyncpa [#allocation6], 0  ;;  %s8684_s24 = smov [#allocation5]   ;;  %s8685_s26 = smov [#allocation3]  }
   0x2   :  { %s35_s25 = sshll.u32 %s8684_s24, 4  ;;  %s21_s27 = sshll.u32 %s8685_s26, 4  ;;  %s36_s25 = int_to_ptr.vmem [resolvable:$true] %s35_s25  ;;  %s22_s27 = int_to_ptr.vmem [resolvable:$true] %s21_s27 }
   0x3   :  { %s8628_s28 = scalar_lea.vmem %s36_s25, 16384  ;;  %p8633_p1 = scmp.lt.s32.totalorder %s36_s25, %s36_s25 }
   0x4   :  { %p8629_p0 = scmp.ne.s32.totalorder %s36_s25, %s8628_s28  ;;  %p8634_p2 = scmp.lt.s32.totalorder %s8628_s28, %s8628_s28 }
   0x6   :  { %p8635_p3 = por %p8634_p2, %p8633_p1 }
   0x8   :  { %p8636_p4 = pnand %p8635_p3, %p8629_p0 }
   0xa   :  { %8639 = shalt.err (!%p8636_p4)
}
   0xb   :  { %s8686_s29 = smov 256   ;;  %s8687_s30 = smov 16  }
   0xc   :  { %41 = dma.hbm_to_vmem [thread:$0]  %s9022_s3, 16384, %s36_s25, [#allocation6], %s8686_s29, %s8686_s29, %s8687_s30  }
   0xd   :  { %s8648_s10 = scalar_lea.vmem %s22_s27, 86016  ;;  %p8653_p6 = scmp.lt.s32.totalorder %s22_s27, %s22_s27 }
   0xe   :  { %p8649_p5 = scmp.ne.s32.totalorder %s22_s27, %s8648_s10  ;;  %p8654_p7 = scmp.lt.s32.totalorder %s8648_s10, %s8648_s10 }
  0x10   :  { %p8655_p8 = por %p8654_p7, %p8653_p6 }
  0x12   :  { %p8656_p9 = pnand %p8655_p8, %p8649_p5 }
  0x14   :  { %8659 = shalt.err (!%p8656_p9)
}
  0x15   :  { %27 = dma.hbm_to_vmem [thread:$0]  %s9020_s1, 86016, %s22_s27, [#allocation4], %s8686_s29, %s8686_s29, %s8687_s30  }
  0x16   :  { %s8688_s13 = smov [#allocation7]  }
  0x17   :  { %s49_s14 = sshll.u32 %s8688_s13, 4  ;;  %s50_s14 = int_to_ptr.vmem [resolvable:$true] %s49_s14 }
  0x18   :  { %s8668_s15 = scalar_lea.vmem %s50_s14, 4096  ;;  %p8673_p11 = scmp.lt.s32.totalorder %s50_s14, %s50_s14 }
  0x19   :  { %p8669_p10 = scmp.ne.s32.totalorder %s50_s14, %s8668_s15  ;;  %p8674_p12 = scmp.lt.s32.totalorder %s8668_s15, %s8668_s15 }
  0x1b   :  { %p8675_p13 = por %p8674_p12, %p8673_p11 }
  0x1d   :  { %p8676_p0 = pnand %p8675_p13, %p8669_p10 }
  0x1f   :  { %8679 = shalt.err (!%p8676_p0)
}
  0x20   :  { %s8689_s3 = smov 64   ;;  %s8690_s16 = smov 4  }
  0x21   :  { %55 = dma.hbm_to_vmem [thread:$0]  %s9024_s5, 4096, %s50_s14, [#allocation6], %s8689_s3, %s8689_s3, %s8690_s16  }
  0x22   :  { %8680 = dma.done.wait [#allocation4], 86016  }
  0x23   :  { %8681 = vsyncadd [#allocation4], 4294881280 }
  0x24   :  { %8682 = dma.done.wait [#allocation6], 20480  }
  0x25   :  { %8683 = vsyncadd [#allocation6], 4294946816  ;;  %v7366_v0 = vld [vmem:[#allocation3 + $0xe4] ss:$16 sps:$4 sm:$0xff]   ;;  %v7370_v2 = vld [vmem:[#allocation3 + $0xe0] ss:$16 sps:$4 sm:$0xff]  }
  0x26   :  { %v7368_v1 = vld [vmem:[#allocation3 + $0x2e4] ss:$16 sps:$4 sm:$0xff]   ;;  %4197 = vmatprep.subr.bf16.mxu0 %v7366_v0  ;;  %v7371_v3 = vld [vmem:[#allocation3 + $0x2e0] ss:$16 sps:$4 sm:$0xff]   ;;  %v81_v48 = vld [vmem:[%s9019_s0 + $0x8] sm:$0xff] }
  0x27   :  { %4238 = vmatprep.subr.bf16.mxu1 %v7368_v1  ;;  %v7372_v4 = vld [vmem:[#allocation3 + $0xc4] ss:$16 sps:$4 sm:$0xff]   ;;  %4198 = vmatpush1.bf16.msra.mxu0 %v7370_v2  ;;  %v7376_v6 = vld [vmem:[#allocation3 + $0xc0] ss:$16 sps:$4 sm:$0xff]   ;;  %v8749_v51 = vcombine.high %v81_v48, %v81_v48 }
  0x28   :  { %4239 = vmatpush1.bf16.msra.mxu1 %v7371_v3  ;;  %v7374_v5 = vld [vmem:[#allocation3 + $0x2c4] ss:$16 sps:$4 sm:$0xff]   ;;  %4199 = vmatprep.subr.bf16.mxu0 %v7372_v4  ;;  %v7377_v7 = vld [vmem:[#allocation3 + $0x2c0] ss:$16 sps:$4 sm:$0xff]  }
  0x29   :  { %4240 = vmatprep.subr.bf16.mxu1 %v7374_v5  ;;  %v7378_v8 = vld [vmem:[#allocation3 + $0xa4] ss:$16 sps:$4 sm:$0xff]   ;;  %v7382_v10 = vld [vmem:[#allocation3 + $0xa0] ss:$16 sps:$4 sm:$0xff]   ;;  %4270 = vmatprep.mubr.bf16.mxu1 %v8749_v51 }
  0x2a   :  { %v7380_v9 = vld [vmem:[#allocation3 + $0x2a4] ss:$16 sps:$4 sm:$0xff]   ;;  %v7383_v11 = vld [vmem:[#allocation3 + $0x2a0] ss:$16 sps:$4 sm:$0xff]  }
  0x2b   :  { %4200 = vmatpush1.bf16.msra.mxu0 %v7376_v6  ;;  %v7384_v12 = vld [vmem:[#allocation3 + $0x84] ss:$16 sps:$4 sm:$0xff]   ;;  %v7388_v14 = vld [vmem:[#allocation3 + $0x80] ss:$16 sps:$4 sm:$0xff]  }
  0x2c   :  { %4241 = vmatpush1.bf16.msra.mxu1 %v7377_v7  ;;  %4201 = vmatprep.subr.bf16.mxu0 %v7378_v8  ;;  %v7386_v13 = vld [vmem:[#allocation3 + $0x284] ss:$16 sps:$4 sm:$0xff]   ;;  %v7389_v15 = vld [vmem:[#allocation3 + $0x280] ss:$16 sps:$4 sm:$0xff]   ;;  %v8755_v7 = vcombine.low %v81_v48, %v81_v48 }
  0x2d   :  { %4242 = vmatprep.subr.bf16.mxu1 %v7380_v9  ;;  %v7390_v16 = vld [vmem:[#allocation3 + $0x64] ss:$16 sps:$4 sm:$0xff]   ;;  %v7394_v18 = vld [vmem:[#allocation3 + $0x60] ss:$16 sps:$4 sm:$0xff]  }
  0x2e   :  { %v7392_v17 = vld [vmem:[#allocation3 + $0x264] ss:$16 sps:$4 sm:$0xff]   ;;  %v7395_v19 = vld [vmem:[#allocation3 + $0x260] ss:$16 sps:$4 sm:$0xff]  }
  0x2f   :  { %4202 = vmatpush1.bf16.msra.mxu0 %v7382_v10  ;;  %v7396_v20 = vld [vmem:[#allocation3 + $0x44] ss:$16 sps:$4 sm:$0xff]   ;;  %v7400_v22 = vld [vmem:[#allocation3 + $0x40] ss:$16 sps:$4 sm:$0xff]  }
  0x30   :  { %4243 = vmatpush1.bf16.msra.mxu1 %v7383_v11  ;;  %4203 = vmatprep.subr.bf16.mxu0 %v7384_v12  ;;  %v7398_v21 = vld [vmem:[#allocation3 + $0x244] ss:$16 sps:$4 sm:$0xff]   ;;  %v7401_v23 = vld [vmem:[#allocation3 + $0x240] ss:$16 sps:$4 sm:$0xff]  }
  0x31   :  { %4244 = vmatprep.subr.bf16.mxu1 %v7386_v13  ;;  %v7402_v24 = vld [vmem:[#allocation3 + $0x24] ss:$16 sps:$4 sm:$0xff]   ;;  %v7406_v26 = vld [vmem:[#allocation3 + $0x20] ss:$16 sps:$4 sm:$0xff]  }
  0x32   :  { %v7404_v25 = vld [vmem:[#allocation3 + $0x224] ss:$16 sps:$4 sm:$0xff]   ;;  %v7407_v27 = vld [vmem:[#allocation3 + $0x220] ss:$16 sps:$4 sm:$0xff]  }
  0x33   :  { %4204 = vmatpush1.bf16.msra.mxu0 %v7388_v14  ;;  %v7408_v28 = vld [vmem:[#allocation3 + $0x4] ss:$16 sps:$4 sm:$0xff]   ;;  %v7412_v30 = vld [vmem:[#allocation3] ss:$16 sps:$4 sm:$0xff]  }
  0x34   :  { %4245 = vmatpush1.bf16.msra.mxu1 %v7389_v15  ;;  %4205 = vmatprep.subr.bf16.mxu0 %v7390_v16  ;;  %v7410_v29 = vld [vmem:[#allocation3 + $0x204] ss:$16 sps:$4 sm:$0xff]   ;;  %v7413_v31 = vld [vmem:[#allocation3 + $0x200] ss:$16 sps:$4 sm:$0xff]  }
  0x35   :  { %4246 = vmatprep.subr.bf16.mxu1 %v7392_v17  ;;  %v7414_v32 = vld [vmem:[#allocation3 + $0x1e4] ss:$16 sps:$4 sm:$0xff]   ;;  %v7418_v34 = vld [vmem:[#allocation3 + $0x1e0] ss:$16 sps:$4 sm:$0xff]  }
  0x36   :  { %v7416_v33 = vld [vmem:[#allocation3 + $0x3e4] ss:$16 sps:$4 sm:$0xff]   ;;  %v7419_v35 = vld [vmem:[#allocation3 + $0x3e0] ss:$16 sps:$4 sm:$0xff]  }
  0x37   :  { %4206 = vmatpush1.bf16.msra.mxu0 %v7394_v18  ;;  %v7420_v36 = vld [vmem:[#allocation3 + $0x1c4] ss:$16 sps:$4 sm:$0xff]   ;;  %v7424_v38 = vld [vmem:[#allocation3 + $0x1c0] ss:$16 sps:$4 sm:$0xff]  }
  0x38   :  { %4247 = vmatpush1.bf16.msra.mxu1 %v7395_v19  ;;  %4207 = vmatprep.subr.bf16.mxu0 %v7396_v20  ;;  %v7422_v37 = vld [vmem:[#allocation3 + $0x3c4] ss:$16 sps:$4 sm:$0xff]   ;;  %v7425_v39 = vld [vmem:[#allocation3 + $0x3c0] ss:$16 sps:$4 sm:$0xff]  }
  0x39   :  { %4248 = vmatprep.subr.bf16.mxu1 %v7398_v21  ;;  %v7426_v40 = vld [vmem:[#allocation3 + $0x1a4] ss:$16 sps:$4 sm:$0xff]   ;;  %v7430_v42 = vld [vmem:[#allocation3 + $0x1a0] ss:$16 sps:$4 sm:$0xff]  }
  0x3a   :  { %v7428_v41 = vld [vmem:[#allocation3 + $0x3a4] ss:$16 sps:$4 sm:$0xff]   ;;  %v7431_v43 = vld [vmem:[#allocation3 + $0x3a0] ss:$16 sps:$4 sm:$0xff]  }
  0x3b   :  { %4208 = vmatpush1.bf16.msra.mxu0 %v7400_v22  ;;  %v7432_v44 = vld [vmem:[#allocation3 + $0x184] ss:$16 sps:$4 sm:$0xff]   ;;  %v7436_v49 = vld [vmem:[#allocation3 + $0x180] ss:$16 sps:$4 sm:$0xff]  }
  0x3c   :  { %4249 = vmatpush1.bf16.msra.mxu1 %v7401_v23  ;;  %4209 = vmatprep.subr.bf16.mxu0 %v7402_v24  ;;  %v7434_v45 = vld [vmem:[#allocation3 + $0x384] ss:$16 sps:$4 sm:$0xff]   ;;  %v7437_v50 = vld [vmem:[#allocation3 + $0x380] ss:$16 sps:$4 sm:$0xff]  }
  0x3d   :  { %4250 = vmatprep.subr.bf16.mxu1 %v7404_v25  ;;  %v80_v46 = vld [vmem:[%s9019_s0] sm:$0xff] }
  0x3e   :  { %v8744_v47 = vcombine.high %v80_v46, %v80_v46  ;;  %v7438_v52 = vld [vmem:[#allocation3 + $0x164] ss:$16 sps:$4 sm:$0xff]   ;;  %v7442_v54 = vld [vmem:[#allocation3 + $0x160] ss:$16 sps:$4 sm:$0xff]   ;;  %v8753_v6 = vcombine.low %v80_v46, %v80_v46 }
  0x3f   :  { %4210 = vmatpush1.bf16.msra.mxu0 %v7406_v26  ;;  %v7440_v53 = vld [vmem:[#allocation3 + $0x364] ss:$16 sps:$4 sm:$0xff]   ;;  %v7443_v55 = vld [vmem:[#allocation3 + $0x360] ss:$16 sps:$4 sm:$0xff]  }
  0x40   :  { %4251 = vmatpush1.bf16.msra.mxu1 %v7407_v27  ;;  %4211 = vmatprep.subr.bf16.mxu0 %v7408_v28  ;;  %v7444_v56 = vld [vmem:[#allocation3 + $0x144] ss:$16 sps:$4 sm:$0xff]   ;;  %v7448_v58 = vld [vmem:[#allocation3 + $0x140] ss:$16 sps:$4 sm:$0xff]  }
  0x41   :  { %4252 = vmatprep.subr.bf16.mxu1 %v7410_v29  ;;  %4229 = vmatprep.mubr.bf16.mxu0 %v8744_v47  ;;  %v7446_v57 = vld [vmem:[#allocation3 + $0x344] ss:$16 sps:$4 sm:$0xff]   ;;  %v7449_v59 = vld [vmem:[#allocation3 + $0x340] ss:$16 sps:$4 sm:$0xff]  }
  0x42   :  { %v7450_v60 = vld [vmem:[#allocation3 + $0x124] ss:$16 sps:$4 sm:$0xff]   ;;  %v7454_v62 = vld [vmem:[#allocation3 + $0x120] ss:$16 sps:$4 sm:$0xff]  }
  0x43   :  { %4212 = vmatpush1.bf16.msra.mxu0 %v7412_v30  ;;  %v7452_v61 = vld [vmem:[#allocation3 + $0x324] ss:$16 sps:$4 sm:$0xff]   ;;  %v7455_v63 = vld [vmem:[#allocation3 + $0x320] ss:$16 sps:$4 sm:$0xff]  }
  0x44   :  { %4253 = vmatpush1.bf16.msra.mxu1 %v7413_v31  ;;  %4213 = vmatprep.subr.bf16.mxu0 %v7414_v32  ;;  %v7456_v0 = vld [vmem:[#allocation3 + $0x104] ss:$16 sps:$4 sm:$0xff]   ;;  %v7460_v2 = vld [vmem:[#allocation3 + $0x100] ss:$16 sps:$4 sm:$0xff]  }
  0x45   :  { %4254 = vmatprep.subr.bf16.mxu1 %v7416_v33  ;;  %v7458_v1 = vld [vmem:[#allocation3 + $0x304] ss:$16 sps:$4 sm:$0xff]   ;;  %v7461_v3 = vld [vmem:[#allocation3 + $0x300] ss:$16 sps:$4 sm:$0xff]   ;;  %v8767_v33 = vld [vmem:[%s9019_s0 + $0x18] sm:$0xff] }
  0x46   :  { %v7468_v4 = vld [vmem:[#allocation3 + $0x4e4] ss:$16 sps:$4 sm:$0xff]   ;;  %v7466_v8 = vld [vmem:[#allocation3 + $0x4e0] ss:$16 sps:$4 sm:$0xff]  }
  0x47   :  { %4214 = vmatpush2.bf16.msra.mxu0 %v7418_v34  ;;  %v7471_v5 = vld [vmem:[#allocation3 + $0x6e4] ss:$16 sps:$4 sm:$0xff]   ;;  %v7469_v9 = vld [vmem:[#allocation3 + $0x6e0] ss:$16 sps:$4 sm:$0xff]  }
  0x48   :  { %4255 = vmatpush2.bf16.msra.mxu1 %v7419_v35  ;;  %4215 = vmatprep.subr.bf16.mxu0 %v7420_v36  ;;  %v7474_v10 = vld [vmem:[#allocation3 + $0x4c4] ss:$16 sps:$4 sm:$0xff]   ;;  %v7472_v12 = vld [vmem:[#allocation3 + $0x4c0] ss:$16 sps:$4 sm:$0xff]  }
  0x49   :  { %4256 = vmatprep.subr.bf16.mxu1 %v7422_v37  ;;  %v7477_v11 = vld [vmem:[#allocation3 + $0x6c4] ss:$16 sps:$4 sm:$0xff]   ;;  %v7475_v13 = vld [vmem:[#allocation3 + $0x6c0] ss:$16 sps:$4 sm:$0xff]   ;;  %v8775_v37 = vcombine.high %v8767_v33, %v8767_v33 }
  0x4a   :  { %v7480_v14 = vld [vmem:[#allocation3 + $0x4a4] ss:$16 sps:$4 sm:$0xff]   ;;  %v7478_v16 = vld [vmem:[#allocation3 + $0x4a0] ss:$16 sps:$4 sm:$0xff]  }
  0x4b   :  { %4216 = vmatpush2.bf16.msra.mxu0 %v7424_v38  ;;  %v7483_v15 = vld [vmem:[#allocation3 + $0x6a4] ss:$16 sps:$4 sm:$0xff]   ;;  %v7481_v17 = vld [vmem:[#allocation3 + $0x6a0] ss:$16 sps:$4 sm:$0xff]  }
  0x4c   :  { %4257 = vmatpush2.bf16.msra.mxu1 %v7425_v39  ;;  %4217 = vmatprep.subr.bf16.mxu0 %v7426_v40  ;;  %v7486_v18 = vld [vmem:[#allocation3 + $0x484] ss:$16 sps:$4 sm:$0xff]   ;;  %v7484_v20 = vld [vmem:[#allocation3 + $0x480] ss:$16 sps:$4 sm:$0xff]  }
  0x4d   :  { %4258 = vmatprep.subr.bf16.mxu1 %v7428_v41  ;;  %v7489_v19 = vld [vmem:[#allocation3 + $0x684] ss:$16 sps:$4 sm:$0xff]   ;;  %v7487_v21 = vld [vmem:[#allocation3 + $0x680] ss:$16 sps:$4 sm:$0xff]  }
  0x4e   :  { %v7492_v22 = vld [vmem:[#allocation3 + $0x464] ss:$16 sps:$4 sm:$0xff]   ;;  %v7490_v24 = vld [vmem:[#allocation3 + $0x460] ss:$16 sps:$4 sm:$0xff]  }
  0x4f   :  { %4218 = vmatpush2.bf16.msra.mxu0 %v7430_v42  ;;  %v7495_v23 = vld [vmem:[#allocation3 + $0x664] ss:$16 sps:$4 sm:$0xff]   ;;  %v7493_v25 = vld [vmem:[#allocation3 + $0x660] ss:$16 sps:$4 sm:$0xff]  }
  0x50   :  { %4259 = vmatpush2.bf16.msra.mxu1 %v7431_v43  ;;  %4219 = vmatprep.subr.bf16.mxu0 %v7432_v44  ;;  %v7498_v26 = vld [vmem:[#allocation3 + $0x444] ss:$16 sps:$4 sm:$0xff]   ;;  %v7496_v28 = vld [vmem:[#allocation3 + $0x440] ss:$16 sps:$4 sm:$0xff]  }
  0x51   :  { %4260 = vmatprep.subr.bf16.mxu1 %v7434_v45  ;;  %v7501_v27 = vld [vmem:[#allocation3 + $0x644] ss:$16 sps:$4 sm:$0xff]   ;;  %v7499_v29 = vld [vmem:[#allocation3 + $0x640] ss:$16 sps:$4 sm:$0xff]  }
  0x52   :  { %v7504_v30 = vld [vmem:[#allocation3 + $0x424] ss:$16 sps:$4 sm:$0xff]   ;;  %v7502_v34 = vld [vmem:[#allocation3 + $0x420] ss:$16 sps:$4 sm:$0xff]  }
  0x53   :  { %4220 = vmatpush2.bf16.msra.mxu0 %v7436_v49  ;;  %v7507_v31 = vld [vmem:[#allocation3 + $0x624] ss:$16 sps:$4 sm:$0xff]   ;;  %v7505_v35 = vld [vmem:[#allocation3 + $0x620] ss:$16 sps:$4 sm:$0xff]  }
  0x54   :  { %4261 = vmatpush2.bf16.msra.mxu1 %v7437_v50  ;;  %4221 = vmatprep.subr.bf16.mxu0 %v7438_v52  ;;  %v8762_v32 = vld [vmem:[%s9019_s0 + $0x10] sm:$0xff] }
  0x55   :  { %4262 = vmatprep.subr.bf16.mxu1 %v7440_v53  ;;  %v8771_v36 = vcombine.high %v8762_v32, %v8762_v32  ;;  %v7510_v38 = vld [vmem:[#allocation3 + $0x404] ss:$16 sps:$4 sm:$0xff]   ;;  %v7508_v40 = vld [vmem:[#allocation3 + $0x400] ss:$16 sps:$4 sm:$0xff]  }
  0x56   :  { %v7513_v39 = vld [vmem:[#allocation3 + $0x604] ss:$16 sps:$4 sm:$0xff]   ;;  %v7511_v41 = vld [vmem:[#allocation3 + $0x600] ss:$16 sps:$4 sm:$0xff]  }
  0x57   :  { %4222 = vmatpush2.bf16.msra.mxu0 %v7442_v54  ;;  %v7516_v42 = vld [vmem:[#allocation3 + $0x5e4] ss:$16 sps:$4 sm:$0xff]   ;;  %v7514_v44 = vld [vmem:[#allocation3 + $0x5e0] ss:$16 sps:$4 sm:$0xff]  }
  0x58   :  { %4263 = vmatpush2.bf16.msra.mxu1 %v7443_v55  ;;  %4223 = vmatprep.subr.bf16.mxu0 %v7444_v56  ;;  %v7519_v43 = vld [vmem:[#allocation3 + $0x7e4] ss:$16 sps:$4 sm:$0xff]   ;;  %v7517_v45 = vld [vmem:[#allocation3 + $0x7e0] ss:$16 sps:$4 sm:$0xff]  }
  0x59   :  { %4264 = vmatprep.subr.bf16.mxu1 %v7446_v57  ;;  %v7522_v46 = vld [vmem:[#allocation3 + $0x5c4] ss:$16 sps:$4 sm:$0xff]   ;;  %v7520_v49 = vld [vmem:[#allocation3 + $0x5c0] ss:$16 sps:$4 sm:$0xff]  }
  0x5a   :  { %v7525_v48 = vld [vmem:[#allocation3 + $0x7c4] ss:$16 sps:$4 sm:$0xff]   ;;  %v7523_v50 = vld [vmem:[#allocation3 + $0x7c0] ss:$16 sps:$4 sm:$0xff]  }
  0x5b   :  { %4224 = vmatpush2.bf16.msra.mxu0 %v7448_v58  ;;  %v7528_v52 = vld [vmem:[#allocation3 + $0x5a4] ss:$16 sps:$4 sm:$0xff]   ;;  %v7526_v54 = vld [vmem:[#allocation3 + $0x5a0] ss:$16 sps:$4 sm:$0xff]  }
  0x5c   :  { %4265 = vmatpush2.bf16.msra.mxu1 %v7449_v59  ;;  %4225 = vmatprep.subr.bf16.mxu0 %v7450_v60  ;;  %v7531_v53 = vld [vmem:[#allocation3 + $0x7a4] ss:$16 sps:$4 sm:$0xff]   ;;  %v7529_v55 = vld [vmem:[#allocation3 + $0x7a0] ss:$16 sps:$4 sm:$0xff]  }
  0x5d   :  { %4266 = vmatprep.subr.bf16.mxu1 %v7452_v61  ;;  %v7534_v56 = vld [vmem:[#allocation3 + $0x584] ss:$16 sps:$4 sm:$0xff]   ;;  %v7532_v58 = vld [vmem:[#allocation3 + $0x580] ss:$16 sps:$4 sm:$0xff]  }
  0x5e   :  { %v7537_v57 = vld [vmem:[#allocation3 + $0x784] ss:$16 sps:$4 sm:$0xff]   ;;  %v7535_v59 = vld [vmem:[#allocation3 + $0x780] ss:$16 sps:$4 sm:$0xff]  }
  0x5f   :  { %4226 = vmatpush2.bf16.msra.mxu0 %v7454_v62  ;;  %v7540_v60 = vld [vmem:[#allocation3 + $0x564] ss:$16 sps:$4 sm:$0xff]   ;;  %v7538_v62 = vld [vmem:[#allocation3 + $0x560] ss:$16 sps:$4 sm:$0xff]  }
  0x60   :  { %4267 = vmatpush2.bf16.msra.mxu1 %v7455_v63  ;;  %4227 = vmatprep.subr.bf16.mxu0 %v7456_v0  ;;  %v7543_v61 = vld [vmem:[#allocation3 + $0x764] ss:$16 sps:$4 sm:$0xff]   ;;  %v7541_v63 = vld [vmem:[#allocation3 + $0x760] ss:$16 sps:$4 sm:$0xff]  }
  0x61   :  { %4268 = vmatprep.subr.bf16.mxu1 %v7458_v1  ;;  %v7546_v0 = vld [vmem:[#allocation3 + $0x544] ss:$16 sps:$4 sm:$0xff]  }
  0x62   :  { %v7549_v1 = vld [vmem:[#allocation3 + $0x744] ss:$16 sps:$4 sm:$0xff]  }
  0x63   :  { %4228 = vmatpush2.bf16.msra.mxu0 %v7460_v2  ;;  %v7544_v2 = vld [vmem:[#allocation3 + $0x540] ss:$16 sps:$4 sm:$0xff]  }
  0x64   :  { %4269 = vmatpush2.bf16.msra.mxu1 %v7461_v3  ;;  %4279 = vmatprep.subr.bf16.mxu0 %v7468_v4  ;;  %v7547_v3 = vld [vmem:[#allocation3 + $0x740] ss:$16 sps:$4 sm:$0xff]   ;;  %v7552_v4 = vld [vmem:[#allocation3 + $0x524] ss:$16 sps:$4 sm:$0xff]  }
  0x65   :  { %4320 = vmatprep.subr.bf16.mxu1 %v7471_v5  ;;  %v7555_v5 = vld [vmem:[#allocation3 + $0x724] ss:$16 sps:$4 sm:$0xff]  }
  0x66   :  { %4230 = vmatmul.mubr.bf16.vlgmr.msra.gmra.mxu0 %v8753_v6 }
  0x67   :  { %4271 = vmatmul.mubr.bf16.vlgmr.msra.gmra.mxu1 %v8755_v7  ;;  %4280 = vmatpush1.bf16.msra.mxu0 %v7466_v8  ;;  %v7550_v8 = vld [vmem:[#allocation3 + $0x520] ss:$16 sps:$4 sm:$0xff]  }
  0x68   :  { %4321 = vmatpush1.bf16.msra.mxu1 %v7469_v9  ;;  %4281 = vmatprep.subr.bf16.mxu0 %v7474_v10  ;;  %v7553_v9 = vld [vmem:[#allocation3 + $0x720] ss:$16 sps:$4 sm:$0xff]   ;;  %v7558_v10 = vld [vmem:[#allocation3 + $0x504] ss:$16 sps:$4 sm:$0xff]  }
  0x69   :  { %4322 = vmatprep.subr.bf16.mxu1 %v7477_v11  ;;  %4311 = vmatprep.mubr.bf16.mxu0 %v8771_v36  ;;  %v7561_v11 = vld [vmem:[#allocation3 + $0x704] ss:$16 sps:$4 sm:$0xff]  }
  0x6a   :  { %4352 = vmatprep.mubr.bf16.mxu1 %v8775_v37 }
  0x6b   :  { %4282 = vmatpush1.bf16.msra.mxu0 %v7472_v12  ;;  %v7556_v12 = vld [vmem:[#allocation3 + $0x500] ss:$16 sps:$4 sm:$0xff]  }
  0x6c   :  { %4323 = vmatpush1.bf16.msra.mxu1 %v7475_v13  ;;  %4283 = vmatprep.subr.bf16.mxu0 %v7480_v14  ;;  %v7559_v13 = vld [vmem:[#allocation3 + $0x700] ss:$16 sps:$4 sm:$0xff]   ;;  %v7568_v14 = vld [vmem:[#allocation3 + $0x8e4] ss:$16 sps:$4 sm:$0xff]  }
  0x6d   :  { %4324 = vmatprep.subr.bf16.mxu1 %v7483_v15  ;;  %v7571_v15 = vld [vmem:[#allocation3 + $0xae4] ss:$16 sps:$4 sm:$0xff]  }
  0x6f   :  { %4284 = vmatpush1.bf16.msra.mxu0 %v7478_v16  ;;  %v8781_v16 = vcombine.low %v8762_v32, %v8762_v32  ;;  %v7586_v32 = vld [vmem:[#allocation3 + $0x884] ss:$16 sps:$4 sm:$0xff]  }
  0x70   :  { %4325 = vmatpush1.bf16.msra.mxu1 %v7481_v17  ;;  %4285 = vmatprep.subr.bf16.mxu0 %v7486_v18  ;;  %v8785_v17 = vcombine.low %v8767_v33, %v8767_v33  ;;  %v7566_v18 = vld [vmem:[#allocation3 + $0x8e0] ss:$16 sps:$4 sm:$0xff]   ;;  %v7589_v33 = vld [vmem:[#allocation3 + $0xa84] ss:$16 sps:$4 sm:$0xff]  }
  0x71   :  { %4326 = vmatprep.subr.bf16.mxu1 %v7489_v19  ;;  %v7569_v19 = vld [vmem:[#allocation3 + $0xae0] ss:$16 sps:$4 sm:$0xff]  }
  0x73   :  { %4286 = vmatpush1.bf16.msra.mxu0 %v7484_v20  ;;  %v7574_v20 = vld [vmem:[#allocation3 + $0x8c4] ss:$16 sps:$4 sm:$0xff]  }
  0x74   :  { %4327 = vmatpush1.bf16.msra.mxu1 %v7487_v21  ;;  %4287 = vmatprep.subr.bf16.mxu0 %v7492_v22  ;;  %v7577_v21 = vld [vmem:[#allocation3 + $0xac4] ss:$16 sps:$4 sm:$0xff]  }
  0x75   :  { %4328 = vmatprep.subr.bf16.mxu1 %v7495_v23  ;;  %v8790_v22 = vld [vmem:[%s9019_s0 + $0x20] sm:$0xff]  ;;  %v8795_v23 = vld [vmem:[%s9019_s0 + $0x28] sm:$0xff] }
  0x77   :  { %4288 = vmatpush1.bf16.msra.mxu0 %v7490_v24  ;;  %v8799_v24 = vcombine.high %v8790_v22, %v8790_v22 }
  0x78   :  { %4329 = vmatpush1.bf16.msra.mxu1 %v7493_v25  ;;  %4289 = vmatprep.subr.bf16.mxu0 %v7498_v26  ;;  %v8803_v25 = vcombine.high %v8795_v23, %v8795_v23  ;;  %v7572_v26 = vld [vmem:[#allocation3 + $0x8c0] ss:$16 sps:$4 sm:$0xff]  }
  0x79   :  { %4330 = vmatprep.subr.bf16.mxu1 %v7501_v27  ;;  %v7575_v27 = vld [vmem:[#allocation3 + $0xac0] ss:$16 sps:$4 sm:$0xff]  }
  0x7b   :  { %4290 = vmatpush1.bf16.msra.mxu0 %v7496_v28  ;;  %v7580_v28 = vld [vmem:[#allocation3 + $0x8a4] ss:$16 sps:$4 sm:$0xff]  }
  0x7c   :  { %4331 = vmatpush1.bf16.msra.mxu1 %v7499_v29  ;;  %4291 = vmatprep.subr.bf16.mxu0 %v7504_v30  ;;  %v7583_v29 = vld [vmem:[#allocation3 + $0xaa4] ss:$16 sps:$4 sm:$0xff]   ;;  %v7578_v30 = vld [vmem:[#allocation3 + $0x8a0] ss:$16 sps:$4 sm:$0xff]  }
  0x7d   :  { %4332 = vmatprep.subr.bf16.mxu1 %v7507_v31  ;;  %v7581_v31 = vld [vmem:[#allocation3 + $0xaa0] ss:$16 sps:$4 sm:$0xff]  }
  0x7f   :  { %4292 = vmatpush1.bf16.msra.mxu0 %v7502_v34  ;;  %v7584_v34 = vld [vmem:[#allocation3 + $0x880] ss:$16 sps:$4 sm:$0xff]  }
  0x80   :  { %4333 = vmatpush1.bf16.msra.mxu1 %v7505_v35  ;;  %4293 = vmatprep.subr.bf16.mxu0 %v7510_v38  ;;  %v7587_v35 = vld [vmem:[#allocation3 + $0xa80] ss:$16 sps:$4 sm:$0xff]   ;;  %v7592_v38 = vld [vmem:[#allocation3 + $0x864] ss:$16 sps:$4 sm:$0xff]  }
  0x81   :  { %4334 = vmatprep.subr.bf16.mxu1 %v7513_v39  ;;  %v7595_v39 = vld [vmem:[#allocation3 + $0xa64] ss:$16 sps:$4 sm:$0xff]  }
  0x83   :  { %4294 = vmatpush1.bf16.msra.mxu0 %v7508_v40  ;;  %v7590_v40 = vld [vmem:[#allocation3 + $0x860] ss:$16 sps:$4 sm:$0xff]  }
  0x84   :  { %4335 = vmatpush1.bf16.msra.mxu1 %v7511_v41  ;;  %4295 = vmatprep.subr.bf16.mxu0 %v7516_v42  ;;  %v7593_v41 = vld [vmem:[#allocation3 + $0xa60] ss:$16 sps:$4 sm:$0xff]   ;;  %v7598_v42 = vld [vmem:[#allocation3 + $0x844] ss:$16 sps:$4 sm:$0xff]  }
  0x85   :  { %4336 = vmatprep.subr.bf16.mxu1 %v7519_v43  ;;  %v7601_v43 = vld [vmem:[#allocation3 + $0xa44] ss:$16 sps:$4 sm:$0xff]  }
  0x87   :  { %4296 = vmatpush2.bf16.msra.mxu0 %v7514_v44  ;;  %v7596_v44 = vld [vmem:[#allocation3 + $0x840] ss:$16 sps:$4 sm:$0xff]  }
  0x88   :  { %4337 = vmatpush2.bf16.msra.mxu1 %v7517_v45  ;;  %4297 = vmatprep.subr.bf16.mxu0 %v7522_v46  ;;  %v7599_v45 = vld [vmem:[#allocation3 + $0xa40] ss:$16 sps:$4 sm:$0xff]   ;;  %v7604_v46 = vld [vmem:[#allocation3 + $0x824] ss:$16 sps:$4 sm:$0xff]  }
  0x89   :  { %4338 = vmatprep.subr.bf16.mxu1 %v7525_v48  ;;  %v7607_v48 = vld [vmem:[#allocation3 + $0xa24] ss:$16 sps:$4 sm:$0xff]  }
  0x8b   :  { %4298 = vmatpush2.bf16.msra.mxu0 %v7520_v49  ;;  %v7602_v49 = vld [vmem:[#allocation3 + $0x820] ss:$16 sps:$4 sm:$0xff]  }
  0x8c   :  { %4339 = vmatpush2.bf16.msra.mxu1 %v7523_v50  ;;  %4299 = vmatprep.subr.bf16.mxu0 %v7528_v52  ;;  %v7605_v50 = vld [vmem:[#allocation3 + $0xa20] ss:$16 sps:$4 sm:$0xff]   ;;  %v7610_v52 = vld [vmem:[#allocation3 + $0x804] ss:$16 sps:$4 sm:$0xff]  }
  0x8d   :  { %4340 = vmatprep.subr.bf16.mxu1 %v7531_v53  ;;  %v7613_v53 = vld [vmem:[#allocation3 + $0xa04] ss:$16 sps:$4 sm:$0xff]  }
  0x8f   :  { %4300 = vmatpush2.bf16.msra.mxu0 %v7526_v54  ;;  %v7608_v54 = vld [vmem:[#allocation3 + $0x800] ss:$16 sps:$4 sm:$0xff]  }
  0x90   :  { %4341 = vmatpush2.bf16.msra.mxu1 %v7529_v55  ;;  %4301 = vmatprep.subr.bf16.mxu0 %v7534_v56  ;;  %v7611_v55 = vld [vmem:[#allocation3 + $0xa00] ss:$16 sps:$4 sm:$0xff]   ;;  %v7616_v56 = vld [vmem:[#allocation3 + $0x9e4] ss:$16 sps:$4 sm:$0xff]  }
  0x91   :  { %4342 = vmatprep.subr.bf16.mxu1 %v7537_v57  ;;  %v7619_v57 = vld [vmem:[#allocation3 + $0xbe4] ss:$16 sps:$4 sm:$0xff]  }
  0x93   :  { %4302 = vmatpush2.bf16.msra.mxu0 %v7532_v58  ;;  %v7614_v58 = vld [vmem:[#allocation3 + $0x9e0] ss:$16 sps:$4 sm:$0xff]  }
  0x94   :  { %4343 = vmatpush2.bf16.msra.mxu1 %v7535_v59  ;;  %4303 = vmatprep.subr.bf16.mxu0 %v7540_v60  ;;  %v7617_v59 = vld [vmem:[#allocation3 + $0xbe0] ss:$16 sps:$4 sm:$0xff]   ;;  %v7622_v60 = vld [vmem:[#allocation3 + $0x9c4] ss:$16 sps:$4 sm:$0xff]  }
  0x95   :  { %4344 = vmatprep.subr.bf16.mxu1 %v7543_v61  ;;  %v7625_v61 = vld [vmem:[#allocation3 + $0xbc4] ss:$16 sps:$4 sm:$0xff]  }
  0x97   :  { %4304 = vmatpush2.bf16.msra.mxu0 %v7538_v62  ;;  %v7620_v62 = vld [vmem:[#allocation3 + $0x9c0] ss:$16 sps:$4 sm:$0xff]  }
  0x98   :  { %4345 = vmatpush2.bf16.msra.mxu1 %v7541_v63  ;;  %4305 = vmatprep.subr.bf16.mxu0 %v7546_v0  ;;  %v7623_v63 = vld [vmem:[#allocation3 + $0xbc0] ss:$16 sps:$4 sm:$0xff]   ;;  %v7628_v0 = vld [vmem:[#allocation3 + $0x9a4] ss:$16 sps:$4 sm:$0xff]  }
  0x99   :  { %4346 = vmatprep.subr.bf16.mxu1 %v7549_v1  ;;  %v7631_v1 = vld [vmem:[#allocation3 + $0xba4] ss:$16 sps:$4 sm:$0xff]  }
  0x9b   :  { %4306 = vmatpush2.bf16.msra.mxu0 %v7544_v2  ;;  %v7626_v2 = vld [vmem:[#allocation3 + $0x9a0] ss:$16 sps:$4 sm:$0xff]  }
  0x9c   :  { %4347 = vmatpush2.bf16.msra.mxu1 %v7547_v3  ;;  %4307 = vmatprep.subr.bf16.mxu0 %v7552_v4  ;;  %v7629_v3 = vld [vmem:[#allocation3 + $0xba0] ss:$16 sps:$4 sm:$0xff]   ;;  %v7634_v4 = vld [vmem:[#allocation3 + $0x984] ss:$16 sps:$4 sm:$0xff]  }
  0x9d   :  { %4348 = vmatprep.subr.bf16.mxu1 %v7555_v5  ;;  %v7637_v5 = vld [vmem:[#allocation3 + $0xb84] ss:$16 sps:$4 sm:$0xff]  }
  0x9f   :  { %4308 = vmatpush2.bf16.msra.mxu0 %v7550_v8  ;;  %v7632_v8 = vld [vmem:[#allocation3 + $0x980] ss:$16 sps:$4 sm:$0xff]  }
  0xa0   :  { %4349 = vmatpush2.bf16.msra.mxu1 %v7553_v9  ;;  %4309 = vmatprep.subr.bf16.mxu0 %v7558_v10  ;;  %v7635_v9 = vld [vmem:[#allocation3 + $0xb80] ss:$16 sps:$4 sm:$0xff]   ;;  %v7640_v10 = vld [vmem:[#allocation3 + $0x964] ss:$16 sps:$4 sm:$0xff]  }
  0xa1   :  { %4350 = vmatprep.subr.bf16.mxu1 %v7561_v11  ;;  %v7643_v11 = vld [vmem:[#allocation3 + $0xb64] ss:$16 sps:$4 sm:$0xff]  }
  0xa3   :  { %4310 = vmatpush2.bf16.msra.mxu0 %v7556_v12  ;;  %v7638_v12 = vld [vmem:[#allocation3 + $0x960] ss:$16 sps:$4 sm:$0xff]  }
  0xa4   :  { %4351 = vmatpush2.bf16.msra.mxu1 %v7559_v13  ;;  %4361 = vmatprep.subr.bf16.mxu0 %v7568_v14  ;;  %v7641_v13 = vld [vmem:[#allocation3 + $0xb60] ss:$16 sps:$4 sm:$0xff]   ;;  %v7646_v14 = vld [vmem:[#allocation3 + $0x944] ss:$16 sps:$4 sm:$0xff]  }
  0xa5   :  { %4402 = vmatprep.subr.bf16.mxu1 %v7571_v15  ;;  %v7649_v15 = vld [vmem:[#allocation3 + $0xb44] ss:$16 sps:$4 sm:$0xff]  }
  0xa6   :  { %4312 = vmatmul.mubr.bf16.vlgmr.msra.gmra.mxu0 %v8781_v16 }
  0xa7   :  { %4353 = vmatmul.mubr.bf16.vlgmr.msra.gmra.mxu1 %v8785_v17  ;;  %4362 = vmatpush1.bf16.msra.mxu0 %v7566_v18  ;;  %v7644_v18 = vld [vmem:[#allocation3 + $0x940] ss:$16 sps:$4 sm:$0xff]  }
  0xa8   :  { %4403 = vmatpush1.bf16.msra.mxu1 %v7569_v19  ;;  %4363 = vmatprep.subr.bf16.mxu0 %v7574_v20  ;;  %v7647_v19 = vld [vmem:[#allocation3 + $0xb40] ss:$16 sps:$4 sm:$0xff]   ;;  %v7652_v20 = vld [vmem:[#allocation3 + $0x924] ss:$16 sps:$4 sm:$0xff]  }
  0xa9   :  { %4404 = vmatprep.subr.bf16.mxu1 %v7577_v21  ;;  %4393 = vmatprep.mubr.bf16.mxu0 %v8799_v24  ;;  %v7655_v21 = vld [vmem:[#allocation3 + $0xb24] ss:$16 sps:$4 sm:$0xff]  }
  0xaa   :  { %4434 = vmatprep.mubr.bf16.mxu1 %v8803_v25 }
  0xab   :  { %4364 = vmatpush1.bf16.msra.mxu0 %v7572_v26  ;;  %v7650_v26 = vld [vmem:[#allocation3 + $0x920] ss:$16 sps:$4 sm:$0xff]  }
  0xac   :  { %4405 = vmatpush1.bf16.msra.mxu1 %v7575_v27  ;;  %4365 = vmatprep.subr.bf16.mxu0 %v7580_v28  ;;  %v7653_v27 = vld [vmem:[#allocation3 + $0xb20] ss:$16 sps:$4 sm:$0xff]   ;;  %v7658_v28 = vld [vmem:[#allocation3 + $0x904] ss:$16 sps:$4 sm:$0xff]  }
  0xad   :  { %4406 = vmatprep.subr.bf16.mxu1 %v7583_v29  ;;  %v7661_v29 = vld [vmem:[#allocation3 + $0xb04] ss:$16 sps:$4 sm:$0xff]  }
  0xaf   :  { %4366 = vmatpush1.bf16.msra.mxu0 %v7578_v30  ;;  %v7656_v30 = vld [vmem:[#allocation3 + $0x900] ss:$16 sps:$4 sm:$0xff]  }
  0xb0   :  { %4407 = vmatpush1.bf16.msra.mxu1 %v7581_v31  ;;  %4367 = vmatprep.subr.bf16.mxu0 %v7586_v32  ;;  %v7659_v31 = vld [vmem:[#allocation3 + $0xb00] ss:$16 sps:$4 sm:$0xff]   ;;  %v7668_v32 = vld [vmem:[#allocation3 + $0xce4] ss:$16 sps:$4 sm:$0xff]  }
  0xb1   :  { %4408 = vmatprep.subr.bf16.mxu1 %v7589_v33  ;;  %v7671_v33 = vld [vmem:[#allocation3 + $0xee4] ss:$16 sps:$4 sm:$0xff]  }
  0xb3   :  { %4368 = vmatpush1.bf16.msra.mxu0 %v7584_v34  ;;  %v7666_v34 = vld [vmem:[#allocation3 + $0xce0] ss:$16 sps:$4 sm:$0xff]  }
  0xb4   :  { %4409 = vmatpush1.bf16.msra.mxu1 %v7587_v35  ;;  %4369 = vmatprep.subr.bf16.mxu0 %v7592_v38  ;;  %v7669_v35 = vld [vmem:[#allocation3 + $0xee0] ss:$16 sps:$4 sm:$0xff]   ;;  %v8811_v38 = vcombine.low %v8790_v22, %v8790_v22  ;;  %v7677_v22 = vld [vmem:[#allocation3 + $0xec4] ss:$16 sps:$4 sm:$0xff]  }
  0xb5   :  { %4410 = vmatprep.subr.bf16.mxu1 %v7595_v39  ;;  %v8815_v39 = vcombine.low %v8795_v23, %v8795_v23 }
  0xb7   :  { %4370 = vmatpush1.bf16.msra.mxu0 %v7590_v40  ;;  %v8820_v40 = vld [vmem:[%s9019_s0 + $0x30] sm:$0xff] }
  0xb8   :  { %4411 = vmatpush1.bf16.msra.mxu1 %v7593_v41  ;;  %4371 = vmatprep.subr.bf16.mxu0 %v7598_v42  ;;  %v8825_v41 = vld [vmem:[%s9019_s0 + $0x38] sm:$0xff]  ;;  %v7674_v42 = vld [vmem:[#allocation3 + $0xcc4] ss:$16 sps:$4 sm:$0xff]   ;;  %v8829_v23 = vcombine.high %v8820_v40, %v8820_v40 }
  0xb9   :  { %4412 = vmatprep.subr.bf16.mxu1 %v7601_v43  ;;  %v8833_v43 = vcombine.high %v8825_v41, %v8825_v41 }
  0xbb   :  { %4372 = vmatpush1.bf16.msra.mxu0 %v7596_v44  ;;  %v7672_v44 = vld [vmem:[#allocation3 + $0xcc0] ss:$16 sps:$4 sm:$0xff]  }
  0xbc   :  { %4413 = vmatpush1.bf16.msra.mxu1 %v7599_v45  ;;  %4373 = vmatprep.subr.bf16.mxu0 %v7604_v46  ;;  %v7675_v45 = vld [vmem:[#allocation3 + $0xec0] ss:$16 sps:$4 sm:$0xff]   ;;  %v7680_v46 = vld [vmem:[#allocation3 + $0xca4] ss:$16 sps:$4 sm:$0xff]  }
  0xbd   :  { %4414 = vmatprep.subr.bf16.mxu1 %v7607_v48  ;;  %v7683_v48 = vld [vmem:[#allocation3 + $0xea4] ss:$16 sps:$4 sm:$0xff]  }
  0xbf   :  { %4374 = vmatpush1.bf16.msra.mxu0 %v7602_v49  ;;  %v7678_v49 = vld [vmem:[#allocation3 + $0xca0] ss:$16 sps:$4 sm:$0xff]  }
  0xc0   :  { %4415 = vmatpush1.bf16.msra.mxu1 %v7605_v50  ;;  %4375 = vmatprep.subr.bf16.mxu0 %v7610_v52  ;;  %v7681_v50 = vld [vmem:[#allocation3 + $0xea0] ss:$16 sps:$4 sm:$0xff]   ;;  %v7686_v52 = vld [vmem:[#allocation3 + $0xc84] ss:$16 sps:$4 sm:$0xff]  }
  0xc1   :  { %4416 = vmatprep.subr.bf16.mxu1 %v7613_v53  ;;  %v7689_v53 = vld [vmem:[#allocation3 + $0xe84] ss:$16 sps:$4 sm:$0xff]  }
  0xc3   :  { %4376 = vmatpush1.bf16.msra.mxu0 %v7608_v54  ;;  %v7684_v54 = vld [vmem:[#allocation3 + $0xc80] ss:$16 sps:$4 sm:$0xff]  }
  0xc4   :  { %4417 = vmatpush1.bf16.msra.mxu1 %v7611_v55  ;;  %4377 = vmatprep.subr.bf16.mxu0 %v7616_v56  ;;  %v7687_v55 = vld [vmem:[#allocation3 + $0xe80] ss:$16 sps:$4 sm:$0xff]   ;;  %v7692_v56 = vld [vmem:[#allocation3 + $0xc64] ss:$16 sps:$4 sm:$0xff]  }
  0xc5   :  { %4418 = vmatprep.subr.bf16.mxu1 %v7619_v57  ;;  %v7695_v57 = vld [vmem:[#allocation3 + $0xe64] ss:$16 sps:$4 sm:$0xff]  }
  0xc7   :  { %4378 = vmatpush2.bf16.msra.mxu0 %v7614_v58  ;;  %v7690_v58 = vld [vmem:[#allocation3 + $0xc60] ss:$16 sps:$4 sm:$0xff]  }
  0xc8   :  { %4419 = vmatpush2.bf16.msra.mxu1 %v7617_v59  ;;  %4379 = vmatprep.subr.bf16.mxu0 %v7622_v60  ;;  %v7693_v59 = vld [vmem:[#allocation3 + $0xe60] ss:$16 sps:$4 sm:$0xff]   ;;  %v7698_v60 = vld [vmem:[#allocation3 + $0xc44] ss:$16 sps:$4 sm:$0xff]  }
  0xc9   :  { %4420 = vmatprep.subr.bf16.mxu1 %v7625_v61  ;;  %v7701_v61 = vld [vmem:[#allocation3 + $0xe44] ss:$16 sps:$4 sm:$0xff]  }
  0xcb   :  { %4380 = vmatpush2.bf16.msra.mxu0 %v7620_v62  ;;  %v7696_v62 = vld [vmem:[#allocation3 + $0xc40] ss:$16 sps:$4 sm:$0xff]  }
  0xcc   :  { %4421 = vmatpush2.bf16.msra.mxu1 %v7623_v63  ;;  %4381 = vmatprep.subr.bf16.mxu0 %v7628_v0  ;;  %v7699_v63 = vld [vmem:[#allocation3 + $0xe40] ss:$16 sps:$4 sm:$0xff]   ;;  %v7704_v0 = vld [vmem:[#allocation3 + $0xc24] ss:$16 sps:$4 sm:$0xff]  }
  0xcd   :  { %4422 = vmatprep.subr.bf16.mxu1 %v7631_v1  ;;  %v7707_v1 = vld [vmem:[#allocation3 + $0xe24] ss:$16 sps:$4 sm:$0xff]  }
  0xcf   :  { %4382 = vmatpush2.bf16.msra.mxu0 %v7626_v2  ;;  %v7702_v2 = vld [vmem:[#allocation3 + $0xc20] ss:$16 sps:$4 sm:$0xff]  }
  0xd0   :  { %4423 = vmatpush2.bf16.msra.mxu1 %v7629_v3  ;;  %4383 = vmatprep.subr.bf16.mxu0 %v7634_v4  ;;  %v7705_v3 = vld [vmem:[#allocation3 + $0xe20] ss:$16 sps:$4 sm:$0xff]   ;;  %v7710_v4 = vld [vmem:[#allocation3 + $0xc04] ss:$16 sps:$4 sm:$0xff]  }
  0xd1   :  { %4424 = vmatprep.subr.bf16.mxu1 %v7637_v5  ;;  %v7713_v5 = vld [vmem:[#allocation3 + $0xe04] ss:$16 sps:$4 sm:$0xff]  }
  0xd3   :  { %4384 = vmatpush2.bf16.msra.mxu0 %v7632_v8  ;;  %v7708_v8 = vld [vmem:[#allocation3 + $0xc00] ss:$16 sps:$4 sm:$0xff]  }
  0xd4   :  { %4425 = vmatpush2.bf16.msra.mxu1 %v7635_v9  ;;  %4385 = vmatprep.subr.bf16.mxu0 %v7640_v10  ;;  %v7711_v9 = vld [vmem:[#allocation3 + $0xe00] ss:$16 sps:$4 sm:$0xff]   ;;  %v7716_v10 = vld [vmem:[#allocation3 + $0xde4] ss:$16 sps:$4 sm:$0xff]  }
  0xd5   :  { %4426 = vmatprep.subr.bf16.mxu1 %v7643_v11  ;;  %v7719_v11 = vld [vmem:[#allocation3 + $0xfe4] ss:$16 sps:$4 sm:$0xff]  }
  0xd7   :  { %4386 = vmatpush2.bf16.msra.mxu0 %v7638_v12  ;;  %v7714_v12 = vld [vmem:[#allocation3 + $0xde0] ss:$16 sps:$4 sm:$0xff]  }
  0xd8   :  { %4427 = vmatpush2.bf16.msra.mxu1 %v7641_v13  ;;  %4387 = vmatprep.subr.bf16.mxu0 %v7646_v14  ;;  %v7717_v13 = vld [vmem:[#allocation3 + $0xfe0] ss:$16 sps:$4 sm:$0xff]   ;;  %v7722_v14 = vld [vmem:[#allocation3 + $0xdc4] ss:$16 sps:$4 sm:$0xff]  }
  0xd9   :  { %4428 = vmatprep.subr.bf16.mxu1 %v7649_v15  ;;  %v7725_v15 = vld [vmem:[#allocation3 + $0xfc4] ss:$16 sps:$4 sm:$0xff]  }
  0xdb   :  { %4388 = vmatpush2.bf16.msra.mxu0 %v7644_v18  ;;  %v7720_v18 = vld [vmem:[#allocation3 + $0xdc0] ss:$16 sps:$4 sm:$0xff]  }
  0xdc   :  { %4429 = vmatpush2.bf16.msra.mxu1 %v7647_v19  ;;  %4389 = vmatprep.subr.bf16.mxu0 %v7652_v20  ;;  %v7723_v19 = vld [vmem:[#allocation3 + $0xfc0] ss:$16 sps:$4 sm:$0xff]   ;;  %v7728_v20 = vld [vmem:[#allocation3 + $0xda4] ss:$16 sps:$4 sm:$0xff]  }
  0xdd   :  { %4430 = vmatprep.subr.bf16.mxu1 %v7655_v21  ;;  %v7731_v21 = vld [vmem:[#allocation3 + $0xfa4] ss:$16 sps:$4 sm:$0xff]  }
  0xdf   :  { %4390 = vmatpush2.bf16.msra.mxu0 %v7650_v26  ;;  %v7726_v26 = vld [vmem:[#allocation3 + $0xda0] ss:$16 sps:$4 sm:$0xff]  }
  0xe0   :  { %4431 = vmatpush2.bf16.msra.mxu1 %v7653_v27  ;;  %4391 = vmatprep.subr.bf16.mxu0 %v7658_v28  ;;  %v7729_v27 = vld [vmem:[#allocation3 + $0xfa0] ss:$16 sps:$4 sm:$0xff]   ;;  %v7734_v28 = vld [vmem:[#allocation3 + $0xd84] ss:$16 sps:$4 sm:$0xff]  }
  0xe1   :  { %4432 = vmatprep.subr.bf16.mxu1 %v7661_v29  ;;  %v7737_v29 = vld [vmem:[#allocation3 + $0xf84] ss:$16 sps:$4 sm:$0xff]  }
  0xe3   :  { %4392 = vmatpush2.bf16.msra.mxu0 %v7656_v30  ;;  %v7732_v30 = vld [vmem:[#allocation3 + $0xd80] ss:$16 sps:$4 sm:$0xff]  }
  0xe4   :  { %4433 = vmatpush2.bf16.msra.mxu1 %v7659_v31  ;;  %4443 = vmatprep.subr.bf16.mxu0 %v7668_v32  ;;  %v7735_v31 = vld [vmem:[#allocation3 + $0xf80] ss:$16 sps:$4 sm:$0xff]   ;;  %v7740_v32 = vld [vmem:[#allocation3 + $0xd64] ss:$16 sps:$4 sm:$0xff]  }
  0xe5   :  { %4484 = vmatprep.subr.bf16.mxu1 %v7671_v33  ;;  %v7743_v33 = vld [vmem:[#allocation3 + $0xf64] ss:$16 sps:$4 sm:$0xff]  }
  0xe6   :  { %4394 = vmatmul.mubr.bf16.vlgmr.msra.gmra.mxu0 %v8811_v38 }
  0xe7   :  { %4435 = vmatmul.mubr.bf16.vlgmr.msra.gmra.mxu1 %v8815_v39  ;;  %4444 = vmatpush1.bf16.msra.mxu0 %v7666_v34  ;;  %v7738_v34 = vld [vmem:[#allocation3 + $0xd60] ss:$16 sps:$4 sm:$0xff]  }
  0xe8   :  { %4485 = vmatpush1.bf16.msra.mxu1 %v7669_v35  ;;  %4445 = vmatprep.subr.bf16.mxu0 %v7674_v42  ;;  %v7741_v35 = vld [vmem:[#allocation3 + $0xf60] ss:$16 sps:$4 sm:$0xff]   ;;  %v7746_v42 = vld [vmem:[#allocation3 + $0xd44] ss:$16 sps:$4 sm:$0xff]  }
  0xe9   :  { %4486 = vmatprep.subr.bf16.mxu1 %v7677_v22  ;;  %4475 = vmatprep.mubr.bf16.mxu0 %v8829_v23  ;;  %v7749_v22 = vld [vmem:[#allocation3 + $0xf44] ss:$16 sps:$4 sm:$0xff]  }
  0xea   :  { %4516 = vmatprep.mubr.bf16.mxu1 %v8833_v43 }
  0xeb   :  { %4446 = vmatpush1.bf16.msra.mxu0 %v7672_v44  ;;  %v7744_v44 = vld [vmem:[#allocation3 + $0xd40] ss:$16 sps:$4 sm:$0xff]  }
  0xec   :  { %4487 = vmatpush1.bf16.msra.mxu1 %v7675_v45  ;;  %4447 = vmatprep.subr.bf16.mxu0 %v7680_v46  ;;  %v7747_v45 = vld [vmem:[#allocation3 + $0xf40] ss:$16 sps:$4 sm:$0xff]   ;;  %v7752_v46 = vld [vmem:[#allocation3 + $0xd24] ss:$16 sps:$4 sm:$0xff]  }
  0xed   :  { %4488 = vmatprep.subr.bf16.mxu1 %v7683_v48  ;;  %v7755_v48 = vld [vmem:[#allocation3 + $0xf24] ss:$16 sps:$4 sm:$0xff]  }
  0xef   :  { %4448 = vmatpush1.bf16.msra.mxu0 %v7678_v49  ;;  %v7750_v49 = vld [vmem:[#allocation3 + $0xd20] ss:$16 sps:$4 sm:$0xff]  }
  0xf0   :  { %4489 = vmatpush1.bf16.msra.mxu1 %v7681_v50  ;;  %4449 = vmatprep.subr.bf16.mxu0 %v7686_v52  ;;  %v7753_v50 = vld [vmem:[#allocation3 + $0xf20] ss:$16 sps:$4 sm:$0xff]   ;;  %v7758_v52 = vld [vmem:[#allocation3 + $0xd04] ss:$16 sps:$4 sm:$0xff]  }
  0xf1   :  { %4490 = vmatprep.subr.bf16.mxu1 %v7689_v53  ;;  %v7761_v53 = vld [vmem:[#allocation3 + $0xf04] ss:$16 sps:$4 sm:$0xff]  }
  0xf3   :  { %4450 = vmatpush1.bf16.msra.mxu0 %v7684_v54  ;;  %v7756_v54 = vld [vmem:[#allocation3 + $0xd00] ss:$16 sps:$4 sm:$0xff]  }
  0xf4   :  { %4491 = vmatpush1.bf16.msra.mxu1 %v7687_v55  ;;  %4451 = vmatprep.subr.bf16.mxu0 %v7692_v56  ;;  %v7759_v55 = vld [vmem:[#allocation3 + $0xf00] ss:$16 sps:$4 sm:$0xff]   ;;  %v7768_v56 = vld [vmem:[#allocation3 + $0x10e4] ss:$16 sps:$4 sm:$0xff]  }
  0xf5   :  { %4492 = vmatprep.subr.bf16.mxu1 %v7695_v57  ;;  %v7771_v57 = vld [vmem:[#allocation3 + $0x12e4] ss:$16 sps:$4 sm:$0xff]  }
  0xf7   :  { %4452 = vmatpush1.bf16.msra.mxu0 %v7690_v58  ;;  %v7766_v58 = vld [vmem:[#allocation3 + $0x10e0] ss:$16 sps:$4 sm:$0xff]  }
  0xf8   :  { %4493 = vmatpush1.bf16.msra.mxu1 %v7693_v59  ;;  %4453 = vmatprep.subr.bf16.mxu0 %v7698_v60  ;;  %v7769_v59 = vld [vmem:[#allocation3 + $0x12e0] ss:$16 sps:$4 sm:$0xff]   ;;  %v8841_v60 = vcombine.low %v8820_v40, %v8820_v40  ;;  %v7777_v40 = vld [vmem:[#allocation3 + $0x12c4] ss:$16 sps:$4 sm:$0xff]  }
  0xf9   :  { %4494 = vmatprep.subr.bf16.mxu1 %v7701_v61  ;;  %v8845_v61 = vcombine.low %v8825_v41, %v8825_v41 }
  0xfb   :  { %4454 = vmatpush1.bf16.msra.mxu0 %v7696_v62  ;;  %v8850_v62 = vld [vmem:[%s9019_s0 + $0x40] sm:$0xff] }
  0xfc   :  { %4495 = vmatpush1.bf16.msra.mxu1 %v7699_v63  ;;  %4455 = vmatprep.subr.bf16.mxu0 %v7704_v0  ;;  %v8855_v63 = vld [vmem:[%s9019_s0 + $0x48] sm:$0xff]  ;;  %v7774_v0 = vld [vmem:[#allocation3 + $0x10c4] ss:$16 sps:$4 sm:$0xff]   ;;  %v8859_v41 = vcombine.high %v8850_v62, %v8850_v62 }
  0xfd   :  { %4496 = vmatprep.subr.bf16.mxu1 %v7707_v1  ;;  %v8863_v1 = vcombine.high %v8855_v63, %v8855_v63 }
  0xff   :  { %4456 = vmatpush1.bf16.msra.mxu0 %v7702_v2 }
 0x100   :  { %4497 = vmatpush1.bf16.msra.mxu1 %v7705_v3  ;;  %4457 = vmatprep.subr.bf16.mxu0 %v7710_v4  ;;  %v7772_v4 = vld [vmem:[#allocation3 + $0x10c0] ss:$16 sps:$4 sm:$0xff]  }
 0x101   :  { %4498 = vmatprep.subr.bf16.mxu1 %v7713_v5  ;;  %v7775_v5 = vld [vmem:[#allocation3 + $0x12c0] ss:$16 sps:$4 sm:$0xff]  }
 0x103   :  { %4458 = vmatpush1.bf16.msra.mxu0 %v7708_v8 }
 0x104   :  { %4499 = vmatpush1.bf16.msra.mxu1 %v7711_v9  ;;  %4459 = vmatprep.subr.bf16.mxu0 %v7716_v10  ;;  %v7780_v9 = vld [vmem:[#allocation3 + $0x10a4] ss:$16 sps:$4 sm:$0xff]  }
 0x105   :  { %4500 = vmatprep.subr.bf16.mxu1 %v7719_v11 }
 0x107   :  { %4460 = vmatpush2.bf16.msra.mxu0 %v7714_v12  ;;  %v7783_v12 = vld [vmem:[#allocation3 + $0x12a4] ss:$16 sps:$4 sm:$0xff]  }
 0x108   :  { %4501 = vmatpush2.bf16.msra.mxu1 %v7717_v13  ;;  %4461 = vmatprep.subr.bf16.mxu0 %v7722_v14 }
 0x109   :  { %4502 = vmatprep.subr.bf16.mxu1 %v7725_v15 }
 0x10b   :  { %4462 = vmatpush2.bf16.msra.mxu0 %v7720_v18  ;;  %v7778_v18 = vld [vmem:[#allocation3 + $0x10a0] ss:$16 sps:$4 sm:$0xff]  }
 0x10c   :  { %4503 = vmatpush2.bf16.msra.mxu1 %v7723_v19  ;;  %4463 = vmatprep.subr.bf16.mxu0 %v7728_v20  ;;  %v7781_v19 = vld [vmem:[#allocation3 + $0x12a0] ss:$16 sps:$4 sm:$0xff]   ;;  %v7786_v20 = vld [vmem:[#allocation3 + $0x1084] ss:$16 sps:$4 sm:$0xff]  }
 0x10d   :  { %4504 = vmatprep.subr.bf16.mxu1 %v7731_v21 }
 0x10f   :  { %4464 = vmatpush2.bf16.msra.mxu0 %v7726_v26 }
 0x110   :  { %4505 = vmatpush2.bf16.msra.mxu1 %v7729_v27  ;;  %4465 = vmatprep.subr.bf16.mxu0 %v7734_v28  ;;  %v7789_v27 = vld [vmem:[#allocation3 + $0x1284] ss:$16 sps:$4 sm:$0xff]   ;;  %v7784_v28 = vld [vmem:[#allocation3 + $0x1080] ss:$16 sps:$4 sm:$0xff]  }
 0x111   :  { %4506 = vmatprep.subr.bf16.mxu1 %v7737_v29  ;;  %v7787_v29 = vld [vmem:[#allocation3 + $0x1280] ss:$16 sps:$4 sm:$0xff]  }
 0x113   :  { %4466 = vmatpush2.bf16.msra.mxu0 %v7732_v30  ;;  %v7792_v30 = vld [vmem:[#allocation3 + $0x1064] ss:$16 sps:$4 sm:$0xff]  }
 0x114   :  { %4507 = vmatpush2.bf16.msra.mxu1 %v7735_v31  ;;  %4467 = vmatprep.subr.bf16.mxu0 %v7740_v32  ;;  %v7795_v31 = vld [vmem:[#allocation3 + $0x1264] ss:$16 sps:$4 sm:$0xff]   ;;  %v7790_v32 = vld [vmem:[#allocation3 + $0x1060] ss:$16 sps:$4 sm:$0xff]  }
 0x115   :  { %4508 = vmatprep.subr.bf16.mxu1 %v7743_v33  ;;  %v7793_v33 = vld [vmem:[#allocation3 + $0x1260] ss:$16 sps:$4 sm:$0xff]  }
 0x117   :  { %4468 = vmatpush2.bf16.msra.mxu0 %v7738_v34  ;;  %v7798_v34 = vld [vmem:[#allocation3 + $0x1044] ss:$16 sps:$4 sm:$0xff]  }
 0x118   :  { %4509 = vmatpush2.bf16.msra.mxu1 %v7741_v35  ;;  %4469 = vmatprep.subr.bf16.mxu0 %v7746_v42  ;;  %v7801_v35 = vld [vmem:[#allocation3 + $0x1244] ss:$16 sps:$4 sm:$0xff]   ;;  %v7796_v42 = vld [vmem:[#allocation3 + $0x1040] ss:$16 sps:$4 sm:$0xff]  }
 0x119   :  { %4510 = vmatprep.subr.bf16.mxu1 %v7749_v22  ;;  %v7799_v22 = vld [vmem:[#allocation3 + $0x1240] ss:$16 sps:$4 sm:$0xff]  }
 0x11b   :  { %4470 = vmatpush2.bf16.msra.mxu0 %v7744_v44  ;;  %v7804_v44 = vld [vmem:[#allocation3 + $0x1024] ss:$16 sps:$4 sm:$0xff]  }
 0x11c   :  { %4511 = vmatpush2.bf16.msra.mxu1 %v7747_v45  ;;  %4471 = vmatprep.subr.bf16.mxu0 %v7752_v46  ;;  %v7807_v45 = vld [vmem:[#allocation3 + $0x1224] ss:$16 sps:$4 sm:$0xff]   ;;  %v7802_v46 = vld [vmem:[#allocation3 + $0x1020] ss:$16 sps:$4 sm:$0xff]  }
 0x11d   :  { %4512 = vmatprep.subr.bf16.mxu1 %v7755_v48  ;;  %v7805_v48 = vld [vmem:[#allocation3 + $0x1220] ss:$16 sps:$4 sm:$0xff]  }
 0x11f   :  { %4472 = vmatpush2.bf16.msra.mxu0 %v7750_v49  ;;  %v7810_v49 = vld [vmem:[#allocation3 + $0x1004] ss:$16 sps:$4 sm:$0xff]  }
 0x120   :  { %4513 = vmatpush2.bf16.msra.mxu1 %v7753_v50  ;;  %4473 = vmatprep.subr.bf16.mxu0 %v7758_v52  ;;  %v7813_v50 = vld [vmem:[#allocation3 + $0x1204] ss:$16 sps:$4 sm:$0xff]   ;;  %v7808_v52 = vld [vmem:[#allocation3 + $0x1000] ss:$16 sps:$4 sm:$0xff]  }
 0x121   :  { %4514 = vmatprep.subr.bf16.mxu1 %v7761_v53  ;;  %v7811_v53 = vld [vmem:[#allocation3 + $0x1200] ss:$16 sps:$4 sm:$0xff]  }
 0x123   :  { %4474 = vmatpush2.bf16.msra.mxu0 %v7756_v54  ;;  %v7816_v54 = vld [vmem:[#allocation3 + $0x11e4] ss:$16 sps:$4 sm:$0xff]  }
 0x124   :  { %4515 = vmatpush2.bf16.msra.mxu1 %v7759_v55  ;;  %4525 = vmatprep.subr.bf16.mxu0 %v7768_v56  ;;  %v7819_v55 = vld [vmem:[#allocation3 + $0x13e4] ss:$16 sps:$4 sm:$0xff]   ;;  %v7814_v56 = vld [vmem:[#allocation3 + $0x11e0] ss:$16 sps:$4 sm:$0xff]  }
 0x125   :  { %4566 = vmatprep.subr.bf16.mxu1 %v7771_v57  ;;  %v7817_v57 = vld [vmem:[#allocation3 + $0x13e0] ss:$16 sps:$4 sm:$0xff]  }
 0x126   :  { %v4231_v2 = vpop.f32.mrf.mxu0  ;;  %4476 = vmatmul.mubr.bf16.vlgmr.msra.gmra.mxu0 %v8841_v60 }
 0x127   :  { %v4272_v3 = vpop.f32.mrf.mxu1  ;;  %4517 = vmatmul.mubr.bf16.vlgmr.msra.gmra.mxu1 %v8845_v61  ;;  %4526 = vmatpush1.bf16.msra.mxu0 %v7766_v58  ;;  %v7822_v58 = vld [vmem:[#allocation3 + $0x11c4] ss:$16 sps:$4 sm:$0xff]  }
 0x128   :  { %v8867_v8 = vadd.f32 %v4272_v3, %v4231_v2  ;;  %4567 = vmatpush1.bf16.msra.mxu1 %v7769_v59  ;;  %v4233_v10 = vpop.f32.mrf.mxu0  ;;  %4527 = vmatprep.subr.bf16.mxu0 %v7774_v0  ;;  %v7825_v59 = vld [vmem:[#allocation3 + $0x13c4] ss:$16 sps:$4 sm:$0xff]   ;;  %v7820_v0 = vld [vmem:[#allocation3 + $0x11c0] ss:$16 sps:$4 sm:$0xff]  }
 0x129   :  { %v4274_v11 = vpop.f32.mrf.mxu1  ;;  %4568 = vmatprep.subr.bf16.mxu1 %v7777_v40  ;;  %4557 = vmatprep.mubr.bf16.mxu0 %v8859_v41  ;;  %v7823_v40 = vld [vmem:[#allocation3 + $0x13c0] ss:$16 sps:$4 sm:$0xff]   ;;  %v7828_v2 = vld [vmem:[#allocation3 + $0x11a4] ss:$16 sps:$4 sm:$0xff]  }
 0x12a   :  { %v8869_v13 = vadd.f32 %v4274_v11, %v4233_v10  ;;  %4598 = vmatprep.mubr.bf16.mxu1 %v8863_v1  ;;  %v4235_v14 = vpop.f32.mrf.mxu0  ;;  %v7831_v3 = vld [vmem:[#allocation3 + $0x13a4] ss:$16 sps:$4 sm:$0xff]   ;;  %v7832_v11 = vld [vmem:[#allocation3 + $0x1180] ss:$16 sps:$4 sm:$0xff]  }
 0x12b   :  { %v4276_v15 = vpop.f32.mrf.mxu1  ;;  %4528 = vmatpush1.bf16.msra.mxu0 %v7772_v4  ;;  %v7826_v4 = vld [vmem:[#allocation3 + $0x11a0] ss:$16 sps:$4 sm:$0xff]   ;;  %v7837_v10 = vld [vmem:[#allocation3 + $0x1384] ss:$16 sps:$4 sm:$0xff]  }
 0x12c   :  { %4569 = vmatpush1.bf16.msra.mxu1 %v7775_v5  ;;  %v4236_v21 = vpop.f32.mrf.mxu0  ;;  %4529 = vmatprep.subr.bf16.mxu0 %v7780_v9  ;;  %v7829_v5 = vld [vmem:[#allocation3 + $0x13a0] ss:$16 sps:$4 sm:$0xff]   ;;  %v7834_v9 = vld [vmem:[#allocation3 + $0x1184] ss:$16 sps:$4 sm:$0xff]  }
 0x12d   :  { %v4277_v26 = vpop.f32.mrf.mxu1  ;;  %4570 = vmatprep.subr.bf16.mxu1 %v7783_v12  ;;  %v7835_v12 = vld [vmem:[#allocation3 + $0x1380] ss:$16 sps:$4 sm:$0xff]   ;;  %v7840_v14 = vld [vmem:[#allocation3 + $0x1164] ss:$16 sps:$4 sm:$0xff]  }
 0x12e   :  { %v7843_v15 = vld [vmem:[#allocation3 + $0x1364] ss:$16 sps:$4 sm:$0xff]   ;;  %v7844_v26 = vld [vmem:[#allocation3 + $0x1140] ss:$16 sps:$4 sm:$0xff]  }
 0x12f   :  { %4530 = vmatpush1.bf16.msra.mxu0 %v7778_v18  ;;  %v7838_v18 = vld [vmem:[#allocation3 + $0x1160] ss:$16 sps:$4 sm:$0xff]   ;;  %v7849_v21 = vld [vmem:[#allocation3 + $0x1344] ss:$16 sps:$4 sm:$0xff]  }
 0x130   :  { %4571 = vmatpush1.bf16.msra.mxu1 %v7781_v19  ;;  %4531 = vmatprep.subr.bf16.mxu0 %v7786_v20  ;;  %v7841_v19 = vld [vmem:[#allocation3 + $0x1360] ss:$16 sps:$4 sm:$0xff]   ;;  %v7846_v20 = vld [vmem:[#allocation3 + $0x1144] ss:$16 sps:$4 sm:$0xff]  }
 0x131   :  { %4572 = vmatprep.subr.bf16.mxu1 %v7789_v27  ;;  %v7847_v27 = vld [vmem:[#allocation3 + $0x1340] ss:$16 sps:$4 sm:$0xff]  }
 0x133   :  { %4532 = vmatpush1.bf16.msra.mxu0 %v7784_v28  ;;  %v7852_v28 = vld [vmem:[#allocation3 + $0x1124] ss:$16 sps:$4 sm:$0xff]  }
 0x134   :  { %4573 = vmatpush1.bf16.msra.mxu1 %v7787_v29  ;;  %4533 = vmatprep.subr.bf16.mxu0 %v7792_v30  ;;  %v7855_v29 = vld [vmem:[#allocation3 + $0x1324] ss:$16 sps:$4 sm:$0xff]   ;;  %v7850_v30 = vld [vmem:[#allocation3 + $0x1120] ss:$16 sps:$4 sm:$0xff]  }
 0x135   :  { %4574 = vmatprep.subr.bf16.mxu1 %v7795_v31  ;;  %v7853_v31 = vld [vmem:[#allocation3 + $0x1320] ss:$16 sps:$4 sm:$0xff]  }
 0x137   :  { %4534 = vmatpush1.bf16.msra.mxu0 %v7790_v32  ;;  %v7858_v32 = vld [vmem:[#allocation3 + $0x1104] ss:$16 sps:$4 sm:$0xff]  }
 0x138   :  { %4575 = vmatpush1.bf16.msra.mxu1 %v7793_v33  ;;  %4535 = vmatprep.subr.bf16.mxu0 %v7798_v34  ;;  %v7861_v33 = vld [vmem:[#allocation3 + $0x1304] ss:$16 sps:$4 sm:$0xff]   ;;  %v7856_v34 = vld [vmem:[#allocation3 + $0x1100] ss:$16 sps:$4 sm:$0xff]  }
 0x139   :  { %4576 = vmatprep.subr.bf16.mxu1 %v7801_v35  ;;  %v7859_v35 = vld [vmem:[#allocation3 + $0x1300] ss:$16 sps:$4 sm:$0xff]  }
 0x13b   :  { %4536 = vmatpush1.bf16.msra.mxu0 %v7796_v42  ;;  %v7868_v42 = vld [vmem:[#allocation3 + $0x14e4] ss:$16 sps:$4 sm:$0xff]  }
 0x13c   :  { %4577 = vmatpush1.bf16.msra.mxu1 %v7799_v22  ;;  %4537 = vmatprep.subr.bf16.mxu0 %v7804_v44  ;;  %v7871_v22 = vld [vmem:[#allocation3 + $0xec] ss:$16 sps:$4 sm:$0xff]   ;;  %v7866_v44 = vld [vmem:[#allocation3 + $0x14e0] ss:$16 sps:$4 sm:$0xff]  }
 0x13d   :  { %4578 = vmatprep.subr.bf16.mxu1 %v7807_v45  ;;  %v7869_v45 = vld [vmem:[#allocation3 + $0xe8] ss:$16 sps:$4 sm:$0xff]  }
 0x13f   :  { %4538 = vmatpush1.bf16.msra.mxu0 %v7802_v46  ;;  %v8875_v46 = vcombine.low %v8850_v62, %v8850_v62 }
 0x140   :  { %4579 = vmatpush1.bf16.msra.mxu1 %v7805_v48  ;;  %4539 = vmatprep.subr.bf16.mxu0 %v7810_v49  ;;  %v8879_v48 = vcombine.low %v8855_v63, %v8855_v63  ;;  %v7874_v49 = vld [vmem:[#allocation3 + $0x14c4] ss:$16 sps:$4 sm:$0xff]  }
 0x141   :  { %4580 = vmatprep.subr.bf16.mxu1 %v7813_v50  ;;  %v7877_v50 = vld [vmem:[#allocation3 + $0xcc] ss:$16 sps:$4 sm:$0xff]  }
 0x143   :  { %4540 = vmatpush1.bf16.msra.mxu0 %v7808_v52  ;;  %v7872_v52 = vld [vmem:[#allocation3 + $0x14c0] ss:$16 sps:$4 sm:$0xff]  }
 0x144   :  { %4581 = vmatpush1.bf16.msra.mxu1 %v7811_v53  ;;  %4541 = vmatprep.subr.bf16.mxu0 %v7816_v54  ;;  %v7875_v53 = vld [vmem:[#allocation3 + $0xc8] ss:$16 sps:$4 sm:$0xff]  }
 0x145   :  { %4582 = vmatprep.subr.bf16.mxu1 %v7819_v55 }
 0x147   :  { %4542 = vmatpush2.bf16.msra.mxu0 %v7814_v56 }
 0x148   :  { %4583 = vmatpush2.bf16.msra.mxu1 %v7817_v57  ;;  %4543 = vmatprep.subr.bf16.mxu0 %v7822_v58  ;;  %v7880_v57 = vld [vmem:[#allocation3 + $0x14a4] ss:$16 sps:$4 sm:$0xff]   ;;  %v7883_v58 = vld [vmem:[#allocation3 + $0xac] ss:$16 sps:$4 sm:$0xff]  }
 0x149   :  { %4584 = vmatprep.subr.bf16.mxu1 %v7825_v59 }
 0x14b   :  { %4544 = vmatpush2.bf16.msra.mxu0 %v7820_v0 }
 0x14c   :  { %4585 = vmatpush2.bf16.msra.mxu1 %v7823_v40  ;;  %4545 = vmatprep.subr.bf16.mxu0 %v7828_v2  ;;  %v7878_v40 = vld [vmem:[#allocation3 + $0x14a0] ss:$16 sps:$4 sm:$0xff]   ;;  %v7881_v2 = vld [vmem:[#allocation3 + $0xa8] ss:$16 sps:$4 sm:$0xff]  }
 0x14d   :  { %4586 = vmatprep.subr.bf16.mxu1 %v7831_v3  ;;  %v8691_v3 = vmov 0  }
 0x14f   :  { %4546 = vmatpush2.bf16.msra.mxu0 %v7826_v4 }
 0x150   :  { %4587 = vmatpush2.bf16.msra.mxu1 %v7829_v5  ;;  %4547 = vmatprep.subr.bf16.mxu0 %v7834_v9 }
 0x151   :  { %4588 = vmatprep.subr.bf16.mxu1 %v7837_v10 }
 0x153   :  { %4548 = vmatpush2.bf16.msra.mxu0 %v7832_v11  ;;  %v7886_v11 = vld [vmem:[#allocation3 + $0x1484] ss:$16 sps:$4 sm:$0xff]  }
 0x154   :  { %4589 = vmatpush2.bf16.msra.mxu1 %v7835_v12  ;;  %4549 = vmatprep.subr.bf16.mxu0 %v7840_v14  ;;  %v7889_v12 = vld [vmem:[#allocation3 + $0x8c] ss:$16 sps:$4 sm:$0xff]   ;;  %v7887_v14 = vld [vmem:[#allocation3 + $0x88] ss:$16 sps:$4 sm:$0xff]  }
 0x155   :  { %4590 = vmatprep.subr.bf16.mxu1 %v7843_v15  ;;  %v7892_v15 = vld [vmem:[#allocation3 + $0x1464] ss:$16 sps:$4 sm:$0xff]  }
 0x157   :  { %4550 = vmatpush2.bf16.msra.mxu0 %v7838_v18  ;;  %v7890_v18 = vld [vmem:[#allocation3 + $0x1460] ss:$16 sps:$4 sm:$0xff]  }
 0x158   :  { %4591 = vmatpush2.bf16.msra.mxu1 %v7841_v19  ;;  %4551 = vmatprep.subr.bf16.mxu0 %v7846_v20  ;;  %v7893_v19 = vld [vmem:[#allocation3 + $0x68] ss:$16 sps:$4 sm:$0xff]   ;;  %v7898_v20 = vld [vmem:[#allocation3 + $0x1444] ss:$16 sps:$4 sm:$0xff]  }
 0x159   :  { %4592 = vmatprep.subr.bf16.mxu1 %v7849_v21  ;;  %v7901_v21 = vld [vmem:[#allocation3 + $0x4c] ss:$16 sps:$4 sm:$0xff]  }
 0x15b   :  { %4552 = vmatpush2.bf16.msra.mxu0 %v7844_v26  ;;  %v7896_v26 = vld [vmem:[#allocation3 + $0x1440] ss:$16 sps:$4 sm:$0xff]  }
 0x15c   :  { %4593 = vmatpush2.bf16.msra.mxu1 %v7847_v27  ;;  %4553 = vmatprep.subr.bf16.mxu0 %v7852_v28  ;;  %v7899_v27 = vld [vmem:[#allocation3 + $0x48] ss:$16 sps:$4 sm:$0xff]   ;;  %v7904_v28 = vld [vmem:[#allocation3 + $0x1424] ss:$16 sps:$4 sm:$0xff]  }
 0x15d   :  { %4594 = vmatprep.subr.bf16.mxu1 %v7855_v29  ;;  %v7907_v29 = vld [vmem:[#allocation3 + $0x2c] ss:$16 sps:$4 sm:$0xff]  }
 0x15f   :  { %4554 = vmatpush2.bf16.msra.mxu0 %v7850_v30  ;;  %v7902_v30 = vld [vmem:[#allocation3 + $0x1420] ss:$16 sps:$4 sm:$0xff]  }
 0x160   :  { %4595 = vmatpush2.bf16.msra.mxu1 %v7853_v31  ;;  %4555 = vmatprep.subr.bf16.mxu0 %v7858_v32  ;;  %v7905_v31 = vld [vmem:[#allocation3 + $0x28] ss:$16 sps:$4 sm:$0xff]   ;;  %v7910_v32 = vld [vmem:[#allocation3 + $0x1404] ss:$16 sps:$4 sm:$0xff]  }
 0x161   :  { %4596 = vmatprep.subr.bf16.mxu1 %v7861_v33  ;;  %v7913_v33 = vld [vmem:[#allocation3 + $0xc] ss:$16 sps:$4 sm:$0xff]  }
 0x163   :  { %4556 = vmatpush2.bf16.msra.mxu0 %v7856_v34  ;;  %v7908_v34 = vld [vmem:[#allocation3 + $0x1400] ss:$16 sps:$4 sm:$0xff]  }
 0x164   :  { %4597 = vmatpush2.bf16.msra.mxu1 %v7859_v35  ;;  %4607 = vmatprep.subr.bf16.mxu0 %v7868_v42  ;;  %v7911_v35 = vld [vmem:[#allocation3 + $0x8] ss:$16 sps:$4 sm:$0xff]   ;;  %v7914_v42 = vld [vmem:[%s9019_s0 + $0x50] ss:$0 sps:$4 sm:$0xff]  }
 0x165   :  { %4648 = vmatprep.subr.bf16.mxu1 %v7871_v22  ;;  %v7917_v22 = vld [vmem:[#allocation3 + $0x1ec] ss:$16 sps:$4 sm:$0xff]  }
 0x166   :  { %v4313_v54 = vpop.f32.mrf.mxu0  ;;  %4558 = vmatmul.mubr.bf16.vlgmr.msra.gmra.mxu0 %v8875_v46 }
 0x167   :  { %v4354_v55 = vpop.f32.mrf.mxu1  ;;  %4599 = vmatmul.mubr.bf16.vlgmr.msra.gmra.mxu1 %v8879_v48  ;;  %v4314_v62 = vadd.f32 %v4313_v54, %v8867_v8  ;;  %4608 = vmatpush1.bf16.msra.mxu0 %v7866_v44  ;;  %v7920_v44 = vld [vmem:[#allocation3 + $0x2ec] ss:$16 sps:$4 sm:$0xff]   ;;  %v7924_v54 = vld [vmem:[#allocation3 + $0x2c8] ss:$16 sps:$4 sm:$0xff]  }
 0x168   :  { %4649 = vmatpush1.bf16.msra.mxu1 %v7869_v45  ;;  %v4315_v63 = vpop.f32.mrf.mxu0  ;;  %4609 = vmatprep.subr.bf16.mxu0 %v7874_v49  ;;  %v7915_v45 = vld [vmem:[#allocation3 + $0x1e8] ss:$16 sps:$4 sm:$0xff]  }
 0x169   :  { %v4356_v56 = vpop.f32.mrf.mxu1  ;;  %4650 = vmatprep.subr.bf16.mxu1 %v7877_v50  ;;  %v8884_v59 = vadd.f32 %v4354_v55, %v4314_v62  ;;  %v4316_v0 = vadd.f32 %v4315_v63, %v8869_v13  ;;  %4639 = vmatprep.mubr.bf16.mxu0 %v8691_v3  ;;  %v7884_v13 = vld [vmem:[#allocation3 + $0x1480] ss:$16 sps:$4 sm:$0xff]   ;;  %v7918_v49 = vld [vmem:[#allocation3 + $0x2e8] ss:$16 sps:$4 sm:$0xff]   ;;  %v7923_v50 = vld [vmem:[#allocation3 + $0x1cc] ss:$16 sps:$4 sm:$0xff]  }
 0x16a   :  { %4680 = vmatprep.mubr.bf16.mxu1 %v8744_v47  ;;  %v4317_v8 = vpop.f32.mrf.mxu0  ;;  %v7895_v47 = vld [vmem:[#allocation3 + $0x6c] ss:$16 sps:$4 sm:$0xff]   ;;  %v7927_v63 = vld [vmem:[#allocation3 + $0x1a8] ss:$16 sps:$4 sm:$0xff]  }
 0x16b   :  { %v4358_v4 = vpop.f32.mrf.mxu1  ;;  %v8889_v5 = vadd.f32 %v4356_v56, %v4316_v0  ;;  %4610 = vmatpush1.bf16.msra.mxu0 %v7872_v52  ;;  %v7926_v52 = vld [vmem:[#allocation3 + $0x2cc] ss:$16 sps:$4 sm:$0xff]   ;;  %v7930_v56 = vld [vmem:[#allocation3 + $0x2a8] ss:$16 sps:$4 sm:$0xff]  }
 0x16c   :  { %4651 = vmatpush1.bf16.msra.mxu1 %v7875_v53  ;;  %v4318_v9 = vpop.f32.mrf.mxu0  ;;  %4611 = vmatprep.subr.bf16.mxu0 %v7880_v57  ;;  %v7921_v53 = vld [vmem:[#allocation3 + $0x1c8] ss:$16 sps:$4 sm:$0xff]   ;;  %v7929_v55 = vld [vmem:[#allocation3 + $0x1ac] ss:$16 sps:$4 sm:$0xff]  }
 0x16d   :  { %v4359_v10 = vpop.f32.mrf.mxu1  ;;  %4652 = vmatprep.subr.bf16.mxu1 %v7883_v58  ;;  %v7932_v62 = vld [vmem:[#allocation3 + $0x2ac] ss:$16 sps:$4 sm:$0xff]   ;;  %v7933_v0 = vld [vmem:[#allocation3 + $0x188] ss:$16 sps:$4 sm:$0xff]  }
 0x16e   :  { %v7935_v57 = vld [vmem:[#allocation3 + $0x18c] ss:$16 sps:$4 sm:$0xff]   ;;  %v7939_v4 = vld [vmem:[#allocation3 + $0x168] ss:$16 sps:$4 sm:$0xff]  }
 0x16f   :  { %4612 = vmatpush1.bf16.msra.mxu0 %v7878_v40  ;;  %v7938_v58 = vld [vmem:[#allocation3 + $0x28c] ss:$16 sps:$4 sm:$0xff]   ;;  %v7936_v40 = vld [vmem:[#allocation3 + $0x288] ss:$16 sps:$4 sm:$0xff]  }
 0x170   :  { %4653 = vmatpush1.bf16.msra.mxu1 %v7881_v2  ;;  %4613 = vmatprep.subr.bf16.mxu0 %v7886_v11  ;;  %v7941_v2 = vld [vmem:[#allocation3 + $0x16c] ss:$16 sps:$4 sm:$0xff]   ;;  %v7945_v11 = vld [vmem:[#allocation3 + $0x148] ss:$16 sps:$4 sm:$0xff]  }
 0x171   :  { %4654 = vmatprep.subr.bf16.mxu1 %v7889_v12  ;;  %v7944_v8 = vld [vmem:[#allocation3 + $0x26c] ss:$16 sps:$4 sm:$0xff]   ;;  %v7948_v12 = vld [vmem:[#allocation3 + $0x248] ss:$16 sps:$4 sm:$0xff]  }
 0x172   :  { %v7947_v9 = vld [vmem:[#allocation3 + $0x14c] ss:$16 sps:$4 sm:$0xff]  }
 0x173   :  { %4614 = vmatpush1.bf16.msra.mxu0 %v7884_v13  ;;  %v7950_v10 = vld [vmem:[#allocation3 + $0x24c] ss:$16 sps:$4 sm:$0xff]  }
 0x174   :  { %4655 = vmatpush1.bf16.msra.mxu1 %v7887_v14  ;;  %4615 = vmatprep.subr.bf16.mxu0 %v7892_v15  ;;  %v7953_v13 = vld [vmem:[#allocation3 + $0x12c] ss:$16 sps:$4 sm:$0xff]   ;;  %v7951_v15 = vld [vmem:[#allocation3 + $0x128] ss:$16 sps:$4 sm:$0xff]  }
 0x175   :  { %4656 = vmatprep.subr.bf16.mxu1 %v7895_v47  ;;  %v7956_v14 = vld [vmem:[#allocation3 + $0x22c] ss:$16 sps:$4 sm:$0xff]   ;;  %v7954_v47 = vld [vmem:[#allocation3 + $0x228] ss:$16 sps:$4 sm:$0xff]  }
 0x177   :  { %4616 = vmatpush1.bf16.msra.mxu0 %v7890_v18  ;;  %v7959_v18 = vld [vmem:[#allocation3 + $0x10c] ss:$16 sps:$4 sm:$0xff]  }
 0x178   :  { %4657 = vmatpush1.bf16.msra.mxu1 %v7893_v19  ;;  %4617 = vmatprep.subr.bf16.mxu0 %v7898_v20  ;;  %v7962_v19 = vld [vmem:[#allocation3 + $0x20c] ss:$16 sps:$4 sm:$0xff]   ;;  %v7957_v20 = vld [vmem:[#allocation3 + $0x108] ss:$16 sps:$4 sm:$0xff]  }
 0x179   :  { %4658 = vmatprep.subr.bf16.mxu1 %v7901_v21  ;;  %v7960_v21 = vld [vmem:[#allocation3 + $0x208] ss:$16 sps:$4 sm:$0xff]  }
 0x17b   :  { %4618 = vmatpush1.bf16.msra.mxu0 %v7896_v26  ;;  %v7965_v26 = vld [vmem:[#allocation3 + $0x3ec] ss:$16 sps:$4 sm:$0xff]  }
 0x17c   :  { %4659 = vmatpush1.bf16.msra.mxu1 %v7899_v27  ;;  %4619 = vmatprep.subr.bf16.mxu0 %v7904_v28  ;;  %v7968_v27 = vld [vmem:[#allocation3 + $0x4ec] ss:$16 sps:$4 sm:$0xff]   ;;  %v7963_v28 = vld [vmem:[#allocation3 + $0x3e8] ss:$16 sps:$4 sm:$0xff]  }
 0x17d   :  { %4660 = vmatprep.subr.bf16.mxu1 %v7907_v29  ;;  %v7966_v29 = vld [vmem:[#allocation3 + $0x4e8] ss:$16 sps:$4 sm:$0xff]  }
 0x17f   :  { %4620 = vmatpush1.bf16.msra.mxu0 %v7902_v30  ;;  %v7971_v30 = vld [vmem:[#allocation3 + $0x3cc] ss:$16 sps:$4 sm:$0xff]  }
 0x180   :  { %4661 = vmatpush1.bf16.msra.mxu1 %v7905_v31  ;;  %4621 = vmatprep.subr.bf16.mxu0 %v7910_v32  ;;  %v7974_v31 = vld [vmem:[#allocation3 + $0x4cc] ss:$16 sps:$4 sm:$0xff]   ;;  %v7969_v32 = vld [vmem:[#allocation3 + $0x3c8] ss:$16 sps:$4 sm:$0xff]  }
 0x181   :  { %4662 = vmatprep.subr.bf16.mxu1 %v7913_v33  ;;  %v7972_v33 = vld [vmem:[#allocation3 + $0x4c8] ss:$16 sps:$4 sm:$0xff]  }
 0x183   :  { %4622 = vmatpush1.bf16.msra.mxu0 %v7908_v34 }
 0x184   :  { %4663 = vmatpush1.bf16.msra.mxu1 %v7911_v35  ;;  %4689 = vmatprep.subr.bf16.mxu0 %v7920_v44 }
 0x185   :  { %4664 = vmatprep.subr.bf16.mxu1 %v7917_v22 }
 0x186   :  { %4640 = vmatmul.mubr.bf16.vlgmr.msra.gmra.mxu0 %v7914_v42 }
 0x187   :  { %4690 = vmatpush1.bf16.msra.mxu0 %v7918_v49  ;;  %4721 = vmatprep.mubr.bf16.mxu0 %v8749_v51  ;;  %v7942_v51 = vld [vmem:[#allocation3 + $0x268] ss:$16 sps:$4 sm:$0xff]   ;;  %v7980_v49 = vld [vmem:[#allocation3 + $0x4ac] ss:$16 sps:$4 sm:$0xff]  }
 0x188   :  { %4665 = vmatpush2.bf16.msra.mxu1 %v7915_v45  ;;  %4691 = vmatprep.subr.bf16.mxu0 %v7926_v52  ;;  %v7977_v45 = vld [vmem:[#allocation3 + $0x3ac] ss:$16 sps:$4 sm:$0xff]  }
 0x189   :  { %4666 = vmatprep.subr.bf16.mxu1 %v7923_v50 }
 0x18b   :  { %4692 = vmatpush1.bf16.msra.mxu0 %v7924_v54  ;;  %v7978_v54 = vld [vmem:[#allocation3 + $0x4a8] ss:$16 sps:$4 sm:$0xff]  }
 0x18c   :  { %4667 = vmatpush2.bf16.msra.mxu1 %v7921_v53  ;;  %4693 = vmatprep.subr.bf16.mxu0 %v7932_v62  ;;  %v7975_v53 = vld [vmem:[#allocation3 + $0x3a8] ss:$16 sps:$4 sm:$0xff]  }
 0x18d   :  { %4668 = vmatprep.subr.bf16.mxu1 %v7929_v55 }
 0x18f   :  { %4694 = vmatpush1.bf16.msra.mxu0 %v7930_v56  ;;  %v7983_v56 = vld [vmem:[#allocation3 + $0x38c] ss:$16 sps:$4 sm:$0xff]  }
 0x190   :  { %4669 = vmatpush2.bf16.msra.mxu1 %v7927_v63  ;;  %4695 = vmatprep.subr.bf16.mxu0 %v7938_v58  ;;  %v7981_v58 = vld [vmem:[#allocation3 + $0x388] ss:$16 sps:$4 sm:$0xff]  }
 0x191   :  { %4670 = vmatprep.subr.bf16.mxu1 %v7935_v57  ;;  %v7986_v57 = vld [vmem:[#allocation3 + $0x48c] ss:$16 sps:$4 sm:$0xff]  }
 0x193   :  { %4696 = vmatpush1.bf16.msra.mxu0 %v7936_v40  ;;  %v7987_v40 = vld [vmem:[#allocation3 + $0x368] ss:$16 sps:$4 sm:$0xff]  }
 0x194   :  { %4671 = vmatpush2.bf16.msra.mxu1 %v7933_v0  ;;  %4697 = vmatprep.subr.bf16.mxu0 %v7944_v8  ;;  %v7989_v0 = vld [vmem:[#allocation3 + $0x36c] ss:$16 sps:$4 sm:$0xff]  }
 0x195   :  { %4672 = vmatprep.subr.bf16.mxu1 %v7941_v2  ;;  %v7990_v2 = vld [vmem:[#allocation3 + $0x468] ss:$16 sps:$4 sm:$0xff]   ;;  %v7995_v8 = vld [vmem:[#allocation3 + $0x34c] ss:$16 sps:$4 sm:$0xff]  }
 0x197   :  { %4698 = vmatpush1.bf16.msra.mxu0 %v7942_v51  ;;  %v7993_v51 = vld [vmem:[#allocation3 + $0x348] ss:$16 sps:$4 sm:$0xff]  }
 0x198   :  { %4673 = vmatpush2.bf16.msra.mxu1 %v7939_v4  ;;  %4699 = vmatprep.subr.bf16.mxu0 %v7950_v10  ;;  %v7998_v4 = vld [vmem:[#allocation3 + $0x44c] ss:$16 sps:$4 sm:$0xff]  }
 0x199   :  { %4674 = vmatprep.subr.bf16.mxu1 %v7947_v9  ;;  %v7996_v9 = vld [vmem:[#allocation3 + $0x448] ss:$16 sps:$4 sm:$0xff]   ;;  %v8001_v10 = vld [vmem:[#allocation3 + $0x32c] ss:$16 sps:$4 sm:$0xff]  }
 0x19b   :  { %4700 = vmatpush1.bf16.msra.mxu0 %v7948_v12  ;;  %v7999_v12 = vld [vmem:[#allocation3 + $0x328] ss:$16 sps:$4 sm:$0xff]  }
 0x19c   :  { %4675 = vmatpush2.bf16.msra.mxu1 %v7945_v11  ;;  %4701 = vmatprep.subr.bf16.mxu0 %v7956_v14  ;;  %v8004_v11 = vld [vmem:[#allocation3 + $0x42c] ss:$16 sps:$4 sm:$0xff]  }
 0x19d   :  { %4676 = vmatprep.subr.bf16.mxu1 %v7953_v13  ;;  %v8002_v13 = vld [vmem:[#allocation3 + $0x428] ss:$16 sps:$4 sm:$0xff]   ;;  %v8007_v14 = vld [vmem:[#allocation3 + $0x30c] ss:$16 sps:$4 sm:$0xff]  }
 0x19f   :  { %4702 = vmatpush1.bf16.msra.mxu0 %v7954_v47  ;;  %v8005_v47 = vld [vmem:[#allocation3 + $0x308] ss:$16 sps:$4 sm:$0xff]  }
 0x1a0   :  { %4677 = vmatpush2.bf16.msra.mxu1 %v7951_v15  ;;  %4703 = vmatprep.subr.bf16.mxu0 %v7962_v19  ;;  %v8010_v15 = vld [vmem:[#allocation3 + $0x40c] ss:$16 sps:$4 sm:$0xff]  }
 0x1a1   :  { %4678 = vmatprep.subr.bf16.mxu1 %v7959_v18  ;;  %v8008_v18 = vld [vmem:[#allocation3 + $0x408] ss:$16 sps:$4 sm:$0xff]   ;;  %v8013_v19 = vld [vmem:[#allocation3 + $0x5ec] ss:$16 sps:$4 sm:$0xff]  }
 0x1a3   :  { %4704 = vmatpush1.bf16.msra.mxu0 %v7960_v21  ;;  %v8011_v21 = vld [vmem:[#allocation3 + $0x5e8] ss:$16 sps:$4 sm:$0xff]  }
 0x1a4   :  { %4679 = vmatpush2.bf16.msra.mxu1 %v7957_v20  ;;  %4705 = vmatprep.subr.bf16.mxu0 %v7965_v26  ;;  %v8016_v20 = vld [vmem:[#allocation3 + $0x6ec] ss:$16 sps:$4 sm:$0xff]   ;;  %v8014_v26 = vld [vmem:[#allocation3 + $0x6e8] ss:$16 sps:$4 sm:$0xff]  }
 0x1a5   :  { %4730 = vmatprep.subr.bf16.mxu1 %v7968_v27  ;;  %v8019_v27 = vld [vmem:[#allocation3 + $0x5cc] ss:$16 sps:$4 sm:$0xff]  }
 0x1a6   :  { %v4395_v34 = vpop.f32.mrf.mxu0 }
 0x1a7   :  { %v4436_v35 = vpop.f32.mrf.mxu1  ;;  %4681 = vmatmul.mubr.bf16.vlgmr.msra.gmra.mxu1 %v8753_v6  ;;  %v4396_v42 = vadd.f32 %v4395_v34, %v8884_v59  ;;  %4706 = vmatpush2.bf16.msra.mxu0 %v7963_v28  ;;  %v8022_v28 = vld [vmem:[#allocation3 + $0x6cc] ss:$16 sps:$4 sm:$0xff]   ;;  %v8026_v34 = vld [vmem:[#allocation3 + $0x6a8] ss:$16 sps:$4 sm:$0xff]  }
 0x1a8   :  { %4731 = vmatpush1.bf16.msra.mxu1 %v7966_v29  ;;  %v4397_v22 = vpop.f32.mrf.mxu0  ;;  %4707 = vmatprep.subr.bf16.mxu0 %v7971_v30  ;;  %v8017_v29 = vld [vmem:[#allocation3 + $0x5c8] ss:$16 sps:$4 sm:$0xff]  }
 0x1a9   :  { %v4438_v44 = vpop.f32.mrf.mxu1  ;;  %4732 = vmatprep.subr.bf16.mxu1 %v7974_v31  ;;  %v8897_v50 = vadd.f32 %v4436_v35, %v4396_v42  ;;  %v4398_v52 = vadd.f32 %v4397_v22, %v8889_v5  ;;  %4762 = vmatprep.mubr.bf16.mxu1 %v8771_v36  ;;  %v7984_v5 = vld [vmem:[#allocation3 + $0x488] ss:$16 sps:$4 sm:$0xff]   ;;  %v7992_v36 = vld [vmem:[#allocation3 + $0x46c] ss:$16 sps:$4 sm:$0xff]  }
 0x1aa   :  { %v4399_v55 = vpop.f32.mrf.mxu0  ;;  %v8020_v30 = vld [vmem:[#allocation3 + $0x6c8] ss:$16 sps:$4 sm:$0xff]   ;;  %v8025_v31 = vld [vmem:[#allocation3 + $0x5ac] ss:$16 sps:$4 sm:$0xff]  }
 0x1ab   :  { %v4440_v6 = vpop.f32.mrf.mxu1  ;;  %v8901_v62 = vadd.f32 %v4438_v44, %v4398_v52  ;;  %4708 = vmatpush2.bf16.msra.mxu0 %v7969_v32  ;;  %v8028_v32 = vld [vmem:[#allocation3 + $0x6ac] ss:$16 sps:$4 sm:$0xff]   ;;  %v8032_v22 = vld [vmem:[#allocation3 + $0x688] ss:$16 sps:$4 sm:$0xff]  }
 0x1ac   :  { %4733 = vmatpush1.bf16.msra.mxu1 %v7972_v33  ;;  %v4400_v59 = vpop.f32.mrf.mxu0  ;;  %4709 = vmatprep.subr.bf16.mxu0 %v7977_v45  ;;  %v8023_v33 = vld [vmem:[#allocation3 + $0x5a8] ss:$16 sps:$4 sm:$0xff]   ;;  %v8031_v35 = vld [vmem:[#allocation3 + $0x58c] ss:$16 sps:$4 sm:$0xff]  }
 0x1ad   :  { %v4441_v63 = vpop.f32.mrf.mxu1  ;;  %4734 = vmatprep.subr.bf16.mxu1 %v7980_v49  ;;  %v8034_v42 = vld [vmem:[#allocation3 + $0x68c] ss:$16 sps:$4 sm:$0xff]   ;;  %v8035_v49 = vld [vmem:[#allocation3 + $0x568] ss:$16 sps:$4 sm:$0xff]  }
 0x1ae   :  { %v8037_v44 = vld [vmem:[#allocation3 + $0x56c] ss:$16 sps:$4 sm:$0xff]   ;;  %v8038_v52 = vld [vmem:[#allocation3 + $0x668] ss:$16 sps:$4 sm:$0xff]  }
 0x1af   :  { %4710 = vmatpush2.bf16.msra.mxu0 %v7975_v53  ;;  %v8040_v45 = vld [vmem:[#allocation3 + $0x66c] ss:$16 sps:$4 sm:$0xff]   ;;  %v8044_v55 = vld [vmem:[#allocation3 + $0x648] ss:$16 sps:$4 sm:$0xff]  }
 0x1b0   :  { %4735 = vmatpush1.bf16.msra.mxu1 %v7978_v54  ;;  %4711 = vmatprep.subr.bf16.mxu0 %v7983_v56  ;;  %v8046_v53 = vld [vmem:[#allocation3 + $0x64c] ss:$16 sps:$4 sm:$0xff]   ;;  %v8041_v54 = vld [vmem:[#allocation3 + $0x548] ss:$16 sps:$4 sm:$0xff]  }
 0x1b1   :  { %4736 = vmatprep.subr.bf16.mxu1 %v7986_v57  ;;  %v8049_v6 = vld [vmem:[#allocation3 + $0x52c] ss:$16 sps:$4 sm:$0xff]   ;;  %v8047_v63 = vld [vmem:[#allocation3 + $0x528] ss:$16 sps:$4 sm:$0xff]  }
 0x1b2   :  { %v8052_v59 = vld [vmem:[#allocation3 + $0x62c] ss:$16 sps:$4 sm:$0xff]   ;;  %v8050_v56 = vld [vmem:[#allocation3 + $0x628] ss:$16 sps:$4 sm:$0xff]  }
 0x1b3   :  { %4712 = vmatpush2.bf16.msra.mxu0 %v7981_v58  ;;  %v8055_v57 = vld [vmem:[#allocation3 + $0x50c] ss:$16 sps:$4 sm:$0xff]  }
 0x1b4   :  { %4737 = vmatpush1.bf16.msra.mxu1 %v7984_v5  ;;  %4713 = vmatprep.subr.bf16.mxu0 %v7989_v0  ;;  %v8058_v58 = vld [vmem:[#allocation3 + $0x60c] ss:$16 sps:$4 sm:$0xff]   ;;  %v8053_v5 = vld [vmem:[#allocation3 + $0x508] ss:$16 sps:$4 sm:$0xff]  }
 0x1b5   :  { %4738 = vmatprep.subr.bf16.mxu1 %v7992_v36  ;;  %v8056_v0 = vld [vmem:[#allocation3 + $0x608] ss:$16 sps:$4 sm:$0xff]   ;;  %v8061_v36 = vld [vmem:[#allocation3 + $0x7ec] ss:$16 sps:$4 sm:$0xff]  }
 0x1b7   :  { %4714 = vmatpush2.bf16.msra.mxu0 %v7987_v40  ;;  %v8064_v40 = vld [vmem:[#allocation3 + $0x8ec] ss:$16 sps:$4 sm:$0xff]  }
 0x1b8   :  { %4739 = vmatpush1.bf16.msra.mxu1 %v7990_v2  ;;  %4715 = vmatprep.subr.bf16.mxu0 %v7995_v8  ;;  %v8059_v2 = vld [vmem:[#allocation3 + $0x7e8] ss:$16 sps:$4 sm:$0xff]  }
 0x1b9   :  { %4740 = vmatprep.subr.bf16.mxu1 %v7998_v4  ;;  %v8062_v8 = vld [vmem:[#allocation3 + $0x8e8] ss:$16 sps:$4 sm:$0xff]   ;;  %v8067_v4 = vld [vmem:[#allocation3 + $0x7cc] ss:$16 sps:$4 sm:$0xff]  }
 0x1bb   :  { %4716 = vmatpush2.bf16.msra.mxu0 %v7993_v51  ;;  %v8070_v51 = vld [vmem:[#allocation3 + $0x8cc] ss:$16 sps:$4 sm:$0xff]  }
 0x1bc   :  { %4741 = vmatpush1.bf16.msra.mxu1 %v7996_v9  ;;  %4717 = vmatprep.subr.bf16.mxu0 %v8001_v10  ;;  %v8065_v9 = vld [vmem:[#allocation3 + $0x7c8] ss:$16 sps:$4 sm:$0xff]  }
 0x1bd   :  { %4742 = vmatprep.subr.bf16.mxu1 %v8004_v11  ;;  %v8068_v10 = vld [vmem:[#allocation3 + $0x8c8] ss:$16 sps:$4 sm:$0xff]  }
 0x1bf   :  { %4718 = vmatpush2.bf16.msra.mxu0 %v7999_v12 }
 0x1c0   :  { %4743 = vmatpush1.bf16.msra.mxu1 %v8002_v13  ;;  %4719 = vmatprep.subr.bf16.mxu0 %v8007_v14 }
 0x1c1   :  { %4744 = vmatprep.subr.bf16.mxu1 %v8010_v15 }
 0x1c3   :  { %4720 = vmatpush2.bf16.msra.mxu0 %v8005_v47  ;;  %v8073_v47 = vld [vmem:[#allocation3 + $0x7ac] ss:$16 sps:$4 sm:$0xff]  }
 0x1c4   :  { %4745 = vmatpush1.bf16.msra.mxu1 %v8008_v18  ;;  %4771 = vmatprep.subr.bf16.mxu0 %v8016_v20  ;;  %v8076_v18 = vld [vmem:[#allocation3 + $0x8ac] ss:$16 sps:$4 sm:$0xff]  }
 0x1c5   :  { %4746 = vmatprep.subr.bf16.mxu1 %v8013_v19 }
 0x1c6   :  { %4722 = vmatmul.mubr.bf16.vlgmr.msra.gmra.mxu0 %v8755_v7  ;;  %v8029_v7 = vld [vmem:[#allocation3 + $0x588] ss:$16 sps:$4 sm:$0xff]  }
 0x1c7   :  { %4772 = vmatpush1.bf16.msra.mxu0 %v8014_v26  ;;  %4803 = vmatprep.mubr.bf16.mxu0 %v8775_v37  ;;  %v8043_v37 = vld [vmem:[#allocation3 + $0x54c] ss:$16 sps:$4 sm:$0xff]   ;;  %v8074_v26 = vld [vmem:[#allocation3 + $0x8a8] ss:$16 sps:$4 sm:$0xff]  }
 0x1c8   :  { %4747 = vmatpush2.bf16.msra.mxu1 %v8011_v21  ;;  %4773 = vmatprep.subr.bf16.mxu0 %v8022_v28  ;;  %v8071_v21 = vld [vmem:[#allocation3 + $0x7a8] ss:$16 sps:$4 sm:$0xff]  }
 0x1c9   :  { %4748 = vmatprep.subr.bf16.mxu1 %v8019_v27 }
 0x1cb   :  { %4774 = vmatpush1.bf16.msra.mxu0 %v8020_v30  ;;  %v8079_v30 = vld [vmem:[#allocation3 + $0x78c] ss:$16 sps:$4 sm:$0xff]  }
 0x1cc   :  { %4749 = vmatpush2.bf16.msra.mxu1 %v8017_v29  ;;  %4775 = vmatprep.subr.bf16.mxu0 %v8028_v32  ;;  %v8077_v32 = vld [vmem:[#allocation3 + $0x788] ss:$16 sps:$4 sm:$0xff]  }
 0x1cd   :  { %4750 = vmatprep.subr.bf16.mxu1 %v8025_v31  ;;  %v8082_v31 = vld [vmem:[#allocation3 + $0x88c] ss:$16 sps:$4 sm:$0xff]  }
 0x1cf   :  { %4776 = vmatpush1.bf16.msra.mxu0 %v8026_v34  ;;  %v8083_v34 = vld [vmem:[#allocation3 + $0x768] ss:$16 sps:$4 sm:$0xff]  }
 0x1d0   :  { %4751 = vmatpush2.bf16.msra.mxu1 %v8023_v33  ;;  %4777 = vmatprep.subr.bf16.mxu0 %v8034_v42  ;;  %v8085_v33 = vld [vmem:[#allocation3 + $0x76c] ss:$16 sps:$4 sm:$0xff]  }
 0x1d1   :  { %4752 = vmatprep.subr.bf16.mxu1 %v8031_v35  ;;  %v8086_v35 = vld [vmem:[#allocation3 + $0x868] ss:$16 sps:$4 sm:$0xff]   ;;  %v8091_v42 = vld [vmem:[#allocation3 + $0x74c] ss:$16 sps:$4 sm:$0xff]  }
 0x1d3   :  { %4778 = vmatpush1.bf16.msra.mxu0 %v8032_v22  ;;  %v8089_v22 = vld [vmem:[#allocation3 + $0x748] ss:$16 sps:$4 sm:$0xff]  }
 0x1d4   :  { %4753 = vmatpush2.bf16.msra.mxu1 %v8029_v7  ;;  %4779 = vmatprep.subr.bf16.mxu0 %v8040_v45  ;;  %v8094_v7 = vld [vmem:[#allocation3 + $0x84c] ss:$16 sps:$4 sm:$0xff]  }
 0x1d5   :  { %4754 = vmatprep.subr.bf16.mxu1 %v8037_v44  ;;  %v8092_v44 = vld [vmem:[#allocation3 + $0x848] ss:$16 sps:$4 sm:$0xff]   ;;  %v8097_v45 = vld [vmem:[#allocation3 + $0x72c] ss:$16 sps:$4 sm:$0xff]  }
 0x1d7   :  { %4780 = vmatpush1.bf16.msra.mxu0 %v8038_v52  ;;  %v8095_v52 = vld [vmem:[#allocation3 + $0x728] ss:$16 sps:$4 sm:$0xff]  }
 0x1d8   :  { %4755 = vmatpush2.bf16.msra.mxu1 %v8035_v49  ;;  %4781 = vmatprep.subr.bf16.mxu0 %v8046_v53  ;;  %v8100_v49 = vld [vmem:[#allocation3 + $0x82c] ss:$16 sps:$4 sm:$0xff]  }
 0x1d9   :  { %4756 = vmatprep.subr.bf16.mxu1 %v8043_v37  ;;  %v8098_v37 = vld [vmem:[#allocation3 + $0x828] ss:$16 sps:$4 sm:$0xff]   ;;  %v8103_v53 = vld [vmem:[#allocation3 + $0x70c] ss:$16 sps:$4 sm:$0xff]  }
 0x1db   :  { %4782 = vmatpush1.bf16.msra.mxu0 %v8044_v55  ;;  %v8101_v55 = vld [vmem:[#allocation3 + $0x708] ss:$16 sps:$4 sm:$0xff]  }
 0x1dc   :  { %4757 = vmatpush2.bf16.msra.mxu1 %v8041_v54  ;;  %4783 = vmatprep.subr.bf16.mxu0 %v8052_v59  ;;  %v8106_v54 = vld [vmem:[#allocation3 + $0x80c] ss:$16 sps:$4 sm:$0xff]  }
 0x1dd   :  { %4758 = vmatprep.subr.bf16.mxu1 %v8049_v6  ;;  %v8104_v6 = vld [vmem:[#allocation3 + $0x808] ss:$16 sps:$4 sm:$0xff]   ;;  %v8109_v59 = vld [vmem:[#allocation3 + $0x9ec] ss:$16 sps:$4 sm:$0xff]  }
 0x1df   :  { %4784 = vmatpush1.bf16.msra.mxu0 %v8050_v56  ;;  %v8107_v56 = vld [vmem:[#allocation3 + $0x9e8] ss:$16 sps:$4 sm:$0xff]  }
 0x1e0   :  { %4759 = vmatpush2.bf16.msra.mxu1 %v8047_v63  ;;  %4785 = vmatprep.subr.bf16.mxu0 %v8058_v58  ;;  %v8112_v63 = vld [vmem:[#allocation3 + $0xaec] ss:$16 sps:$4 sm:$0xff]  }
 0x1e1   :  { %4760 = vmatprep.subr.bf16.mxu1 %v8055_v57  ;;  %v8110_v57 = vld [vmem:[#allocation3 + $0xae8] ss:$16 sps:$4 sm:$0xff]   ;;  %v8115_v58 = vld [vmem:[#allocation3 + $0x9cc] ss:$16 sps:$4 sm:$0xff]  }
 0x1e3   :  { %4786 = vmatpush1.bf16.msra.mxu0 %v8056_v0  ;;  %v8113_v0 = vld [vmem:[#allocation3 + $0x9c8] ss:$16 sps:$4 sm:$0xff]  }
 0x1e4   :  { %4761 = vmatpush2.bf16.msra.mxu1 %v8053_v5  ;;  %4787 = vmatprep.subr.bf16.mxu0 %v8061_v36  ;;  %v8118_v5 = vld [vmem:[#allocation3 + $0xacc] ss:$16 sps:$4 sm:$0xff]   ;;  %v8116_v36 = vld [vmem:[#allocation3 + $0xac8] ss:$16 sps:$4 sm:$0xff]  }
 0x1e5   :  { %4812 = vmatprep.subr.bf16.mxu1 %v8064_v40  ;;  %v8121_v40 = vld [vmem:[#allocation3 + $0x9ac] ss:$16 sps:$4 sm:$0xff]  }
 0x1e6   :  { %v4477_v11 = vpop.f32.mrf.mxu0 }
 0x1e7   :  { %v4518_v12 = vpop.f32.mrf.mxu1  ;;  %4763 = vmatmul.mubr.bf16.vlgmr.msra.gmra.mxu1 %v8781_v16  ;;  %v4478_v13 = vadd.f32 %v4477_v11, %v8897_v50  ;;  %4788 = vmatpush2.bf16.msra.mxu0 %v8059_v2  ;;  %v8124_v2 = vld [vmem:[#allocation3 + $0xaac] ss:$16 sps:$4 sm:$0xff]  }
 0x1e8   :  { %4813 = vmatpush1.bf16.msra.mxu1 %v8062_v8  ;;  %v4479_v14 = vpop.f32.mrf.mxu0  ;;  %4789 = vmatprep.subr.bf16.mxu0 %v8067_v4  ;;  %v8119_v8 = vld [vmem:[#allocation3 + $0x9a8] ss:$16 sps:$4 sm:$0xff]   ;;  %v8133_v11 = vld [vmem:[#allocation3 + $0x96c] ss:$16 sps:$4 sm:$0xff]  }
 0x1e9   :  { %v4520_v15 = vpop.f32.mrf.mxu1  ;;  %4814 = vmatprep.subr.bf16.mxu1 %v8070_v51  ;;  %v8907_v19 = vadd.f32 %v4518_v12, %v4478_v13  ;;  %v4480_v20 = vadd.f32 %v4479_v14, %v8901_v62  ;;  %4844 = vmatprep.mubr.bf16.mxu1 %v8799_v24  ;;  %v8080_v62 = vld [vmem:[#allocation3 + $0x888] ss:$16 sps:$4 sm:$0xff]   ;;  %v8088_v24 = vld [vmem:[#allocation3 + $0x86c] ss:$16 sps:$4 sm:$0xff]  }
 0x1ea   :  { %v4481_v27 = vpop.f32.mrf.mxu0  ;;  %v8122_v4 = vld [vmem:[#allocation3 + $0xaa8] ss:$16 sps:$4 sm:$0xff]   ;;  %v8127_v51 = vld [vmem:[#allocation3 + $0x98c] ss:$16 sps:$4 sm:$0xff]  }
 0x1eb   :  { %v4522_v16 = vpop.f32.mrf.mxu1  ;;  %v8911_v28 = vadd.f32 %v4520_v15, %v4480_v20  ;;  %4790 = vmatpush2.bf16.msra.mxu0 %v8065_v9  ;;  %v8130_v9 = vld [vmem:[#allocation3 + $0xa8c] ss:$16 sps:$4 sm:$0xff]   ;;  %v8131_v13 = vld [vmem:[#allocation3 + $0x968] ss:$16 sps:$4 sm:$0xff]  }
 0x1ec   :  { %4815 = vmatpush1.bf16.msra.mxu1 %v8068_v10  ;;  %v4482_v50 = vpop.f32.mrf.mxu0  ;;  %4791 = vmatprep.subr.bf16.mxu0 %v8073_v47  ;;  %v8125_v10 = vld [vmem:[#allocation3 + $0x988] ss:$16 sps:$4 sm:$0xff]   ;;  %v8136_v12 = vld [vmem:[#allocation3 + $0xa6c] ss:$16 sps:$4 sm:$0xff]  }
 0x1ed   :  { %v4523_v29 = vpop.f32.mrf.mxu1  ;;  %4816 = vmatprep.subr.bf16.mxu1 %v8076_v18  ;;  %v8134_v14 = vld [vmem:[#allocation3 + $0xa68] ss:$16 sps:$4 sm:$0xff]   ;;  %v8142_v15 = vld [vmem:[#allocation3 + $0xa4c] ss:$16 sps:$4 sm:$0xff]  }
 0x1ee   :  { %v8137_v47 = vld [vmem:[#allocation3 + $0x948] ss:$16 sps:$4 sm:$0xff]   ;;  %v8145_v20 = vld [vmem:[#allocation3 + $0x92c] ss:$16 sps:$4 sm:$0xff]  }
 0x1ef   :  { %4792 = vmatpush2.bf16.msra.mxu0 %v8071_v21  ;;  %v8140_v18 = vld [vmem:[#allocation3 + $0xa48] ss:$16 sps:$4 sm:$0xff]   ;;  %v8148_v21 = vld [vmem:[#allocation3 + $0xa2c] ss:$16 sps:$4 sm:$0xff]  }
 0x1f0   :  { %4817 = vmatpush1.bf16.msra.mxu1 %v8074_v26  ;;  %4793 = vmatprep.subr.bf16.mxu0 %v8079_v30  ;;  %v8143_v26 = vld [vmem:[#allocation3 + $0x928] ss:$16 sps:$4 sm:$0xff]   ;;  %v8151_v16 = vld [vmem:[#allocation3 + $0x90c] ss:$16 sps:$4 sm:$0xff]  }
 0x1f1   :  { %4818 = vmatprep.subr.bf16.mxu1 %v8082_v31  ;;  %v8146_v27 = vld [vmem:[#allocation3 + $0xa28] ss:$16 sps:$4 sm:$0xff]   ;;  %v8154_v50 = vld [vmem:[#allocation3 + $0xa0c] ss:$16 sps:$4 sm:$0xff]  }
 0x1f2   :  { %v8149_v29 = vld [vmem:[#allocation3 + $0x908] ss:$16 sps:$4 sm:$0xff]   ;;  %v8157_v31 = vld [vmem:[#allocation3 + $0xbec] ss:$16 sps:$4 sm:$0xff]  }
 0x1f3   :  { %4794 = vmatpush2.bf16.msra.mxu0 %v8077_v32  ;;  %v8152_v30 = vld [vmem:[#allocation3 + $0xa08] ss:$16 sps:$4 sm:$0xff]   ;;  %v8160_v32 = vld [vmem:[#allocation3 + $0xcec] ss:$16 sps:$4 sm:$0xff]  }
 0x1f4   :  { %4819 = vmatpush1.bf16.msra.mxu1 %v8080_v62  ;;  %4795 = vmatprep.subr.bf16.mxu0 %v8085_v33  ;;  %v8155_v62 = vld [vmem:[#allocation3 + $0xbe8] ss:$16 sps:$4 sm:$0xff]  }
 0x1f5   :  { %4820 = vmatprep.subr.bf16.mxu1 %v8088_v24  ;;  %v8158_v33 = vld [vmem:[#allocation3 + $0xce8] ss:$16 sps:$4 sm:$0xff]   ;;  %v8163_v24 = vld [vmem:[#allocation3 + $0xbcc] ss:$16 sps:$4 sm:$0xff]  }
 0x1f7   :  { %4796 = vmatpush2.bf16.msra.mxu0 %v8083_v34  ;;  %v8166_v34 = vld [vmem:[#allocation3 + $0xccc] ss:$16 sps:$4 sm:$0xff]  }
 0x1f8   :  { %4821 = vmatpush1.bf16.msra.mxu1 %v8086_v35  ;;  %4797 = vmatprep.subr.bf16.mxu0 %v8091_v42 }
 0x1f9   :  { %4822 = vmatprep.subr.bf16.mxu1 %v8094_v7 }
 0x1fb   :  { %4798 = vmatpush2.bf16.msra.mxu0 %v8089_v22  ;;  %v8161_v22 = vld [vmem:[#allocation3 + $0xbc8] ss:$16 sps:$4 sm:$0xff]  }
 0x1fc   :  { %4823 = vmatpush1.bf16.msra.mxu1 %v8092_v44  ;;  %4799 = vmatprep.subr.bf16.mxu0 %v8097_v45  ;;  %v8164_v44 = vld [vmem:[#allocation3 + $0xcc8] ss:$16 sps:$4 sm:$0xff]  }
 0x1fd   :  { %4824 = vmatprep.subr.bf16.mxu1 %v8100_v49 }
 0x1ff   :  { %4800 = vmatpush2.bf16.msra.mxu0 %v8095_v52  ;;  %v8169_v52 = vld [vmem:[#allocation3 + $0xbac] ss:$16 sps:$4 sm:$0xff]  }
 0x200   :  { %4825 = vmatpush1.bf16.msra.mxu1 %v8098_v37  ;;  %4801 = vmatprep.subr.bf16.mxu0 %v8103_v53  ;;  %v8172_v37 = vld [vmem:[#allocation3 + $0xcac] ss:$16 sps:$4 sm:$0xff]  }
 0x201   :  { %4826 = vmatprep.subr.bf16.mxu1 %v8106_v54 }
 0x203   :  { %4802 = vmatpush2.bf16.msra.mxu0 %v8101_v55 }
 0x204   :  { %4827 = vmatpush1.bf16.msra.mxu1 %v8104_v6  ;;  %4853 = vmatprep.subr.bf16.mxu0 %v8112_v63 }
 0x205   :  { %4828 = vmatprep.subr.bf16.mxu1 %v8109_v59  ;;  %v8170_v59 = vld [vmem:[#allocation3 + $0xca8] ss:$16 sps:$4 sm:$0xff]  }
 0x206   :  { %4804 = vmatmul.mubr.bf16.vlgmr.msra.gmra.mxu0 %v8785_v17  ;;  %v8128_v17 = vld [vmem:[#allocation3 + $0xa88] ss:$16 sps:$4 sm:$0xff]  }
 0x207   :  { %4854 = vmatpush1.bf16.msra.mxu0 %v8110_v57  ;;  %4885 = vmatprep.mubr.bf16.mxu0 %v8803_v25  ;;  %v8139_v25 = vld [vmem:[#allocation3 + $0x94c] ss:$16 sps:$4 sm:$0xff]  }
 0x208   :  { %4829 = vmatpush2.bf16.msra.mxu1 %v8107_v56  ;;  %4855 = vmatprep.subr.bf16.mxu0 %v8118_v5  ;;  %v8175_v57 = vld [vmem:[#allocation3 + $0xb8c] ss:$16 sps:$4 sm:$0xff]   ;;  %v8173_v5 = vld [vmem:[#allocation3 + $0xb88] ss:$16 sps:$4 sm:$0xff]  }
 0x209   :  { %4830 = vmatprep.subr.bf16.mxu1 %v8115_v58  ;;  %v8178_v58 = vld [vmem:[#allocation3 + $0xc8c] ss:$16 sps:$4 sm:$0xff]  }
 0x20b   :  { %4856 = vmatpush1.bf16.msra.mxu0 %v8116_v36  ;;  %v8179_v36 = vld [vmem:[#allocation3 + $0xb68] ss:$16 sps:$4 sm:$0xff]  }
 0x20c   :  { %4831 = vmatpush2.bf16.msra.mxu1 %v8113_v0  ;;  %4857 = vmatprep.subr.bf16.mxu0 %v8124_v2  ;;  %v8184_v0 = vld [vmem:[#allocation3 + $0xc6c] ss:$16 sps:$4 sm:$0xff]  }
 0x20d   :  { %4832 = vmatprep.subr.bf16.mxu1 %v8121_v40  ;;  %v8182_v40 = vld [vmem:[#allocation3 + $0xc68] ss:$16 sps:$4 sm:$0xff]   ;;  %v8187_v2 = vld [vmem:[#allocation3 + $0xb4c] ss:$16 sps:$4 sm:$0xff]  }
 0x20f   :  { %4858 = vmatpush1.bf16.msra.mxu0 %v8122_v4  ;;  %v8185_v4 = vld [vmem:[#allocation3 + $0xb48] ss:$16 sps:$4 sm:$0xff]  }
 0x210   :  { %4833 = vmatpush2.bf16.msra.mxu1 %v8119_v8  ;;  %4859 = vmatprep.subr.bf16.mxu0 %v8130_v9  ;;  %v8190_v8 = vld [vmem:[#allocation3 + $0xc4c] ss:$16 sps:$4 sm:$0xff]  }
 0x211   :  { %4834 = vmatprep.subr.bf16.mxu1 %v8127_v51  ;;  %v8188_v51 = vld [vmem:[#allocation3 + $0xc48] ss:$16 sps:$4 sm:$0xff]   ;;  %v8193_v9 = vld [vmem:[#allocation3 + $0xb2c] ss:$16 sps:$4 sm:$0xff]  }
 0x213   :  { %4860 = vmatpush1.bf16.msra.mxu0 %v8128_v17  ;;  %v8191_v17 = vld [vmem:[#allocation3 + $0xb28] ss:$16 sps:$4 sm:$0xff]  }
 0x214   :  { %4835 = vmatpush2.bf16.msra.mxu1 %v8125_v10  ;;  %4861 = vmatprep.subr.bf16.mxu0 %v8136_v12  ;;  %v8196_v10 = vld [vmem:[#allocation3 + $0xc2c] ss:$16 sps:$4 sm:$0xff]  }
 0x215   :  { %4836 = vmatprep.subr.bf16.mxu1 %v8133_v11  ;;  %v8194_v11 = vld [vmem:[#allocation3 + $0xc28] ss:$16 sps:$4 sm:$0xff]   ;;  %v8199_v12 = vld [vmem:[#allocation3 + $0xb0c] ss:$16 sps:$4 sm:$0xff]  }
 0x217   :  { %4862 = vmatpush1.bf16.msra.mxu0 %v8134_v14  ;;  %v8197_v14 = vld [vmem:[#allocation3 + $0xb08] ss:$16 sps:$4 sm:$0xff]  }
 0x218   :  { %4837 = vmatpush2.bf16.msra.mxu1 %v8131_v13  ;;  %4863 = vmatprep.subr.bf16.mxu0 %v8142_v15  ;;  %v8202_v13 = vld [vmem:[#allocation3 + $0xc0c] ss:$16 sps:$4 sm:$0xff]  }
 0x219   :  { %4838 = vmatprep.subr.bf16.mxu1 %v8139_v25  ;;  %v8200_v25 = vld [vmem:[#allocation3 + $0xc08] ss:$16 sps:$4 sm:$0xff]   ;;  %v8205_v15 = vld [vmem:[#allocation3 + $0xdec] ss:$16 sps:$4 sm:$0xff]  }
 0x21b   :  { %4864 = vmatpush1.bf16.msra.mxu0 %v8140_v18  ;;  %v8203_v18 = vld [vmem:[#allocation3 + $0xde8] ss:$16 sps:$4 sm:$0xff]  }
 0x21c   :  { %4839 = vmatpush2.bf16.msra.mxu1 %v8137_v47  ;;  %4865 = vmatprep.subr.bf16.mxu0 %v8148_v21  ;;  %v8208_v47 = vld [vmem:[#allocation3 + $0xeec] ss:$16 sps:$4 sm:$0xff]  }
 0x21d   :  { %4840 = vmatprep.subr.bf16.mxu1 %v8145_v20  ;;  %v8206_v20 = vld [vmem:[#allocation3 + $0xee8] ss:$16 sps:$4 sm:$0xff]   ;;  %v8211_v21 = vld [vmem:[#allocation3 + $0xdcc] ss:$16 sps:$4 sm:$0xff]  }
 0x21f   :  { %4866 = vmatpush1.bf16.msra.mxu0 %v8146_v27 }
 0x220   :  { %4841 = vmatpush2.bf16.msra.mxu1 %v8143_v26  ;;  %4867 = vmatprep.subr.bf16.mxu0 %v8154_v50  ;;  %v8214_v26 = vld [vmem:[#allocation3 + $0xecc] ss:$16 sps:$4 sm:$0xff]   ;;  %v8209_v50 = vld [vmem:[#allocation3 + $0xdc8] ss:$16 sps:$4 sm:$0xff]  }
 0x221   :  { %4842 = vmatprep.subr.bf16.mxu1 %v8151_v16 }
 0x223   :  { %4868 = vmatpush1.bf16.msra.mxu0 %v8152_v30 }
 0x224   :  { %4843 = vmatpush2.bf16.msra.mxu1 %v8149_v29  ;;  %4869 = vmatprep.subr.bf16.mxu0 %v8157_v31  ;;  %v8212_v29 = vld [vmem:[#allocation3 + $0xec8] ss:$16 sps:$4 sm:$0xff]   ;;  %v8217_v31 = vld [vmem:[#allocation3 + $0xdac] ss:$16 sps:$4 sm:$0xff]  }
 0x225   :  { %4894 = vmatprep.subr.bf16.mxu1 %v8160_v32  ;;  %v8220_v32 = vld [vmem:[#allocation3 + $0xeac] ss:$16 sps:$4 sm:$0xff]  }
 0x226   :  { %v4559_v35 = vpop.f32.mrf.mxu0 }
 0x227   :  { %v4600_v42 = vpop.f32.mrf.mxu1  ;;  %4845 = vmatmul.mubr.bf16.vlgmr.msra.gmra.mxu1 %v8811_v38  ;;  %v4560_v7 = vadd.f32 %v4559_v35, %v8907_v19  ;;  %4870 = vmatpush2.bf16.msra.mxu0 %v8155_v62  ;;  %v8167_v19 = vld [vmem:[#allocation3 + $0xba8] ss:$16 sps:$4 sm:$0xff]   ;;  %v8223_v35 = vld [vmem:[#allocation3 + $0xd8c] ss:$16 sps:$4 sm:$0xff]  }
 0x228   :  { %4895 = vmatpush1.bf16.msra.mxu1 %v8158_v33  ;;  %v4561_v45 = vpop.f32.mrf.mxu0  ;;  %4871 = vmatprep.subr.bf16.mxu0 %v8163_v24  ;;  %v8218_v24 = vld [vmem:[#allocation3 + $0xea8] ss:$16 sps:$4 sm:$0xff]  }
 0x229   :  { %v4602_v49 = vpop.f32.mrf.mxu1  ;;  %4896 = vmatprep.subr.bf16.mxu1 %v8166_v34  ;;  %v8917_v53 = vadd.f32 %v4600_v42, %v4560_v7  ;;  %v4562_v54 = vadd.f32 %v4561_v45, %v8911_v28  ;;  %4926 = vmatprep.mubr.bf16.mxu1 %v8829_v23  ;;  %v8176_v28 = vld [vmem:[#allocation3 + $0xc88] ss:$16 sps:$4 sm:$0xff]   ;;  %v8181_v23 = vld [vmem:[#allocation3 + $0xb6c] ss:$16 sps:$4 sm:$0xff]  }
 0x22a   :  { %v4563_v55 = vpop.f32.mrf.mxu0  ;;  %v8226_v42 = vld [vmem:[#allocation3 + $0xe8c] ss:$16 sps:$4 sm:$0xff]   ;;  %v8221_v7 = vld [vmem:[#allocation3 + $0xd88] ss:$16 sps:$4 sm:$0xff]  }
 0x22b   :  { %v4604_v38 = vpop.f32.mrf.mxu1  ;;  %v8921_v6 = vadd.f32 %v4602_v49, %v4562_v54  ;;  %4872 = vmatpush2.bf16.msra.mxu0 %v8161_v22  ;;  %v8224_v22 = vld [vmem:[#allocation3 + $0xe88] ss:$16 sps:$4 sm:$0xff]   ;;  %v8232_v45 = vld [vmem:[#allocation3 + $0xe6c] ss:$16 sps:$4 sm:$0xff]  }
 0x22c   :  { %4897 = vmatpush1.bf16.msra.mxu1 %v8164_v44  ;;  %v4564_v63 = vpop.f32.mrf.mxu0  ;;  %4873 = vmatprep.subr.bf16.mxu0 %v8169_v52  ;;  %v8229_v44 = vld [vmem:[#allocation3 + $0xd6c] ss:$16 sps:$4 sm:$0xff]   ;;  %v8230_v49 = vld [vmem:[#allocation3 + $0xe68] ss:$16 sps:$4 sm:$0xff]  }
 0x22d   :  { %v4605_v56 = vpop.f32.mrf.mxu1  ;;  %4898 = vmatprep.subr.bf16.mxu1 %v8172_v37  ;;  %v8235_v52 = vld [vmem:[#allocation3 + $0xd4c] ss:$16 sps:$4 sm:$0xff]   ;;  %v8236_v54 = vld [vmem:[#allocation3 + $0xe48] ss:$16 sps:$4 sm:$0xff]  }
 0x22e   :  { %v8238_v37 = vld [vmem:[#allocation3 + $0xe4c] ss:$16 sps:$4 sm:$0xff]   ;;  %v8245_v56 = vld [vmem:[#allocation3 + $0xd08] ss:$16 sps:$4 sm:$0xff]  }
 0x22f   :  { %4874 = vmatpush2.bf16.msra.mxu0 %v8167_v19  ;;  %v8241_v55 = vld [vmem:[#allocation3 + $0xd2c] ss:$16 sps:$4 sm:$0xff]   ;;  %v8242_v19 = vld [vmem:[#allocation3 + $0xe28] ss:$16 sps:$4 sm:$0xff]  }
 0x230   :  { %4899 = vmatpush1.bf16.msra.mxu1 %v8170_v59  ;;  %4875 = vmatprep.subr.bf16.mxu0 %v8175_v57  ;;  %v8244_v38 = vld [vmem:[#allocation3 + $0xe2c] ss:$16 sps:$4 sm:$0xff]   ;;  %v8248_v57 = vld [vmem:[#allocation3 + $0xe08] ss:$16 sps:$4 sm:$0xff]  }
 0x231   :  { %4900 = vmatprep.subr.bf16.mxu1 %v8178_v58  ;;  %v8247_v59 = vld [vmem:[#allocation3 + $0xd0c] ss:$16 sps:$4 sm:$0xff]  }
 0x232   :  { %v8250_v63 = vld [vmem:[#allocation3 + $0xe0c] ss:$16 sps:$4 sm:$0xff]  }
 0x233   :  { %4876 = vmatpush2.bf16.msra.mxu0 %v8173_v5  ;;  %v8253_v58 = vld [vmem:[#allocation3 + $0xfec] ss:$16 sps:$4 sm:$0xff]  }
 0x234   :  { %4901 = vmatpush1.bf16.msra.mxu1 %v8176_v28  ;;  %4877 = vmatprep.subr.bf16.mxu0 %v8181_v23  ;;  %v8256_v5 = vld [vmem:[#allocation3 + $0x10ec] ss:$16 sps:$4 sm:$0xff]   ;;  %v8251_v28 = vld [vmem:[#allocation3 + $0xfe8] ss:$16 sps:$4 sm:$0xff]  }
 0x235   :  { %4902 = vmatprep.subr.bf16.mxu1 %v8184_v0  ;;  %v8254_v23 = vld [vmem:[#allocation3 + $0x10e8] ss:$16 sps:$4 sm:$0xff]   ;;  %v8259_v0 = vld [vmem:[#allocation3 + $0xfcc] ss:$16 sps:$4 sm:$0xff]  }
 0x237   :  { %4878 = vmatpush2.bf16.msra.mxu0 %v8179_v36  ;;  %v8262_v36 = vld [vmem:[#allocation3 + $0x10cc] ss:$16 sps:$4 sm:$0xff]  }
 0x238   :  { %4903 = vmatpush1.bf16.msra.mxu1 %v8182_v40  ;;  %4879 = vmatprep.subr.bf16.mxu0 %v8187_v2  ;;  %v8257_v2 = vld [vmem:[#allocation3 + $0xfc8] ss:$16 sps:$4 sm:$0xff]  }
 0x239   :  { %4904 = vmatprep.subr.bf16.mxu1 %v8190_v8  ;;  %v8260_v8 = vld [vmem:[#allocation3 + $0x10c8] ss:$16 sps:$4 sm:$0xff]  }
 0x23b   :  { %4880 = vmatpush2.bf16.msra.mxu0 %v8185_v4 }
 0x23c   :  { %4905 = vmatpush1.bf16.msra.mxu1 %v8188_v51  ;;  %4881 = vmatprep.subr.bf16.mxu0 %v8193_v9  ;;  %v8265_v51 = vld [vmem:[#allocation3 + $0xfac] ss:$16 sps:$4 sm:$0xff]  }
 0x23d   :  { %4906 = vmatprep.subr.bf16.mxu1 %v8196_v10  ;;  %v8268_v9 = vld [vmem:[#allocation3 + $0x10ac] ss:$16 sps:$4 sm:$0xff]  }
 0x23f   :  { %4882 = vmatpush2.bf16.msra.mxu0 %v8191_v17  ;;  %v8263_v17 = vld [vmem:[#allocation3 + $0xfa8] ss:$16 sps:$4 sm:$0xff]  }
 0x240   :  { %4907 = vmatpush1.bf16.msra.mxu1 %v8194_v11  ;;  %4883 = vmatprep.subr.bf16.mxu0 %v8199_v12  ;;  %v8266_v11 = vld [vmem:[#allocation3 + $0x10a8] ss:$16 sps:$4 sm:$0xff]  }
 0x241   :  { %4908 = vmatprep.subr.bf16.mxu1 %v8202_v13  ;;  %v8274_v13 = vld [vmem:[#allocation3 + $0x108c] ss:$16 sps:$4 sm:$0xff]  }
 0x243   :  { %4884 = vmatpush2.bf16.msra.mxu0 %v8197_v14  ;;  %v8269_v14 = vld [vmem:[#allocation3 + $0xf88] ss:$16 sps:$4 sm:$0xff]  }
 0x244   :  { %4909 = vmatpush1.bf16.msra.mxu1 %v8200_v25  ;;  %4935 = vmatprep.subr.bf16.mxu0 %v8208_v47  ;;  %v8272_v25 = vld [vmem:[#allocation3 + $0x1088] ss:$16 sps:$4 sm:$0xff]   ;;  %v8280_v47 = vld [vmem:[#allocation3 + $0x106c] ss:$16 sps:$4 sm:$0xff]  }
 0x245   :  { %4910 = vmatprep.subr.bf16.mxu1 %v8205_v15  ;;  %v8277_v15 = vld [vmem:[#allocation3 + $0xf6c] ss:$16 sps:$4 sm:$0xff]  }
 0x246   :  { %v4641_v27 = vpop.f32.mrf.mxu0  ;;  %4886 = vmatmul.mubr.bf16.vlgmr.msra.gmra.mxu0 %v8815_v39  ;;  %v8215_v39 = vld [vmem:[#allocation3 + $0xda8] ss:$16 sps:$4 sm:$0xff]  }
 0x247   :  { %v8925_v16 = vadd.f32 %v4641_v27, %v8917_v53  ;;  %4936 = vmatpush1.bf16.msra.mxu0 %v8206_v20  ;;  %4967 = vmatprep.mubr.bf16.mxu0 %v8833_v43  ;;  %v8227_v43 = vld [vmem:[#allocation3 + $0xd68] ss:$16 sps:$4 sm:$0xff]   ;;  %v8283_v20 = vld [vmem:[#allocation3 + $0xf4c] ss:$16 sps:$4 sm:$0xff]  }
 0x248   :  { %4911 = vmatpush2.bf16.msra.mxu1 %v8203_v18  ;;  %v4643_v30 = vpop.f32.mrf.mxu0  ;;  %4937 = vmatprep.subr.bf16.mxu0 %v8214_v26  ;;  %v8233_v53 = vld [vmem:[#allocation3 + $0xd48] ss:$16 sps:$4 sm:$0xff]  }
 0x249   :  { %4912 = vmatprep.subr.bf16.mxu1 %v8211_v21  ;;  %v8928_v62 = vadd.f32 %v4643_v30, %v8921_v6  ;;  %v8239_v6 = vld [vmem:[#allocation3 + $0xd28] ss:$16 sps:$4 sm:$0xff]   ;;  %v8286_v21 = vld [vmem:[#allocation3 + $0x104c] ss:$16 sps:$4 sm:$0xff]  }
 0x24a   :  { %v4645_v33 = vpop.f32.mrf.mxu0  ;;  %v8278_v18 = vld [vmem:[#allocation3 + $0x1068] ss:$16 sps:$4 sm:$0xff]  }
 0x24b   :  { %4938 = vmatpush1.bf16.msra.mxu0 %v8212_v29  ;;  %v8281_v26 = vld [vmem:[#allocation3 + $0xf48] ss:$16 sps:$4 sm:$0xff]   ;;  %v8292_v29 = vld [vmem:[#allocation3 + $0x102c] ss:$16 sps:$4 sm:$0xff]  }
 0x24c   :  { %4913 = vmatpush2.bf16.msra.mxu1 %v8209_v50  ;;  %v4646_v34 = vpop.f32.mrf.mxu0  ;;  %4939 = vmatprep.subr.bf16.mxu0 %v8220_v32  ;;  %v8284_v27 = vld [vmem:[#allocation3 + $0x1048] ss:$16 sps:$4 sm:$0xff]   ;;  %v8289_v50 = vld [vmem:[#allocation3 + $0xf2c] ss:$16 sps:$4 sm:$0xff]  }
 0x24d   :  { %4914 = vmatprep.subr.bf16.mxu1 %v8217_v31  ;;  %v8287_v30 = vld [vmem:[#allocation3 + $0xf28] ss:$16 sps:$4 sm:$0xff]   ;;  %v8295_v32 = vld [vmem:[#allocation3 + $0xf0c] ss:$16 sps:$4 sm:$0xff]  }
 0x24e   :  { %v8290_v31 = vld [vmem:[#allocation3 + $0x1028] ss:$16 sps:$4 sm:$0xff]   ;;  %v8298_v33 = vld [vmem:[#allocation3 + $0x100c] ss:$16 sps:$4 sm:$0xff]  }
 0x24f   :  { %4940 = vmatpush1.bf16.msra.mxu0 %v8218_v24  ;;  %v8296_v24 = vld [vmem:[#allocation3 + $0x1008] ss:$16 sps:$4 sm:$0xff]   ;;  %v8301_v34 = vld [vmem:[#allocation3 + $0x11ec] ss:$16 sps:$4 sm:$0xff]  }
 0x250   :  { %4915 = vmatpush2.bf16.msra.mxu1 %v8215_v39  ;;  %4941 = vmatprep.subr.bf16.mxu0 %v8226_v42  ;;  %v8293_v39 = vld [vmem:[#allocation3 + $0xf08] ss:$16 sps:$4 sm:$0xff]  }
 0x251   :  { %4916 = vmatprep.subr.bf16.mxu1 %v8223_v35  ;;  %v8304_v35 = vld [vmem:[#allocation3 + $0x12ec] ss:$16 sps:$4 sm:$0xff]   ;;  %v8299_v42 = vld [vmem:[#allocation3 + $0x11e8] ss:$16 sps:$4 sm:$0xff]  }
 0x253   :  { %4942 = vmatpush1.bf16.msra.mxu0 %v8224_v22  ;;  %v8307_v22 = vld [vmem:[#allocation3 + $0x11cc] ss:$16 sps:$4 sm:$0xff]  }
 0x254   :  { %4917 = vmatpush2.bf16.msra.mxu1 %v8221_v7  ;;  %4943 = vmatprep.subr.bf16.mxu0 %v8232_v45  ;;  %v8302_v7 = vld [vmem:[#allocation3 + $0x12e8] ss:$16 sps:$4 sm:$0xff]  }
 0x255   :  { %4918 = vmatprep.subr.bf16.mxu1 %v8229_v44  ;;  %v8310_v44 = vld [vmem:[#allocation3 + $0x12cc] ss:$16 sps:$4 sm:$0xff]  }
 0x257   :  { %4944 = vmatpush1.bf16.msra.mxu0 %v8230_v49  ;;  %v8305_v49 = vld [vmem:[#allocation3 + $0x11c8] ss:$16 sps:$4 sm:$0xff]  }
 0x258   :  { %4919 = vmatpush2.bf16.msra.mxu1 %v8227_v43  ;;  %4945 = vmatprep.subr.bf16.mxu0 %v8238_v37 }
 0x259   :  { %4920 = vmatprep.subr.bf16.mxu1 %v8235_v52  ;;  %v8308_v52 = vld [vmem:[#allocation3 + $0x12c8] ss:$16 sps:$4 sm:$0xff]  }
 0x25b   :  { %4946 = vmatpush1.bf16.msra.mxu0 %v8236_v54  ;;  %v8316_v54 = vld [vmem:[#allocation3 + $0x12ac] ss:$16 sps:$4 sm:$0xff]  }
 0x25c   :  { %4921 = vmatpush2.bf16.msra.mxu1 %v8233_v53  ;;  %4947 = vmatprep.subr.bf16.mxu0 %v8244_v38  ;;  %v8313_v53 = vld [vmem:[#allocation3 + $0x11ac] ss:$16 sps:$4 sm:$0xff]  }
 0x25d   :  { %4922 = vmatprep.subr.bf16.mxu1 %v8241_v55 }
 0x25f   :  { %4948 = vmatpush1.bf16.msra.mxu0 %v8242_v19 }
 0x260   :  { %4923 = vmatpush2.bf16.msra.mxu1 %v8239_v6  ;;  %4949 = vmatprep.subr.bf16.mxu0 %v8250_v63  ;;  %v8314_v6 = vld [vmem:[#allocation3 + $0x12a8] ss:$16 sps:$4 sm:$0xff]   ;;  %v8322_v63 = vld [vmem:[#allocation3 + $0x128c] ss:$16 sps:$4 sm:$0xff]  }
 0x261   :  { %4924 = vmatprep.subr.bf16.mxu1 %v8247_v59  ;;  %v8319_v59 = vld [vmem:[#allocation3 + $0x118c] ss:$16 sps:$4 sm:$0xff]  }
 0x263   :  { %4950 = vmatpush1.bf16.msra.mxu0 %v8248_v57  ;;  %v8320_v57 = vld [vmem:[#allocation3 + $0x1288] ss:$16 sps:$4 sm:$0xff]  }
 0x264   :  { %4925 = vmatpush2.bf16.msra.mxu1 %v8245_v56  ;;  %4951 = vmatprep.subr.bf16.mxu0 %v8253_v58  ;;  %v8317_v56 = vld [vmem:[#allocation3 + $0x1188] ss:$16 sps:$4 sm:$0xff]   ;;  %v8325_v58 = vld [vmem:[#allocation3 + $0x116c] ss:$16 sps:$4 sm:$0xff]  }
 0x265   :  { %4976 = vmatprep.subr.bf16.mxu1 %v8256_v5  ;;  %v8328_v5 = vld [vmem:[#allocation3 + $0x126c] ss:$16 sps:$4 sm:$0xff]  }
 0x267   :  { %v8931_v40 = vpop.f32.mrf.mxu1  ;;  %4927 = vmatmul.mubr.bf16.vlgmr.msra.gmra.mxu1 %v8841_v60  ;;  %4952 = vmatpush2.bf16.msra.mxu0 %v8251_v28  ;;  %v8271_v60 = vld [vmem:[#allocation3 + $0xf8c] ss:$16 sps:$4 sm:$0xff]   ;;  %v8326_v28 = vld [vmem:[#allocation3 + $0x1268] ss:$16 sps:$4 sm:$0xff]  }
 0x268   :  { %4977 = vmatpush1.bf16.msra.mxu1 %v8254_v23  ;;  %4953 = vmatprep.subr.bf16.mxu0 %v8259_v0  ;;  %v8331_v23 = vld [vmem:[#allocation3 + $0x114c] ss:$16 sps:$4 sm:$0xff]  }
 0x269   :  { %v8934_v4 = vpop.f32.mrf.mxu1  ;;  %4978 = vmatprep.subr.bf16.mxu1 %v8262_v36  ;;  %5008 = vmatprep.mubr.bf16.mxu1 %v8859_v41  ;;  %v8275_v41 = vld [vmem:[#allocation3 + $0xf68] ss:$16 sps:$4 sm:$0xff]   ;;  %v8334_v0 = vld [vmem:[#allocation3 + $0x124c] ss:$16 sps:$4 sm:$0xff]  }
 0x26a   :  { %v8329_v36 = vld [vmem:[#allocation3 + $0x1148] ss:$16 sps:$4 sm:$0xff]  }
 0x26b   :  { %v4686_v10 = vpop.f32.mrf.mxu1  ;;  %4954 = vmatpush2.bf16.msra.mxu0 %v8257_v2  ;;  %v8337_v2 = vld [vmem:[#allocation3 + $0x112c] ss:$16 sps:$4 sm:$0xff]  }
 0x26c   :  { %4979 = vmatpush1.bf16.msra.mxu1 %v8260_v8  ;;  %4955 = vmatprep.subr.bf16.mxu0 %v8265_v51  ;;  %v8340_v8 = vld [vmem:[#allocation3 + $0x122c] ss:$16 sps:$4 sm:$0xff]   ;;  %v8338_v51 = vld [vmem:[#allocation3 + $0x1228] ss:$16 sps:$4 sm:$0xff]  }
 0x26d   :  { %v4687_v12 = vpop.f32.mrf.mxu1  ;;  %4980 = vmatprep.subr.bf16.mxu1 %v8268_v9  ;;  %v8343_v9 = vld [vmem:[#allocation3 + $0x110c] ss:$16 sps:$4 sm:$0xff]  }
 0x26e   :  { %v8346_v10 = vld [vmem:[#allocation3 + $0x120c] ss:$16 sps:$4 sm:$0xff]  }
 0x26f   :  { %4956 = vmatpush2.bf16.msra.mxu0 %v8263_v17  ;;  %v8341_v17 = vld [vmem:[#allocation3 + $0x1108] ss:$16 sps:$4 sm:$0xff]   ;;  %v8349_v12 = vld [vmem:[#allocation3 + $0x13ec] ss:$16 sps:$4 sm:$0xff]  }
 0x270   :  { %4981 = vmatpush1.bf16.msra.mxu1 %v8266_v11  ;;  %4957 = vmatprep.subr.bf16.mxu0 %v8271_v60  ;;  %v8344_v11 = vld [vmem:[#allocation3 + $0x1208] ss:$16 sps:$4 sm:$0xff]   ;;  %v8352_v60 = vld [vmem:[#allocation3 + $0x14ec] ss:$16 sps:$4 sm:$0xff]  }
 0x271   :  { %4982 = vmatprep.subr.bf16.mxu1 %v8274_v13  ;;  %v8347_v13 = vld [vmem:[#allocation3 + $0x13e8] ss:$16 sps:$4 sm:$0xff]  }
 0x273   :  { %4958 = vmatpush2.bf16.msra.mxu0 %v8269_v14  ;;  %v8350_v14 = vld [vmem:[#allocation3 + $0x14e8] ss:$16 sps:$4 sm:$0xff]  }
 0x274   :  { %4983 = vmatpush1.bf16.msra.mxu1 %v8272_v25  ;;  %4959 = vmatprep.subr.bf16.mxu0 %v8277_v15  ;;  %v8355_v25 = vld [vmem:[#allocation3 + $0x13cc] ss:$16 sps:$4 sm:$0xff]  }
 0x275   :  { %4984 = vmatprep.subr.bf16.mxu1 %v8280_v47  ;;  %v8358_v15 = vld [vmem:[#allocation3 + $0x14cc] ss:$16 sps:$4 sm:$0xff]  }
 0x277   :  { %4960 = vmatpush2.bf16.msra.mxu0 %v8275_v41 }
 0x278   :  { %4985 = vmatpush1.bf16.msra.mxu1 %v8278_v18  ;;  %4961 = vmatprep.subr.bf16.mxu0 %v8283_v20  ;;  %v8353_v18 = vld [vmem:[#allocation3 + $0x13c8] ss:$16 sps:$4 sm:$0xff]  }
 0x279   :  { %4986 = vmatprep.subr.bf16.mxu1 %v8286_v21  ;;  %v8356_v20 = vld [vmem:[#allocation3 + $0x14c8] ss:$16 sps:$4 sm:$0xff]  }
 0x27b   :  { %4962 = vmatpush2.bf16.msra.mxu0 %v8281_v26  ;;  %v8361_v26 = vld [vmem:[#allocation3 + $0x13ac] ss:$16 sps:$4 sm:$0xff]  }
 0x27c   :  { %4987 = vmatpush1.bf16.msra.mxu1 %v8284_v27  ;;  %4963 = vmatprep.subr.bf16.mxu0 %v8289_v50  ;;  %v8364_v27 = vld [vmem:[#allocation3 + $0x14ac] ss:$16 sps:$4 sm:$0xff]  }
 0x27d   :  { %4988 = vmatprep.subr.bf16.mxu1 %v8292_v29 }
 0x27f   :  { %4964 = vmatpush2.bf16.msra.mxu0 %v8287_v30  ;;  %v8362_v30 = vld [vmem:[#allocation3 + $0x14a8] ss:$16 sps:$4 sm:$0xff]  }
 0x280   :  { %4989 = vmatpush1.bf16.msra.mxu1 %v8290_v31  ;;  %4965 = vmatprep.subr.bf16.mxu0 %v8295_v32  ;;  %v8367_v32 = vld [vmem:[#allocation3 + $0x138c] ss:$16 sps:$4 sm:$0xff]  }
 0x281   :  { %4990 = vmatprep.subr.bf16.mxu1 %v8298_v33  ;;  %v8370_v33 = vld [vmem:[#allocation3 + $0x148c] ss:$16 sps:$4 sm:$0xff]  }
 0x283   :  { %4966 = vmatpush2.bf16.msra.mxu0 %v8293_v39  ;;  %v5116_v39 = vlaneseq }
 0x284   :  { %4991 = vmatpush1.bf16.msra.mxu1 %v8296_v24  ;;  %5017 = vmatprep.subr.bf16.mxu0 %v8304_v35  ;;  %v8365_v24 = vld [vmem:[#allocation3 + $0x1388] ss:$16 sps:$4 sm:$0xff]   ;;  %v8373_v35 = vld [vmem:[#allocation3 + $0x136c] ss:$16 sps:$4 sm:$0xff]  }
 0x285   :  { %4992 = vmatprep.subr.bf16.mxu1 %v8301_v34  ;;  %v8368_v34 = vld [vmem:[#allocation3 + $0x1488] ss:$16 sps:$4 sm:$0xff]  }
 0x286   :  { %v4723_v45 = vpop.f32.mrf.mxu0  ;;  %4968 = vmatmul.mubr.bf16.vlgmr.msra.gmra.mxu0 %v8845_v61  ;;  %v8311_v61 = vld [vmem:[#allocation3 + $0x11a8] ss:$16 sps:$4 sm:$0xff]  }
 0x287   :  { %v8939_v43 = vadd.f32 %v4723_v45, %v8931_v40  ;;  %5018 = vmatpush1.bf16.msra.mxu0 %v8302_v7  ;;  %5049 = vmatprep.mubr.bf16.mxu0 %v8863_v1  ;;  %v8323_v1 = vld [vmem:[#allocation3 + $0x1168] ss:$16 sps:$4 sm:$0xff]   ;;  %v8382_v45 = vld [vmem:[#allocation3 + $0x144c] ss:$16 sps:$4 sm:$0xff]  }
 0x288   :  { %4993 = vmatpush2.bf16.msra.mxu1 %v8299_v42  ;;  %v4725_v37 = vpop.f32.mrf.mxu0  ;;  %5019 = vmatprep.subr.bf16.mxu0 %v8310_v44  ;;  %v8332_v40 = vld [vmem:[#allocation3 + $0x1248] ss:$16 sps:$4 sm:$0xff]   ;;  %v8376_v42 = vld [vmem:[#allocation3 + $0x146c] ss:$16 sps:$4 sm:$0xff]  }
 0x289   :  { %4994 = vmatprep.subr.bf16.mxu1 %v8307_v22  ;;  %v8942_v55 = vadd.f32 %v4725_v37, %v8934_v4  ;;  %v8335_v4 = vld [vmem:[#allocation3 + $0x1128] ss:$16 sps:$4 sm:$0xff]   ;;  %v8379_v44 = vld [vmem:[#allocation3 + $0x134c] ss:$16 sps:$4 sm:$0xff]   ;;  %v8959_v37 = vld [vmem:[%s9021_s2] sm:$0xf] }
 0x28a   :  { %v4727_v38 = vpop.f32.mrf.mxu0  ;;  %v8371_v7 = vld [vmem:[#allocation3 + $0x1368] ss:$16 sps:$4 sm:$0xff]  }
 0x28b   :  { %5020 = vmatpush1.bf16.msra.mxu0 %v8308_v52  ;;  %v8374_v22 = vld [vmem:[#allocation3 + $0x1468] ss:$16 sps:$4 sm:$0xff]  }
 0x28c   :  { %4995 = vmatpush2.bf16.msra.mxu1 %v8305_v49  ;;  %v4728_v19 = vpop.f32.mrf.mxu0  ;;  %5021 = vmatprep.subr.bf16.mxu0 %v8316_v54  ;;  %v8377_v49 = vld [vmem:[#allocation3 + $0x1348] ss:$16 sps:$4 sm:$0xff]   ;;  %v8388_v54 = vld [vmem:[#allocation3 + $0x142c] ss:$16 sps:$4 sm:$0xff]  }
 0x28d   :  { %4996 = vmatprep.subr.bf16.mxu1 %v8313_v53  ;;  %v8380_v52 = vld [vmem:[#allocation3 + $0x1448] ss:$16 sps:$4 sm:$0xff]   ;;  %v8385_v53 = vld [vmem:[#allocation3 + $0x132c] ss:$16 sps:$4 sm:$0xff]  }
 0x28e   :  { %v8383_v38 = vld [vmem:[#allocation3 + $0x1328] ss:$16 sps:$4 sm:$0xff]   ;;  %v8394_v19 = vld [vmem:[#allocation3 + $0x140c] ss:$16 sps:$4 sm:$0xff]  }
 0x28f   :  { %5022 = vmatpush1.bf16.msra.mxu0 %v8314_v6  ;;  %v8391_v6 = vld [vmem:[#allocation3 + $0x130c] ss:$16 sps:$4 sm:$0xff]  }
 0x290   :  { %4997 = vmatpush2.bf16.msra.mxu1 %v8311_v61  ;;  %5023 = vmatprep.subr.bf16.mxu0 %v8322_v63  ;;  %v8386_v61 = vld [vmem:[#allocation3 + $0x1428] ss:$16 sps:$4 sm:$0xff]  }
 0x291   :  { %4998 = vmatprep.subr.bf16.mxu1 %v8319_v59  ;;  %v8389_v63 = vld [vmem:[#allocation3 + $0x1308] ss:$16 sps:$4 sm:$0xff]  }
 0x293   :  { %5024 = vmatpush1.bf16.msra.mxu0 %v8320_v57  ;;  %v8397_v57 = vld [vmem:[#allocation5 + $0xe4] ss:$16 sps:$4 sm:$0xff]  }
 0x294   :  { %4999 = vmatpush2.bf16.msra.mxu1 %v8317_v56  ;;  %5025 = vmatprep.subr.bf16.mxu0 %v8328_v5  ;;  %v8392_v56 = vld [vmem:[#allocation3 + $0x1408] ss:$16 sps:$4 sm:$0xff]   ;;  %v8395_v5 = vld [vmem:[#allocation5 + $0xe0] ss:$16 sps:$4 sm:$0xff]  }
 0x295   :  { %5000 = vmatprep.subr.bf16.mxu1 %v8325_v58 }
 0x297   :  { %5026 = vmatpush1.bf16.msra.mxu0 %v8326_v28 }
 0x298   :  { %5001 = vmatpush2.bf16.msra.mxu1 %v8323_v1  ;;  %5027 = vmatprep.subr.bf16.mxu0 %v8334_v0  ;;  %v8400_v1 = vld [vmem:[#allocation5 + $0xc4] ss:$16 sps:$4 sm:$0xff]  }
 0x299   :  { %5002 = vmatprep.subr.bf16.mxu1 %v8331_v23 }
 0x29b   :  { %5028 = vmatpush1.bf16.msra.mxu0 %v8332_v40 }
 0x29c   :  { %5003 = vmatpush2.bf16.msra.mxu1 %v8329_v36  ;;  %5029 = vmatprep.subr.bf16.mxu0 %v8340_v8  ;;  %v8398_v36 = vld [vmem:[#allocation5 + $0xc0] ss:$16 sps:$4 sm:$0xff]  }
 0x29d   :  { %5004 = vmatprep.subr.bf16.mxu1 %v8337_v2  ;;  %v8403_v2 = vld [vmem:[#allocation5 + $0xa4] ss:$16 sps:$4 sm:$0xff]  }
 0x29f   :  { %5030 = vmatpush1.bf16.msra.mxu0 %v8338_v51  ;;  %v8401_v51 = vld [vmem:[#allocation5 + $0xa0] ss:$16 sps:$4 sm:$0xff]  }
 0x2a0   :  { %5005 = vmatpush2.bf16.msra.mxu1 %v8335_v4  ;;  %5031 = vmatprep.subr.bf16.mxu0 %v8346_v10  ;;  %v8491_v10 = vld [vmem:[#allocation5 + $0x2e0] ss:$16 sps:$4 sm:$0xff]  }
 0x2a1   :  { %5006 = vmatprep.subr.bf16.mxu1 %v8343_v9  ;;  %v8406_v9 = vld [vmem:[#allocation5 + $0x84] ss:$16 sps:$4 sm:$0xff]  }
 0x2a3   :  { %5032 = vmatpush1.bf16.msra.mxu0 %v8344_v11  ;;  %v8496_v11 = vld [vmem:[#allocation5 + $0x2c4] ss:$16 sps:$4 sm:$0xff]  }
 0x2a4   :  { %5007 = vmatpush2.bf16.msra.mxu1 %v8341_v17  ;;  %5033 = vmatprep.subr.bf16.mxu0 %v8349_v12  ;;  %v8493_v17 = vld [vmem:[#allocation5 + $0x2e4] ss:$16 sps:$4 sm:$0xff]   ;;  %v8404_v12 = vld [vmem:[#allocation5 + $0x80] ss:$16 sps:$4 sm:$0xff]  }
 0x2a5   :  { %5058 = vmatprep.subr.bf16.mxu1 %v8352_v60  ;;  %v8494_v60 = vld [vmem:[#allocation5 + $0x2c0] ss:$16 sps:$4 sm:$0xff]  }
 0x2a7   :  { %v4764_v47 = vpop.f32.mrf.mxu1  ;;  %5009 = vmatmul.mubr.bf16.vlgmr.msra.gmra.mxu1 %v8875_v46  ;;  %5034 = vmatpush2.bf16.msra.mxu0 %v8347_v13  ;;  %v8359_v46 = vld [vmem:[#allocation3 + $0x13a8] ss:$16 sps:$4 sm:$0xff]   ;;  %v8409_v13 = vld [vmem:[#allocation5 + $0x64] ss:$16 sps:$4 sm:$0xff]  }
 0x2a8   :  { %v8947_v41 = vadd.f32 %v4764_v47, %v8939_v43  ;;  %5059 = vmatpush1.bf16.msra.mxu1 %v8350_v14  ;;  %5035 = vmatprep.subr.bf16.mxu0 %v8355_v25  ;;  %v8499_v14 = vld [vmem:[#allocation5 + $0x2a4] ss:$16 sps:$4 sm:$0xff]   ;;  %v8407_v25 = vld [vmem:[#allocation5 + $0x60] ss:$16 sps:$4 sm:$0xff]  }
 0x2a9   :  { %v4766_v21 = vpop.f32.mrf.mxu1  ;;  %5060 = vmatprep.subr.bf16.mxu1 %v8358_v15  ;;  %5090 = vmatprep.mubr.bf16.mxu1 %v8691_v3  ;;  %v8953_v3 = vshrl.u32 %v5116_v39, 7  ;;  %v8497_v15 = vld [vmem:[#allocation5 + $0x2a0] ss:$16 sps:$4 sm:$0xff]   ;;  %v8412_v47 = vld [vmem:[#allocation5 + $0x44] ss:$16 sps:$4 sm:$0xff]  }
 0x2aa   :  { %v8950_v50 = vadd.f32 %v4766_v21, %v8942_v55  ;;  %v8415_v21 = vld [vmem:[#allocation5 + $0x24] ss:$16 sps:$4 sm:$0xff]  }
 0x2ab   :  { %v4768_v29 = vpop.f32.mrf.mxu1  ;;  %5036 = vmatpush2.bf16.msra.mxu0 %v8353_v18  ;;  %v5122_v43 = vsub.s32 1, %v8953_v3  ;;  %v8410_v18 = vld [vmem:[#allocation5 + $0x40] ss:$16 sps:$4 sm:$0xff]  }
 0x2ac   :  { %5061 = vmatpush1.bf16.msra.mxu1 %v8356_v20  ;;  %5037 = vmatprep.subr.bf16.mxu0 %v8361_v26  ;;  %v8500_v20 = vld [vmem:[#allocation5 + $0x280] ss:$16 sps:$4 sm:$0xff]   ;;  %v8505_v26 = vld [vmem:[#allocation5 + $0x264] ss:$16 sps:$4 sm:$0xff]  }
 0x2ad   :  { %v4769_v31 = vpop.f32.mrf.mxu1  ;;  %5062 = vmatprep.subr.bf16.mxu1 %v8364_v27  ;;  %v5123_v55 = vrot.slane %v8959_v37, %v5122_v43  ;;  %v8413_v27 = vld [vmem:[#allocation5 + $0x20] ss:$16 sps:$4 sm:$0xff]   ;;  %v8418_v29 = vld [vmem:[#allocation5 + $0x4] ss:$16 sps:$4 sm:$0xff]  }
 0x2ae   :  { %v8419_v31 = vld [vmem:[#allocation5 + $0x1e0] ss:$16 sps:$4 sm:$0xff]  }
 0x2af   :  { %5038 = vmatpush2.bf16.msra.mxu0 %v8359_v46  ;;  %v5137_v59 = vadd.f32 %v5123_v55, %v8928_v62  ;;  %v8619_v62 = vld [vmem:[%s9019_s0 + $0x50] ss:$0 sps:$4 sm:$0xff]  }
 0x2b0   :  { %5063 = vmatpush1.bf16.msra.mxu1 %v8362_v30  ;;  %5039 = vmatprep.subr.bf16.mxu0 %v8367_v32  ;;  %v8416_v46 = vld [vmem:[#allocation5] ss:$16 sps:$4 sm:$0xff]   ;;  %v8421_v30 = vld [vmem:[#allocation5 + $0x1e4] ss:$16 sps:$4 sm:$0xff]  }
 0x2b1   :  { %5064 = vmatprep.subr.bf16.mxu1 %v8370_v33  ;;  %v5141_v58 = vmax.f32 %v5137_v59, 0.0  ;;  %v8424_v32 = vld [vmem:[#allocation5 + $0x1c4] ss:$16 sps:$4 sm:$0xff]   ;;  %v8512_v55 = vld [vmem:[#allocation5 + $0x200] ss:$16 sps:$4 sm:$0xff]  }
 0x2b2   :  { %v8508_v33 = vld [vmem:[#allocation5 + $0x244] ss:$16 sps:$4 sm:$0xff]   ;;  %v8515_v59 = vld [vmem:[#allocation5 + $0x3e0] ss:$16 sps:$4 sm:$0xff]  }
 0x2b3   :  { %5040 = vmatpush2.bf16.msra.mxu0 %v8365_v24  ;;  %v8965_v28 = vpack.c.bf16 %v5141_v58, %v5141_v58  ;;  %v8506_v24 = vld [vmem:[#allocation5 + $0x240] ss:$16 sps:$4 sm:$0xff]   ;;  %v8436_v58 = vld [vmem:[#allocation5 + $0x144] ss:$16 sps:$4 sm:$0xff]  }
 0x2b4   :  { %5065 = vmatpush1.bf16.msra.mxu1 %v8368_v34  ;;  %5041 = vmatprep.subr.bf16.mxu0 %v8373_v35  ;;  %v8422_v35 = vld [vmem:[#allocation5 + $0x1c0] ss:$16 sps:$4 sm:$0xff]  }
 0x2b5   :  { %5066 = vmatprep.subr.bf16.mxu1 %v8376_v42 }
 0x2b7   :  { %5042 = vmatpush2.bf16.msra.mxu0 %v8371_v7  ;;  %v8427_v7 = vld [vmem:[#allocation5 + $0x1a4] ss:$16 sps:$4 sm:$0xff]  }
 0x2b8   :  { %5067 = vmatpush1.bf16.msra.mxu1 %v8374_v22  ;;  %5043 = vmatprep.subr.bf16.mxu0 %v8379_v44  ;;  %v8511_v44 = vld [vmem:[#allocation5 + $0x224] ss:$16 sps:$4 sm:$0xff]  }
 0x2b9   :  { %5068 = vmatprep.subr.bf16.mxu1 %v8382_v45 }
 0x2bb   :  { %5044 = vmatpush2.bf16.msra.mxu0 %v8377_v49  ;;  %v8509_v49 = vld [vmem:[#allocation5 + $0x220] ss:$16 sps:$4 sm:$0xff]  }
 0x2bc   :  { %5069 = vmatpush1.bf16.msra.mxu1 %v8380_v52  ;;  %5045 = vmatprep.subr.bf16.mxu0 %v8385_v53  ;;  %v8425_v52 = vld [vmem:[#allocation5 + $0x1a0] ss:$16 sps:$4 sm:$0xff]  }
 0x2bd   :  { %5070 = vmatprep.subr.bf16.mxu1 %v8388_v54  ;;  %v8430_v54 = vld [vmem:[#allocation5 + $0x184] ss:$16 sps:$4 sm:$0xff]  }
 0x2bf   :  { %5046 = vmatpush2.bf16.msra.mxu0 %v8383_v38  ;;  %v8514_v38 = vld [vmem:[#allocation5 + $0x204] ss:$16 sps:$4 sm:$0xff]  }
 0x2c0   :  { %5071 = vmatpush1.bf16.msra.mxu1 %v8386_v61  ;;  %5047 = vmatprep.subr.bf16.mxu0 %v8391_v6  ;;  %v8517_v61 = vld [vmem:[#allocation5 + $0x3e4] ss:$16 sps:$4 sm:$0xff]   ;;  %v8428_v6 = vld [vmem:[#allocation5 + $0x180] ss:$16 sps:$4 sm:$0xff]  }
 0x2c1   :  { %5072 = vmatprep.subr.bf16.mxu1 %v8394_v19  ;;  %v8433_v19 = vld [vmem:[#allocation5 + $0x164] ss:$16 sps:$4 sm:$0xff]  }
 0x2c3   :  { %5048 = vmatpush2.bf16.msra.mxu0 %v8389_v63  ;;  %v8520_v63 = vld [vmem:[#allocation5 + $0x3c4] ss:$16 sps:$4 sm:$0xff]  }
 0x2c4   :  { %5073 = vmatpush1.bf16.msra.mxu1 %v8392_v56  ;;  %5938 = vmatprep.subr.bf16.mxu0 %v8397_v57  ;;  %v8431_v56 = vld [vmem:[#allocation5 + $0x160] ss:$16 sps:$4 sm:$0xff]   ;;  %v5118_v57 = vsub.s32 0, %v8953_v3 }
 0x2c5   :  { %5979 = vmatprep.subr.bf16.mxu1 %v8493_v17  ;;  %v8445_v17 = vld [vmem:[#allocation5 + $0xec] ss:$16 sps:$4 sm:$0xff]  }
 0x2c6   :  { %v4805_v23 = vpop.f32.mrf.mxu0  ;;  %5050 = vmatmul.mubr.bf16.vlgmr.msra.gmra.mxu0 %v8879_v48 }
 0x2c7   :  { %5091 = vmatmul.mubr.bf16.vlgmr.msra.gmra.mxu1 %v8619_v62  ;;  %v4806_v0 = vadd.f32 %v4805_v23, %v8947_v41  ;;  %5939 = vmatpush1.bf16.msra.mxu0 %v8395_v5  ;;  %v8502_v41 = vld [vmem:[#allocation5 + $0x284] ss:$16 sps:$4 sm:$0xff]   ;;  %v8518_v5 = vld [vmem:[#allocation5 + $0x3c0] ss:$16 sps:$4 sm:$0xff]   ;;  %v5119_v62 = vrot.slane %v8959_v37, %v5118_v57 }
 0x2c8   :  { %5970 = vmatprep.mubr.bf16.mxu0 %v8965_v28  ;;  %v4807_v40 = vpop.f32.mrf.mxu0  ;;  %5940 = vmatprep.subr.bf16.mxu0 %v8400_v1  ;;  %v8523_v1 = vld [vmem:[#allocation5 + $0x3a4] ss:$16 sps:$4 sm:$0xff]   ;;  %v8434_v23 = vld [vmem:[#allocation5 + $0x140] ss:$16 sps:$4 sm:$0xff]  }
 0x2c9   :  { %v4808_v8 = vadd.f32 %v4807_v40, %v8950_v50  ;;  %5980 = vmatpush1.bf16.msra.mxu1 %v8491_v10  ;;  %v8503_v50 = vld [vmem:[#allocation5 + $0x260] ss:$16 sps:$4 sm:$0xff]   ;;  %v8526_v40 = vld [vmem:[#allocation5 + $0x384] ss:$16 sps:$4 sm:$0xff]  }
 0x2ca   :  { %v4809_v4 = vpop.f32.mrf.mxu0  ;;  %5981 = vmatprep.subr.bf16.mxu1 %v8496_v11  ;;  %v8527_v11 = vld [vmem:[#allocation5 + $0x360] ss:$16 sps:$4 sm:$0xff]  }
 0x2cb   :  { %5941 = vmatpush1.bf16.msra.mxu0 %v8398_v36  ;;  %v8521_v36 = vld [vmem:[#allocation5 + $0x3a0] ss:$16 sps:$4 sm:$0xff]   ;;  %v8442_v4 = vld [vmem:[#allocation5 + $0x104] ss:$16 sps:$4 sm:$0xff]  }
 0x2cc   :  { %v4810_v48 = vpop.f32.mrf.mxu0  ;;  %5942 = vmatprep.subr.bf16.mxu0 %v8403_v2  ;;  %v8437_v2 = vld [vmem:[#allocation5 + $0x120] ss:$16 sps:$4 sm:$0xff]  }
 0x2cd   :  { %5982 = vmatpush1.bf16.msra.mxu1 %v8494_v60  ;;  %v8529_v48 = vld [vmem:[#allocation5 + $0x364] ss:$16 sps:$4 sm:$0xff]  }
 0x2ce   :  { %5983 = vmatprep.subr.bf16.mxu1 %v8499_v14 }
 0x2cf   :  { %5943 = vmatpush1.bf16.msra.mxu0 %v8401_v51  ;;  %v8524_v51 = vld [vmem:[#allocation5 + $0x380] ss:$16 sps:$4 sm:$0xff]  }
 0x2d0   :  { %5944 = vmatprep.subr.bf16.mxu0 %v8406_v9  ;;  %v8440_v9 = vld [vmem:[#allocation5 + $0x100] ss:$16 sps:$4 sm:$0xff]  }
 0x2d1   :  { %5984 = vmatpush1.bf16.msra.mxu1 %v8497_v15 }
 0x2d2   :  { %5985 = vmatprep.subr.bf16.mxu1 %v8502_v41 }
 0x2d3   :  { %5945 = vmatpush1.bf16.msra.mxu0 %v8404_v12  ;;  %v8443_v12 = vld [vmem:[#allocation5 + $0xe8] ss:$16 sps:$4 sm:$0xff]  }
 0x2d4   :  { %5946 = vmatprep.subr.bf16.mxu0 %v8409_v13  ;;  %v8532_v13 = vld [vmem:[#allocation5 + $0x344] ss:$16 sps:$4 sm:$0xff]  }
 0x2d5   :  { %5986 = vmatpush1.bf16.msra.mxu1 %v8500_v20 }
 0x2d6   :  { %5987 = vmatprep.subr.bf16.mxu1 %v8505_v26 }
 0x2d7   :  { %5947 = vmatpush1.bf16.msra.mxu0 %v8407_v25  ;;  %v8530_v25 = vld [vmem:[#allocation5 + $0x340] ss:$16 sps:$4 sm:$0xff]  }
 0x2d8   :  { %5948 = vmatprep.subr.bf16.mxu0 %v8412_v47  ;;  %v8446_v47 = vld [vmem:[#allocation5 + $0xc8] ss:$16 sps:$4 sm:$0xff]  }
 0x2d9   :  { %5988 = vmatpush1.bf16.msra.mxu1 %v8503_v50  ;;  %v8449_v50 = vld [vmem:[#allocation5 + $0xa8] ss:$16 sps:$4 sm:$0xff]  }
 0x2da   :  { %5989 = vmatprep.subr.bf16.mxu1 %v8508_v33  ;;  %v8541_v33 = vld [vmem:[#allocation5 + $0x2ec] ss:$16 sps:$4 sm:$0xff]  }
 0x2db   :  { %5949 = vmatpush1.bf16.msra.mxu0 %v8410_v18  ;;  %v8451_v18 = vld [vmem:[#allocation5 + $0xac] ss:$16 sps:$4 sm:$0xff]  }
 0x2dc   :  { %5950 = vmatprep.subr.bf16.mxu0 %v8415_v21  ;;  %v8535_v21 = vld [vmem:[#allocation5 + $0x324] ss:$16 sps:$4 sm:$0xff]  }
 0x2dd   :  { %5990 = vmatpush1.bf16.msra.mxu1 %v8506_v24  ;;  %v8460_v24 = vld [vmem:[#allocation5 + $0x4c] ss:$16 sps:$4 sm:$0xff]  }
 0x2de   :  { %5991 = vmatprep.subr.bf16.mxu1 %v8511_v44  ;;  %v8469_v44 = vld [vmem:[#allocation5 + $0x1ec] ss:$16 sps:$4 sm:$0xff]  }
 0x2df   :  { %5951 = vmatpush1.bf16.msra.mxu0 %v8413_v27  ;;  %v8533_v27 = vld [vmem:[#allocation5 + $0x320] ss:$16 sps:$4 sm:$0xff]  }
 0x2e0   :  { %5952 = vmatprep.subr.bf16.mxu0 %v8418_v29 }
 0x2e1   :  { %5992 = vmatpush1.bf16.msra.mxu1 %v8509_v49  ;;  %v8472_v49 = vld [vmem:[#allocation5 + $0x1cc] ss:$16 sps:$4 sm:$0xff]  }
 0x2e2   :  { %5993 = vmatprep.subr.bf16.mxu1 %v8514_v38  ;;  %v8475_v38 = vld [vmem:[#allocation5 + $0x1ac] ss:$16 sps:$4 sm:$0xff]  }
 0x2e3   :  { %5953 = vmatpush1.bf16.msra.mxu0 %v8416_v46  ;;  %v8454_v46 = vld [vmem:[#allocation5 + $0x8c] ss:$16 sps:$4 sm:$0xff]  }
 0x2e4   :  { %5954 = vmatprep.subr.bf16.mxu0 %v8421_v30  ;;  %v8538_v30 = vld [vmem:[#allocation5 + $0x304] ss:$16 sps:$4 sm:$0xff]  }
 0x2e5   :  { %5994 = vmatpush1.bf16.msra.mxu1 %v8512_v55 }
 0x2e6   :  { %5995 = vmatprep.subr.bf16.mxu1 %v8517_v61 }
 0x2e7   :  { %v4846_v39 = vpop.f32.mrf.mxu1  ;;  %5955 = vmatpush2.bf16.msra.mxu0 %v8419_v31  ;;  %v8452_v31 = vld [vmem:[#allocation5 + $0x88] ss:$16 sps:$4 sm:$0xff]  }
 0x2e8   :  { %v8974_v34 = vadd.f32 %v4846_v39, %v4806_v0  ;;  %5956 = vmatprep.subr.bf16.mxu0 %v8424_v32  ;;  %v8439_v0 = vld [vmem:[#allocation5 + $0x124] ss:$16 sps:$4 sm:$0xff]   ;;  %v8457_v32 = vld [vmem:[#allocation5 + $0x6c] ss:$16 sps:$4 sm:$0xff]   ;;  %v8455_v39 = vld [vmem:[#allocation5 + $0x68] ss:$16 sps:$4 sm:$0xff]  }
 0x2e9   :  { %v4848_v42 = vpop.f32.mrf.mxu1  ;;  %5996 = vmatpush2.bf16.msra.mxu1 %v8515_v59 }
 0x2ea   :  { %v8976_v22 = vadd.f32 %v4848_v42, %v4808_v8  ;;  %5997 = vmatprep.subr.bf16.mxu1 %v8520_v63  ;;  %v5136_v8 = vadd.f32 %v5119_v62, %v8925_v16  ;;  %v8448_v16 = vld [vmem:[#allocation5 + $0xcc] ss:$16 sps:$4 sm:$0xff]   ;;  %v8461_v42 = vld [vmem:[#allocation5 + $0x28] ss:$16 sps:$4 sm:$0xff]  }
 0x2eb   :  { %v4850_v45 = vpop.f32.mrf.mxu1  ;;  %5957 = vmatpush2.bf16.msra.mxu0 %v8422_v35  ;;  %v8463_v35 = vld [vmem:[#allocation5 + $0x2c] ss:$16 sps:$4 sm:$0xff]  }
 0x2ec   :  { %5958 = vmatprep.subr.bf16.mxu0 %v8427_v7  ;;  %v5140_v10 = vmax.f32 %v5136_v8, 0.0  ;;  %v8466_v7 = vld [vmem:[#allocation5 + $0xc] ss:$16 sps:$4 sm:$0xff]   ;;  %v8467_v45 = vld [vmem:[#allocation5 + $0x1e8] ss:$16 sps:$4 sm:$0xff]  }
 0x2ed   :  { %v4851_v53 = vpop.f32.mrf.mxu1  ;;  %5998 = vmatpush2.bf16.msra.mxu1 %v8518_v5  ;;  %v8478_v63 = vld [vmem:[#allocation5 + $0x18c] ss:$16 sps:$4 sm:$0xff]   ;;  %v8479_v5 = vld [vmem:[#allocation5 + $0x168] ss:$16 sps:$4 sm:$0xff]  }
 0x2ee   :  { %5999 = vmatprep.subr.bf16.mxu1 %v8523_v1  ;;  %v8983_v60 = vpack.c.bf16 %v5140_v10, %v5140_v10  ;;  %v8484_v1 = vld [vmem:[#allocation5 + $0x14c] ss:$16 sps:$4 sm:$0xff]  }
 0x2ef   :  { %5959 = vmatpush2.bf16.msra.mxu0 %v8425_v52  ;;  %v8487_v62 = vld [vmem:[#allocation5 + $0x12c] ss:$16 sps:$4 sm:$0xff]  }
 0x2f0   :  { %5960 = vmatprep.subr.bf16.mxu0 %v8430_v54  ;;  %v8470_v54 = vld [vmem:[#allocation5 + $0x1c8] ss:$16 sps:$4 sm:$0xff]  }
 0x2f1   :  { %6000 = vmatpush2.bf16.msra.mxu1 %v8521_v36  ;;  %v8490_v36 = vld [vmem:[#allocation5 + $0x10c] ss:$16 sps:$4 sm:$0xff]  }
 0x2f2   :  { %6001 = vmatprep.subr.bf16.mxu1 %v8526_v40  ;;  %v8488_v40 = vld [vmem:[#allocation5 + $0x108] ss:$16 sps:$4 sm:$0xff]  }
 0x2f3   :  { %5961 = vmatpush2.bf16.msra.mxu0 %v8428_v6 }
 0x2f4   :  { %5962 = vmatprep.subr.bf16.mxu0 %v8433_v19  ;;  %v8473_v19 = vld [vmem:[#allocation5 + $0x1a8] ss:$16 sps:$4 sm:$0xff]  }
 0x2f5   :  { %6002 = vmatpush2.bf16.msra.mxu1 %v8524_v51 }
 0x2f6   :  { %6003 = vmatprep.subr.bf16.mxu1 %v8529_v48 }
 0x2f7   :  { %5963 = vmatpush2.bf16.msra.mxu0 %v8431_v56  ;;  %v8476_v56 = vld [vmem:[#allocation5 + $0x188] ss:$16 sps:$4 sm:$0xff]  }
 0x2f8   :  { %5964 = vmatprep.subr.bf16.mxu0 %v8436_v58  ;;  %v8481_v58 = vld [vmem:[#allocation5 + $0x16c] ss:$16 sps:$4 sm:$0xff]  }
 0x2f9   :  { %6004 = vmatpush2.bf16.msra.mxu1 %v8527_v11 }
 0x2fa   :  { %6005 = vmatprep.subr.bf16.mxu1 %v8532_v13 }
 0x2fb   :  { %5965 = vmatpush2.bf16.msra.mxu0 %v8434_v23  ;;  %v8482_v23 = vld [vmem:[#allocation5 + $0x148] ss:$16 sps:$4 sm:$0xff]  }
 0x2fc   :  { %5966 = vmatprep.subr.bf16.mxu0 %v8439_v0  ;;  %v8485_v0 = vld [vmem:[#allocation5 + $0x128] ss:$16 sps:$4 sm:$0xff]  }
 0x2fd   :  { %6006 = vmatpush2.bf16.msra.mxu1 %v8530_v25 }
 0x2fe   :  { %6007 = vmatprep.subr.bf16.mxu1 %v8535_v21 }
 0x2ff   :  { %5967 = vmatpush2.bf16.msra.mxu0 %v8437_v2 }
 0x300   :  { %5968 = vmatprep.subr.bf16.mxu0 %v8442_v4 }
 0x301   :  { %6008 = vmatpush2.bf16.msra.mxu1 %v8533_v27 }
 0x302   :  { %6009 = vmatprep.subr.bf16.mxu1 %v8538_v30 }
 0x303   :  { %5969 = vmatpush2.bf16.msra.mxu0 %v8440_v9 }
 0x304   :  { %6020 = vmatprep.subr.bf16.mxu0 %v8445_v17 }
 0x306   :  { %v4887_v14 = vpop.f32.mrf.mxu0  ;;  %5971 = vmatmul.mubr.bf16.vlgmr.msra.gmra.mxu0 %v8983_v60 }
 0x307   :  { %v4888_v15 = vadd.f32 %v4887_v14, %v8974_v34  ;;  %6021 = vmatpush1.bf16.msra.mxu0 %v8443_v12  ;;  %6052 = vmatprep.mubr.bf16.mxu0 %v8965_v28  ;;  %v8536_v28 = vld [vmem:[#allocation5 + $0x300] ss:$16 sps:$4 sm:$0xff]   ;;  %v8458_v34 = vld [vmem:[#allocation5 + $0x48] ss:$16 sps:$4 sm:$0xff]   ;;  %v5126_v12 = vsub.s32 2, %v8953_v3  ;;  %v5130_v14 = vsub.s32 3, %v8953_v3 }
 0x308   :  { %v4889_v41 = vpop.f32.mrf.mxu0  ;;  %6022 = vmatprep.subr.bf16.mxu0 %v8448_v16  ;;  %6010 = vmatpush2.bf16.msra.mxu1 %v8536_v28 }
 0x309   :  { %v4890_v20 = vadd.f32 %v4889_v41, %v8976_v22  ;;  %6061 = vmatprep.subr.bf16.mxu1 %v8541_v33  ;;  %v8464_v22 = vld [vmem:[#allocation5 + $0x8] ss:$16 sps:$4 sm:$0xff]   ;;  %v5131_v27 = vrot.slane %v8959_v37, %v5130_v14 }
 0x30a   :  { %v4891_v26 = vpop.f32.mrf.mxu0  ;;  %v8588_v33 = vld [vmem:[#allocation7 + $0x38] sm:$0xff]  }
 0x30b   :  { %6023 = vmatpush1.bf16.msra.mxu0 %v8446_v47 }
 0x30c   :  { %v4892_v29 = vpop.f32.mrf.mxu0  ;;  %6024 = vmatprep.subr.bf16.mxu0 %v8451_v18 }
 0x30f   :  { %6025 = vmatpush1.bf16.msra.mxu0 %v8449_v50 }
 0x310   :  { %6026 = vmatprep.subr.bf16.mxu0 %v8454_v46 }
 0x313   :  { %6027 = vmatpush1.bf16.msra.mxu0 %v8452_v31 }
 0x314   :  { %6028 = vmatprep.subr.bf16.mxu0 %v8457_v32  ;;  %v8587_v32 = vld [vmem:[#allocation7 + $0x78] sm:$0xff]  }
 0x317   :  { %6029 = vmatpush1.bf16.msra.mxu0 %v8455_v39  ;;  %v8589_v39 = vld [vmem:[#allocation7 + $0x70] sm:$0xff]  }
 0x318   :  { %6030 = vmatprep.subr.bf16.mxu0 %v8460_v24 }
 0x31b   :  { %6031 = vmatpush1.bf16.msra.mxu0 %v8458_v34 }
 0x31c   :  { %6032 = vmatprep.subr.bf16.mxu0 %v8463_v35 }
 0x31f   :  { %6033 = vmatpush1.bf16.msra.mxu0 %v8461_v42  ;;  %v8590_v42 = vld [vmem:[#allocation7 + $0x30] sm:$0xff]  }
 0x320   :  { %6034 = vmatprep.subr.bf16.mxu0 %v8466_v7  ;;  %v8591_v7 = vld [vmem:[#allocation7 + $0x68] sm:$0xff]  }
 0x323   :  { %6035 = vmatpush1.bf16.msra.mxu0 %v8464_v22 }
 0x324   :  { %6036 = vmatprep.subr.bf16.mxu0 %v8469_v44  ;;  %v8539_v44 = vld [vmem:[#allocation5 + $0x2e8] ss:$16 sps:$4 sm:$0xff]  }
 0x327   :  { %v4928_v52 = vpop.f32.mrf.mxu1  ;;  %6037 = vmatpush2.bf16.msra.mxu0 %v8467_v45  ;;  %v8544_v45 = vld [vmem:[#allocation5 + $0x2cc] ss:$16 sps:$4 sm:$0xff]  }
 0x328   :  { %v4929_v53 = vadd.f32 %v4928_v52, %v4888_v15  ;;  %6038 = vmatprep.subr.bf16.mxu0 %v8472_v49  ;;  %v8592_v49 = vld [vmem:[#allocation7 + $0x28] sm:$0xff]   ;;  %v8593_v52 = vld [vmem:[#allocation7 + $0x60] sm:$0xff]  }
 0x329   :  { %v4930_v55 = vpop.f32.mrf.mxu1 }
 0x32a   :  { %v4931_v61 = vadd.f32 %v4930_v55, %v4890_v20  ;;  %v8594_v55 = vld [vmem:[#allocation7 + $0x20] sm:$0xff]  }
 0x32b   :  { %v4932_v6 = vpop.f32.mrf.mxu1  ;;  %6039 = vmatpush2.bf16.msra.mxu0 %v8470_v54  ;;  %v8547_v54 = vld [vmem:[#allocation5 + $0x2ac] ss:$16 sps:$4 sm:$0xff]  }
 0x32c   :  { %6040 = vmatprep.subr.bf16.mxu0 %v8475_v38  ;;  %v8595_v38 = vld [vmem:[#allocation7 + $0x58] sm:$0xff]  }
 0x32d   :  { %v4933_v59 = vpop.f32.mrf.mxu1  ;;  %v8550_v6 = vld [vmem:[#allocation5 + $0x28c] ss:$16 sps:$4 sm:$0xff]  }
 0x32e   :  { %v8597_v59 = vld [vmem:[#allocation7 + $0x50] sm:$0xff]  }
 0x32f   :  { %6041 = vmatpush2.bf16.msra.mxu0 %v8473_v19  ;;  %v8596_v19 = vld [vmem:[#allocation7 + $0x18] sm:$0xff]  }
 0x330   :  { %6042 = vmatprep.subr.bf16.mxu0 %v8478_v63  ;;  %v8548_v63 = vld [vmem:[#allocation5 + $0x288] ss:$16 sps:$4 sm:$0xff]  }
 0x333   :  { %6043 = vmatpush2.bf16.msra.mxu0 %v8476_v56  ;;  %v8553_v56 = vld [vmem:[#allocation5 + $0x26c] ss:$16 sps:$4 sm:$0xff]  }
 0x334   :  { %6044 = vmatprep.subr.bf16.mxu0 %v8481_v58  ;;  %v8598_v58 = vld [vmem:[#allocation7 + $0x10] sm:$0xff]  }
 0x337   :  { %6045 = vmatpush2.bf16.msra.mxu0 %v8479_v5  ;;  %v8551_v5 = vld [vmem:[#allocation5 + $0x268] ss:$16 sps:$4 sm:$0xff]  }
 0x338   :  { %6046 = vmatprep.subr.bf16.mxu0 %v8484_v1  ;;  %v8556_v1 = vld [vmem:[#allocation5 + $0x24c] ss:$16 sps:$4 sm:$0xff]  }
 0x33b   :  { %6047 = vmatpush2.bf16.msra.mxu0 %v8482_v23  ;;  %v8554_v23 = vld [vmem:[#allocation5 + $0x248] ss:$16 sps:$4 sm:$0xff]  }
 0x33c   :  { %6048 = vmatprep.subr.bf16.mxu0 %v8487_v62  ;;  %v8559_v62 = vld [vmem:[#allocation5 + $0x22c] ss:$16 sps:$4 sm:$0xff]  }
 0x33f   :  { %6049 = vmatpush2.bf16.msra.mxu0 %v8485_v0  ;;  %v8557_v0 = vld [vmem:[#allocation5 + $0x228] ss:$16 sps:$4 sm:$0xff]  }
 0x340   :  { %6050 = vmatprep.subr.bf16.mxu0 %v8490_v36  ;;  %v8562_v36 = vld [vmem:[#allocation5 + $0x20c] ss:$16 sps:$4 sm:$0xff]  }
 0x343   :  { %6051 = vmatpush2.bf16.msra.mxu0 %v8488_v40  ;;  %v8560_v40 = vld [vmem:[#allocation5 + $0x208] ss:$16 sps:$4 sm:$0xff]  }
 0x344   :  { %7314 = vmatprep.subr.bf16.mxu0 %v8587_v32  ;;  %v8606_v32 = vld [vmem:[#allocation7 + $0xb0] sm:$0xff]  }
 0x346   :  { %v4969_v2 = vpop.f32.mrf.mxu0  ;;  %6053 = vmatmul.mubr.bf16.vlgmr.msra.gmra.mxu0 %v8983_v60  ;;  %v5127_v60 = vrot.slane %v8959_v37, %v5126_v12 }
 0x347   :  { %v4970_v11 = vadd.f32 %v4969_v2, %v4929_v53  ;;  %7315 = vmatpush3.bf16.msra.mxu0 %v8588_v33  ;;  %v8542_v53 = vld [vmem:[#allocation5 + $0x2c8] ss:$16 sps:$4 sm:$0xff]   ;;  %v8565_v2 = vld [vmem:[#allocation5 + $0x3ec] ss:$16 sps:$4 sm:$0xff]  }
 0x348   :  { %v4971_v8 = vpop.f32.mrf.mxu0  ;;  %7316 = vmatprep.subr.bf16.mxu0 %v8589_v39  ;;  %v8607_v33 = vld [vmem:[#allocation7 + $0xe8] sm:$0xff]  }
 0x349   :  { %v4972_v16 = vadd.f32 %v4971_v8, %v4931_v61  ;;  %v8545_v61 = vld [vmem:[#allocation5 + $0x2a8] ss:$16 sps:$4 sm:$0xff]  }
 0x34a   :  { %v4973_v4 = vpop.f32.mrf.mxu0  ;;  %v8563_v8 = vld [vmem:[#allocation5 + $0x3e8] ss:$16 sps:$4 sm:$0xff]  }
 0x34b   :  { %7317 = vmatpush3.bf16.msra.mxu0 %v8590_v42  ;;  %v8568_v4 = vld [vmem:[#allocation5 + $0x3cc] ss:$16 sps:$4 sm:$0xff]  }
 0x34c   :  { %v4974_v51 = vpop.f32.mrf.mxu0  ;;  %7318 = vmatprep.subr.bf16.mxu0 %v8591_v7  ;;  %v8608_v39 = vld [vmem:[#allocation7 + $0xa8] sm:$0xff]   ;;  %v8612_v42 = vld [vmem:[#allocation7 + $0x98] sm:$0xff]   ;;  %v8613_v7 = vld [vmem:[#allocation7 + $0xd0] sm:$0xff]  }
 0x34d   :  { %v8566_v51 = vld [vmem:[#allocation5 + $0x3c8] ss:$16 sps:$4 sm:$0xff]  }
 0x34f   :  { %7319 = vmatpush3.bf16.msra.mxu0 %v8592_v49 }
 0x350   :  { %7320 = vmatprep.subr.bf16.mxu0 %v8593_v52  ;;  %v8615_v52 = vld [vmem:[#allocation7 + $0xc8] sm:$0xff]  }
 0x353   :  { %7321 = vmatpush3.bf16.msra.mxu0 %v8594_v55  ;;  %v8618_v55 = vld [vmem:[#allocation7 + $0x80] sm:$0xff]  }
 0x354   :  { %7322 = vmatprep.subr.bf16.mxu0 %v8595_v38  ;;  %v5276_v38 = vld [vmem:[%s9023_s4] sm:$0xf] }
 0x357   :  { %7323 = vmatpush3.bf16.msra.mxu0 %v8596_v19 }
 0x358   :  { %7324 = vmatprep.subr.bf16.mxu0 %v8597_v59 }
 0x35b   :  { %7325 = vmatpush3.bf16.msra.mxu0 %v8598_v58 }
 0x367   :  { %v5010_v48 = vpop.f32.mrf.mxu1 }
 0x368   :  { %v5011_v13 = vadd.f32 %v5010_v48, %v4970_v11  ;;  %v8571_v48 = vld [vmem:[#allocation5 + $0x3ac] ss:$16 sps:$4 sm:$0xff]  }
 0x369   :  { %v5012_v9 = vpop.f32.mrf.mxu1  ;;  %v8577_v11 = vld [vmem:[#allocation5 + $0x36c] ss:$16 sps:$4 sm:$0xff]  }
 0x36a   :  { %v5013_v47 = vadd.f32 %v5012_v9, %v4972_v16  ;;  %v8569_v9 = vld [vmem:[#allocation5 + $0x3a8] ss:$16 sps:$4 sm:$0xff]  }
 0x36b   :  { %v5014_v10 = vpop.f32.mrf.mxu1  ;;  %v8575_v16 = vld [vmem:[#allocation5 + $0x368] ss:$16 sps:$4 sm:$0xff]  }
 0x36c   :  { %v8574_v10 = vld [vmem:[#allocation5 + $0x38c] ss:$16 sps:$4 sm:$0xff]  }
 0x36d   :  { %v5015_v17 = vpop.f32.mrf.mxu1 }
 0x36e   :  { %v8572_v17 = vld [vmem:[#allocation5 + $0x388] ss:$16 sps:$4 sm:$0xff]  }
 0x386   :  { %v5051_v25 = vpop.f32.mrf.mxu0 }
 0x387   :  { %v5092_v15 = vpop.f32.mrf.mxu1  ;;  %v5052_v41 = vadd.f32 %v5051_v25, %v5011_v13  ;;  %v8580_v13 = vld [vmem:[#allocation5 + $0x34c] ss:$16 sps:$4 sm:$0xff]   ;;  %v8578_v25 = vld [vmem:[#allocation5 + $0x348] ss:$16 sps:$4 sm:$0xff]  }
 0x388   :  { %v5053_v18 = vpop.f32.mrf.mxu0 }
 0x389   :  { %v5094_v20 = vpop.f32.mrf.mxu1  ;;  %v5093_v21 = vadd.f32 %v5092_v15, %v5052_v41  ;;  %v5054_v26 = vadd.f32 %v5053_v18, %v5013_v47  ;;  %v8583_v47 = vld [vmem:[#allocation5 + $0x32c] ss:$16 sps:$4 sm:$0xff]  }
 0x38a   :  { %v5055_v50 = vpop.f32.mrf.mxu0 }
 0x38b   :  { %v5096_v29 = vpop.f32.mrf.mxu1  ;;  %v5138_v46 = vadd.f32 %v5127_v60, %v5093_v21  ;;  %v5095_v30 = vadd.f32 %v5094_v20, %v5054_v26  ;;  %v8581_v60 = vld [vmem:[#allocation5 + $0x328] ss:$16 sps:$4 sm:$0xff]   ;;  %v8586_v20 = vld [vmem:[#allocation5 + $0x30c] ss:$16 sps:$4 sm:$0xff]  }
 0x38c   :  { %v5056_v28 = vpop.f32.mrf.mxu0  ;;  %v8584_v26 = vld [vmem:[#allocation5 + $0x308] ss:$16 sps:$4 sm:$0xff]   ;;  %v8601_v29 = vld [vmem:[#allocation7 + $0x40] sm:$0xff]  }
 0x38d   :  { %v5097_v31 = vpop.f32.mrf.mxu1  ;;  %v5139_v24 = vadd.f32 %v5131_v27, %v5095_v30  ;;  %v5142_v34 = vmax.f32 %v5138_v46, 0.0  ;;  %v8599_v27 = vld [vmem:[#allocation7 + $0x48] sm:$0xff]   ;;  %v8602_v46 = vld [vmem:[#allocation7] sm:$0xff]   ;;  %v8603_v30 = vld [vmem:[#allocation7 + $0xf8] sm:$0xff]  }
 0x38e   :  { %v8600_v50 = vld [vmem:[#allocation7 + $0x8] sm:$0xff]   ;;  %7326 = vmatprep.subr.bf16.mxu0 %v8599_v27  ;;  %v8604_v28 = vld [vmem:[#allocation7 + $0xb8] sm:$0xff]   ;;  %v8605_v31 = vld [vmem:[#allocation7 + $0xf0] sm:$0xff]  }
 0x38f   :  { %v5143_v35 = vmax.f32 %v5139_v24, 0.0  ;;  %v8998_v37 = vpack.c.bf16 %v5142_v34, %v5142_v34  ;;  %7327 = vmatpush3.bf16.msra.mxu0 %v8600_v50  ;;  %v8609_v24 = vld [vmem:[#allocation7 + $0xe0] sm:$0xff]  }
 0x390   :  { %7328 = vmatprep.subr.bf16.mxu0 %v8601_v29  ;;  %v8610_v34 = vld [vmem:[#allocation7 + $0xa0] sm:$0xff]  }
 0x391   :  { %v5147_v22 = vpack.c.bf16 %v5143_v35, %v5143_v35  ;;  %v8611_v35 = vld [vmem:[#allocation7 + $0xd8] sm:$0xff]  }
 0x393   :  { %6011 = vmatprep.mubr.bf16.mxu1 %v5147_v22  ;;  %7329 = vmatpush3.bf16.msra.mxu0 %v8602_v46 }
 0x394   :  { %6012 = vmatmul.mubr.bf16.vlgmr.msra.gmra.mxu1 %v8998_v37 }
 0x395   :  { %6062 = vmatpush1.bf16.msra.mxu1 %v8539_v44  ;;  %6093 = vmatprep.mubr.bf16.mxu1 %v5147_v22  ;;  %v8614_v22 = vld [vmem:[#allocation7 + $0x90] sm:$0xff]  }
 0x396   :  { %6063 = vmatprep.subr.bf16.mxu1 %v8544_v45 }
 0x399   :  { %6064 = vmatpush1.bf16.msra.mxu1 %v8542_v53  ;;  %v8616_v53 = vld [vmem:[#allocation7 + $0x88] sm:$0xff]  }
 0x39a   :  { %6065 = vmatprep.subr.bf16.mxu1 %v8547_v54  ;;  %v8617_v54 = vld [vmem:[#allocation7 + $0xc0] sm:$0xff]  }
 0x39d   :  { %6066 = vmatpush1.bf16.msra.mxu1 %v8545_v61  ;;  %v5281_v61 = vrot.slane %v5276_v38, %v5118_v57  ;;  %v5289_v57 = vrot.slane %v5276_v38, %v5126_v12 }
 0x39e   :  { %6067 = vmatprep.subr.bf16.mxu1 %v8550_v6  ;;  %v5285_v6 = vrot.slane %v5276_v38, %v5122_v43  ;;  %v5293_v43 = vrot.slane %v5276_v38, %v5130_v14  ;;  %v7281_v14 = vld [vmem:[%s9025_s6] ss:$0 sm:$0xff] }
 0x3a1   :  { %6068 = vmatpush1.bf16.msra.mxu1 %v8548_v63 }
 0x3a2   :  { %6069 = vmatprep.subr.bf16.mxu1 %v8553_v56 }
 0x3a5   :  { %6070 = vmatpush1.bf16.msra.mxu1 %v8551_v5 }
 0x3a6   :  { %6071 = vmatprep.subr.bf16.mxu1 %v8556_v1 }
 0x3a9   :  { %6072 = vmatpush1.bf16.msra.mxu1 %v8554_v23 }
 0x3aa   :  { %6073 = vmatprep.subr.bf16.mxu1 %v8559_v62 }
 0x3ad   :  { %6074 = vmatpush1.bf16.msra.mxu1 %v8557_v0 }
 0x3ae   :  { %6075 = vmatprep.subr.bf16.mxu1 %v8562_v36 }
 0x3b1   :  { %6076 = vmatpush1.bf16.msra.mxu1 %v8560_v40 }
 0x3b2   :  { %6077 = vmatprep.subr.bf16.mxu1 %v8565_v2 }
 0x3b5   :  { %6078 = vmatpush2.bf16.msra.mxu1 %v8563_v8 }
 0x3b6   :  { %6079 = vmatprep.subr.bf16.mxu1 %v8568_v4 }
 0x3b9   :  { %6080 = vmatpush2.bf16.msra.mxu1 %v8566_v51 }
 0x3ba   :  { %6081 = vmatprep.subr.bf16.mxu1 %v8571_v48 }
 0x3bd   :  { %6082 = vmatpush2.bf16.msra.mxu1 %v8569_v9 }
 0x3be   :  { %6083 = vmatprep.subr.bf16.mxu1 %v8574_v10 }
 0x3c1   :  { %6084 = vmatpush2.bf16.msra.mxu1 %v8572_v17 }
 0x3c2   :  { %6085 = vmatprep.subr.bf16.mxu1 %v8577_v11 }
 0x3c5   :  { %6086 = vmatpush2.bf16.msra.mxu1 %v8575_v16 }
 0x3c6   :  { %v5972_v15 = vpop.f32.mrf.mxu0  ;;  %6087 = vmatprep.subr.bf16.mxu1 %v8580_v13 }
 0x3c7   :  { %v5973_v19 = vadd.f32 %v5972_v15, %v5281_v61 }
 0x3c8   :  { %v5974_v41 = vpop.f32.mrf.mxu0 }
 0x3c9   :  { %6088 = vmatpush2.bf16.msra.mxu1 %v8578_v25  ;;  %v5975_v63 = vadd.f32 %v5974_v41, %v5285_v6 }
 0x3ca   :  { %v5976_v18 = vpop.f32.mrf.mxu0  ;;  %6089 = vmatprep.subr.bf16.mxu1 %v8583_v47 }
 0x3cc   :  { %v5977_v21 = vpop.f32.mrf.mxu0 }
 0x3cd   :  { %6090 = vmatpush2.bf16.msra.mxu1 %v8581_v60 }
 0x3ce   :  { %6091 = vmatprep.subr.bf16.mxu1 %v8586_v20 }
 0x3d1   :  { %6092 = vmatpush2.bf16.msra.mxu1 %v8584_v26 }
 0x3d2   :  { %7336 = vmatprep.subr.bf16.mxu1 %v8603_v30 }
 0x3d4   :  { %6094 = vmatmul.mubr.bf16.vlgmr.msra.gmra.mxu1 %v8998_v37 }
 0x3d5   :  { %7337 = vmatpush3.bf16.msra.mxu1 %v8604_v28 }
 0x3d6   :  { %7338 = vmatprep.subr.bf16.mxu1 %v8605_v31 }
 0x3d9   :  { %7339 = vmatpush3.bf16.msra.mxu1 %v8606_v32 }
 0x3da   :  { %7340 = vmatprep.subr.bf16.mxu1 %v8607_v33 }
 0x3dd   :  { %7341 = vmatpush3.bf16.msra.mxu1 %v8608_v39 }
 0x3de   :  { %7342 = vmatprep.subr.bf16.mxu1 %v8609_v24 }
 0x3e1   :  { %7343 = vmatpush3.bf16.msra.mxu1 %v8610_v34 }
 0x3e2   :  { %7344 = vmatprep.subr.bf16.mxu1 %v8611_v35 }
 0x3e5   :  { %7345 = vmatpush3.bf16.msra.mxu1 %v8612_v42 }
 0x3e6   :  { %7346 = vmatprep.subr.bf16.mxu1 %v8613_v7 }
 0x3e9   :  { %7347 = vmatpush3.bf16.msra.mxu1 %v8614_v22 }
 0x3ea   :  { %7348 = vmatprep.subr.bf16.mxu1 %v8615_v52 }
 0x3ed   :  { %7349 = vmatpush3.bf16.msra.mxu1 %v8616_v53 }
 0x3ee   :  { %7350 = vmatprep.subr.bf16.mxu1 %v8617_v54 }
 0x3f1   :  { %7351 = vmatpush3.bf16.msra.mxu1 %v8618_v55 }
 0x406   :  { %v6054_v44 = vpop.f32.mrf.mxu0 }
 0x407   :  { %v6055_v2 = vadd.f32 %v6054_v44, %v5289_v57 }
 0x408   :  { %v6056_v37 = vpop.f32.mrf.mxu0 }
 0x409   :  { %v6057_v4 = vadd.f32 %v6056_v37, %v5293_v43 }
 0x40a   :  { %v6058_v45 = vpop.f32.mrf.mxu0 }
 0x40c   :  { %v6059_v49 = vpop.f32.mrf.mxu0 }
 0x454   :  { %v6013_v59 = vpop.f32.mrf.mxu1 }
 0x455   :  { %v6014_v56 = vadd.f32 %v6013_v59, %v5973_v19 }
 0x456   :  { %v6015_v58 = vpop.f32.mrf.mxu1 }
 0x457   :  { %v6016_v5 = vadd.f32 %v6015_v58, %v5975_v63  ;;  %v6102_v1 = vmax.f32 %v6014_v56, 0.0 }
 0x458   :  { %v6017_v23 = vpop.f32.mrf.mxu1 }
 0x459   :  { %v6103_v62 = vmax.f32 %v6016_v5, 0.0  ;;  %v6106_v40 = vpack.c.bf16 %v6102_v1, %v6102_v1 }
 0x45a   :  { %v6018_v0 = vpop.f32.mrf.mxu1 }
 0x45b   :  { %v6107_v36 = vpack.c.bf16 %v6103_v62, %v6103_v62 }
 0x45d   :  { %6405 = vmatprep.mubr.bf16.mxu0 %v6107_v36 }
 0x45e   :  { %6406 = vmatmul.mubr.bf16.vlgmr.msra.gmra.mxu0 %v6106_v40 }
 0x494   :  { %v6095_v8 = vpop.f32.mrf.mxu1 }
 0x495   :  { %v6096_v51 = vadd.f32 %v6095_v8, %v6055_v2 }
 0x496   :  { %v6097_v48 = vpop.f32.mrf.mxu1 }
 0x497   :  { %v6098_v9 = vadd.f32 %v6097_v48, %v6057_v4  ;;  %v6104_v10 = vmax.f32 %v6096_v51, 0.0 }
 0x498   :  { %v6099_v17 = vpop.f32.mrf.mxu1 }
 0x499   :  { %v6105_v11 = vmax.f32 %v6098_v9, 0.0  ;;  %v6108_v25 = vpack.c.bf16 %v6104_v10, %v6104_v10 }
 0x49a   :  { %v6100_v16 = vpop.f32.mrf.mxu1 }
 0x49b   :  { %v6109_v13 = vpack.c.bf16 %v6105_v11, %v6105_v11 }
 0x49d   :  { %6445 = vmatprep.mubr.bf16.mxu1 %v6109_v13 }
 0x49e   :  { %6446 = vmatmul.mubr.bf16.vlgmr.msra.gmra.mxu1 %v6108_v25 }
 0x51e   :  { %v7330_v15 = vpop.f32.mrf.mxu0 }
 0x520   :  { %v7331_v47 = vpop.f32.mrf.mxu0 }
 0x521   :  { %v7332_v3 = vadd.f32 %v7331_v47, %v7330_v15 }
 0x522   :  { %v7333_v12 = vpop.f32.mrf.mxu0 }
 0x523   :  { %v6408_v20 = vadd.f32 %v7332_v3, %v7281_v14 }
 0x524   :  { %v7334_v41 = vpop.f32.mrf.mxu0 }
 0x55e   :  { %v7352_v60 = vpop.f32.mrf.mxu1 }
 0x560   :  { %v7353_v18 = vpop.f32.mrf.mxu1 }
 0x561   :  { %v7354_v21 = vadd.f32 %v7353_v18, %v7352_v60 }
 0x562   :  { %v7355_v26 = vpop.f32.mrf.mxu1 }
 0x563   :  { %v6448_v27 = vadd.f32 %v7354_v21, %v6408_v20 }
 0x564   :  { %v7356_v50 = vpop.f32.mrf.mxu1 }
 0x565   :  { %6453 = vst [vmem:[%s9026_s7] sm:$0xff] %v6448_v27 }
 0x566   :  { %6458 = vsyncpa [#allocation4], 1 }
 0x567   :  { %6459 = vsyncpa [#allocation6], 1 }

</bundles_post_ra>
